<compile_context>
chip_gen: v7x
topology: tpu7x:2x2x1
jax: 0.10.0
libtpu: 0.0.40
codegen_flags: <defaults>
</compile_context>

<pallas_src>
import functools

import jax
import jax.numpy as jnp
from jax import lax
from jax.experimental import pallas as pl
from jax.experimental.pallas import tpu as pltpu

BN_EPS = 1e-5
LANE_HALF = 256            # per-w-phase lane block (padded from 224 -> 256)
LANES = 2 * LANE_HALF      # 512
NC_PAD = 128               # fc output lanes padded to a full lane tile


# ---------------------------------------------------------------------------
# In-kernel helper.
# ---------------------------------------------------------------------------
def _bn_relu(y, rmask, fold, expand, gamma, beta, inv_count):
    """Train-mode BatchNorm + ReLU on an (R, 512) tile.

    rmask  (1, R):   1.0 on rows that are real conv outputs (stat weights).
    fold   (512, C): valid-lane -> channel summation matrix (0 on pad lanes).
    expand (C, 512): channel -> lane broadcast, 0 on pad lanes so they come out
                     exactly 0 after the FMA + ReLU.
    Stats are computed with MXU matmuls (ones-row trick), not axis-0 sums.
    """
    f32 = jnp.float32
    s1 = jnp.dot(rmask, y, preferred_element_type=f32)            # (1, 512)
    s2 = jnp.dot(rmask, y * y, preferred_element_type=f32)        # (1, 512)
    mean = jnp.dot(s1, fold, preferred_element_type=f32) * inv_count
    ex2 = jnp.dot(s2, fold, preferred_element_type=f32) * inv_count
    var = ex2 - mean * mean                                       # biased var
    scale = gamma * lax.rsqrt(var + BN_EPS)
    shift = beta - mean * scale
    scale_l = jnp.dot(scale, expand, preferred_element_type=f32)  # (1, 512)
    shift_l = jnp.dot(shift, expand, preferred_element_type=f32)
    return jnp.maximum(y * scale_l + shift_l, 0.0)


# ---------------------------------------------------------------------------
# The fused per-block kernel (one grid step = one block of B images).
# ---------------------------------------------------------------------------
def _fused_kernel(B, x1_ref, t1_ref, t2_ref,
                  fold1_ref, exp1_ref, g1_ref, be1_ref, rm1_ref,
                  fold2_ref, exp2_ref, g2_ref, be2_ref, rm2_ref,
                  sfc_ref, wfc_ref, bfc_ref, out_ref, x2_ref):
    f32 = jnp.float32
    R1 = 28 * B            # layer-1 rows in this block (one per (b, h))
    H1 = 14 * B            # rows per h-parity half
    R2 = 18 * B - 4        # layer-2 conv rows (18-row per-image grid)

    # ---- layer 1: 5x5 conv as ONE matmul (ky folded into K wrapper-side) ---
    y1 = jnp.dot(x1_ref[0], t1_ref[...], preferred_element_type=f32)  # (R1,512)
    # lane layout: (w % 2) * 256 + (w // 2) * 16 + co ; lanes [224,256)+[480,512) = 0
    y1 = _bn_relu(y1, rm1_ref[...], fold1_ref[...], exp1_ref[...],
                  g1_ref[...], be1_ref[...], 1.0 / float(B * 28 * 28))

    # ---- 2x2/2 max-pool: h-parity row halves + w-phase lane halves ---------
    hmax = jnp.maximum(y1[0:H1, :], y1[H1:R1, :])                   # (H1, 512)
    wmax = jnp.maximum(hmax[:, 0:LANE_HALF], hmax[:, LANE_HALF:LANES])  # (H1,256)

    # ---- scatter pooled rows into per-image 18-row zero-padded slab --------
    x2_ref[...] = jnp.zeros((18 * B, LANE_HALF), x2_ref.dtype)
    wmax = wmax.astype(x2_ref.dtype)
    for b in range(B):                                   # B static slice copies
        x2_ref[b * 18 + 2: b * 18 + 16, :] = wmax[b * 14:(b + 1) * 14, :]

    # ---- layer 2: 5x5 conv as 5 row-shifted block-Toeplitz matmuls ---------
    y2 = jnp.dot(x2_ref[0:R2, :], t2_ref[0], preferred_element_type=f32)
    for ky in range(1, 5):
        y2 = y2 + jnp.dot(x2_ref[ky:ky + R2, :], t2_ref[ky],
                          preferred_element_type=f32)
    # valid rows: q % 18 < 14 ; lane layout (w2 % 2)*256 + (w2 // 2)*32 + co
    y2 = _bn_relu(y2, rm2_ref[...], fold2_ref[...], exp2_ref[...],
                  g2_ref[...], be2_ref[...], 1.0 / float(B * 14 * 14))

    # ---- pool 2 -------------------------------------------------------------
    m2 = jnp.maximum(y2[0:R2 - 1, :], y2[1:R2, :])                  # (R2-1, 512)
    m2 = jnp.maximum(m2[:, 0:LANE_HALF], m2[:, LANE_HALF:LANES])    # (R2-1, 256)

    # ---- fc: constant-selector anchor gather + 7 block matmuls, ONE store --
    p2 = jnp.dot(sfc_ref[...], m2, preferred_element_type=f32)      # (7B, 256)
    p2 = p2.astype(wfc_ref.dtype)
    acc = jnp.dot(p2[0:B, :], wfc_ref[0], preferred_element_type=f32)
    for ph in range(1, 7):
        acc = acc + jnp.dot(p2[ph * B:(ph + 1) * B, :], wfc_ref[ph],
                            preferred_element_type=f32)
    out_ref[0] = (acc + bfc_ref[...]).astype(out_ref.dtype)         # (B, 128)


# ---------------------------------------------------------------------------
# Wrapper-side layout / weight preparation (weight-only; input is just padded
# + ky-folded + parity-reordered, no im2col of intermediate activations).
# ---------------------------------------------------------------------------
def _build_x1(x_nchw, B):
    """(N,1,28,28) -> (N/B, 28B, 140): per output row h, the 5 ky-shifted input
    rows are concatenated along lanes; rows are ordered parity-major within a
    block (even h half, then odd h half) so the h-pool is a static row split."""
    n = x_nchw.shape[0]
    x = x_nchw[:, 0, :, :]
    xp = jnp.pad(x, ((0, 0), (2, 2), (0, 0)))                     # (n, 32, 28)
    xf = jnp.stack([xp[:, ky:ky + 28, :] for ky in range(5)], axis=2)
    xf = xf.reshape(n, 28, 140)                                    # lane = ky*28+j
    nb = n // B
    xf = xf.reshape(nb, B, 14, 2, 140)                             # h = 2*hh+par
    xf = jnp.transpose(xf, (0, 3, 1, 2, 4))                        # (nb,par,B,hh,·)
    return xf.reshape(nb, 28 * B, 140)


def _build_toeplitz(w_oikk, width, k_pad, half_pad):
    """(Cout,Cin,5,5) -> (5, k_pad, 2*half_pad) block-Toeplitz with
      T[ky, j*Cin+ci, (w%2)*half_pad + (w//2)*Cout + co] = w[co,ci,ky,j-w+2]
    (zero outside 0 <= j-w+2 < 5).  Padded K rows / lanes are zero."""
    cout, cin = w_oikk.shape[0], w_oikk.shape[1]
    half = width // 2
    j = jnp.arange(width)
    w = jnp.arange(width)
    kx = j[:, None] - w[None, :] + 2
    valid = (kx >= 0) & (kx < 5)
    wk = jnp.transpose(w_oikk, (2, 3, 1, 0))                       # (5,5,ci,co)
    g = wk[:, jnp.clip(kx, 0, 4)]                                  # (5,W,W,ci,co)
    g = jnp.where(valid[None, :, :, None, None], g, 0.0)
    g = jnp.transpose(g, (0, 1, 3, 2, 4))                          # (ky,j,ci,w,co)
    g = g.reshape(5, width, cin, half, 2, cout)
    g = jnp.transpose(g, (0, 1, 2, 4, 3, 5))                       # (ky,j,ci,ph,w2,co)
    g = g.reshape(5, width * cin, 2, half * cout)
    g = jnp.pad(g, ((0, 0), (0, k_pad - width * cin),
                    (0, 0), (0, half_pad - half * cout)))
    return g.reshape(5, k_pad, 2 * half_pad)


def _fold_expand(c, half_valid):
    """fold (512,c): valid lane -> channel; expand (c,512) = fold.T (0 on pads)."""
    lanes = jnp.arange(LANES)
    ch = (lanes % LANE_HALF) % c
    j = (lanes % LANE_HALF) // c
    valid = j < half_valid
    fold = ((ch[:, None] == jnp.arange(c)[None, :]) & valid[:, None])
    fold = fold.astype(jnp.float32)
    return fold, fold.T


def _build_fc_select(B):
    """(7B, 18B-5) 0/1 selector: row ph*B+b picks pooled-2 anchor m2[b*18+2*ph]."""
    rows = 7 * B
    cols = 18 * B - 5
    ph = jnp.arange(rows) // B
    b = jnp.arange(rows) % B
    tgt = b * 18 + 2 * ph
    return (tgt[:, None] == jnp.arange(cols)[None, :]).astype(jnp.float32)


def _build_fc_weight(wfc, nc_pad):
    """(K,1568) PyTorch fc weight -> (7, 256, nc_pad) matching the kernel's
    pooled layout (rows: ph2; lanes: pw2*32+co); NCHW flatten co*49+ph*7+pw."""
    k = wfc.shape[0]
    w = wfc.reshape(k, 32, 7, 7)                  # (k, co, ph, pw)
    w = jnp.transpose(w, (2, 3, 1, 0))            # (ph, pw, co, k)
    w = w.reshape(7, 224, k)
    return jnp.pad(w, ((0, 0), (0, LANE_HALF - 224), (0, nc_pad - k)))


def _const_spec(a):
    zeros = (0,) * a.ndim
    return pl.BlockSpec(a.shape, lambda i: zeros)


def convnet_forward(x_nchw, params, block_n=None, matmul_dtype=jnp.float32):
    """Fused ConvNet forward.  block_n = images per grid step (default: whole
    batch -> exact PyTorch full-batch train-mode BatchNorm statistics).
    # TODO(synk): when block_n < batch, BatchNorm stats are per block (DDP
    # local-BN style); exact full-batch stats cannot be streamed in one pass.
    """
    n = x_nchw.shape[0]
    nc = params["wfc"].shape[0]
    assert nc <= NC_PAD
    B = n if block_n is None else block_n
    assert n % B == 0, "batch must be divisible by block_n"
    nb = n // B
    mm = matmul_dtype

    x1 = _build_x1(x_nchw, B).astype(mm)                         # (nb, 28B, 140)
    t1 = _build_toeplitz(params["w1"], 28, 28, LANE_HALF)        # (5, 28, 512)
    t1 = t1.reshape(140, LANES).astype(mm)                       # ky folded into K
    t2 = _build_toeplitz(params["w2"], 14, LANE_HALF, LANE_HALF).astype(mm)
    fold1, exp1 = _fold_expand(16, 14)
    fold2, exp2 = _fold_expand(32, 7)
    rm1 = jnp.ones((1, 28 * B), jnp.float32)
    r2 = 18 * B - 4
    rm2 = (jnp.arange(r2) % 18 < 14).astype(jnp.float32).reshape(1, r2)
    sfc = _build_fc_select(B)                                    # (7B, 18B-5)
    wfc = _build_fc_weight(params["wfc"], NC_PAD).astype(mm)     # (7, 256, 128)
    bfc = jnp.pad(params["bfc"], (0, NC_PAD - nc)).reshape(1, NC_PAD)
    g1 = params["g1"].reshape(1, 16)
    be1 = params["beta1"].reshape(1, 16)
    g2 = params["g2"].reshape(1, 32)
    be2 = params["beta2"].reshape(1, 32)
    # Conv biases b1/b2 are not passed: train-mode BatchNorm cancels them.

    consts = (t1, t2, fold1, exp1, g1, be1, rm1,
              fold2, exp2, g2, be2, rm2, sfc, wfc, bfc)

    out = pl.pallas_call(
        functools.partial(_fused_kernel, B),
        out_shape=jax.ShapeDtypeStruct((nb, B, NC_PAD), jnp.float32),
        grid=(nb,),
        in_specs=[pl.BlockSpec((1, 28 * B, 140), lambda i: (i, 0, 0))]
                 + [_const_spec(c) for c in consts],
        out_specs=pl.BlockSpec((1, B, NC_PAD), lambda i: (i, 0, 0)),
        scratch_shapes=[pltpu.VMEM((18 * B, LANE_HALF), mm)],
        compiler_params=pltpu.CompilerParams(
            dimension_semantics=("parallel",),
            vmem_limit_bytes=32 * 1024 * 1024),
    )(x1, *consts)
    return out.reshape(n, NC_PAD)[:, :nc]


# ---------------------------------------------------------------------------
# Pure-JAX reference (mirrors PyTorch train-mode semantics) for correctness.
# ---------------------------------------------------------------------------
def reference_forward(x, params):
    def block(x, w, b, g, beta):
        y = lax.conv_general_dilated(
            x, w, window_strides=(1, 1), padding=((2, 2), (2, 2)),
            dimension_numbers=("NCHW", "OIHW", "NCHW"),
            precision=lax.Precision.HIGHEST)
        y = y + b[None, :, None, None]
        mean = y.mean(axis=(0, 2, 3), keepdims=True)
        var = ((y - mean) ** 2).mean(axis=(0, 2, 3), keepdims=True)
        y = (y - mean) / jnp.sqrt(var + BN_EPS)
        y = y * g[None, :, None, None] + beta[None, :, None, None]
        y = jnp.maximum(y, 0.0)
        n, c, h, w_ = y.shape
        return y.reshape(n, c, h // 2, 2, w_ // 2, 2).max(axis=(3, 5))

    y = block(x, params["w1"], params["b1"], params["g1"], params["beta1"])
    y = block(y, params["w2"], params["b2"], params["g2"], params["beta2"])
    flat = y.reshape(y.shape[0], -1)
    return jnp.dot(flat, params["wfc"].T,
                   precision=lax.Precision.HIGHEST) + params["bfc"]


# ---------------------------------------------------------------------------
if __name__ == "__main__":
    key = jax.random.PRNGKey(0)
    ks = jax.random.split(key, 7)

    params = {
        "w1": jax.random.normal(ks[1], (16, 1, 5, 5), jnp.float32) * 0.1,
        "b1": jax.random.normal(ks[2], (16,), jnp.float32) * 0.1,
        "g1": jnp.ones((16,), jnp.float32),
        "beta1": jnp.zeros((16,), jnp.float32),
        "w2": jax.random.normal(ks[3], (32, 16, 5, 5), jnp.float32) * 0.05,
        "b2": jax.random.normal(ks[4], (32,), jnp.float32) * 0.1,
        "g2": jnp.ones((32,), jnp.float32),
        "beta2": jnp.zeros((32,), jnp.float32),
        "wfc": jax.random.normal(ks[5], (10, 7 * 7 * 32), jnp.float32) * 0.02,
        "bfc": jax.random.normal(ks[6], (10,), jnp.float32) * 0.1,
    }

    # MNIST-shaped input (28x28 required by the fc layer: 7*7*32); small batch.
    x = jax.random.normal(ks[0], (8, 1, 28, 28), jnp.float32)

    # 1) Default path: whole batch in one block -> exact PyTorch BN semantics.
    out = jax.block_until_ready(jax.jit(convnet_forward)(x, params))
    assert out.shape == (8, 10), out.shape
    ref = reference_forward(x, params)
    err = float(jnp.max(jnp.abs(out - ref)))
    assert jnp.allclose(out, ref, rtol=2e-3, atol=2e-3), f"f32 max abs err {err}"

    # 2) Multi-step batch grid (2 blocks of 4); BN stats are per block
    #    (DDP local-BN style), so the reference is applied per block.
    fwd_blk = jax.jit(functools.partial(convnet_forward, block_n=4))
    out_blk = jax.block_until_ready(fwd_blk(x, params))
    ref_blk = jnp.concatenate([reference_forward(x[0:4], params),
                               reference_forward(x[4:8], params)], axis=0)
    err_blk = float(jnp.max(jnp.abs(out_blk - ref_blk)))
    assert jnp.allclose(out_blk, ref_blk, rtol=2e-3, atol=2e-3), \
        f"block-grid max abs err {err_blk}"

    # 3) bf16 MXU-operand path (v6e/v7x optimization); f32 accumulate/elementwise.
    fwd_bf = jax.jit(functools.partial(convnet_forward,
                                       matmul_dtype=jnp.bfloat16))
    out_bf = jax.block_until_ready(fwd_bf(x, params))
    err_bf = float(jnp.max(jnp.abs(out_bf - ref)))
    assert jnp.allclose(out_bf, ref, rtol=5e-2, atol=5e-2), \
        f"bf16 max abs err {err_bf}"

    print("KERNEL_OK")
</pallas_src>

<mosaic_0001>
module attributes {stable_mosaic.version = 11 : i64} {
  func.func @_fused_kernel(%arg0: i32, %arg1: memref<1x224x140xf32, #tpu.memory_space<vmem>>, %arg2: memref<140x512xf32, #tpu.memory_space<vmem>>, %arg3: memref<5x256x512xf32, #tpu.memory_space<vmem>>, %arg4: memref<512x16xf32, #tpu.memory_space<vmem>>, %arg5: memref<16x512xf32, #tpu.memory_space<vmem>>, %arg6: memref<1x16xf32, #tpu.memory_space<vmem>>, %arg7: memref<1x16xf32, #tpu.memory_space<vmem>>, %arg8: memref<1x224xf32, #tpu.memory_space<vmem>>, %arg9: memref<512x32xf32, #tpu.memory_space<vmem>>, %arg10: memref<32x512xf32, #tpu.memory_space<vmem>>, %arg11: memref<1x32xf32, #tpu.memory_space<vmem>>, %arg12: memref<1x32xf32, #tpu.memory_space<vmem>>, %arg13: memref<1x140xf32, #tpu.memory_space<vmem>>, %arg14: memref<56x139xf32, #tpu.memory_space<vmem>>, %arg15: memref<7x256x128xf32, #tpu.memory_space<vmem>>, %arg16: memref<1x128xf32, #tpu.memory_space<vmem>>, %arg17: memref<1x8x128xf32, #tpu.memory_space<vmem>>, %arg18: memref<144x256xf32, #tpu.memory_space<vmem>>) attributes {dimension_semantics = [#tpu.dimension_semantics<parallel>], iteration_bounds = array<i64: 1>, scalar_prefetch = 0 : i64, scratch_operands = 1 : i64, tpu.core_type = #tpu.core_type<tc>, window_params = [{transform_indices = @transform_0, window_bounds = array<i64: 1, 224, 140>}, {pipeline_mode = #tpu.pipeline_mode<synchronous>, transform_indices = @transform_1, window_bounds = array<i64: 140, 512>}, {pipeline_mode = #tpu.pipeline_mode<synchronous>, transform_indices = @transform_2, window_bounds = array<i64: 5, 256, 512>}, {pipeline_mode = #tpu.pipeline_mode<synchronous>, transform_indices = @transform_3, window_bounds = array<i64: 512, 16>}, {pipeline_mode = #tpu.pipeline_mode<synchronous>, transform_indices = @transform_4, window_bounds = array<i64: 16, 512>}, {pipeline_mode = #tpu.pipeline_mode<synchronous>, transform_indices = @transform_5, window_bounds = array<i64: 1, 16>}, {pipeline_mode = #tpu.pipeline_mode<synchronous>, transform_indices = @transform_6, window_bounds = array<i64: 1, 16>}, {pipeline_mode = #tpu.pipeline_mode<synchronous>, transform_indices = @transform_7, window_bounds = array<i64: 1, 224>}, {pipeline_mode = #tpu.pipeline_mode<synchronous>, transform_indices = @transform_8, window_bounds = array<i64: 512, 32>}, {pipeline_mode = #tpu.pipeline_mode<synchronous>, transform_indices = @transform_9, window_bounds = array<i64: 32, 512>}, {pipeline_mode = #tpu.pipeline_mode<synchronous>, transform_indices = @transform_10, window_bounds = array<i64: 1, 32>}, {pipeline_mode = #tpu.pipeline_mode<synchronous>, transform_indices = @transform_11, window_bounds = array<i64: 1, 32>}, {pipeline_mode = #tpu.pipeline_mode<synchronous>, transform_indices = @transform_12, window_bounds = array<i64: 1, 140>}, {pipeline_mode = #tpu.pipeline_mode<synchronous>, transform_indices = @transform_13, window_bounds = array<i64: 56, 139>}, {pipeline_mode = #tpu.pipeline_mode<synchronous>, transform_indices = @transform_14, window_bounds = array<i64: 7, 256, 128>}, {pipeline_mode = #tpu.pipeline_mode<synchronous>, transform_indices = @transform_15, window_bounds = array<i64: 1, 128>}, {transform_indices = @transform_16, window_bounds = array<i64: 1, 8, 128>}]} {
    %c0 = arith.constant 0 : index
    %c0_0 = arith.constant 0 : index
    %c0_1 = arith.constant 0 : index
    %0 = vector.load %arg1[%c0, %c0_0, %c0_1] : memref<1x224x140xf32, #tpu.memory_space<vmem>>, vector<1x224x140xf32>
    %1 = vector.shape_cast %0 : vector<1x224x140xf32> to vector<224x140xf32>
    %c0_2 = arith.constant 0 : index
    %c0_3 = arith.constant 0 : index
    %2 = vector.load %arg2[%c0_2, %c0_3] : memref<140x512xf32, #tpu.memory_space<vmem>>, vector<140x512xf32>
    %cst = arith.constant dense<0.000000e+00> : vector<224x512xf32>
    %3 = tpu.matmul %1, %2, %cst {dimension_numbers = #tpu.dot_dimension_numbers<[1], [0], [0], [1], [0, 0, 1, 1], [], []>} : vector<224x140xf32>, vector<140x512xf32>, vector<224x512xf32> -> vector<224x512xf32>
    %c0_4 = arith.constant 0 : index
    %c0_5 = arith.constant 0 : index
    %4 = vector.load %arg8[%c0_4, %c0_5] : memref<1x224xf32, #tpu.memory_space<vmem>>, vector<1x224xf32>
    %c0_6 = arith.constant 0 : index
    %c0_7 = arith.constant 0 : index
    %5 = vector.load %arg4[%c0_6, %c0_7] : memref<512x16xf32, #tpu.memory_space<vmem>>, vector<512x16xf32>
    %c0_8 = arith.constant 0 : index
    %c0_9 = arith.constant 0 : index
    %6 = vector.load %arg5[%c0_8, %c0_9] : memref<16x512xf32, #tpu.memory_space<vmem>>, vector<16x512xf32>
    %c0_10 = arith.constant 0 : index
    %c0_11 = arith.constant 0 : index
    %7 = vector.load %arg6[%c0_10, %c0_11] : memref<1x16xf32, #tpu.memory_space<vmem>>, vector<1x16xf32>
    %c0_12 = arith.constant 0 : index
    %c0_13 = arith.constant 0 : index
    %8 = vector.load %arg7[%c0_12, %c0_13] : memref<1x16xf32, #tpu.memory_space<vmem>>, vector<1x16xf32>
    %cst_14 = arith.constant dense<0.000000e+00> : vector<1x512xf32>
    %9 = tpu.matmul %4, %3, %cst_14 {dimension_numbers = #tpu.dot_dimension_numbers<[1], [0], [0], [1], [0, 0, 1, 1], [], []>} : vector<1x224xf32>, vector<224x512xf32>, vector<1x512xf32> -> vector<1x512xf32>
    %10 = arith.mulf %3, %3 : vector<224x512xf32>
    %cst_15 = arith.constant dense<0.000000e+00> : vector<1x512xf32>
    %11 = tpu.matmul %4, %10, %cst_15 {dimension_numbers = #tpu.dot_dimension_numbers<[1], [0], [0], [1], [0, 0, 1, 1], [], []>} : vector<1x224xf32>, vector<224x512xf32>, vector<1x512xf32> -> vector<1x512xf32>
    %cst_16 = arith.constant dense<0.000000e+00> : vector<1x16xf32>
    %12 = tpu.matmul %9, %5, %cst_16 {dimension_numbers = #tpu.dot_dimension_numbers<[1], [0], [0], [1], [0, 0, 1, 1], [], []>} : vector<1x512xf32>, vector<512x16xf32>, vector<1x16xf32> -> vector<1x16xf32>
    %cst_17 = arith.constant 1.59438772E-4 : f32
    %13 = vector.broadcast %cst_17 : f32 to vector<1x16xf32>
    %14 = arith.mulf %12, %13 : vector<1x16xf32>
    %cst_18 = arith.constant dense<0.000000e+00> : vector<1x16xf32>
    %15 = tpu.matmul %11, %5, %cst_18 {dimension_numbers = #tpu.dot_dimension_numbers<[1], [0], [0], [1], [0, 0, 1, 1], [], []>} : vector<1x512xf32>, vector<512x16xf32>, vector<1x16xf32> -> vector<1x16xf32>
    %cst_19 = arith.constant 1.59438772E-4 : f32
    %16 = vector.broadcast %cst_19 : f32 to vector<1x16xf32>
    %17 = arith.mulf %15, %16 : vector<1x16xf32>
    %18 = arith.mulf %14, %14 : vector<1x16xf32>
    %19 = arith.subf %17, %18 : vector<1x16xf32>
    %cst_20 = arith.constant 9.99999974E-6 : f32
    %20 = vector.broadcast %cst_20 : f32 to vector<1x16xf32>
    %21 = arith.addf %19, %20 : vector<1x16xf32>
    %22 = math.rsqrt %21 : vector<1x16xf32>
    %23 = arith.mulf %7, %22 : vector<1x16xf32>
    %24 = arith.mulf %14, %23 : vector<1x16xf32>
    %25 = arith.subf %8, %24 : vector<1x16xf32>
    %cst_21 = arith.constant dense<0.000000e+00> : vector<1x512xf32>
    %26 = tpu.matmul %23, %6, %cst_21 {dimension_numbers = #tpu.dot_dimension_numbers<[1], [0], [0], [1], [0, 0, 1, 1], [], []>} : vector<1x16xf32>, vector<16x512xf32>, vector<1x512xf32> -> vector<1x512xf32>
    %cst_22 = arith.constant dense<0.000000e+00> : vector<1x512xf32>
    %27 = tpu.matmul %25, %6, %cst_22 {dimension_numbers = #tpu.dot_dimension_numbers<[1], [0], [0], [1], [0, 0, 1, 1], [], []>} : vector<1x16xf32>, vector<16x512xf32>, vector<1x512xf32> -> vector<1x512xf32>
    %28 = vector.broadcast %26 : vector<1x512xf32> to vector<224x512xf32>
    %29 = arith.mulf %3, %28 : vector<224x512xf32>
    %30 = vector.broadcast %27 : vector<1x512xf32> to vector<224x512xf32>
    %31 = arith.addf %29, %30 : vector<224x512xf32>
    %cst_23 = arith.constant 0.000000e+00 : f32
    %32 = vector.broadcast %cst_23 : f32 to vector<224x512xf32>
    %33 = arith.maximumf %31, %32 : vector<224x512xf32>
    %34 = vector.extract_strided_slice %33 {offsets = [0, 0], sizes = [112, 512], strides = [1, 1]} : vector<224x512xf32> to vector<112x512xf32>
    %35 = vector.extract_strided_slice %33 {offsets = [112, 0], sizes = [112, 512], strides = [1, 1]} : vector<224x512xf32> to vector<112x512xf32>
    %36 = arith.maximumf %34, %35 : vector<112x512xf32>
    %37 = vector.extract_strided_slice %36 {offsets = [0, 0], sizes = [112, 256], strides = [1, 1]} : vector<112x512xf32> to vector<112x256xf32>
    %38 = vector.extract_strided_slice %36 {offsets = [0, 256], sizes = [112, 256], strides = [1, 1]} : vector<112x512xf32> to vector<112x256xf32>
    %39 = arith.maximumf %37, %38 : vector<112x256xf32>
    %cst_24 = arith.constant 0.000000e+00 : f32
    %40 = vector.broadcast %cst_24 : f32 to vector<144x256xf32>
    %c0_25 = arith.constant 0 : index
    %c0_26 = arith.constant 0 : index
    %41 = vector.load %arg18[%c0_25, %c0_26] : memref<144x256xf32, #tpu.memory_space<vmem>>, vector<144x256xf32>
    tpu.vector_store %arg18[%c0_25, %c0_26], %40 {strides = array<i32>} : memref<144x256xf32, #tpu.memory_space<vmem>>, vector<144x256xf32>,
    %42 = vector.extract_strided_slice %39 {offsets = [0, 0], sizes = [14, 256], strides = [1, 1]} : vector<112x256xf32> to vector<14x256xf32>
    %c2 = arith.constant 2 : index
    %c0_27 = arith.constant 0 : index
    %43 = vector.load %arg18[%c2, %c0_27] : memref<144x256xf32, #tpu.memory_space<vmem>>, vector<14x256xf32>
    tpu.vector_store %arg18[%c2, %c0_27], %42 {strides = array<i32>} : memref<144x256xf32, #tpu.memory_space<vmem>>, vector<14x256xf32>,
    %44 = vector.extract_strided_slice %39 {offsets = [14, 0], sizes = [14, 256], strides = [1, 1]} : vector<112x256xf32> to vector<14x256xf32>
    %c20 = arith.constant 20 : index
    %c0_28 = arith.constant 0 : index
    %45 = vector.load %arg18[%c20, %c0_28] : memref<144x256xf32, #tpu.memory_space<vmem>>, vector<14x256xf32>
    tpu.vector_store %arg18[%c20, %c0_28], %44 {strides = array<i32>} : memref<144x256xf32, #tpu.memory_space<vmem>>, vector<14x256xf32>,
    %46 = vector.extract_strided_slice %39 {offsets = [28, 0], sizes = [14, 256], strides = [1, 1]} : vector<112x256xf32> to vector<14x256xf32>
    %c38 = arith.constant 38 : index
    %c0_29 = arith.constant 0 : index
    %47 = vector.load %arg18[%c38, %c0_29] : memref<144x256xf32, #tpu.memory_space<vmem>>, vector<14x256xf32>
    tpu.vector_store %arg18[%c38, %c0_29], %46 {strides = array<i32>} : memref<144x256xf32, #tpu.memory_space<vmem>>, vector<14x256xf32>,
    %48 = vector.extract_strided_slice %39 {offsets = [42, 0], sizes = [14, 256], strides = [1, 1]} : vector<112x256xf32> to vector<14x256xf32>
    %c56 = arith.constant 56 : index
    %c0_30 = arith.constant 0 : index
    %49 = vector.load %arg18[%c56, %c0_30] : memref<144x256xf32, #tpu.memory_space<vmem>>, vector<14x256xf32>
    tpu.vector_store %arg18[%c56, %c0_30], %48 {strides = array<i32>} : memref<144x256xf32, #tpu.memory_space<vmem>>, vector<14x256xf32>,
    %50 = vector.extract_strided_slice %39 {offsets = [56, 0], sizes = [14, 256], strides = [1, 1]} : vector<112x256xf32> to vector<14x256xf32>
    %c74 = arith.constant 74 : index
    %c0_31 = arith.constant 0 : index
    %51 = vector.load %arg18[%c74, %c0_31] : memref<144x256xf32, #tpu.memory_space<vmem>>, vector<14x256xf32>
    tpu.vector_store %arg18[%c74, %c0_31], %50 {strides = array<i32>} : memref<144x256xf32, #tpu.memory_space<vmem>>, vector<14x256xf32>,
    %52 = vector.extract_strided_slice %39 {offsets = [70, 0], sizes = [14, 256], strides = [1, 1]} : vector<112x256xf32> to vector<14x256xf32>
    %c92 = arith.constant 92 : index
    %c0_32 = arith.constant 0 : index
    %53 = vector.load %arg18[%c92, %c0_32] : memref<144x256xf32, #tpu.memory_space<vmem>>, vector<14x256xf32>
    tpu.vector_store %arg18[%c92, %c0_32], %52 {strides = array<i32>} : memref<144x256xf32, #tpu.memory_space<vmem>>, vector<14x256xf32>,
    %54 = vector.extract_strided_slice %39 {offsets = [84, 0], sizes = [14, 256], strides = [1, 1]} : vector<112x256xf32> to vector<14x256xf32>
    %c110 = arith.constant 110 : index
    %c0_33 = arith.constant 0 : index
    %55 = vector.load %arg18[%c110, %c0_33] : memref<144x256xf32, #tpu.memory_space<vmem>>, vector<14x256xf32>
    tpu.vector_store %arg18[%c110, %c0_33], %54 {strides = array<i32>} : memref<144x256xf32, #tpu.memory_space<vmem>>, vector<14x256xf32>,
    %56 = vector.extract_strided_slice %39 {offsets = [98, 0], sizes = [14, 256], strides = [1, 1]} : vector<112x256xf32> to vector<14x256xf32>
    %c128 = arith.constant 128 : index
    %c0_34 = arith.constant 0 : index
    %57 = vector.load %arg18[%c128, %c0_34] : memref<144x256xf32, #tpu.memory_space<vmem>>, vector<14x256xf32>
    tpu.vector_store %arg18[%c128, %c0_34], %56 {strides = array<i32>} : memref<144x256xf32, #tpu.memory_space<vmem>>, vector<14x256xf32>,
    %c0_35 = arith.constant 0 : index
    %c0_36 = arith.constant 0 : index
    %58 = vector.load %arg18[%c0_35, %c0_36] : memref<144x256xf32, #tpu.memory_space<vmem>>, vector<140x256xf32>
    %c0_37 = arith.constant 0 : index
    %c0_38 = arith.constant 0 : index
    %c0_39 = arith.constant 0 : index
    %59 = vector.load %arg3[%c0_37, %c0_38, %c0_39] : memref<5x256x512xf32, #tpu.memory_space<vmem>>, vector<1x256x512xf32>
    %60 = vector.shape_cast %59 : vector<1x256x512xf32> to vector<256x512xf32>
    %cst_40 = arith.constant dense<0.000000e+00> : vector<140x512xf32>
    %61 = tpu.matmul %58, %60, %cst_40 {dimension_numbers = #tpu.dot_dimension_numbers<[1], [0], [0], [1], [0, 0, 1, 1], [], []>} : vector<140x256xf32>, vector<256x512xf32>, vector<140x512xf32> -> vector<140x512xf32>
    %c1 = arith.constant 1 : index
    %c0_41 = arith.constant 0 : index
    %62 = vector.load %arg18[%c1, %c0_41] : memref<144x256xf32, #tpu.memory_space<vmem>>, vector<140x256xf32>
    %c1_42 = arith.constant 1 : index
    %c0_43 = arith.constant 0 : index
    %c0_44 = arith.constant 0 : index
    %63 = vector.load %arg3[%c1_42, %c0_43, %c0_44] : memref<5x256x512xf32, #tpu.memory_space<vmem>>, vector<1x256x512xf32>
    %64 = vector.shape_cast %63 : vector<1x256x512xf32> to vector<256x512xf32>
    %cst_45 = arith.constant dense<0.000000e+00> : vector<140x512xf32>
    %65 = tpu.matmul %62, %64, %cst_45 {dimension_numbers = #tpu.dot_dimension_numbers<[1], [0], [0], [1], [0, 0, 1, 1], [], []>} : vector<140x256xf32>, vector<256x512xf32>, vector<140x512xf32> -> vector<140x512xf32>
    %66 = arith.addf %61, %65 : vector<140x512xf32>
    %c2_46 = arith.constant 2 : index
    %c0_47 = arith.constant 0 : index
    %67 = vector.load %arg18[%c2_46, %c0_47] : memref<144x256xf32, #tpu.memory_space<vmem>>, vector<140x256xf32>
    %c2_48 = arith.constant 2 : index
    %c0_49 = arith.constant 0 : index
    %c0_50 = arith.constant 0 : index
    %68 = vector.load %arg3[%c2_48, %c0_49, %c0_50] : memref<5x256x512xf32, #tpu.memory_space<vmem>>, vector<1x256x512xf32>
    %69 = vector.shape_cast %68 : vector<1x256x512xf32> to vector<256x512xf32>
    %cst_51 = arith.constant dense<0.000000e+00> : vector<140x512xf32>
    %70 = tpu.matmul %67, %69, %cst_51 {dimension_numbers = #tpu.dot_dimension_numbers<[1], [0], [0], [1], [0, 0, 1, 1], [], []>} : vector<140x256xf32>, vector<256x512xf32>, vector<140x512xf32> -> vector<140x512xf32>
    %71 = arith.addf %66, %70 : vector<140x512xf32>
    %c3 = arith.constant 3 : index
    %c0_52 = arith.constant 0 : index
    %72 = vector.load %arg18[%c3, %c0_52] : memref<144x256xf32, #tpu.memory_space<vmem>>, vector<140x256xf32>
    %c3_53 = arith.constant 3 : index
    %c0_54 = arith.constant 0 : index
    %c0_55 = arith.constant 0 : index
    %73 = vector.load %arg3[%c3_53, %c0_54, %c0_55] : memref<5x256x512xf32, #tpu.memory_space<vmem>>, vector<1x256x512xf32>
    %74 = vector.shape_cast %73 : vector<1x256x512xf32> to vector<256x512xf32>
    %cst_56 = arith.constant dense<0.000000e+00> : vector<140x512xf32>
    %75 = tpu.matmul %72, %74, %cst_56 {dimension_numbers = #tpu.dot_dimension_numbers<[1], [0], [0], [1], [0, 0, 1, 1], [], []>} : vector<140x256xf32>, vector<256x512xf32>, vector<140x512xf32> -> vector<140x512xf32>
    %76 = arith.addf %71, %75 : vector<140x512xf32>
    %c4 = arith.constant 4 : index
    %c0_57 = arith.constant 0 : index
    %77 = vector.load %arg18[%c4, %c0_57] : memref<144x256xf32, #tpu.memory_space<vmem>>, vector<140x256xf32>
    %c4_58 = arith.constant 4 : index
    %c0_59 = arith.constant 0 : index
    %c0_60 = arith.constant 0 : index
    %78 = vector.load %arg3[%c4_58, %c0_59, %c0_60] : memref<5x256x512xf32, #tpu.memory_space<vmem>>, vector<1x256x512xf32>
    %79 = vector.shape_cast %78 : vector<1x256x512xf32> to vector<256x512xf32>
    %cst_61 = arith.constant dense<0.000000e+00> : vector<140x512xf32>
    %80 = tpu.matmul %77, %79, %cst_61 {dimension_numbers = #tpu.dot_dimension_numbers<[1], [0], [0], [1], [0, 0, 1, 1], [], []>} : vector<140x256xf32>, vector<256x512xf32>, vector<140x512xf32> -> vector<140x512xf32>
    %81 = arith.addf %76, %80 : vector<140x512xf32>
    %c0_62 = arith.constant 0 : index
    %c0_63 = arith.constant 0 : index
    %82 = vector.load %arg13[%c0_62, %c0_63] : memref<1x140xf32, #tpu.memory_space<vmem>>, vector<1x140xf32>
    %c0_64 = arith.constant 0 : index
    %c0_65 = arith.constant 0 : index
    %83 = vector.load %arg9[%c0_64, %c0_65] : memref<512x32xf32, #tpu.memory_space<vmem>>, vector<512x32xf32>
    %c0_66 = arith.constant 0 : index
    %c0_67 = arith.constant 0 : index
    %84 = vector.load %arg10[%c0_66, %c0_67] : memref<32x512xf32, #tpu.memory_space<vmem>>, vector<32x512xf32>
    %c0_68 = arith.constant 0 : index
    %c0_69 = arith.constant 0 : index
    %85 = vector.load %arg11[%c0_68, %c0_69] : memref<1x32xf32, #tpu.memory_space<vmem>>, vector<1x32xf32>
    %c0_70 = arith.constant 0 : index
    %c0_71 = arith.constant 0 : index
    %86 = vector.load %arg12[%c0_70, %c0_71] : memref<1x32xf32, #tpu.memory_space<vmem>>, vector<1x32xf32>
    %cst_72 = arith.constant dense<0.000000e+00> : vector<1x512xf32>
    %87 = tpu.matmul %82, %81, %cst_72 {dimension_numbers = #tpu.dot_dimension_numbers<[1], [0], [0], [1], [0, 0, 1, 1], [], []>} : vector<1x140xf32>, vector<140x512xf32>, vector<1x512xf32> -> vector<1x512xf32>
    %88 = arith.mulf %81, %81 : vector<140x512xf32>
    %cst_73 = arith.constant dense<0.000000e+00> : vector<1x512xf32>
    %89 = tpu.matmul %82, %88, %cst_73 {dimension_numbers = #tpu.dot_dimension_numbers<[1], [0], [0], [1], [0, 0, 1, 1], [], []>} : vector<1x140xf32>, vector<140x512xf32>, vector<1x512xf32> -> vector<1x512xf32>
    %cst_74 = arith.constant dense<0.000000e+00> : vector<1x32xf32>
    %90 = tpu.matmul %87, %83, %cst_74 {dimension_numbers = #tpu.dot_dimension_numbers<[1], [0], [0], [1], [0, 0, 1, 1], [], []>} : vector<1x512xf32>, vector<512x32xf32>, vector<1x32xf32> -> vector<1x32xf32>
    %cst_75 = arith.constant 6.37755089E-4 : f32
    %91 = vector.broadcast %cst_75 : f32 to vector<1x32xf32>
    %92 = arith.mulf %90, %91 : vector<1x32xf32>
    %cst_76 = arith.constant dense<0.000000e+00> : vector<1x32xf32>
    %93 = tpu.matmul %89, %83, %cst_76 {dimension_numbers = #tpu.dot_dimension_numbers<[1], [0], [0], [1], [0, 0, 1, 1], [], []>} : vector<1x512xf32>, vector<512x32xf32>, vector<1x32xf32> -> vector<1x32xf32>
    %cst_77 = arith.constant 6.37755089E-4 : f32
    %94 = vector.broadcast %cst_77 : f32 to vector<1x32xf32>
    %95 = arith.mulf %93, %94 : vector<1x32xf32>
    %96 = arith.mulf %92, %92 : vector<1x32xf32>
    %97 = arith.subf %95, %96 : vector<1x32xf32>
    %cst_78 = arith.constant 9.99999974E-6 : f32
    %98 = vector.broadcast %cst_78 : f32 to vector<1x32xf32>
    %99 = arith.addf %97, %98 : vector<1x32xf32>
    %100 = math.rsqrt %99 : vector<1x32xf32>
    %101 = arith.mulf %85, %100 : vector<1x32xf32>
    %102 = arith.mulf %92, %101 : vector<1x32xf32>
    %103 = arith.subf %86, %102 : vector<1x32xf32>
    %cst_79 = arith.constant dense<0.000000e+00> : vector<1x512xf32>
    %104 = tpu.matmul %101, %84, %cst_79 {dimension_numbers = #tpu.dot_dimension_numbers<[1], [0], [0], [1], [0, 0, 1, 1], [], []>} : vector<1x32xf32>, vector<32x512xf32>, vector<1x512xf32> -> vector<1x512xf32>
    %cst_80 = arith.constant dense<0.000000e+00> : vector<1x512xf32>
    %105 = tpu.matmul %103, %84, %cst_80 {dimension_numbers = #tpu.dot_dimension_numbers<[1], [0], [0], [1], [0, 0, 1, 1], [], []>} : vector<1x32xf32>, vector<32x512xf32>, vector<1x512xf32> -> vector<1x512xf32>
    %106 = vector.broadcast %104 : vector<1x512xf32> to vector<140x512xf32>
    %107 = arith.mulf %81, %106 : vector<140x512xf32>
    %108 = vector.broadcast %105 : vector<1x512xf32> to vector<140x512xf32>
    %109 = arith.addf %107, %108 : vector<140x512xf32>
    %cst_81 = arith.constant 0.000000e+00 : f32
    %110 = vector.broadcast %cst_81 : f32 to vector<140x512xf32>
    %111 = arith.maximumf %109, %110 : vector<140x512xf32>
    %112 = vector.extract_strided_slice %111 {offsets = [0, 0], sizes = [139, 512], strides = [1, 1]} : vector<140x512xf32> to vector<139x512xf32>
    %113 = vector.extract_strided_slice %111 {offsets = [1, 0], sizes = [139, 512], strides = [1, 1]} : vector<140x512xf32> to vector<139x512xf32>
    %114 = arith.maximumf %112, %113 : vector<139x512xf32>
    %115 = vector.extract_strided_slice %114 {offsets = [0, 0], sizes = [139, 256], strides = [1, 1]} : vector<139x512xf32> to vector<139x256xf32>
    %116 = vector.extract_strided_slice %114 {offsets = [0, 256], sizes = [139, 256], strides = [1, 1]} : vector<139x512xf32> to vector<139x256xf32>
    %117 = arith.maximumf %115, %116 : vector<139x256xf32>
    %c0_82 = arith.constant 0 : index
    %c0_83 = arith.constant 0 : index
    %118 = vector.load %arg14[%c0_82, %c0_83] : memref<56x139xf32, #tpu.memory_space<vmem>>, vector<56x139xf32>
    %cst_84 = arith.constant dense<0.000000e+00> : vector<56x256xf32>
    %119 = tpu.matmul %118, %117, %cst_84 {dimension_numbers = #tpu.dot_dimension_numbers<[1], [0], [0], [1], [0, 0, 1, 1], [], []>} : vector<56x139xf32>, vector<139x256xf32>, vector<56x256xf32> -> vector<56x256xf32>
    %120 = vector.extract_strided_slice %119 {offsets = [0, 0], sizes = [8, 256], strides = [1, 1]} : vector<56x256xf32> to vector<8x256xf32>
    %c0_85 = arith.constant 0 : index
    %c0_86 = arith.constant 0 : index
    %c0_87 = arith.constant 0 : index
    %121 = vector.load %arg15[%c0_85, %c0_86, %c0_87] : memref<7x256x128xf32, #tpu.memory_space<vmem>>, vector<1x256x128xf32>
    %122 = vector.shape_cast %121 : vector<1x256x128xf32> to vector<256x128xf32>
    %cst_88 = arith.constant dense<0.000000e+00> : vector<8x128xf32>
    %123 = tpu.matmul %120, %122, %cst_88 {dimension_numbers = #tpu.dot_dimension_numbers<[1], [0], [0], [1], [0, 0, 1, 1], [], []>} : vector<8x256xf32>, vector<256x128xf32>, vector<8x128xf32> -> vector<8x128xf32>
    %124 = vector.extract_strided_slice %119 {offsets = [8, 0], sizes = [8, 256], strides = [1, 1]} : vector<56x256xf32> to vector<8x256xf32>
    %c1_89 = arith.constant 1 : index
    %c0_90 = arith.constant 0 : index
    %c0_91 = arith.constant 0 : index
    %125 = vector.load %arg15[%c1_89, %c0_90, %c0_91] : memref<7x256x128xf32, #tpu.memory_space<vmem>>, vector<1x256x128xf32>
    %126 = vector.shape_cast %125 : vector<1x256x128xf32> to vector<256x128xf32>
    %cst_92 = arith.constant dense<0.000000e+00> : vector<8x128xf32>
    %127 = tpu.matmul %124, %126, %cst_92 {dimension_numbers = #tpu.dot_dimension_numbers<[1], [0], [0], [1], [0, 0, 1, 1], [], []>} : vector<8x256xf32>, vector<256x128xf32>, vector<8x128xf32> -> vector<8x128xf32>
    %128 = arith.addf %123, %127 : vector<8x128xf32>
    %129 = vector.extract_strided_slice %119 {offsets = [16, 0], sizes = [8, 256], strides = [1, 1]} : vector<56x256xf32> to vector<8x256xf32>
    %c2_93 = arith.constant 2 : index
    %c0_94 = arith.constant 0 : index
    %c0_95 = arith.constant 0 : index
    %130 = vector.load %arg15[%c2_93, %c0_94, %c0_95] : memref<7x256x128xf32, #tpu.memory_space<vmem>>, vector<1x256x128xf32>
    %131 = vector.shape_cast %130 : vector<1x256x128xf32> to vector<256x128xf32>
    %cst_96 = arith.constant dense<0.000000e+00> : vector<8x128xf32>
    %132 = tpu.matmul %129, %131, %cst_96 {dimension_numbers = #tpu.dot_dimension_numbers<[1], [0], [0], [1], [0, 0, 1, 1], [], []>} : vector<8x256xf32>, vector<256x128xf32>, vector<8x128xf32> -> vector<8x128xf32>
    %133 = arith.addf %128, %132 : vector<8x128xf32>
    %134 = vector.extract_strided_slice %119 {offsets = [24, 0], sizes = [8, 256], strides = [1, 1]} : vector<56x256xf32> to vector<8x256xf32>
    %c3_97 = arith.constant 3 : index
    %c0_98 = arith.constant 0 : index
    %c0_99 = arith.constant 0 : index
    %135 = vector.load %arg15[%c3_97, %c0_98, %c0_99] : memref<7x256x128xf32, #tpu.memory_space<vmem>>, vector<1x256x128xf32>
    %136 = vector.shape_cast %135 : vector<1x256x128xf32> to vector<256x128xf32>
    %cst_100 = arith.constant dense<0.000000e+00> : vector<8x128xf32>
    %137 = tpu.matmul %134, %136, %cst_100 {dimension_numbers = #tpu.dot_dimension_numbers<[1], [0], [0], [1], [0, 0, 1, 1], [], []>} : vector<8x256xf32>, vector<256x128xf32>, vector<8x128xf32> -> vector<8x128xf32>
    %138 = arith.addf %133, %137 : vector<8x128xf32>
    %139 = vector.extract_strided_slice %119 {offsets = [32, 0], sizes = [8, 256], strides = [1, 1]} : vector<56x256xf32> to vector<8x256xf32>
    %c4_101 = arith.constant 4 : index
    %c0_102 = arith.constant 0 : index
    %c0_103 = arith.constant 0 : index
    %140 = vector.load %arg15[%c4_101, %c0_102, %c0_103] : memref<7x256x128xf32, #tpu.memory_space<vmem>>, vector<1x256x128xf32>
    %141 = vector.shape_cast %140 : vector<1x256x128xf32> to vector<256x128xf32>
    %cst_104 = arith.constant dense<0.000000e+00> : vector<8x128xf32>
    %142 = tpu.matmul %139, %141, %cst_104 {dimension_numbers = #tpu.dot_dimension_numbers<[1], [0], [0], [1], [0, 0, 1, 1], [], []>} : vector<8x256xf32>, vector<256x128xf32>, vector<8x128xf32> -> vector<8x128xf32>
    %143 = arith.addf %138, %142 : vector<8x128xf32>
    %144 = vector.extract_strided_slice %119 {offsets = [40, 0], sizes = [8, 256], strides = [1, 1]} : vector<56x256xf32> to vector<8x256xf32>
    %c5 = arith.constant 5 : index
    %c0_105 = arith.constant 0 : index
    %c0_106 = arith.constant 0 : index
    %145 = vector.load %arg15[%c5, %c0_105, %c0_106] : memref<7x256x128xf32, #tpu.memory_space<vmem>>, vector<1x256x128xf32>
    %146 = vector.shape_cast %145 : vector<1x256x128xf32> to vector<256x128xf32>
    %cst_107 = arith.constant dense<0.000000e+00> : vector<8x128xf32>
    %147 = tpu.matmul %144, %146, %cst_107 {dimension_numbers = #tpu.dot_dimension_numbers<[1], [0], [0], [1], [0, 0, 1, 1], [], []>} : vector<8x256xf32>, vector<256x128xf32>, vector<8x128xf32> -> vector<8x128xf32>
    %148 = arith.addf %143, %147 : vector<8x128xf32>
    %149 = vector.extract_strided_slice %119 {offsets = [48, 0], sizes = [8, 256], strides = [1, 1]} : vector<56x256xf32> to vector<8x256xf32>
    %c6 = arith.constant 6 : index
    %c0_108 = arith.constant 0 : index
    %c0_109 = arith.constant 0 : index
    %150 = vector.load %arg15[%c6, %c0_108, %c0_109] : memref<7x256x128xf32, #tpu.memory_space<vmem>>, vector<1x256x128xf32>
    %151 = vector.shape_cast %150 : vector<1x256x128xf32> to vector<256x128xf32>
    %cst_110 = arith.constant dense<0.000000e+00> : vector<8x128xf32>
    %152 = tpu.matmul %149, %151, %cst_110 {dimension_numbers = #tpu.dot_dimension_numbers<[1], [0], [0], [1], [0, 0, 1, 1], [], []>} : vector<8x256xf32>, vector<256x128xf32>, vector<8x128xf32> -> vector<8x128xf32>
    %153 = arith.addf %148, %152 : vector<8x128xf32>
    %c0_111 = arith.constant 0 : index
    %c0_112 = arith.constant 0 : index
    %154 = vector.load %arg16[%c0_111, %c0_112] : memref<1x128xf32, #tpu.memory_space<vmem>>, vector<1x128xf32>
    %155 = vector.broadcast %154 : vector<1x128xf32> to vector<8x128xf32>
    %156 = arith.addf %153, %155 : vector<8x128xf32>
    %c0_113 = arith.constant 0 : index
    %c0_114 = arith.constant 0 : index
    %c0_115 = arith.constant 0 : index
    %157 = vector.load %arg17[%c0_113, %c0_114, %c0_115] : memref<1x8x128xf32, #tpu.memory_space<vmem>>, vector<1x8x128xf32>
    %158 = vector.shape_cast %157 : vector<1x8x128xf32> to vector<8x128xf32>
    %159 = vector.shape_cast %156 : vector<8x128xf32> to vector<1x8x128xf32>
    tpu.vector_store %arg17[%c0_113, %c0_114, %c0_115], %159 {strides = array<i32>} : memref<1x8x128xf32, #tpu.memory_space<vmem>>, vector<1x8x128xf32>,
    return
  }
  func.func @transform_0(%arg0: i32) -> (i32, i32, i32) {
    %c0_i32 = arith.constant 0 : i32
    %c0_i32_0 = arith.constant 0 : i32
    %c0_i32_1 = arith.constant 0 : i32
    return %arg0, %c0_i32, %c0_i32_0 : i32, i32, i32
  }
  func.func @transform_1(%arg0: i32) -> (i32, i32) {
    %c0_i32 = arith.constant 0 : i32
    %c0_i32_0 = arith.constant 0 : i32
    %c0_i32_1 = arith.constant 0 : i32
    return %c0_i32, %c0_i32_0 : i32, i32
  }
  func.func @transform_2(%arg0: i32) -> (i32, i32, i32) {
    %c0_i32 = arith.constant 0 : i32
    %c0_i32_0 = arith.constant 0 : i32
    %c0_i32_1 = arith.constant 0 : i32
    %c0_i32_2 = arith.constant 0 : i32
    return %c0_i32, %c0_i32_0, %c0_i32_1 : i32, i32, i32
  }
  func.func @transform_3(%arg0: i32) -> (i32, i32) {
    %c0_i32 = arith.constant 0 : i32
    %c0_i32_0 = arith.constant 0 : i32
    %c0_i32_1 = arith.constant 0 : i32
    return %c0_i32, %c0_i32_0 : i32, i32
  }
  func.func @transform_4(%arg0: i32) -> (i32, i32) {
    %c0_i32 = arith.constant 0 : i32
    %c0_i32_0 = arith.constant 0 : i32
    %c0_i32_1 = arith.constant 0 : i32
    return %c0_i32, %c0_i32_0 : i32, i32
  }
  func.func @transform_5(%arg0: i32) -> (i32, i32) {
    %c0_i32 = arith.constant 0 : i32
    %c0_i32_0 = arith.constant 0 : i32
    %c0_i32_1 = arith.constant 0 : i32
    return %c0_i32, %c0_i32_0 : i32, i32
  }
  func.func @transform_6(%arg0: i32) -> (i32, i32) {
    %c0_i32 = arith.constant 0 : i32
    %c0_i32_0 = arith.constant 0 : i32
    %c0_i32_1 = arith.constant 0 : i32
    return %c0_i32, %c0_i32_0 : i32, i32
  }
  func.func @transform_7(%arg0: i32) -> (i32, i32) {
    %c0_i32 = arith.constant 0 : i32
    %c0_i32_0 = arith.constant 0 : i32
    %c0_i32_1 = arith.constant 0 : i32
    return %c0_i32, %c0_i32_0 : i32, i32
  }
  func.func @transform_8(%arg0: i32) -> (i32, i32) {
    %c0_i32 = arith.constant 0 : i32
    %c0_i32_0 = arith.constant 0 : i32
    %c0_i32_1 = arith.constant 0 : i32
    return %c0_i32, %c0_i32_0 : i32, i32
  }
  func.func @transform_9(%arg0: i32) -> (i32, i32) {
    %c0_i32 = arith.constant 0 : i32
    %c0_i32_0 = arith.constant 0 : i32
    %c0_i32_1 = arith.constant 0 : i32
    return %c0_i32, %c0_i32_0 : i32, i32
  }
  func.func @transform_10(%arg0: i32) -> (i32, i32) {
    %c0_i32 = arith.constant 0 : i32
    %c0_i32_0 = arith.constant 0 : i32
    %c0_i32_1 = arith.constant 0 : i32
    return %c0_i32, %c0_i32_0 : i32, i32
  }
  func.func @transform_11(%arg0: i32) -> (i32, i32) {
    %c0_i32 = arith.constant 0 : i32
    %c0_i32_0 = arith.constant 0 : i32
    %c0_i32_1 = arith.constant 0 : i32
    return %c0_i32, %c0_i32_0 : i32, i32
  }
  func.func @transform_12(%arg0: i32) -> (i32, i32) {
    %c0_i32 = arith.constant 0 : i32
    %c0_i32_0 = arith.constant 0 : i32
    %c0_i32_1 = arith.constant 0 : i32
    return %c0_i32, %c0_i32_0 : i32, i32
  }
  func.func @transform_13(%arg0: i32) -> (i32, i32) {
    %c0_i32 = arith.constant 0 : i32
    %c0_i32_0 = arith.constant 0 : i32
    %c0_i32_1 = arith.constant 0 : i32
    return %c0_i32, %c0_i32_0 : i32, i32
  }
  func.func @transform_14(%arg0: i32) -> (i32, i32, i32) {
    %c0_i32 = arith.constant 0 : i32
    %c0_i32_0 = arith.constant 0 : i32
    %c0_i32_1 = arith.constant 0 : i32
    %c0_i32_2 = arith.constant 0 : i32
    return %c0_i32, %c0_i32_0, %c0_i32_1 : i32, i32, i32
  }
  func.func @transform_15(%arg0: i32) -> (i32, i32) {
    %c0_i32 = arith.constant 0 : i32
    %c0_i32_0 = arith.constant 0 : i32
    %c0_i32_1 = arith.constant 0 : i32
    return %c0_i32, %c0_i32_0 : i32, i32
  }
  func.func @transform_16(%arg0: i32) -> (i32, i32, i32) {
    %c0_i32 = arith.constant 0 : i32
    %c0_i32_0 = arith.constant 0 : i32
    %c0_i32_1 = arith.constant 0 : i32
    return %arg0, %c0_i32, %c0_i32_0 : i32, i32, i32
  }
}

</mosaic_0001>

<bundles_post_ra>
// kernel: convnet_forward.1
= control target key start
LH: loop header
LB: loop body
LE: loop exit
PB: predicated region body
PF: predicated region fallthrough
CT: control target
= control target key end

     0   :  { %s19212_s0 = inlined_call_operand.vmem [shape: f32[1,224,140], index: 0, kind: input, shape index: {}]   ;;  %s19213_s1 = inlined_call_operand.vmem [shape: f32[140,512], index: 1, kind: input, shape index: {}]   ;;  %s19214_s2 = inlined_call_operand.vmem [shape: f32[5,256,512], index: 2, kind: input, shape index: {}]   ;;  %s19215_s3 = inlined_call_operand.vmem [shape: f32[512,16], index: 3, kind: input, shape index: {}]   ;;  %s19216_s4 = inlined_call_operand.vmem [shape: f32[16,512], index: 4, kind: input, shape index: {}]   ;;  %s19217_s5 = inlined_call_operand.vmem [shape: f32[1,16], index: 5, kind: input, shape index: {}]   ;;  %s19218_s6 = inlined_call_operand.vmem [shape: f32[1,16], index: 6, kind: input, shape index: {}]   ;;  %s19219_s7 = inlined_call_operand.vmem [shape: f32[1,224], index: 7, kind: input, shape index: {}]   ;;  %s19220_s8 = inlined_call_operand.vmem [shape: f32[512,32], index: 8, kind: input, shape index: {}]   ;;  %s19221_s9 = inlined_call_operand.vmem [shape: f32[32,512], index: 9, kind: input, shape index: {}]   ;;  %s19222_s10 = inlined_call_operand.vmem [shape: f32[1,32], index: 10, kind: input, shape index: {}]   ;;  %s19223_s11 = inlined_call_operand.vmem [shape: f32[1,32], index: 11, kind: input, shape index: {}]   ;;  %s19224_s12 = inlined_call_operand.vmem [shape: f32[1,140], index: 12, kind: input, shape index: {}]   ;;  %s19225_s13 = inlined_call_operand.vmem [shape: f32[56,139], index: 13, kind: input, shape index: {}]   ;;  %s19226_s14 = inlined_call_operand.vmem [shape: f32[7,256,128], index: 14, kind: input, shape index: {}]   ;;  %s19227_s15 = inlined_call_operand.vmem [shape: f32[1,128], index: 15, kind: input, shape index: {}]   ;;  %s19228_s16 = inlined_call_operand.hbm [shape: f32[1,8,128], index: 16, kind: output, shape index: {}]  }
   0x1   :  { %19562 = sst [smem:[#allocation182_spill]] %s19212_s0 }
   0x2   :  { %v111_v0 = vld [vmem:[%s19213_s1 + $0x8] sm:$0xff]  ;;  %v113_v2 = vld [vmem:[%s19213_s1 + $0x18] sm:$0xff]  ;;  %v110_v5 = vld [vmem:[%s19213_s1] sm:$0xff]  ;;  %vm182_vm0 = vcmask 97280   ;;  %s19563_s23 = sld [smem:[#allocation182_spill]]  ;;  %vm267_vm1 = vcmask 1043456  }
   0x3   :  { %v115_v1 = vld [vmem:[%s19213_s1 + $0x28] sm:$0xff]  ;;  %v117_v4 = vld [vmem:[%s19213_s1 + $0x38] sm:$0xff]  ;;  %v114_v6 = vld [vmem:[%s19213_s1 + $0x20] sm:$0xff]  ;;  %vm11545_vm2 = vmmov 1  }
   0x4   :  { %v9504_v3 = vpack.c.bf16 %v115_v1, %v111_v0  ;;  %v9542_v7 = vpack.c.bf16 %v117_v4, %v113_v2  ;;  %v9506_v8 = vpack.c.bf16 %v114_v6, %v110_v5  ;;  %v112_v9 = vld [vmem:[%s19213_s1 + $0x10] sm:$0xff]  ;;  %v119_v11 = vld [vmem:[%s19213_s1 + $0x48] sm:$0xff]  ;;  %v121_v14 = vld [vmem:[%s19213_s1 + $0x58] sm:$0xff] }
   0x5   :  { %v116_v10 = vld [vmem:[%s19213_s1 + $0x30] sm:$0xff]  ;;  %v123_v13 = vld [vmem:[%s19213_s1 + $0x68] sm:$0xff]  ;;  %v125_v15 = vld [vmem:[%s19213_s1 + $0x78] sm:$0xff] }
   0x6   :  { %9505 = vmatprep.subr.bf16.mxu0 %v9504_v3  ;;  %v9544_v12 = vpack.c.bf16 %v116_v10, %v112_v9  ;;  %9543 = vmatprep.subr.bf16.mxu1 %v9542_v7  ;;  %v9508_v16 = vpack.c.bf16 %v123_v13, %v119_v11  ;;  %v9546_v17 = vpack.c.bf16 %v125_v15, %v121_v14  ;;  %v118_v18 = vld [vmem:[%s19213_s1 + $0x40] sm:$0xff]  ;;  %v120_v20 = vld [vmem:[%s19213_s1 + $0x50] sm:$0xff]  ;;  %v127_v23 = vld [vmem:[%s19213_s1 + $0x88] sm:$0xff] }
   0x7   :  { %9507 = vmatpush1.bf16.msra.mxu0 %v9506_v8  ;;  %v122_v19 = vld [vmem:[%s19213_s1 + $0x60] sm:$0xff]  ;;  %v124_v22 = vld [vmem:[%s19213_s1 + $0x70] sm:$0xff]  ;;  %v131_v24 = vld [vmem:[%s19213_s1 + $0xa8] sm:$0xff] }
   0x8   :  { %9545 = vmatpush1.bf16.msra.mxu1 %v9544_v12  ;;  %v9510_v21 = vpack.c.bf16 %v122_v19, %v118_v18  ;;  %9509 = vmatprep.subr.bf16.mxu0 %v9508_v16  ;;  %v9548_v25 = vpack.c.bf16 %v124_v22, %v120_v20  ;;  %v9512_v26 = vpack.c.bf16 %v131_v24, %v127_v23  ;;  %v129_v27 = vld [vmem:[%s19213_s1 + $0x98] sm:$0xff]  ;;  %v126_v29 = vld [vmem:[%s19213_s1 + $0x80] sm:$0xff]  ;;  %v128_v32 = vld [vmem:[%s19213_s1 + $0x90] sm:$0xff] }
   0x9   :  { %9547 = vmatprep.subr.bf16.mxu1 %v9546_v17  ;;  %v133_v28 = vld [vmem:[%s19213_s1 + $0xb8] sm:$0xff]  ;;  %v130_v31 = vld [vmem:[%s19213_s1 + $0xa0] sm:$0xff]  ;;  %v132_v33 = vld [vmem:[%s19213_s1 + $0xb0] sm:$0xff] }
   0xa   :  { %v9550_v30 = vpack.c.bf16 %v133_v28, %v129_v27  ;;  %v9514_v34 = vpack.c.bf16 %v130_v31, %v126_v29  ;;  %v135_v35 = vld [vmem:[%s19213_s1 + $0xc8] sm:$0xff]  ;;  %v137_v37 = vld [vmem:[%s19213_s1 + $0xd8] sm:$0xff]  ;;  %v9552_v38 = vpack.c.bf16 %v132_v33, %v128_v32  ;;  %v134_v41 = vld [vmem:[%s19213_s1 + $0xc0] sm:$0xff] }
   0xb   :  { %9511 = vmatpush1.bf16.msra.mxu0 %v9510_v21  ;;  %v139_v36 = vld [vmem:[%s19213_s1 + $0xe8] sm:$0xff]  ;;  %v141_v40 = vld [vmem:[%s19213_s1 + $0xf8] sm:$0xff]  ;;  %v138_v42 = vld [vmem:[%s19213_s1 + $0xe0] sm:$0xff] }
   0xc   :  { %9549 = vmatpush1.bf16.msra.mxu1 %v9548_v25  ;;  %9513 = vmatprep.subr.bf16.mxu0 %v9512_v26  ;;  %v9516_v39 = vpack.c.bf16 %v139_v36, %v135_v35  ;;  %v9554_v43 = vpack.c.bf16 %v141_v40, %v137_v37  ;;  %v136_v44 = vld [vmem:[%s19213_s1 + $0xd0] sm:$0xff]  ;;  %v143_v46 = vld [vmem:[%s19213_s1 + $0x108] sm:$0xff]  ;;  %v145_v48 = vld [vmem:[%s19213_s1 + $0x118] sm:$0xff]  ;;  %v9518_v50 = vpack.c.bf16 %v138_v42, %v134_v41  ;;  %v19564_v40 = vmov 0 }
   0xd   :  { %9551 = vmatprep.subr.bf16.mxu1 %v9550_v30  ;;  %v140_v45 = vld [vmem:[%s19213_s1 + $0xf0] sm:$0xff]  ;;  %v147_v47 = vld [vmem:[%s19213_s1 + $0x128] sm:$0xff]  ;;  %v149_v49 = vld [vmem:[%s19213_s1 + $0x138] sm:$0xff] }
   0xe   :  { %v9556_v51 = vpack.c.bf16 %v140_v45, %v136_v44  ;;  %v9520_v52 = vpack.c.bf16 %v147_v47, %v143_v46  ;;  %v142_v53 = vld [vmem:[%s19213_s1 + $0x100] sm:$0xff]  ;;  %v144_v55 = vld [vmem:[%s19213_s1 + $0x110] sm:$0xff]  ;;  %v9558_v56 = vpack.c.bf16 %v149_v49, %v145_v48  ;;  %v151_v58 = vld [vmem:[%s19213_s1 + $0x148] sm:$0xff] }
   0xf   :  { %9515 = vmatpush1.bf16.msra.mxu0 %v9514_v34  ;;  %v146_v54 = vld [vmem:[%s19213_s1 + $0x120] sm:$0xff]  ;;  %v148_v57 = vld [vmem:[%s19213_s1 + $0x130] sm:$0xff]  ;;  %v155_v59 = vld [vmem:[%s19213_s1 + $0x168] sm:$0xff] }
  0x10   :  { %9553 = vmatpush1.bf16.msra.mxu1 %v9552_v38  ;;  %9517 = vmatprep.subr.bf16.mxu0 %v9516_v39  ;;  %v153_v60 = vld [vmem:[%s19213_s1 + $0x158] sm:$0xff]  ;;  %v9522_v62 = vpack.c.bf16 %v146_v54, %v142_v53  ;;  %v9560_v63 = vpack.c.bf16 %v148_v57, %v144_v55  ;;  %v9524_v0 = vpack.c.bf16 %v155_v59, %v151_v58  ;;  %v150_v1 = vld [vmem:[%s19213_s1 + $0x140] sm:$0xff]  ;;  %v152_v3 = vld [vmem:[%s19213_s1 + $0x150] sm:$0xff] }
  0x11   :  { %9555 = vmatprep.subr.bf16.mxu1 %v9554_v43  ;;  %v157_v61 = vld [vmem:[%s19213_s1 + $0x178] sm:$0xff]  ;;  %v154_v2 = vld [vmem:[%s19213_s1 + $0x160] sm:$0xff]  ;;  %v156_v5 = vld [vmem:[%s19213_s1 + $0x170] sm:$0xff] }
  0x12   :  { %v9562_v4 = vpack.c.bf16 %v157_v61, %v153_v60  ;;  %v159_v6 = vld [vmem:[%s19213_s1 + $0x188] sm:$0xff]  ;;  %v161_v8 = vld [vmem:[%s19213_s1 + $0x198] sm:$0xff]  ;;  %v9526_v10 = vpack.c.bf16 %v154_v2, %v150_v1  ;;  %v9564_v11 = vpack.c.bf16 %v156_v5, %v152_v3  ;;  %v158_v13 = vld [vmem:[%s19213_s1 + $0x180] sm:$0xff] }
  0x13   :  { %9519 = vmatpush1.bf16.msra.mxu0 %v9518_v50  ;;  %v163_v7 = vld [vmem:[%s19213_s1 + $0x1a8] sm:$0xff]  ;;  %v165_v9 = vld [vmem:[%s19213_s1 + $0x1b8] sm:$0xff]  ;;  %v162_v14 = vld [vmem:[%s19213_s1 + $0x1a0] sm:$0xff] }
  0x14   :  { %9557 = vmatpush1.bf16.msra.mxu1 %v9556_v51  ;;  %9521 = vmatprep.subr.bf16.mxu0 %v9520_v52  ;;  %v9528_v12 = vpack.c.bf16 %v163_v7, %v159_v6  ;;  %v160_v15 = vld [vmem:[%s19213_s1 + $0x190] sm:$0xff]  ;;  %v9566_v16 = vpack.c.bf16 %v165_v9, %v161_v8  ;;  %v167_v18 = vld [vmem:[%s19213_s1 + $0x1c8] sm:$0xff]  ;;  %v169_v20 = vld [vmem:[%s19213_s1 + $0x1d8] sm:$0xff]  ;;  %v9530_v22 = vpack.c.bf16 %v162_v14, %v158_v13 }
  0x15   :  { %9559 = vmatprep.subr.bf16.mxu1 %v9558_v56  ;;  %v164_v17 = vld [vmem:[%s19213_s1 + $0x1b0] sm:$0xff]  ;;  %v171_v19 = vld [vmem:[%s19213_s1 + $0x1e8] sm:$0xff]  ;;  %v173_v21 = vld [vmem:[%s19213_s1 + $0x1f8] sm:$0xff] }
  0x16   :  { %v55_v23 = vld [vmem:[%s19563_s23 + $0x8] sm:$0xff]  ;;  %v9568_v24 = vpack.c.bf16 %v164_v17, %v160_v15  ;;  %v9532_v25 = vpack.c.bf16 %v171_v19, %v167_v18  ;;  %v166_v26 = vld [vmem:[%s19213_s1 + $0x1c0] sm:$0xff]  ;;  %v168_v28 = vld [vmem:[%s19213_s1 + $0x1d0] sm:$0xff]  ;;  %v9570_v29 = vpack.c.bf16 %v173_v21, %v169_v20 }
  0x17   :  { %9523 = vmatpush1.bf16.msra.mxu0 %v9522_v62  ;;  %v170_v27 = vld [vmem:[%s19213_s1 + $0x1e0] sm:$0xff]  ;;  %v172_v30 = vld [vmem:[%s19213_s1 + $0x1f0] sm:$0xff]  ;;  %v175_v31 = vld [vmem:[%s19213_s1 + $0x208] sm:$0xff]  ;;  %8183 = vmatprep.mubr.msk.f32.mxu0 %vm182_vm0, %v55_v23 }
  0x18   :  { %9561 = vmatpush1.bf16.msra.mxu1 %v9560_v63  ;;  %9525 = vmatprep.subr.bf16.mxu0 %v9524_v0  ;;  %v179_v32 = vld [vmem:[%s19213_s1 + $0x228] sm:$0xf]  ;;  %v177_v33 = vld [vmem:[%s19213_s1 + $0x218] sm:$0xff]  ;;  %v9534_v35 = vpack.c.bf16 %v170_v27, %v166_v26  ;;  %v9572_v36 = vpack.c.bf16 %v172_v30, %v168_v28  ;;  %v174_v38 = vld [vmem:[%s19213_s1 + $0x200] sm:$0xff] }
  0x19   :  { %9563 = vmatprep.subr.bf16.mxu1 %v9562_v4  ;;  %v181_v34 = vld [vmem:[%s19213_s1 + $0x238] sm:$0xf]  ;;  %8213 = vmatprep.mubr.msk.f32.mxu1 %vm182_vm0, %v55_v23  ;;  %v9536_v37 = vpack.c.bf16 %v179_v32, %v175_v31  ;;  %v178_v39 = vld [vmem:[%s19213_s1 + $0x220] sm:$0xf]  ;;  %vm11850_vm3 = vmpackc.low %vm267_vm1, %vm11545_vm2 }
  0x1a   :  { %v19565_v40 = vsel %vm11850_vm3, 4294967295, %v19564_v40  ;;  %v9574_v41 = vpack.c.bf16 %v181_v34, %v177_v33  ;;  %v176_v42 = vld [vmem:[%s19213_s1 + $0x210] sm:$0xff]  ;;  %v9539_v44 = vpack.c.bf16 %v178_v39, %v174_v38  ;;  %v54_v46 = vld [vmem:[%s19563_s23] sm:$0xff]  ;;  %v57_v47 = vld [vmem:[%s19563_s23 + $0x18] sm:$0xff] }
  0x1b   :  { %9527 = vmatpush1.bf16.msra.mxu0 %v9526_v10  ;;  %19566 = vst [vmem:[#allocation6_spill] sm:$0xff] %v19565_v40  ;;  %v180_v43 = vld [vmem:[%s19213_s1 + $0x230] sm:$0xf]  ;;  %v59_v49 = vld [vmem:[%s19563_s23 + $0x28] sm:$0xff] }
  0x1c   :  { %9565 = vmatpush1.bf16.msra.mxu1 %v9564_v11  ;;  %9529 = vmatprep.subr.bf16.mxu0 %v9528_v12  ;;  %v9577_v45 = vpack.c.bf16 %v180_v43, %v176_v42  ;;  %v56_v48 = vld [vmem:[%s19563_s23 + $0x10] sm:$0xff] }
  0x1d   :  { %9567 = vmatprep.subr.bf16.mxu1 %v9566_v16 }
  0x1f   :  { %9531 = vmatpush1.bf16.msra.mxu0 %v9530_v22 }
  0x20   :  { %9569 = vmatpush1.bf16.msra.mxu1 %v9568_v24  ;;  %9533 = vmatprep.subr.bf16.mxu0 %v9532_v25 }
  0x21   :  { %9571 = vmatprep.subr.bf16.mxu1 %v9570_v29 }
  0x23   :  { %9535 = vmatpush1.bf16.msra.mxu0 %v9534_v35 }
  0x24   :  { %9573 = vmatpush1.bf16.msra.mxu1 %v9572_v36  ;;  %9538 = vmatprep.subr.msk.bf16.mxu0 %vm11850_vm3, %v9536_v37 }
  0x25   :  { %9576 = vmatprep.subr.msk.bf16.mxu1 %vm11850_vm3, %v9574_v41 }
  0x27   :  { %9541 = vmatpush1.bf16.msk.msra.mxu0 %vm11850_vm3, %v9539_v44 }
  0x28   :  { %9579 = vmatpush1.bf16.msk.msra.mxu1 %vm11850_vm3, %v9577_v45 }
  0x2a   :  { %345 = vmatmul.mubr.f32.vlgmr.msra.gmra.mrb[0].mxu0 %v54_v46 }
  0x2b   :  { %578 = vmatmul.mubr.f32.vlgmr.msra.gmra.mrb[0].mxu1 %v54_v46  ;;  %8184 = vmatprep.mubr.msk.f32.mxu0 %vm182_vm0, %v57_v47 }
  0x2c   :  { %8214 = vmatprep.mubr.msk.f32.mxu1 %vm182_vm0, %v57_v47 }
  0x2e   :  { %351 = vmatmul.mubr.f32.gmra.mrb[2].mxu0 %v56_v48 }
  0x2f   :  { %21 = vsyncpa [#allocation4], 0  ;;  %584 = vmatmul.mubr.f32.gmra.mrb[2].mxu1 %v56_v48  ;;  %8185 = vmatprep.mubr.msk.f32.mxu0 %vm182_vm0, %v59_v49  ;;  %v58_v50 = vld [vmem:[%s19563_s23 + $0x20] sm:$0xff]  ;;  %v61_v51 = vld [vmem:[%s19563_s23 + $0x38] sm:$0xff]  ;;  %v822_v37 = vlaneseq  ;;  %vm831_vm4 = vcmask 785408   ;;  %vm1519_vm5 = vcmask 130048  }
  0x30   :  { %8215 = vmatprep.mubr.msk.f32.mxu1 %vm182_vm0, %v59_v49  ;;  %v60_v52 = vld [vmem:[%s19563_s23 + $0x30] sm:$0xff]  ;;  %v63_v53 = vld [vmem:[%s19563_s23 + $0x48] sm:$0xff]  ;;  %v62_v54 = vld [vmem:[%s19563_s23 + $0x40] sm:$0xff]  ;;  %vm2302_vm6 = vcmask 1041408   ;;  %vm2805_vm7 = vcmask 1046528   ;;  %vm2321_vm8 = vcmask 1045504  }
  0x31   :  { %v65_v55 = vld [vmem:[%s19563_s23 + $0x58] sm:$0xff]  ;;  %v64_v56 = vld [vmem:[%s19563_s23 + $0x50] sm:$0xff]  ;;  %v67_v57 = vld [vmem:[%s19563_s23 + $0x68] sm:$0xff]  ;;  %v12087_v38 = vshrl.u32 %v822_v37, 7  ;;  %vm4402_vm9 = vcmask 1044480   ;;  %vm6352_vm10 = vcmask 261120  }
  0x32   :  { %357 = vmatmul.mubr.f32.gmra.mrb[4].mxu0 %v58_v50  ;;  %v66_v58 = vld [vmem:[%s19563_s23 + $0x60] sm:$0xff]  ;;  %v69_v59 = vld [vmem:[%s19563_s23 + $0x78] sm:$0xff]  ;;  %v68_v60 = vld [vmem:[%s19563_s23 + $0x70] sm:$0xff]  ;;  %vm7319_vm11 = vcmask 1042432   ;;  %vm7297_vm12 = vcmask 89088   ;;  %s11547_s19 = smov [#allocation3]  }
  0x33   :  { %590 = vmatmul.mubr.f32.gmra.mrb[4].mxu1 %v58_v50  ;;  %8186 = vmatprep.mubr.msk.f32.mxu0 %vm182_vm0, %v61_v51  ;;  %v71_v61 = vld [vmem:[%s19563_s23 + $0x88] sm:$0xff]  ;;  %v70_v62 = vld [vmem:[%s19563_s23 + $0x80] sm:$0xff]  ;;  %v73_v63 = vld [vmem:[%s19563_s23 + $0x98] sm:$0xff]  ;;  %19567 = vst [vmem:[#allocation7_spill] sm:$0xff] %v12087_v38  ;;  %v19230_v39 = vsub.s32 1, %v12087_v38  ;;  %s8173_s20 = sshll.u32 %s11547_s19, 4  ;;  %s8174_s20 = int_to_ptr.vmem [resolvable:$true] %s8173_s20 }
  0x34   :  { %8216 = vmatprep.mubr.msk.f32.mxu1 %vm182_vm0, %v61_v51  ;;  %v72_v0 = vld [vmem:[%s19563_s23 + $0x90] sm:$0xff]  ;;  %v75_v1 = vld [vmem:[%s19563_s23 + $0xa8] sm:$0xff]  ;;  %v74_v2 = vld [vmem:[%s19563_s23 + $0xa0] sm:$0xff]  ;;  %s11521_s1 = scalar_lea.vmem %s8174_s20, 128  ;;  %p11526_p1 = scmp.lt.s32.totalorder %s8174_s20, %s8174_s20 }
  0x35   :  { %v77_v3 = vld [vmem:[%s19563_s23 + $0xb8] sm:$0xff]  ;;  %v76_v4 = vld [vmem:[%s19563_s23 + $0xb0] sm:$0xff]  ;;  %v79_v5 = vld [vmem:[%s19563_s23 + $0xc8] sm:$0xff]  ;;  %p11522_p0 = scmp.ne.s32.totalorder %s8174_s20, %s11521_s1  ;;  %p11527_p2 = scmp.lt.s32.totalorder %s11521_s1, %s11521_s1 }
  0x36   :  { %363 = vmatmul.mubr.f32.gmra.mrb[6].mxu0 %v60_v52  ;;  %v78_v6 = vld [vmem:[%s19563_s23 + $0xc0] sm:$0xff]  ;;  %v81_v7 = vld [vmem:[%s19563_s23 + $0xd8] sm:$0xff]  ;;  %v80_v8 = vld [vmem:[%s19563_s23 + $0xd0] sm:$0xff] }
  0x37   :  { %596 = vmatmul.mubr.f32.gmra.mrb[6].mxu1 %v60_v52  ;;  %8187 = vmatprep.mubr.msk.f32.mxu0 %vm182_vm0, %v63_v53  ;;  %v83_v9 = vld [vmem:[%s19563_s23 + $0xe8] sm:$0xff]  ;;  %v82_v10 = vld [vmem:[%s19563_s23 + $0xe0] sm:$0xff]  ;;  %v85_v11 = vld [vmem:[%s19563_s23 + $0xf8] sm:$0xff]  ;;  %p11528_p3 = por %p11527_p2, %p11526_p1 }
  0x38   :  { %8217 = vmatprep.mubr.msk.f32.mxu1 %vm182_vm0, %v63_v53  ;;  %v84_v12 = vld [vmem:[%s19563_s23 + $0xf0] sm:$0xff]  ;;  %v87_v13 = vld [vmem:[%s19563_s23 + $0x108] sm:$0xff]  ;;  %v86_v14 = vld [vmem:[%s19563_s23 + $0x100] sm:$0xff] }
  0x39   :  { %v89_v15 = vld [vmem:[%s19563_s23 + $0x118] sm:$0xff]  ;;  %v88_v16 = vld [vmem:[%s19563_s23 + $0x110] sm:$0xff]  ;;  %v91_v17 = vld [vmem:[%s19563_s23 + $0x128] sm:$0xff]  ;;  %p11529_p4 = pnand %p11528_p3, %p11522_p0 }
  0x3a   :  { %369 = vmatmul.mubr.f32.gmra.mrb[8].mxu0 %v62_v54  ;;  %v90_v18 = vld [vmem:[%s19563_s23 + $0x120] sm:$0xff]  ;;  %v93_v19 = vld [vmem:[%s19563_s23 + $0x138] sm:$0xff]  ;;  %v92_v20 = vld [vmem:[%s19563_s23 + $0x130] sm:$0xff] }
  0x3b   :  { %602 = vmatmul.mubr.f32.gmra.mrb[8].mxu1 %v62_v54  ;;  %8188 = vmatprep.mubr.msk.f32.mxu0 %vm182_vm0, %v65_v55  ;;  %v95_v21 = vld [vmem:[%s19563_s23 + $0x148] sm:$0xff]  ;;  %v94_v22 = vld [vmem:[%s19563_s23 + $0x140] sm:$0xff]  ;;  %v97_v23 = vld [vmem:[%s19563_s23 + $0x158] sm:$0xff] }
  0x3c   :  { %8218 = vmatprep.mubr.msk.f32.mxu1 %vm182_vm0, %v65_v55  ;;  %v96_v24 = vld [vmem:[%s19563_s23 + $0x150] sm:$0xff]  ;;  %v99_v25 = vld [vmem:[%s19563_s23 + $0x168] sm:$0xff]  ;;  %v98_v26 = vld [vmem:[%s19563_s23 + $0x160] sm:$0xff] }
  0x3d   :  { %v101_v27 = vld [vmem:[%s19563_s23 + $0x178] sm:$0xff]  ;;  %v100_v28 = vld [vmem:[%s19563_s23 + $0x170] sm:$0xff]  ;;  %v103_v29 = vld [vmem:[%s19563_s23 + $0x188] sm:$0xff] }
  0x3e   :  { %375 = vmatmul.mubr.f32.gmra.mrb[10].mxu0 %v64_v56  ;;  %v102_v30 = vld [vmem:[%s19563_s23 + $0x180] sm:$0xff]  ;;  %v105_v31 = vld [vmem:[%s19563_s23 + $0x198] sm:$0xff]  ;;  %v104_v32 = vld [vmem:[%s19563_s23 + $0x190] sm:$0xff] }
  0x3f   :  { %608 = vmatmul.mubr.f32.gmra.mrb[10].mxu1 %v64_v56  ;;  %8189 = vmatprep.mubr.msk.f32.mxu0 %vm182_vm0, %v67_v57  ;;  %v107_v33 = vld [vmem:[%s19563_s23 + $0x1a8] sm:$0xff]  ;;  %v106_v34 = vld [vmem:[%s19563_s23 + $0x1a0] sm:$0xff]  ;;  %v109_v35 = vld [vmem:[%s19563_s23 + $0x1b8] sm:$0xff] }
  0x40   :  { %8219 = vmatprep.mubr.msk.f32.mxu1 %vm182_vm0, %v67_v57  ;;  %v108_v36 = vld [vmem:[%s19563_s23 + $0x1b0] sm:$0xff]  ;;  %v12093_v41 = vld [vmem:[%s19219_s7] sm:$0x3]  ;;  %vm18482_vm13 = vmpackc.low %vm7319_vm11, %vm11545_vm2 }
  0x41   :  { %v12098_v42 = vrot.slane %v12093_v41, %v19230_v39 }
  0x42   :  { %381 = vmatmul.mubr.f32.gmra.mrb[12].mxu0 %v66_v58 }
  0x43   :  { %614 = vmatmul.mubr.f32.gmra.mrb[12].mxu1 %v66_v58  ;;  %8190 = vmatprep.mubr.msk.f32.mxu0 %vm182_vm0, %v69_v59 }
  0x44   :  { %8220 = vmatprep.mubr.msk.f32.mxu1 %vm182_vm0, %v69_v59 }
  0x46   :  { %387 = vmatmul.mubr.f32.gmra.mrb[14].mxu0 %v68_v60 }
  0x47   :  { %620 = vmatmul.mubr.f32.gmra.mrb[14].mxu1 %v68_v60  ;;  %8191 = vmatprep.mubr.msk.f32.mxu0 %vm182_vm0, %v71_v61 }
  0x48   :  { %8221 = vmatprep.mubr.msk.f32.mxu1 %vm182_vm0, %v71_v61 }
  0x4a   :  { %393 = vmatmul.mubr.f32.gmra.mrb[16].mxu0 %v70_v62 }
  0x4b   :  { %626 = vmatmul.mubr.f32.gmra.mrb[16].mxu1 %v70_v62  ;;  %8192 = vmatprep.mubr.msk.f32.mxu0 %vm182_vm0, %v73_v63 }
  0x4c   :  { %8222 = vmatprep.mubr.msk.f32.mxu1 %vm182_vm0, %v73_v63 }
  0x4e   :  { %399 = vmatmul.mubr.f32.gmra.mrb[18].mxu0 %v72_v0 }
  0x4f   :  { %632 = vmatmul.mubr.f32.gmra.mrb[18].mxu1 %v72_v0  ;;  %8193 = vmatprep.mubr.msk.f32.mxu0 %vm182_vm0, %v75_v1 }
  0x50   :  { %8223 = vmatprep.mubr.msk.f32.mxu1 %vm182_vm0, %v75_v1 }
  0x52   :  { %405 = vmatmul.mubr.f32.gmra.mrb[20].mxu0 %v74_v2 }
  0x53   :  { %638 = vmatmul.mubr.f32.gmra.mrb[20].mxu1 %v74_v2  ;;  %8194 = vmatprep.mubr.msk.f32.mxu0 %vm182_vm0, %v77_v3 }
  0x54   :  { %8224 = vmatprep.mubr.msk.f32.mxu1 %vm182_vm0, %v77_v3 }
  0x56   :  { %411 = vmatmul.mubr.f32.gmra.mrb[22].mxu0 %v76_v4 }
  0x57   :  { %644 = vmatmul.mubr.f32.gmra.mrb[22].mxu1 %v76_v4  ;;  %8195 = vmatprep.mubr.msk.f32.mxu0 %vm182_vm0, %v79_v5 }
  0x58   :  { %8225 = vmatprep.mubr.msk.f32.mxu1 %vm182_vm0, %v79_v5 }
  0x5a   :  { %417 = vmatmul.mubr.f32.gmra.mrb[24].mxu0 %v78_v6 }
  0x5b   :  { %650 = vmatmul.mubr.f32.gmra.mrb[24].mxu1 %v78_v6  ;;  %8196 = vmatprep.mubr.msk.f32.mxu0 %vm182_vm0, %v81_v7 }
  0x5c   :  { %8226 = vmatprep.mubr.msk.f32.mxu1 %vm182_vm0, %v81_v7 }
  0x5e   :  { %423 = vmatmul.mubr.f32.gmra.mrb[26].mxu0 %v80_v8 }
  0x5f   :  { %656 = vmatmul.mubr.f32.gmra.mrb[26].mxu1 %v80_v8  ;;  %8197 = vmatprep.mubr.msk.f32.mxu0 %vm182_vm0, %v83_v9 }
  0x60   :  { %8227 = vmatprep.mubr.msk.f32.mxu1 %vm182_vm0, %v83_v9 }
  0x62   :  { %429 = vmatmul.mubr.f32.gmra.mrb[28].mxu0 %v82_v10 }
  0x63   :  { %662 = vmatmul.mubr.f32.gmra.mrb[28].mxu1 %v82_v10  ;;  %8198 = vmatprep.mubr.msk.f32.mxu0 %vm182_vm0, %v85_v11 }
  0x64   :  { %8228 = vmatprep.mubr.msk.f32.mxu1 %vm182_vm0, %v85_v11 }
  0x66   :  { %435 = vmatmul.mubr.f32.gmra.mrb[30].mxu0 %v84_v12 }
  0x67   :  { %668 = vmatmul.mubr.f32.gmra.mrb[30].mxu1 %v84_v12  ;;  %8199 = vmatprep.mubr.msk.f32.mxu0 %vm182_vm0, %v87_v13 }
  0x68   :  { %8229 = vmatprep.mubr.msk.f32.mxu1 %vm182_vm0, %v87_v13 }
  0x6a   :  { %441 = vmatmul.mubr.f32.gmra.mrb[32].mxu0 %v86_v14 }
  0x6b   :  { %674 = vmatmul.mubr.f32.gmra.mrb[32].mxu1 %v86_v14  ;;  %8200 = vmatprep.mubr.msk.f32.mxu0 %vm182_vm0, %v89_v15 }
  0x6c   :  { %8230 = vmatprep.mubr.msk.f32.mxu1 %vm182_vm0, %v89_v15 }
  0x6e   :  { %447 = vmatmul.mubr.f32.gmra.mrb[34].mxu0 %v88_v16 }
  0x6f   :  { %680 = vmatmul.mubr.f32.gmra.mrb[34].mxu1 %v88_v16  ;;  %8201 = vmatprep.mubr.msk.f32.mxu0 %vm182_vm0, %v91_v17 }
  0x70   :  { %8231 = vmatprep.mubr.msk.f32.mxu1 %vm182_vm0, %v91_v17 }
  0x72   :  { %453 = vmatmul.mubr.f32.gmra.mrb[36].mxu0 %v90_v18 }
  0x73   :  { %686 = vmatmul.mubr.f32.gmra.mrb[36].mxu1 %v90_v18  ;;  %8202 = vmatprep.mubr.msk.f32.mxu0 %vm182_vm0, %v93_v19 }
  0x74   :  { %8232 = vmatprep.mubr.msk.f32.mxu1 %vm182_vm0, %v93_v19 }
  0x76   :  { %459 = vmatmul.mubr.f32.gmra.mrb[38].mxu0 %v92_v20 }
  0x77   :  { %692 = vmatmul.mubr.f32.gmra.mrb[38].mxu1 %v92_v20  ;;  %8203 = vmatprep.mubr.msk.f32.mxu0 %vm182_vm0, %v95_v21 }
  0x78   :  { %8233 = vmatprep.mubr.msk.f32.mxu1 %vm182_vm0, %v95_v21 }
  0x7a   :  { %465 = vmatmul.mubr.f32.gmra.mrb[40].mxu0 %v94_v22 }
  0x7b   :  { %698 = vmatmul.mubr.f32.gmra.mrb[40].mxu1 %v94_v22  ;;  %8204 = vmatprep.mubr.msk.f32.mxu0 %vm182_vm0, %v97_v23 }
  0x7c   :  { %8234 = vmatprep.mubr.msk.f32.mxu1 %vm182_vm0, %v97_v23 }
  0x7e   :  { %471 = vmatmul.mubr.f32.gmra.mrb[42].mxu0 %v96_v24 }
  0x7f   :  { %704 = vmatmul.mubr.f32.gmra.mrb[42].mxu1 %v96_v24  ;;  %8205 = vmatprep.mubr.msk.f32.mxu0 %vm182_vm0, %v99_v25 }
  0x80   :  { %8235 = vmatprep.mubr.msk.f32.mxu1 %vm182_vm0, %v99_v25 }
  0x82   :  { %477 = vmatmul.mubr.f32.gmra.mrb[44].mxu0 %v98_v26 }
  0x83   :  { %710 = vmatmul.mubr.f32.gmra.mrb[44].mxu1 %v98_v26  ;;  %8206 = vmatprep.mubr.msk.f32.mxu0 %vm182_vm0, %v101_v27 }
  0x84   :  { %8236 = vmatprep.mubr.msk.f32.mxu1 %vm182_vm0, %v101_v27 }
  0x86   :  { %483 = vmatmul.mubr.f32.gmra.mrb[46].mxu0 %v100_v28 }
  0x87   :  { %716 = vmatmul.mubr.f32.gmra.mrb[46].mxu1 %v100_v28  ;;  %8207 = vmatprep.mubr.msk.f32.mxu0 %vm182_vm0, %v103_v29 }
  0x88   :  { %8237 = vmatprep.mubr.msk.f32.mxu1 %vm182_vm0, %v103_v29 }
  0x8a   :  { %489 = vmatmul.mubr.f32.gmra.mrb[48].mxu0 %v102_v30 }
  0x8b   :  { %722 = vmatmul.mubr.f32.gmra.mrb[48].mxu1 %v102_v30  ;;  %8208 = vmatprep.mubr.msk.f32.mxu0 %vm182_vm0, %v105_v31 }
  0x8c   :  { %8238 = vmatprep.mubr.msk.f32.mxu1 %vm182_vm0, %v105_v31 }
  0x8e   :  { %495 = vmatmul.mubr.f32.gmra.mrb[50].mxu0 %v104_v32 }
  0x8f   :  { %728 = vmatmul.mubr.f32.gmra.mrb[50].mxu1 %v104_v32  ;;  %8209 = vmatprep.mubr.msk.f32.mxu0 %vm182_vm0, %v107_v33 }
  0x90   :  { %8239 = vmatprep.mubr.msk.f32.mxu1 %vm182_vm0, %v107_v33 }
  0x92   :  { %501 = vmatmul.mubr.f32.gmra.mrb[52].mxu0 %v106_v34 }
  0x93   :  { %734 = vmatmul.mubr.f32.gmra.mrb[52].mxu1 %v106_v34  ;;  %8210 = vmatprep.mubr.msk.f32.mxu0 %vm182_vm0, %v109_v35 }
  0x94   :  { %8240 = vmatprep.mubr.msk.f32.mxu1 %vm182_vm0, %v109_v35 }
  0x96   :  { %507 = vmatmul.mubr.f32.gmra.mrb[54].mxu0 %v108_v36 }
  0x97   :  { %740 = vmatmul.mubr.f32.gmra.mrb[54].mxu1 %v108_v36  ;;  %8241 = vmatprep.mubr.msk.f32.mxu0 %vm831_vm4, %v12098_v42 }
  0x98   :  { %8242 = vmatprep.mubr.msk.f32.mxu1 %vm831_vm4, %v12098_v42 }
  0xfd   :  { %v12104_v43 = vpop.f32.mrb[0].mxu0 }
  0xfe   :  { %19568 = vst [vmem:[#allocation8_spill] sm:$0xff] %v12104_v43  ;;  %v12106_v44 = vpop.f32.mrb[0].mxu1  ;;  %v12108_v45 = vpop.f32.mrb[1].mxu0  ;;  %v12114_v47 = vmul.f32 %v12104_v43, %v12104_v43 }
  0xff   :  { %19569 = vst [vmem:[#allocation9_spill] sm:$0xff] %v12106_v44  ;;  %19570 = vst [vmem:[#allocation10_spill] sm:$0xff] %v12108_v45  ;;  %v12110_v46 = vpop.f32.mrb[1].mxu1  ;;  %v12120_v49 = vmul.f32 %v12106_v44, %v12106_v44  ;;  %v12124_v50 = vmul.f32 %v12108_v45, %v12108_v45 }
 0x100   :  { %19571 = vst [vmem:[#allocation11_spill] sm:$0xff] %v12110_v46  ;;  %v12152_v60 = vmul.f32 %v12110_v46, %v12110_v46 }
 0x101   :  { %v12116_v48 = vpop.f32.mrb[2].mxu0 }
 0x102   :  { %19572 = vst [vmem:[#allocation12_spill] sm:$0xff] %v12116_v48  ;;  %v9582_v51 = vpack.c.bf16 %v12116_v48, %v12104_v43  ;;  %v12130_v52 = vmul.f32 %v12116_v48, %v12116_v48  ;;  %v12132_v53 = vpop.f32.mrb[2].mxu1  ;;  %v12134_v54 = vpop.f32.mrb[3].mxu0 }
 0x103   :  { %19573 = vst [vmem:[#allocation13_spill] sm:$0xff] %v12132_v53  ;;  %19574 = vst [vmem:[#allocation14_spill] sm:$0xff] %v12134_v54  ;;  %v9638_v55 = vpack.c.bf16 %v12132_v53, %v12106_v44  ;;  %v12140_v56 = vmul.f32 %v12132_v53, %v12132_v53  ;;  %v9580_v57 = vpack.c.bf16 %v12134_v54, %v12108_v45  ;;  %v12148_v59 = vpop.f32.mrb[3].mxu1 }
 0x104   :  { %v12146_v58 = vmul.f32 %v12134_v54, %v12134_v54  ;;  %19575 = vst [vmem:[#allocation15_spill] sm:$0xff] %v12148_v59  ;;  %v9636_v62 = vpack.c.bf16 %v12148_v59, %v12110_v46  ;;  %v12160_v63 = vmul.f32 %v12148_v59, %v12148_v59 }
 0x105   :  { %v12164_v1 = vpop.f32.mrb[4].mxu0  ;;  %9581 = vmatprep.subr.bf16.mxu0 %v9580_v57 }
 0x106   :  { %19576 = vst [vmem:[#allocation16_spill] sm:$0xff] %v12164_v1  ;;  %v12168_v3 = vpop.f32.mrb[4].mxu1  ;;  %9637 = vmatprep.subr.bf16.mxu1 %v9636_v62  ;;  %v12170_v4 = vpop.f32.mrb[5].mxu0  ;;  %9583 = vmatpush1.bf16.msra.mxu0 %v9582_v51  ;;  %v12178_v7 = vmul.f32 %v12164_v1, %v12164_v1 }
 0x107   :  { %19577 = vst [vmem:[#allocation17_spill] sm:$0xff] %v12168_v3  ;;  %19578 = vst [vmem:[#allocation18_spill] sm:$0xff] %v12170_v4  ;;  %v12174_v6 = vpop.f32.mrb[5].mxu1  ;;  %9639 = vmatpush1.bf16.msra.mxu1 %v9638_v55  ;;  %v12184_v9 = vmul.f32 %v12168_v3, %v12168_v3  ;;  %v12188_v10 = vmul.f32 %v12170_v4, %v12170_v4 }
 0x108   :  { %19579 = vst [vmem:[#allocation19_spill] sm:$0xff] %v12174_v6  ;;  %v12216_v20 = vmul.f32 %v12174_v6, %v12174_v6 }
 0x109   :  { %v12180_v8 = vpop.f32.mrb[6].mxu0 }
 0x10a   :  { %19580 = vst [vmem:[#allocation20_spill] sm:$0xff] %v12180_v8  ;;  %v9586_v11 = vpack.c.bf16 %v12180_v8, %v12164_v1  ;;  %v12194_v12 = vmul.f32 %v12180_v8, %v12180_v8  ;;  %v12196_v13 = vpop.f32.mrb[6].mxu1  ;;  %v12198_v14 = vpop.f32.mrb[7].mxu0 }
 0x10b   :  { %19581 = vst [vmem:[#allocation21_spill] sm:$0xff] %v12196_v13  ;;  %19582 = vst [vmem:[#allocation22_spill] sm:$0xff] %v12198_v14  ;;  %v9642_v15 = vpack.c.bf16 %v12196_v13, %v12168_v3  ;;  %v12204_v16 = vmul.f32 %v12196_v13, %v12196_v13  ;;  %v9584_v17 = vpack.c.bf16 %v12198_v14, %v12170_v4  ;;  %v12212_v19 = vpop.f32.mrb[7].mxu1 }
 0x10c   :  { %v12210_v18 = vmul.f32 %v12198_v14, %v12198_v14  ;;  %19583 = vst [vmem:[#allocation23_spill] sm:$0xff] %v12212_v19  ;;  %v9640_v22 = vpack.c.bf16 %v12212_v19, %v12174_v6  ;;  %v12224_v23 = vmul.f32 %v12212_v19, %v12212_v19 }
 0x10d   :  { %v12228_v25 = vpop.f32.mrb[8].mxu0  ;;  %9585 = vmatprep.subr.bf16.mxu0 %v9584_v17 }
 0x10e   :  { %19584 = vst [vmem:[#allocation24_spill] sm:$0xff] %v12228_v25  ;;  %v12232_v27 = vpop.f32.mrb[8].mxu1  ;;  %9641 = vmatprep.subr.bf16.mxu1 %v9640_v22  ;;  %v12234_v28 = vpop.f32.mrb[9].mxu0  ;;  %9587 = vmatpush1.bf16.msra.mxu0 %v9586_v11  ;;  %v12242_v31 = vmul.f32 %v12228_v25, %v12228_v25 }
 0x10f   :  { %19585 = vst [vmem:[#allocation25_spill] sm:$0xff] %v12232_v27  ;;  %19586 = vst [vmem:[#allocation26_spill] sm:$0xff] %v12234_v28  ;;  %v12238_v30 = vpop.f32.mrb[9].mxu1  ;;  %9643 = vmatpush1.bf16.msra.mxu1 %v9642_v15  ;;  %v12248_v33 = vmul.f32 %v12232_v27, %v12232_v27  ;;  %v12252_v34 = vmul.f32 %v12234_v28, %v12234_v28 }
 0x110   :  { %19587 = vst [vmem:[#allocation27_spill] sm:$0xff] %v12238_v30  ;;  %v12280_v17 = vmul.f32 %v12238_v30, %v12238_v30 }
 0x111   :  { %v12244_v32 = vpop.f32.mrb[10].mxu0 }
 0x112   :  { %19588 = vst [vmem:[#allocation28_spill] sm:$0xff] %v12244_v32  ;;  %v9590_v35 = vpack.c.bf16 %v12244_v32, %v12228_v25  ;;  %v12258_v36 = vmul.f32 %v12244_v32, %v12244_v32  ;;  %v12260_v37 = vpop.f32.mrb[10].mxu1  ;;  %v12262_v51 = vpop.f32.mrb[11].mxu0 }
 0x113   :  { %19589 = vst [vmem:[#allocation29_spill] sm:$0xff] %v12260_v37  ;;  %19590 = vst [vmem:[#allocation30_spill] sm:$0xff] %v12262_v51  ;;  %v9646_v55 = vpack.c.bf16 %v12260_v37, %v12232_v27  ;;  %v12268_v57 = vmul.f32 %v12260_v37, %v12260_v37  ;;  %v9588_v62 = vpack.c.bf16 %v12262_v51, %v12234_v28  ;;  %v12276_v15 = vpop.f32.mrb[11].mxu1 }
 0x114   :  { %v12274_v11 = vmul.f32 %v12262_v51, %v12262_v51  ;;  %19591 = vst [vmem:[#allocation31_spill] sm:$0xff] %v12276_v15  ;;  %v9644_v39 = vpack.c.bf16 %v12276_v15, %v12238_v30  ;;  %v12288_v24 = vmul.f32 %v12276_v15, %v12276_v15 }
 0x115   :  { %v12292_v29 = vpop.f32.mrb[12].mxu0  ;;  %9589 = vmatprep.subr.bf16.mxu0 %v9588_v62 }
 0x116   :  { %19592 = vst [vmem:[#allocation32_spill] sm:$0xff] %v12292_v29  ;;  %v12296_v0 = vpop.f32.mrb[12].mxu1  ;;  %9645 = vmatprep.subr.bf16.mxu1 %v9644_v39  ;;  %v12298_v22 = vpop.f32.mrb[13].mxu0  ;;  %9591 = vmatpush1.bf16.msra.mxu0 %v9590_v35  ;;  %v12306_v21 = vmul.f32 %v12292_v29, %v12292_v29 }
 0x117   :  { %19593 = vst [vmem:[#allocation33_spill] sm:$0xff] %v12296_v0  ;;  %19594 = vst [vmem:[#allocation34_spill] sm:$0xff] %v12298_v22  ;;  %v12302_v5 = vpop.f32.mrb[13].mxu1  ;;  %9647 = vmatpush1.bf16.msra.mxu1 %v9646_v55  ;;  %v12312_v26 = vmul.f32 %v12296_v0, %v12296_v0  ;;  %v12316_v39 = vmul.f32 %v12298_v22, %v12298_v22 }
 0x118   :  { %19595 = vst [vmem:[#allocation35_spill] sm:$0xff] %v12302_v5  ;;  %v12344_v15 = vmul.f32 %v12302_v5, %v12302_v5 }
 0x119   :  { %v12308_v62 = vpop.f32.mrb[14].mxu0 }
 0x11a   :  { %19596 = vst [vmem:[#allocation36_spill] sm:$0xff] %v12308_v62  ;;  %v9594_v35 = vpack.c.bf16 %v12308_v62, %v12292_v29  ;;  %v12322_v55 = vmul.f32 %v12308_v62, %v12308_v62  ;;  %v12324_v61 = vpop.f32.mrb[14].mxu1  ;;  %v12326_v2 = vpop.f32.mrb[15].mxu0 }
 0x11b   :  { %19597 = vst [vmem:[#allocation37_spill] sm:$0xff] %v12324_v61  ;;  %19598 = vst [vmem:[#allocation38_spill] sm:$0xff] %v12326_v2  ;;  %v9650_v40 = vpack.c.bf16 %v12324_v61, %v12296_v0  ;;  %v12332_v37 = vmul.f32 %v12324_v61, %v12324_v61  ;;  %v9592_v32 = vpack.c.bf16 %v12326_v2, %v12298_v22  ;;  %v12340_v62 = vpop.f32.mrb[15].mxu1 }
 0x11c   :  { %v12338_v29 = vmul.f32 %v12326_v2, %v12326_v2  ;;  %19599 = vst [vmem:[#allocation39_spill] sm:$0xff] %v12340_v62  ;;  %v9648_v61 = vpack.c.bf16 %v12340_v62, %v12302_v5  ;;  %v12352_v51 = vmul.f32 %v12340_v62, %v12340_v62 }
 0x11d   :  { %v12356_v22 = vpop.f32.mrb[16].mxu0  ;;  %9593 = vmatprep.subr.bf16.mxu0 %v9592_v32 }
 0x11e   :  { %19600 = vst [vmem:[#allocation40_spill] sm:$0xff] %v12356_v22  ;;  %v12360_v25 = vpop.f32.mrb[16].mxu1  ;;  %9649 = vmatprep.subr.bf16.mxu1 %v9648_v61  ;;  %v12362_v0 = vpop.f32.mrb[17].mxu0  ;;  %9595 = vmatpush1.bf16.msra.mxu0 %v9594_v35  ;;  %v12370_v2 = vmul.f32 %v12356_v22, %v12356_v22 }
 0x11f   :  { %19601 = vst [vmem:[#allocation41_spill] sm:$0xff] %v12360_v25  ;;  %19602 = vst [vmem:[#allocation42_spill] sm:$0xff] %v12362_v0  ;;  %v12366_v62 = vpop.f32.mrb[17].mxu1  ;;  %9651 = vmatpush1.bf16.msra.mxu1 %v9650_v40  ;;  %v12376_v27 = vmul.f32 %v12360_v25, %v12360_v25  ;;  %v12380_v61 = vmul.f32 %v12362_v0, %v12362_v0 }
 0x120   :  { %19603 = vst [vmem:[#allocation43_spill] sm:$0xff] %v12366_v62  ;;  %v12408_v19 = vmul.f32 %v12366_v62, %v12366_v62 }
 0x121   :  { %v12372_v32 = vpop.f32.mrb[18].mxu0 }
 0x122   :  { %19604 = vst [vmem:[#allocation44_spill] sm:$0xff] %v12372_v32  ;;  %v9598_v35 = vpack.c.bf16 %v12372_v32, %v12356_v22  ;;  %v12386_v40 = vmul.f32 %v12372_v32, %v12372_v32  ;;  %v12388_v5 = vpop.f32.mrb[18].mxu1  ;;  %v12390_v30 = vpop.f32.mrb[19].mxu0 }
 0x123   :  { %19605 = vst [vmem:[#allocation45_spill] sm:$0xff] %v12388_v5  ;;  %19606 = vst [vmem:[#allocation46_spill] sm:$0xff] %v12390_v30  ;;  %v9654_v28 = vpack.c.bf16 %v12388_v5, %v12360_v25  ;;  %v12396_v13 = vmul.f32 %v12388_v5, %v12388_v5  ;;  %v9596_v8 = vpack.c.bf16 %v12390_v30, %v12362_v0  ;;  %v12404_v32 = vpop.f32.mrb[19].mxu1 }
 0x124   :  { %v12402_v22 = vmul.f32 %v12390_v30, %v12390_v30  ;;  %19607 = vst [vmem:[#allocation47_spill] sm:$0xff] %v12404_v32  ;;  %v9652_v5 = vpack.c.bf16 %v12404_v32, %v12366_v62  ;;  %v12416_v14 = vmul.f32 %v12404_v32, %v12404_v32 }
 0x125   :  { %v12420_v0 = vpop.f32.mrb[20].mxu0  ;;  %9597 = vmatprep.subr.bf16.mxu0 %v9596_v8 }
 0x126   :  { %19608 = vst [vmem:[#allocation48_spill] sm:$0xff] %v12420_v0  ;;  %v12424_v1 = vpop.f32.mrb[20].mxu1  ;;  %9653 = vmatprep.subr.bf16.mxu1 %v9652_v5  ;;  %v12426_v25 = vpop.f32.mrb[21].mxu0  ;;  %9599 = vmatpush1.bf16.msra.mxu0 %v9598_v35  ;;  %v12434_v30 = vmul.f32 %v12420_v0, %v12420_v0 }
 0x127   :  { %19609 = vst [vmem:[#allocation49_spill] sm:$0xff] %v12424_v1  ;;  %19610 = vst [vmem:[#allocation50_spill] sm:$0xff] %v12426_v25  ;;  %v12430_v32 = vpop.f32.mrb[21].mxu1  ;;  %9655 = vmatpush1.bf16.msra.mxu1 %v9654_v28  ;;  %v12440_v3 = vmul.f32 %v12424_v1, %v12424_v1  ;;  %v12444_v5 = vmul.f32 %v12426_v25, %v12426_v25 }
 0x128   :  { %19611 = vst [vmem:[#allocation51_spill] sm:$0xff] %v12430_v32  ;;  %19612 = vst [vmem:[#allocation52_spill] sm:$0xff] %v12434_v30  ;;  %v12472_v46 = vmul.f32 %v12430_v32, %v12430_v32 }
 0x129   :  { %v12436_v8 = vpop.f32.mrb[22].mxu0  ;;  %19614 = vst [vmem:[#allocation54_spill] sm:$0xff] %v12440_v3 }
 0x12a   :  { %19613 = vst [vmem:[#allocation53_spill] sm:$0xff] %v12436_v8  ;;  %v9602_v35 = vpack.c.bf16 %v12436_v8, %v12420_v0  ;;  %v12450_v28 = vmul.f32 %v12436_v8, %v12436_v8  ;;  %v12452_v62 = vpop.f32.mrb[22].mxu1  ;;  %v12454_v6 = vpop.f32.mrb[23].mxu0  ;;  %19620 = vst [vmem:[#allocation60_spill] sm:$0xff] %v12472_v46 }
 0x12b   :  { %19616 = vst [vmem:[#allocation56_spill] sm:$0xff] %v12452_v62  ;;  %19617 = vst [vmem:[#allocation57_spill] sm:$0xff] %v12454_v6  ;;  %v9658_v4 = vpack.c.bf16 %v12452_v62, %v12424_v1  ;;  %v12460_v59 = vmul.f32 %v12452_v62, %v12452_v62  ;;  %v9600_v54 = vpack.c.bf16 %v12454_v6, %v12426_v25  ;;  %v12468_v8 = vpop.f32.mrb[23].mxu1 }
 0x12c   :  { %19615 = vst [vmem:[#allocation55_spill] sm:$0xff] %v12450_v28  ;;  %v12466_v0 = vmul.f32 %v12454_v6, %v12454_v6  ;;  %19619 = vst [vmem:[#allocation59_spill] sm:$0xff] %v12468_v8  ;;  %v9656_v62 = vpack.c.bf16 %v12468_v8, %v12430_v32  ;;  %v12480_v45 = vmul.f32 %v12468_v8, %v12468_v8 }
 0x12d   :  { %19618 = vst [vmem:[#allocation58_spill] sm:$0xff] %v12460_v59  ;;  %v12484_v25 = vpop.f32.mrb[24].mxu0  ;;  %9601 = vmatprep.subr.bf16.mxu0 %v9600_v54 }
 0x12e   :  { %19621 = vst [vmem:[#allocation61_spill] sm:$0xff] %v12480_v45  ;;  %19622 = vst [vmem:[#allocation62_spill] sm:$0xff] %v12484_v25  ;;  %v12488_v48 = vpop.f32.mrb[24].mxu1  ;;  %9657 = vmatprep.subr.bf16.mxu1 %v9656_v62  ;;  %v12490_v1 = vpop.f32.mrb[25].mxu0  ;;  %9603 = vmatpush1.bf16.msra.mxu0 %v9602_v35  ;;  %v12498_v6 = vmul.f32 %v12484_v25, %v12484_v25 }
 0x12f   :  { %19623 = vst [vmem:[#allocation63_spill] sm:$0xff] %v12488_v48  ;;  %19624 = vst [vmem:[#allocation64_spill] sm:$0xff] %v12490_v1  ;;  %v12494_v8 = vpop.f32.mrb[25].mxu1  ;;  %9659 = vmatpush1.bf16.msra.mxu1 %v9658_v4  ;;  %v12504_v53 = vmul.f32 %v12488_v48, %v12488_v48  ;;  %v12508_v62 = vmul.f32 %v12490_v1, %v12490_v1 }
 0x130   :  { %19625 = vst [vmem:[#allocation65_spill] sm:$0xff] %v12494_v8  ;;  %19626 = vst [vmem:[#allocation66_spill] sm:$0xff] %v12498_v6  ;;  %v12536_v30 = vmul.f32 %v12494_v8, %v12494_v8 }
 0x131   :  { %v12500_v54 = vpop.f32.mrb[26].mxu0  ;;  %19628 = vst [vmem:[#allocation68_spill] sm:$0xff] %v12504_v53  ;;  %19629 = vst [vmem:[#allocation69_spill] sm:$0xff] %v12508_v62 }
 0x132   :  { %19627 = vst [vmem:[#allocation67_spill] sm:$0xff] %v12500_v54  ;;  %v9606_v35 = vpack.c.bf16 %v12500_v54, %v12484_v25  ;;  %v12514_v4 = vmul.f32 %v12500_v54, %v12500_v54  ;;  %v12516_v32 = vpop.f32.mrb[26].mxu1  ;;  %v12518_v44 = vpop.f32.mrb[27].mxu0  ;;  %19636 = vst [vmem:[#allocation76_spill] sm:$0xff] %v12536_v30 }
 0x133   :  { %19631 = vst [vmem:[#allocation71_spill] sm:$0xff] %v12516_v32  ;;  %19632 = vst [vmem:[#allocation72_spill] sm:$0xff] %v12518_v44  ;;  %v9662_v43 = vpack.c.bf16 %v12516_v32, %v12488_v48  ;;  %v12524_v3 = vmul.f32 %v12516_v32, %v12516_v32  ;;  %v9604_v59 = vpack.c.bf16 %v12518_v44, %v12490_v1  ;;  %v12532_v54 = vpop.f32.mrb[27].mxu1 }
 0x134   :  { %19630 = vst [vmem:[#allocation70_spill] sm:$0xff] %v12514_v4  ;;  %v12530_v25 = vmul.f32 %v12518_v44, %v12518_v44  ;;  %19635 = vst [vmem:[#allocation75_spill] sm:$0xff] %v12532_v54  ;;  %v9660_v32 = vpack.c.bf16 %v12532_v54, %v12494_v8  ;;  %v12544_v28 = vmul.f32 %v12532_v54, %v12532_v54 }
 0x135   :  { %19633 = vst [vmem:[#allocation73_spill] sm:$0xff] %v12524_v3  ;;  %v12548_v1 = vpop.f32.mrb[28].mxu0  ;;  %9605 = vmatprep.subr.bf16.mxu0 %v9604_v59 }
 0x136   :  { %19634 = vst [vmem:[#allocation74_spill] sm:$0xff] %v12530_v25  ;;  %19637 = vst [vmem:[#allocation77_spill] sm:$0xff] %v12544_v28  ;;  %v12552_v45 = vpop.f32.mrb[28].mxu1  ;;  %9661 = vmatprep.subr.bf16.mxu1 %v9660_v32  ;;  %v12554_v48 = vpop.f32.mrb[29].mxu0  ;;  %9607 = vmatpush1.bf16.msra.mxu0 %v9606_v35  ;;  %v12562_v44 = vmul.f32 %v12548_v1, %v12548_v1 }
 0x137   :  { %19638 = vst [vmem:[#allocation78_spill] sm:$0xff] %v12548_v1  ;;  %19639 = vst [vmem:[#allocation79_spill] sm:$0xff] %v12552_v45  ;;  %v12558_v54 = vpop.f32.mrb[29].mxu1  ;;  %9663 = vmatpush1.bf16.msra.mxu1 %v9662_v43  ;;  %v12568_v46 = vmul.f32 %v12552_v45, %v12552_v45  ;;  %v12572_v32 = vmul.f32 %v12554_v48, %v12554_v48 }
 0x138   :  { %19640 = vst [vmem:[#allocation80_spill] sm:$0xff] %v12554_v48  ;;  %19641 = vst [vmem:[#allocation81_spill] sm:$0xff] %v12558_v54  ;;  %v12600_v30 = vmul.f32 %v12558_v54, %v12558_v54 }
 0x139   :  { %19642 = vst [vmem:[#allocation82_spill] sm:$0xff] %v12562_v44  ;;  %v12564_v59 = vpop.f32.mrb[30].mxu0  ;;  %19644 = vst [vmem:[#allocation84_spill] sm:$0xff] %v12568_v46 }
 0x13a   :  { %19643 = vst [vmem:[#allocation83_spill] sm:$0xff] %v12564_v59  ;;  %19645 = vst [vmem:[#allocation85_spill] sm:$0xff] %v12572_v32  ;;  %v9610_v35 = vpack.c.bf16 %v12564_v59, %v12548_v1  ;;  %v12578_v43 = vmul.f32 %v12564_v59, %v12564_v59  ;;  %v12580_v8 = vpop.f32.mrb[30].mxu1  ;;  %v12582_v53 = vpop.f32.mrb[31].mxu0 }
 0x13b   :  { %19647 = vst [vmem:[#allocation87_spill] sm:$0xff] %v12580_v8  ;;  %19648 = vst [vmem:[#allocation88_spill] sm:$0xff] %v12582_v53  ;;  %v9666_v3 = vpack.c.bf16 %v12580_v8, %v12552_v45  ;;  %v12588_v6 = vmul.f32 %v12580_v8, %v12580_v8  ;;  %v9608_v4 = vpack.c.bf16 %v12582_v53, %v12554_v48  ;;  %v12596_v59 = vpop.f32.mrb[31].mxu1 }
 0x13c   :  { %19646 = vst [vmem:[#allocation86_spill] sm:$0xff] %v12578_v43  ;;  %v12594_v1 = vmul.f32 %v12582_v53, %v12582_v53  ;;  %19651 = vst [vmem:[#allocation91_spill] sm:$0xff] %v12596_v59  ;;  %v9664_v8 = vpack.c.bf16 %v12596_v59, %v12558_v54  ;;  %v12608_v28 = vmul.f32 %v12596_v59, %v12596_v59 }
 0x13d   :  { %19649 = vst [vmem:[#allocation89_spill] sm:$0xff] %v12588_v6  ;;  %19652 = vst [vmem:[#allocation92_spill] sm:$0xff] %v12600_v30  ;;  %v12612_v48 = vpop.f32.mrb[32].mxu0  ;;  %9609 = vmatprep.subr.bf16.mxu0 %v9608_v4 }
 0x13e   :  { %19650 = vst [vmem:[#allocation90_spill] sm:$0xff] %v12594_v1  ;;  %19653 = vst [vmem:[#allocation93_spill] sm:$0xff] %v12608_v28  ;;  %v12616_v25 = vpop.f32.mrb[32].mxu1  ;;  %9665 = vmatprep.subr.bf16.mxu1 %v9664_v8  ;;  %v12618_v45 = vpop.f32.mrb[33].mxu0  ;;  %9611 = vmatpush1.bf16.msra.mxu0 %v9610_v35  ;;  %v12626_v53 = vmul.f32 %v12612_v48, %v12612_v48 }
 0x13f   :  { %19654 = vst [vmem:[#allocation94_spill] sm:$0xff] %v12612_v48  ;;  %19655 = vst [vmem:[#allocation95_spill] sm:$0xff] %v12616_v25  ;;  %v12622_v59 = vpop.f32.mrb[33].mxu1  ;;  %9667 = vmatpush1.bf16.msra.mxu1 %v9666_v3  ;;  %v12632_v62 = vmul.f32 %v12616_v25, %v12616_v25  ;;  %v12636_v8 = vmul.f32 %v12618_v45, %v12618_v45 }
 0x140   :  { %19656 = vst [vmem:[#allocation96_spill] sm:$0xff] %v12618_v45  ;;  %19657 = vst [vmem:[#allocation97_spill] sm:$0xff] %v12622_v59  ;;  %v12664_v30 = vmul.f32 %v12622_v59, %v12622_v59 }
 0x141   :  { %19658 = vst [vmem:[#allocation98_spill] sm:$0xff] %v12626_v53  ;;  %v12628_v4 = vpop.f32.mrb[34].mxu0  ;;  %19660 = vst [vmem:[#allocation100_spill] sm:$0xff] %v12632_v62 }
 0x142   :  { %19659 = vst [vmem:[#allocation99_spill] sm:$0xff] %v12628_v4  ;;  %19661 = vst [vmem:[#allocation101_spill] sm:$0xff] %v12636_v8  ;;  %v9614_v35 = vpack.c.bf16 %v12628_v4, %v12612_v48  ;;  %v12642_v3 = vmul.f32 %v12628_v4, %v12628_v4  ;;  %v12644_v54 = vpop.f32.mrb[34].mxu1  ;;  %v12646_v46 = vpop.f32.mrb[35].mxu0 }
 0x143   :  { %19663 = vst [vmem:[#allocation103_spill] sm:$0xff] %v12644_v54  ;;  %19664 = vst [vmem:[#allocation104_spill] sm:$0xff] %v12646_v46  ;;  %v9670_v6 = vpack.c.bf16 %v12644_v54, %v12616_v25  ;;  %v12652_v44 = vmul.f32 %v12644_v54, %v12644_v54  ;;  %v9612_v43 = vpack.c.bf16 %v12646_v46, %v12618_v45  ;;  %v12660_v4 = vpop.f32.mrb[35].mxu1 }
 0x144   :  { %19662 = vst [vmem:[#allocation102_spill] sm:$0xff] %v12642_v3  ;;  %v12658_v48 = vmul.f32 %v12646_v46, %v12646_v46  ;;  %19667 = vst [vmem:[#allocation107_spill] sm:$0xff] %v12660_v4  ;;  %v9668_v54 = vpack.c.bf16 %v12660_v4, %v12622_v59  ;;  %v12672_v28 = vmul.f32 %v12660_v4, %v12660_v4 }
 0x145   :  { %19665 = vst [vmem:[#allocation105_spill] sm:$0xff] %v12652_v44  ;;  %19668 = vst [vmem:[#allocation108_spill] sm:$0xff] %v12664_v30  ;;  %v12676_v45 = vpop.f32.mrb[36].mxu0  ;;  %9613 = vmatprep.subr.bf16.mxu0 %v9612_v43 }
 0x146   :  { %19666 = vst [vmem:[#allocation106_spill] sm:$0xff] %v12658_v48  ;;  %19669 = vst [vmem:[#allocation109_spill] sm:$0xff] %v12672_v28  ;;  %v12680_v1 = vpop.f32.mrb[36].mxu1  ;;  %9669 = vmatprep.subr.bf16.mxu1 %v9668_v54  ;;  %v12682_v25 = vpop.f32.mrb[37].mxu0  ;;  %9615 = vmatpush1.bf16.msra.mxu0 %v9614_v35  ;;  %v12690_v46 = vmul.f32 %v12676_v45, %v12676_v45 }
 0x147   :  { %19670 = vst [vmem:[#allocation110_spill] sm:$0xff] %v12676_v45  ;;  %19671 = vst [vmem:[#allocation111_spill] sm:$0xff] %v12680_v1  ;;  %v12686_v4 = vpop.f32.mrb[37].mxu1  ;;  %9671 = vmatpush1.bf16.msra.mxu1 %v9670_v6  ;;  %v12696_v32 = vmul.f32 %v12680_v1, %v12680_v1  ;;  %v12700_v54 = vmul.f32 %v12682_v25, %v12682_v25 }
 0x148   :  { %19672 = vst [vmem:[#allocation112_spill] sm:$0xff] %v12682_v25  ;;  %19673 = vst [vmem:[#allocation113_spill] sm:$0xff] %v12686_v4  ;;  %v12728_v30 = vmul.f32 %v12686_v4, %v12686_v4 }
 0x149   :  { %19674 = vst [vmem:[#allocation114_spill] sm:$0xff] %v12690_v46  ;;  %v12692_v43 = vpop.f32.mrb[38].mxu0  ;;  %19676 = vst [vmem:[#allocation116_spill] sm:$0xff] %v12696_v32 }
 0x14a   :  { %19675 = vst [vmem:[#allocation115_spill] sm:$0xff] %v12692_v43  ;;  %19677 = vst [vmem:[#allocation117_spill] sm:$0xff] %v12700_v54  ;;  %v9618_v35 = vpack.c.bf16 %v12692_v43, %v12676_v45  ;;  %v12706_v6 = vmul.f32 %v12692_v43, %v12692_v43  ;;  %v12708_v59 = vpop.f32.mrb[38].mxu1  ;;  %v12710_v62 = vpop.f32.mrb[39].mxu0 }
 0x14b   :  { %19679 = vst [vmem:[#allocation119_spill] sm:$0xff] %v12708_v59  ;;  %19680 = vst [vmem:[#allocation120_spill] sm:$0xff] %v12710_v62  ;;  %v9674_v44 = vpack.c.bf16 %v12708_v59, %v12680_v1  ;;  %v12716_v53 = vmul.f32 %v12708_v59, %v12708_v59  ;;  %v9616_v3 = vpack.c.bf16 %v12710_v62, %v12682_v25  ;;  %v12724_v43 = vpop.f32.mrb[39].mxu1 }
 0x14c   :  { %19678 = vst [vmem:[#allocation118_spill] sm:$0xff] %v12706_v6  ;;  %v12722_v45 = vmul.f32 %v12710_v62, %v12710_v62  ;;  %19683 = vst [vmem:[#allocation123_spill] sm:$0xff] %v12724_v43  ;;  %v9672_v59 = vpack.c.bf16 %v12724_v43, %v12686_v4  ;;  %v12736_v28 = vmul.f32 %v12724_v43, %v12724_v43 }
 0x14d   :  { %19681 = vst [vmem:[#allocation121_spill] sm:$0xff] %v12716_v53  ;;  %19684 = vst [vmem:[#allocation124_spill] sm:$0xff] %v12728_v30  ;;  %v12740_v25 = vpop.f32.mrb[40].mxu0  ;;  %9617 = vmatprep.subr.bf16.mxu0 %v9616_v3 }
 0x14e   :  { %19682 = vst [vmem:[#allocation122_spill] sm:$0xff] %v12722_v45  ;;  %19685 = vst [vmem:[#allocation125_spill] sm:$0xff] %v12736_v28  ;;  %v12744_v48 = vpop.f32.mrb[40].mxu1  ;;  %9673 = vmatprep.subr.bf16.mxu1 %v9672_v59  ;;  %v12746_v1 = vpop.f32.mrb[41].mxu0  ;;  %9619 = vmatpush1.bf16.msra.mxu0 %v9618_v35  ;;  %v12754_v62 = vmul.f32 %v12740_v25, %v12740_v25 }
 0x14f   :  { %19686 = vst [vmem:[#allocation126_spill] sm:$0xff] %v12740_v25  ;;  %19687 = vst [vmem:[#allocation127_spill] sm:$0xff] %v12744_v48  ;;  %v12750_v43 = vpop.f32.mrb[41].mxu1  ;;  %9675 = vmatpush1.bf16.msra.mxu1 %v9674_v44  ;;  %v12760_v8 = vmul.f32 %v12744_v48, %v12744_v48  ;;  %v12764_v59 = vmul.f32 %v12746_v1, %v12746_v1 }
 0x150   :  { %19688 = vst [vmem:[#allocation128_spill] sm:$0xff] %v12746_v1  ;;  %19689 = vst [vmem:[#allocation129_spill] sm:$0xff] %v12750_v43  ;;  %v12792_v30 = vmul.f32 %v12750_v43, %v12750_v43 }
 0x151   :  { %19690 = vst [vmem:[#allocation130_spill] sm:$0xff] %v12754_v62  ;;  %v12756_v3 = vpop.f32.mrb[42].mxu0  ;;  %19692 = vst [vmem:[#allocation132_spill] sm:$0xff] %v12760_v8 }
 0x152   :  { %19691 = vst [vmem:[#allocation131_spill] sm:$0xff] %v12756_v3  ;;  %19693 = vst [vmem:[#allocation133_spill] sm:$0xff] %v12764_v59  ;;  %v9622_v35 = vpack.c.bf16 %v12756_v3, %v12740_v25  ;;  %v12770_v44 = vmul.f32 %v12756_v3, %v12756_v3  ;;  %v12772_v4 = vpop.f32.mrb[42].mxu1  ;;  %v12774_v32 = vpop.f32.mrb[43].mxu0 }
 0x153   :  { %19695 = vst [vmem:[#allocation135_spill] sm:$0xff] %v12772_v4  ;;  %19696 = vst [vmem:[#allocation136_spill] sm:$0xff] %v12774_v32  ;;  %v9678_v53 = vpack.c.bf16 %v12772_v4, %v12744_v48  ;;  %v12780_v46 = vmul.f32 %v12772_v4, %v12772_v4  ;;  %v9620_v6 = vpack.c.bf16 %v12774_v32, %v12746_v1  ;;  %v12788_v3 = vpop.f32.mrb[43].mxu1 }
 0x154   :  { %19694 = vst [vmem:[#allocation134_spill] sm:$0xff] %v12770_v44  ;;  %v12786_v25 = vmul.f32 %v12774_v32, %v12774_v32  ;;  %19699 = vst [vmem:[#allocation139_spill] sm:$0xff] %v12788_v3  ;;  %v9676_v4 = vpack.c.bf16 %v12788_v3, %v12750_v43  ;;  %v12800_v28 = vmul.f32 %v12788_v3, %v12788_v3 }
 0x155   :  { %19697 = vst [vmem:[#allocation137_spill] sm:$0xff] %v12780_v46  ;;  %19700 = vst [vmem:[#allocation140_spill] sm:$0xff] %v12792_v30  ;;  %v12804_v1 = vpop.f32.mrb[44].mxu0  ;;  %9621 = vmatprep.subr.bf16.mxu0 %v9620_v6 }
 0x156   :  { %19698 = vst [vmem:[#allocation138_spill] sm:$0xff] %v12786_v25  ;;  %19701 = vst [vmem:[#allocation141_spill] sm:$0xff] %v12800_v28  ;;  %v12808_v45 = vpop.f32.mrb[44].mxu1  ;;  %9677 = vmatprep.subr.bf16.mxu1 %v9676_v4  ;;  %v12810_v48 = vpop.f32.mrb[45].mxu0  ;;  %9623 = vmatpush1.bf16.msra.mxu0 %v9622_v35  ;;  %v12818_v32 = vmul.f32 %v12804_v1, %v12804_v1 }
 0x157   :  { %19702 = vst [vmem:[#allocation142_spill] sm:$0xff] %v12804_v1  ;;  %19703 = vst [vmem:[#allocation143_spill] sm:$0xff] %v12808_v45  ;;  %v12814_v3 = vpop.f32.mrb[45].mxu1  ;;  %9679 = vmatpush1.bf16.msra.mxu1 %v9678_v53  ;;  %v12824_v54 = vmul.f32 %v12808_v45, %v12808_v45  ;;  %v12828_v4 = vmul.f32 %v12810_v48, %v12810_v48 }
 0x158   :  { %19704 = vst [vmem:[#allocation144_spill] sm:$0xff] %v12810_v48  ;;  %19705 = vst [vmem:[#allocation145_spill] sm:$0xff] %v12814_v3  ;;  %v12856_v30 = vmul.f32 %v12814_v3, %v12814_v3 }
 0x159   :  { %19706 = vst [vmem:[#allocation146_spill] sm:$0xff] %v12818_v32  ;;  %v12820_v6 = vpop.f32.mrb[46].mxu0  ;;  %19708 = vst [vmem:[#allocation148_spill] sm:$0xff] %v12824_v54 }
 0x15a   :  { %19707 = vst [vmem:[#allocation147_spill] sm:$0xff] %v12820_v6  ;;  %19709 = vst [vmem:[#allocation149_spill] sm:$0xff] %v12828_v4  ;;  %v9626_v35 = vpack.c.bf16 %v12820_v6, %v12804_v1  ;;  %v12834_v53 = vmul.f32 %v12820_v6, %v12820_v6  ;;  %v12836_v43 = vpop.f32.mrb[46].mxu1  ;;  %v12838_v8 = vpop.f32.mrb[47].mxu0  ;;  %v12951_v4 = vsub.s32 0, %v12087_v38 }
 0x15b   :  { %19711 = vst [vmem:[#allocation151_spill] sm:$0xff] %v12836_v43  ;;  %19712 = vst [vmem:[#allocation152_spill] sm:$0xff] %v12838_v8  ;;  %v9682_v46 = vpack.c.bf16 %v12836_v43, %v12808_v45  ;;  %v12844_v62 = vmul.f32 %v12836_v43, %v12836_v43  ;;  %v9624_v44 = vpack.c.bf16 %v12838_v8, %v12810_v48  ;;  %v12852_v6 = vpop.f32.mrb[47].mxu1 }
 0x15c   :  { %19710 = vst [vmem:[#allocation150_spill] sm:$0xff] %v12834_v53  ;;  %v12850_v1 = vmul.f32 %v12838_v8, %v12838_v8  ;;  %19715 = vst [vmem:[#allocation155_spill] sm:$0xff] %v12852_v6  ;;  %v9680_v43 = vpack.c.bf16 %v12852_v6, %v12814_v3  ;;  %v12864_v28 = vmul.f32 %v12852_v6, %v12852_v6 }
 0x15d   :  { %19713 = vst [vmem:[#allocation153_spill] sm:$0xff] %v12844_v62  ;;  %19716 = vst [vmem:[#allocation156_spill] sm:$0xff] %v12856_v30  ;;  %v12868_v48 = vpop.f32.mrb[48].mxu0  ;;  %9625 = vmatprep.subr.bf16.mxu0 %v9624_v44 }
 0x15e   :  { %19714 = vst [vmem:[#allocation154_spill] sm:$0xff] %v12850_v1  ;;  %19717 = vst [vmem:[#allocation157_spill] sm:$0xff] %v12864_v28  ;;  %v12872_v25 = vpop.f32.mrb[48].mxu1  ;;  %9681 = vmatprep.subr.bf16.mxu1 %v9680_v43  ;;  %v12874_v45 = vpop.f32.mrb[49].mxu0  ;;  %9627 = vmatpush1.bf16.msra.mxu0 %v9626_v35  ;;  %v12882_v8 = vmul.f32 %v12868_v48, %v12868_v48 }
 0x15f   :  { %19718 = vst [vmem:[#allocation158_spill] sm:$0xff] %v12868_v48  ;;  %19719 = vst [vmem:[#allocation159_spill] sm:$0xff] %v12872_v25  ;;  %v12878_v6 = vpop.f32.mrb[49].mxu1  ;;  %9683 = vmatpush1.bf16.msra.mxu1 %v9682_v46  ;;  %v12888_v59 = vmul.f32 %v12872_v25, %v12872_v25  ;;  %v12892_v43 = vmul.f32 %v12874_v45, %v12874_v45 }
 0x160   :  { %19720 = vst [vmem:[#allocation160_spill] sm:$0xff] %v12874_v45  ;;  %19721 = vst [vmem:[#allocation161_spill] sm:$0xff] %v12878_v6  ;;  %v12920_v30 = vmul.f32 %v12878_v6, %v12878_v6 }
 0x161   :  { %19722 = vst [vmem:[#allocation162_spill] sm:$0xff] %v12882_v8  ;;  %v12884_v44 = vpop.f32.mrb[50].mxu0  ;;  %19724 = vst [vmem:[#allocation164_spill] sm:$0xff] %v12888_v59 }
 0x162   :  { %19723 = vst [vmem:[#allocation163_spill] sm:$0xff] %v12884_v44  ;;  %19725 = vst [vmem:[#allocation165_spill] sm:$0xff] %v12892_v43  ;;  %v9630_v35 = vpack.c.bf16 %v12884_v44, %v12868_v48  ;;  %v12898_v46 = vmul.f32 %v12884_v44, %v12884_v44  ;;  %v12900_v3 = vpop.f32.mrb[50].mxu1  ;;  %v12902_v54 = vpop.f32.mrb[51].mxu0 }
 0x163   :  { %19727 = vst [vmem:[#allocation167_spill] sm:$0xff] %v12900_v3  ;;  %19728 = vst [vmem:[#allocation168_spill] sm:$0xff] %v12902_v54  ;;  %v9686_v62 = vpack.c.bf16 %v12900_v3, %v12872_v25  ;;  %v12908_v32 = vmul.f32 %v12900_v3, %v12900_v3  ;;  %v9628_v53 = vpack.c.bf16 %v12902_v54, %v12874_v45  ;;  %v12916_v44 = vpop.f32.mrb[51].mxu1 }
 0x164   :  { %19726 = vst [vmem:[#allocation166_spill] sm:$0xff] %v12898_v46  ;;  %v12914_v48 = vmul.f32 %v12902_v54, %v12902_v54  ;;  %19730 = vst [vmem:[#allocation170_spill] sm:$0xff] %v12916_v44  ;;  %v9684_v3 = vpack.c.bf16 %v12916_v44, %v12878_v6  ;;  %v12928_v28 = vmul.f32 %v12916_v44, %v12916_v44 }
 0x165   :  { %19729 = vst [vmem:[#allocation169_spill] sm:$0xff] %v12908_v32  ;;  %19731 = vst [vmem:[#allocation171_spill] sm:$0xff] %v12920_v30  ;;  %v12932_v45 = vpop.f32.mrb[52].mxu0  ;;  %9629 = vmatprep.subr.bf16.mxu0 %v9628_v53 }
 0x166   :  { %19732 = vst [vmem:[#allocation172_spill] sm:$0xff] %v12928_v28  ;;  %19733 = vst [vmem:[#allocation173_spill] sm:$0xff] %v12932_v45  ;;  %v12936_v1 = vpop.f32.mrb[52].mxu1  ;;  %9685 = vmatprep.subr.bf16.mxu1 %v9684_v3  ;;  %v12938_v25 = vpop.f32.mrb[53].mxu0  ;;  %9631 = vmatpush1.bf16.msra.mxu0 %v9630_v35  ;;  %v12946_v54 = vmul.f32 %v12932_v45, %v12932_v45 }
 0x167   :  { %19734 = vst [vmem:[#allocation174_spill] sm:$0xff] %v12936_v1  ;;  %19735 = vst [vmem:[#allocation175_spill] sm:$0xff] %v12938_v25  ;;  %v12942_v44 = vpop.f32.mrb[53].mxu1  ;;  %9687 = vmatpush1.bf16.msra.mxu1 %v9686_v62  ;;  %v12955_v3 = vmul.f32 %v12936_v1, %v12936_v1  ;;  %v12959_v35 = vmul.f32 %v12938_v25, %v12938_v25 }
 0x168   :  { %19736 = vst [vmem:[#allocation176_spill] sm:$0xff] %v12942_v44  ;;  %19738 = vst [vmem:[#allocation178_spill] sm:$0xff] %v12951_v4  ;;  %v12987_v30 = vmul.f32 %v12942_v44, %v12942_v44 }
 0x169   :  { %v12948_v53 = vpop.f32.mrb[54].mxu0 }
 0x16a   :  { %19737 = vst [vmem:[#allocation177_spill] sm:$0xff] %v12948_v53  ;;  %v9634_v62 = vpack.c.bf16 %v12948_v53, %v12932_v45  ;;  %v12965_v6 = vmul.f32 %v12948_v53, %v12948_v53  ;;  %v12967_v59 = vpop.f32.mrb[54].mxu1  ;;  %v12969_v32 = vpop.f32.mrb[55].mxu0 }
 0x16b   :  { %19739 = vst [vmem:[#allocation179_spill] sm:$0xff] %v12967_v59  ;;  %19740 = vst [vmem:[#allocation180_spill] sm:$0xff] %v12969_v32  ;;  %v9690_v38 = vpack.c.bf16 %v12967_v59, %v12936_v1  ;;  %v12975_v8 = vmul.f32 %v12967_v59, %v12967_v59  ;;  %v9632_v46 = vpack.c.bf16 %v12969_v32, %v12938_v25  ;;  %v12983_v53 = vpop.f32.mrb[55].mxu1 }
 0x16c   :  { %v12981_v45 = vmul.f32 %v12969_v32, %v12969_v32  ;;  %19741 = vst [vmem:[#allocation181_spill] sm:$0xff] %v12983_v53  ;;  %v9688_v59 = vpack.c.bf16 %v12983_v53, %v12942_v44  ;;  %v12995_v28 = vmul.f32 %v12983_v53, %v12983_v53  ;;  %v13001_v25 = vrot.slane %v12093_v41, %v12951_v4  ;;  %v14267_v44 = vld [vmem:[%s19214_s2 + $0x238] sm:$0xff] }
 0x16d   :  { %v9802_v32 = vpack.c.bf16 %v12975_v8, %v12955_v3  ;;  %9633 = vmatprep.subr.bf16.mxu0 %v9632_v46  ;;  %v19742_v53 = vpack.c.bf16 %v12146_v58, %v12124_v50  ;;  %v19743_v46 = vpack.c.bf16 %v12160_v63, %v12152_v60  ;;  %v19744_v41 = vpack.c.bf16 %v12130_v52, %v12114_v47  ;;  %v782_v8 = vld [vmem:[%s19215_s3 + $0x118] sm:$0xff]  ;;  %v767_v3 = vld [vmem:[%s19215_s3 + $0xa0] sm:$0xff] }
 0x16e   :  { %v9744_v43 = vpack.c.bf16 %v12981_v45, %v12959_v35  ;;  %9689 = vmatprep.subr.bf16.mxu1 %v9688_v59  ;;  %9635 = vmatpush1.bf16.msra.mxu0 %v9634_v62  ;;  %v9800_v1 = vpack.c.bf16 %v12995_v28, %v12987_v30  ;;  %v19745_v59 = vpack.c.bf16 %v12140_v56, %v12120_v49  ;;  %v19791_v62 = vld [vmem:[#allocation82_spill] sm:$0xff]  ;;  %v765_v35 = vld [vmem:[%s19215_s3 + $0x90] sm:$0xff] }
 0x16f   :  { %9691 = vmatpush1.bf16.msra.mxu1 %v9690_v38  ;;  %9693 = vmatprep.subr.bf16.mxu0 %v19742_v53  ;;  %v19746_v38 = vpack.c.bf16 %v12210_v18, %v12188_v10  ;;  %v19747_v50 = vpack.c.bf16 %v12224_v23, %v12216_v20  ;;  %v19748_v47 = vpack.c.bf16 %v12194_v12, %v12178_v7  ;;  %v19764_v23 = vld [vmem:[#allocation60_spill] sm:$0xff]  ;;  %v19790_v53 = vld [vmem:[#allocation86_spill] sm:$0xff] }
 0x170   :  { %9749 = vmatprep.subr.bf16.mxu1 %v19743_v46  ;;  %v19749_v49 = vpack.c.bf16 %v12204_v16, %v12184_v9  ;;  %v19750_v52 = vpack.c.bf16 %v12274_v11, %v12252_v34  ;;  %v19751_v56 = vpack.c.bf16 %v12288_v24, %v12280_v17  ;;  %v19752_v58 = vpack.c.bf16 %v12258_v36, %v12242_v31  ;;  %v19770_v31 = vld [vmem:[#allocation54_spill] sm:$0xff]  ;;  %v19773_v34 = vld [vmem:[#allocation69_spill] sm:$0xff]  ;;  %v19776_v36 = vld [vmem:[#allocation76_spill] sm:$0xff] }
 0x171   :  { %899 = vmatmul.mubr.f32.vlgmr.msra.gmra.mrb[56].mxu0 %v13001_v25  ;;  %v19754_v60 = vpack.c.bf16 %v12338_v29, %v12316_v39  ;;  %v19755_v63 = vpack.c.bf16 %v12352_v51, %v12344_v15  ;;  %v19756_v7 = vpack.c.bf16 %v12322_v55, %v12306_v21  ;;  %v19757_v9 = vpack.c.bf16 %v12332_v37, %v12312_v26  ;;  %v19763_v21 = vld [vmem:[#allocation61_spill] sm:$0xff]  ;;  %v19766_v26 = vld [vmem:[#allocation55_spill] sm:$0xff]  ;;  %v19767_v29 = vld [vmem:[#allocation52_spill] sm:$0xff] }
 0x172   :  { %970 = vmatmul.mubr.f32.vlgmr.msra.gmra.mrb[56].mxu1 %v13001_v25  ;;  %9695 = vmatpush1.bf16.msra.mxu0 %v19744_v41  ;;  %v19758_v10 = vpack.c.bf16 %v12402_v22, %v12380_v61  ;;  %v19759_v12 = vpack.c.bf16 %v12416_v14, %v12408_v19  ;;  %v19760_v16 = vpack.c.bf16 %v12386_v40, %v12370_v2  ;;  %v19769_v19 = vld [vmem:[#allocation58_spill] sm:$0xff]  ;;  %v19781_v11 = vld [vmem:[#allocation73_spill] sm:$0xff]  ;;  %v19782_v15 = vld [vmem:[#allocation68_spill] sm:$0xff] }
 0x173   :  { %9751 = vmatpush1.bf16.msra.mxu1 %v19745_v59  ;;  %9697 = vmatprep.subr.bf16.mxu0 %v19746_v38  ;;  %v19761_v18 = vpack.c.bf16 %v12396_v13, %v12376_v27  ;;  %v19762_v20 = vpack.c.bf16 %v12466_v0, %v12444_v5  ;;  %v19765_v24 = vpack.c.bf16 %v19763_v21, %v19764_v23  ;;  %v19775_v27 = vld [vmem:[#allocation77_spill] sm:$0xff]  ;;  %v19778_v37 = vld [vmem:[#allocation70_spill] sm:$0xff]  ;;  %v19788_v40 = vld [vmem:[#allocation92_spill] sm:$0xff] }
 0x174   :  { %9753 = vmatprep.subr.bf16.mxu1 %v19747_v50  ;;  %8243 = vmatprep.mubr.msk.f32.mxu0 %vm831_vm4, %v12098_v42  ;;  %v19768_v14 = vpack.c.bf16 %v19766_v26, %v19767_v29  ;;  %v19771_v2 = vpack.c.bf16 %v19769_v19, %v19770_v31  ;;  %v19777_v0 = vpack.c.bf16 %v19775_v27, %v19776_v36  ;;  %v19779_v51 = vld [vmem:[#allocation66_spill] sm:$0xff]  ;;  %v19785_v39 = vld [vmem:[#allocation85_spill] sm:$0xff]  ;;  %v19794_v59 = vld [vmem:[#allocation84_spill] sm:$0xff] }
 0x175   :  { %8244 = vmatprep.mubr.msk.f32.mxu1 %vm831_vm4, %v12098_v42  ;;  %v19753_v42 = vpack.c.bf16 %v12268_v57, %v12248_v33  ;;  %v19772_v33 = vld [vmem:[#allocation74_spill] sm:$0xff]  ;;  %v19780_v57 = vpack.c.bf16 %v19778_v37, %v19779_v51  ;;  %v19783_v17 = vpack.c.bf16 %v19781_v11, %v19782_v15  ;;  %v19787_v61 = vld [vmem:[#allocation93_spill] sm:$0xff]  ;;  %v19792_v46 = vpack.c.bf16 %v19790_v53, %v19791_v62  ;;  %v19812_v21 = vld [vmem:[#allocation124_spill] sm:$0xff] }
 0x176   :  { %9699 = vmatpush1.bf16.msra.mxu0 %v19748_v47  ;;  %v19774_v13 = vpack.c.bf16 %v19772_v33, %v19773_v34  ;;  %v19784_v22 = vld [vmem:[#allocation90_spill] sm:$0xff]  ;;  %v19789_v5 = vpack.c.bf16 %v19787_v61, %v19788_v40  ;;  %v19793_v41 = vld [vmem:[#allocation89_spill] sm:$0xff]  ;;  %v19818_v19 = vld [vmem:[#allocation116_spill] sm:$0xff]  ;;  %v19855_v30 = vpack.c.bf16 %v12965_v6, %v12946_v54 }
 0x177   :  { %9755 = vmatpush1.bf16.msra.mxu1 %v19749_v49  ;;  %9701 = vmatprep.subr.bf16.mxu0 %v19750_v52  ;;  %v19786_v55 = vpack.c.bf16 %v19784_v22, %v19785_v39  ;;  %v19795_v38 = vpack.c.bf16 %v19793_v41, %v19794_v59  ;;  %v19796_v50 = vld [vmem:[#allocation106_spill] sm:$0xff]  ;;  %v19797_v47 = vld [vmem:[#allocation101_spill] sm:$0xff]  ;;  %v19824_v27 = vld [vmem:[#allocation140_spill] sm:$0xff] }
 0x178   :  { %9757 = vmatprep.subr.bf16.mxu1 %v19751_v56  ;;  %v19798_v49 = vpack.c.bf16 %v19796_v50, %v19797_v47  ;;  %v19799_v52 = vld [vmem:[#allocation109_spill] sm:$0xff]  ;;  %v19800_v56 = vld [vmem:[#allocation108_spill] sm:$0xff]  ;;  %v19815_v26 = vld [vmem:[#allocation114_spill] sm:$0xff] }
 0x179   :  { %v19821_v33 = vld [vmem:[#allocation133_spill] sm:$0xff]  ;;  %v19827_v37 = vld [vmem:[#allocation130_spill] sm:$0xff]  ;;  %v19830_v11 = vld [vmem:[#allocation132_spill] sm:$0xff] }
 0x17a   :  { %9703 = vmatpush1.bf16.msra.mxu0 %v19752_v58  ;;  %v19801_v58 = vpack.c.bf16 %v19799_v52, %v19800_v56  ;;  %v19833_v22 = vld [vmem:[#allocation149_spill] sm:$0xff]  ;;  %v19836_v61 = vld [vmem:[#allocation156_spill] sm:$0xff]  ;;  %v19839_v53 = vld [vmem:[#allocation146_spill] sm:$0xff]  ;;  %19895 = vst [vmem:[#allocation133_spill] sm:$0xff] %v14267_v44 }
 0x17b   :  { %9759 = vmatpush1.bf16.msra.mxu1 %v19753_v42  ;;  %9705 = vmatprep.subr.bf16.mxu0 %v19754_v60  ;;  %v19802_v42 = vld [vmem:[#allocation102_spill] sm:$0xff]  ;;  %v19842_v41 = vld [vmem:[#allocation148_spill] sm:$0xff]  ;;  %v763_v56 = vld [vmem:[%s19215_s3 + $0x80] sm:$0xff] }
 0x17c   :  { %9761 = vmatprep.subr.bf16.mxu1 %v19755_v63  ;;  %v19803_v60 = vld [vmem:[#allocation98_spill] sm:$0xff]  ;;  %v19846_v47 = vld [vmem:[#allocation172_spill] sm:$0xff]  ;;  %v781_v6 = vld [vmem:[%s19215_s3 + $0x110] sm:$0xff] }
 0x17d   :  { %v19804_v63 = vpack.c.bf16 %v19802_v42, %v19803_v60  ;;  %v795_v42 = vld [vmem:[%s19215_s3 + $0x180] sm:$0xff]  ;;  %v19849_v60 = vld [vmem:[#allocation166_spill] sm:$0xff]  ;;  %v750_v54 = vld [vmem:[%s19215_s3 + $0x18] sm:$0xff] }
 0x17e   :  { %9707 = vmatpush1.bf16.msra.mxu0 %v19756_v7  ;;  %v19805_v7 = vld [vmem:[#allocation105_spill] sm:$0xff]  ;;  %v19920_v44 = vld [vmem:[#allocation10_spill] sm:$0xff] }
 0x17f   :  { %9763 = vmatpush1.bf16.msra.mxu1 %v19757_v9  ;;  %9709 = vmatprep.subr.bf16.mxu0 %v19758_v10  ;;  %v19806_v9 = vld [vmem:[#allocation100_spill] sm:$0xff] }
 0x180   :  { %9765 = vmatprep.subr.bf16.mxu1 %v19759_v12  ;;  %v19807_v10 = vpack.c.bf16 %v19805_v7, %v19806_v9  ;;  %v19808_v12 = vld [vmem:[#allocation122_spill] sm:$0xff]  ;;  %v19852_v9 = vld [vmem:[#allocation169_spill] sm:$0xff] }
 0x182   :  { %9711 = vmatpush1.bf16.msra.mxu0 %v19760_v16  ;;  %v19809_v16 = vld [vmem:[#allocation117_spill] sm:$0xff] }
 0x183   :  { %9767 = vmatpush1.bf16.msra.mxu1 %v19761_v18  ;;  %9713 = vmatprep.subr.bf16.mxu0 %v19762_v20  ;;  %v19810_v18 = vpack.c.bf16 %v19808_v12, %v19809_v16  ;;  %v19811_v20 = vld [vmem:[#allocation125_spill] sm:$0xff] }
 0x184   :  { %9769 = vmatprep.subr.bf16.mxu1 %v19765_v24  ;;  %v19813_v23 = vpack.c.bf16 %v19811_v20, %v19812_v21  ;;  %v19814_v24 = vld [vmem:[#allocation118_spill] sm:$0xff]  ;;  %v779_v21 = vld [vmem:[%s19215_s3 + $0x100] sm:$0xff] }
 0x185   :  { %v19816_v29 = vpack.c.bf16 %v19814_v24, %v19815_v26  ;;  %v748_v20 = vld [vmem:[%s19215_s3 + $0x8] sm:$0xff]  ;;  %v797_v24 = vld [vmem:[%s19215_s3 + $0x190] sm:$0xff] }
 0x186   :  { %9715 = vmatpush1.bf16.msra.mxu0 %v19768_v14  ;;  %v19817_v14 = vld [vmem:[#allocation121_spill] sm:$0xff] }
 0x187   :  { %9771 = vmatpush1.bf16.msra.mxu1 %v19771_v2  ;;  %9717 = vmatprep.subr.bf16.mxu0 %v19774_v13  ;;  %v19819_v31 = vpack.c.bf16 %v19817_v14, %v19818_v19  ;;  %v19820_v2 = vld [vmem:[#allocation138_spill] sm:$0xff]  ;;  %v19823_v13 = vld [vmem:[#allocation141_spill] sm:$0xff]  ;;  %v749_v14 = vld [vmem:[%s19215_s3 + $0x10] sm:$0xff] }
 0x188   :  { %9773 = vmatprep.subr.bf16.mxu1 %v19777_v0  ;;  %v19822_v34 = vpack.c.bf16 %v19820_v2, %v19821_v33  ;;  %v19825_v36 = vpack.c.bf16 %v19823_v13, %v19824_v27  ;;  %v19826_v0 = vld [vmem:[#allocation134_spill] sm:$0xff]  ;;  %v13258_v33 = vpack.c.bf16 %v750_v54, %v749_v14  ;;  %v751_v27 = vld [vmem:[%s19215_s3 + $0x20] sm:$0xff] }
 0x189   :  { %v19828_v51 = vpack.c.bf16 %v19826_v0, %v19827_v37  ;;  %v768_v19 = vld [vmem:[%s19215_s3 + $0xa8] sm:$0xff] }
 0x18a   :  { %9719 = vmatpush1.bf16.msra.mxu0 %v19780_v57  ;;  %v19829_v57 = vld [vmem:[#allocation137_spill] sm:$0xff]  ;;  %v800_v2 = vld [vmem:[%s19215_s3 + $0x1a8] sm:$0xff]  ;;  %v13264_v13 = vpack.c.bf16 %v768_v19, %v767_v3 }
 0x18b   :  { %9775 = vmatpush1.bf16.msra.mxu1 %v19783_v17  ;;  %9721 = vmatprep.subr.bf16.mxu0 %v19786_v55  ;;  %v19831_v15 = vpack.c.bf16 %v19829_v57, %v19830_v11  ;;  %v19832_v17 = vld [vmem:[#allocation154_spill] sm:$0xff]  ;;  %v19835_v55 = vld [vmem:[#allocation157_spill] sm:$0xff]  ;;  %v770_v57 = vld [vmem:[%s19215_s3 + $0xb8] sm:$0xff] }
 0x18c   :  { %9777 = vmatprep.subr.bf16.mxu1 %v19789_v5  ;;  %v19834_v39 = vpack.c.bf16 %v19832_v17, %v19833_v22  ;;  %v19837_v40 = vpack.c.bf16 %v19835_v55, %v19836_v61  ;;  %v19838_v5 = vld [vmem:[#allocation150_spill] sm:$0xff]  ;;  %v801_v11 = vld [vmem:[%s19215_s3 + $0x1b0] sm:$0xff]  ;;  %v754_v61 = vld [vmem:[%s19215_s3 + $0x38] sm:$0xff] }
 0x18d   :  { %v19840_v62 = vpack.c.bf16 %v19838_v5, %v19839_v53  ;;  %v784_v37 = vld [vmem:[%s19215_s3 + $0x128] sm:$0xff]  ;;  %v753_v55 = vld [vmem:[%s19215_s3 + $0x30] sm:$0xff]  ;;  %v786_v53 = vld [vmem:[%s19215_s3 + $0x138] sm:$0xff] }
 0x18e   :  { %9723 = vmatpush1.bf16.msra.mxu0 %v19792_v46  ;;  %v19841_v46 = vld [vmem:[#allocation153_spill] sm:$0xff]  ;;  %v760_v3 = vld [vmem:[%s19215_s3 + $0x68] sm:$0xff] }
 0x18f   :  { %9779 = vmatpush1.bf16.msra.mxu1 %v19795_v38  ;;  %9725 = vmatprep.subr.bf16.mxu0 %v19798_v49  ;;  %v19843_v59 = vpack.c.bf16 %v19841_v46, %v19842_v41  ;;  %v19844_v38 = vld [vmem:[#allocation165_spill] sm:$0xff]  ;;  %v19847_v49 = vld [vmem:[#allocation171_spill] sm:$0xff]  ;;  %v772_v46 = vld [vmem:[%s19215_s3 + $0xc8] sm:$0xff] }
 0x190   :  { %9781 = vmatprep.subr.bf16.mxu1 %v19801_v58  ;;  %v19845_v50 = vpack.c.bf16 %v12914_v48, %v19844_v38  ;;  %v19848_v52 = vpack.c.bf16 %v19846_v47, %v19847_v49  ;;  %v764_v58 = vld [vmem:[%s19215_s3 + $0x88] sm:$0xff]  ;;  %v803_v41 = vld [vmem:[%s19215_s3 + $0x1c0] sm:$0xff]  ;;  %v13330_v38 = vpack.c.bf16 %v754_v61, %v753_v55  ;;  %v761_v55 = vld [vmem:[%s19215_s3 + $0x70] sm:$0xff] }
 0x191   :  { %v796_v48 = vld [vmem:[%s19215_s3 + $0x188] sm:$0xff]  ;;  %v13184_v16 = vpack.c.bf16 %v764_v58, %v763_v56  ;;  %v755_v49 = vld [vmem:[%s19215_s3 + $0x40] sm:$0xff]  ;;  %v762_v61 = vld [vmem:[%s19215_s3 + $0x78] sm:$0xff] }
 0x192   :  { %9727 = vmatpush1.bf16.msra.mxu0 %v19804_v63  ;;  %v19850_v63 = vld [vmem:[#allocation162_spill] sm:$0xff]  ;;  %v13198_v45 = vpack.c.bf16 %v796_v48, %v795_v42  ;;  %v787_v56 = vld [vmem:[%s19215_s3 + $0x140] sm:$0xff]  ;;  %v773_v48 = vld [vmem:[%s19215_s3 + $0xd0] sm:$0xff] }
 0x193   :  { %9783 = vmatpush1.bf16.msra.mxu1 %v19807_v10  ;;  %9729 = vmatprep.subr.bf16.mxu0 %v19810_v18  ;;  %v19851_v7 = vpack.c.bf16 %v19849_v60, %v19850_v63  ;;  %v19853_v10 = vld [vmem:[#allocation164_spill] sm:$0xff]  ;;  %v747_v18 = vld [vmem:[%s19215_s3] sm:$0xff]  ;;  %v788_v42 = vld [vmem:[%s19215_s3 + $0x148] sm:$0xff] }
 0x194   :  { %9785 = vmatprep.subr.bf16.mxu1 %v19813_v23  ;;  %v19854_v12 = vpack.c.bf16 %v19852_v9, %v19853_v10  ;;  %v766_v23 = vld [vmem:[%s19215_s3 + $0x98] sm:$0xff]  ;;  %v13218_v28 = vpack.c.bf16 %v748_v20, %v747_v18  ;;  %v805_v63 = vld [vmem:[%s19215_s3 + $0x1d0] sm:$0xff]  ;;  %v13370_v10 = vpack.c.bf16 %v788_v42, %v787_v56  ;;  %v791_v19 = vld [vmem:[%s19215_s3 + $0x160] sm:$0xff] }
 0x195   :  { %v774_v60 = vld [vmem:[%s19215_s3 + $0xd8] sm:$0xff]  ;;  %v757_v18 = vld [vmem:[%s19215_s3 + $0x50] sm:$0xff] }
 0x196   :  { %9731 = vmatpush1.bf16.msra.mxu0 %v19816_v29  ;;  %v13226_v29 = vpack.c.bf16 %v766_v23, %v765_v35  ;;  %v758_v20 = vld [vmem:[%s19215_s3 + $0x58] sm:$0xff]  ;;  %v775_v23 = vld [vmem:[%s19215_s3 + $0xe0] sm:$0xff] }
 0x197   :  { %9787 = vmatpush1.bf16.msra.mxu1 %v19819_v31  ;;  %9733 = vmatprep.subr.bf16.mxu0 %v19822_v34  ;;  %v799_v31 = vld [vmem:[%s19215_s3 + $0x1a0] sm:$0xff]  ;;  %v13262_v34 = vpack.c.bf16 %v782_v8, %v781_v6  ;;  %v790_v35 = vld [vmem:[%s19215_s3 + $0x158] sm:$0xff]  ;;  %v13402_v14 = vpack.c.bf16 %v758_v20, %v757_v18 }
 0x198   :  { %9789 = vmatprep.subr.bf16.mxu1 %v19825_v36  ;;  %v783_v36 = vld [vmem:[%s19215_s3 + $0x120] sm:$0xff]  ;;  %v13276_v0 = vpack.c.bf16 %v800_v2, %v799_v31  ;;  %v792_v2 = vld [vmem:[%s19215_s3 + $0x168] sm:$0xff] }
 0x199   :  { %v13298_v22 = vpack.c.bf16 %v784_v37, %v783_v36  ;;  %v759_v8 = vld [vmem:[%s19215_s3 + $0x60] sm:$0xff]  ;;  %v809_v36 = vld [vmem:[%s19215_s3 + $0x1f0] sm:$0xff]  ;;  %v810_v37 = vld [vmem:[%s19215_s3 + $0x1f8] sm:$0xff] }
 0x19a   :  { %9735 = vmatpush1.bf16.msra.mxu0 %v19828_v51  ;;  %v769_v51 = vld [vmem:[%s19215_s3 + $0xb0] sm:$0xff] }
 0x19b   :  { %9791 = vmatpush1.bf16.msra.mxu1 %v19831_v15  ;;  %9737 = vmatprep.subr.bf16.mxu0 %v19834_v39  ;;  %v802_v15 = vld [vmem:[%s19215_s3 + $0x1b8] sm:$0xff]  ;;  %v13300_v39 = vpack.c.bf16 %v770_v57, %v769_v51  ;;  %v9830_v51 = vpack.c.bf16 %v760_v3, %v759_v8  ;;  %v9862_v57 = vpack.c.bf16 %v792_v2, %v791_v19  ;;  %v8249_v2 = vld [vmem:[%s19214_s2 + $0x400] sm:$0xff] }
 0x19c   :  { %9793 = vmatprep.subr.bf16.mxu1 %v19837_v40  ;;  %v785_v40 = vld [vmem:[%s19215_s3 + $0x130] sm:$0xff]  ;;  %v13312_v5 = vpack.c.bf16 %v802_v15, %v801_v11  ;;  %v9864_v15 = vpack.c.bf16 %v810_v37, %v809_v36  ;;  %v8252_v8 = vld [vmem:[%s19214_s2 + $0x418] sm:$0xff] }
 0x19d   :  { %v8256_v3 = vld [vmem:[%s19214_s2 + $0x438] sm:$0xff]  ;;  %v8251_v36 = vld [vmem:[%s19214_s2 + $0x410] sm:$0xff] }
 0x19e   :  { %9739 = vmatpush1.bf16.msra.mxu0 %v19840_v62  ;;  %v771_v62 = vld [vmem:[%s19215_s3 + $0xc0] sm:$0xff]  ;;  %v8255_v37 = vld [vmem:[%s19214_s2 + $0x430] sm:$0xff] }
 0x19f   :  { %9795 = vmatpush1.bf16.msra.mxu1 %v19843_v59  ;;  %9741 = vmatprep.subr.bf16.mxu0 %v19845_v50  ;;  %v804_v59 = vld [vmem:[%s19215_s3 + $0x1c8] sm:$0xff]  ;;  %v13334_v50 = vpack.c.bf16 %v786_v53, %v785_v40  ;;  %v13336_v47 = vpack.c.bf16 %v772_v46, %v771_v62  ;;  %v793_v40 = vld [vmem:[%s19215_s3 + $0x170] sm:$0xff]  ;;  %v9834_v53 = vpack.c.bf16 %v762_v61, %v761_v55  ;;  %v794_v62 = vld [vmem:[%s19215_s3 + $0x178] sm:$0xff] }
 0x1a0   :  { %9797 = vmatprep.subr.bf16.mxu1 %v19848_v52  ;;  %v756_v52 = vld [vmem:[%s19215_s3 + $0x48] sm:$0xff]  ;;  %v13348_v58 = vpack.c.bf16 %v804_v59, %v803_v41  ;;  %v9866_v46 = vpack.c.bf16 %v794_v62, %v793_v40  ;;  %v8260_v55 = vld [vmem:[%s19214_s2 + $0x458] sm:$0xff]  ;;  %v10014_v62 = vpack.c.bf16 %v8255_v37, %v8251_v36  ;;  %v8293_v36 = vld [vmem:[%s19214_s2 + $0x560] sm:$0xff] }
 0x1a1   :  { %v13366_v9 = vpack.c.bf16 %v756_v52, %v755_v49  ;;  %v8264_v61 = vld [vmem:[%s19214_s2 + $0x478] sm:$0xff] }
 0x1a2   :  { %9743 = vmatpush1.bf16.msra.mxu0 %v19851_v7  ;;  %v806_v7 = vld [vmem:[%s19215_s3 + $0x1d8] sm:$0xff] }
 0x1a3   :  { %9799 = vmatpush1.bf16.msra.mxu1 %v19854_v12  ;;  %9745 = vmatprep.subr.bf16.mxu0 %v9744_v43  ;;  %v780_v43 = vld [vmem:[%s19215_s3 + $0x108] sm:$0xff]  ;;  %v13372_v12 = vpack.c.bf16 %v774_v60, %v773_v48 }
 0x1a4   :  { %9801 = vmatprep.subr.bf16.mxu1 %v9800_v1  ;;  %v798_v1 = vld [vmem:[%s19215_s3 + $0x198] sm:$0xff]  ;;  %v13224_v26 = vpack.c.bf16 %v780_v43, %v779_v21  ;;  %v789_v21 = vld [vmem:[%s19215_s3 + $0x150] sm:$0xff]  ;;  %v13384_v43 = vpack.c.bf16 %v806_v7, %v805_v63 }
 0x1a5   :  { %v9858_v54 = vpack.c.bf16 %v790_v35, %v789_v21 }
 0x1a6   :  { %9747 = vmatpush1.bf16.msra.mxu0 %v19855_v30  ;;  %v808_v30 = vld [vmem:[%s19215_s3 + $0x1e8] sm:$0xff] }
 0x1a7   :  { %9803 = vmatpush1.bf16.msra.mxu1 %v9802_v32  ;;  %9805 = vmatprep.subr.bf16.mxu0 %v13184_v16  ;;  %v13238_v32 = vpack.c.bf16 %v798_v1, %v797_v24  ;;  %v776_v24 = vld [vmem:[%s19215_s3 + $0xe8] sm:$0xff]  ;;  %v807_v1 = vld [vmem:[%s19215_s3 + $0x1e0] sm:$0xff] }
 0x1a8   :  { %9837 = vmatprep.subr.bf16.mxu1 %v13198_v45  ;;  %v9828_v6 = vpack.c.bf16 %v776_v24, %v775_v23  ;;  %v9860_v31 = vpack.c.bf16 %v808_v30, %v807_v1 }
 0x1a9   :  { %1153 = vmatmul.mubr.f32.vlgmr.msra.gmra.mrb[58].mxu0 %v13001_v25 }
 0x1aa   :  { %1224 = vmatmul.mubr.f32.vlgmr.msra.gmra.mrb[58].mxu1 %v13001_v25  ;;  %9807 = vmatpush3.bf16.msra.mxu0 %v13218_v28  ;;  %v752_v25 = vld [vmem:[%s19215_s3 + $0x28] sm:$0xff] }
 0x1ab   :  { %9839 = vmatpush3.bf16.msra.mxu1 %v13224_v26  ;;  %9809 = vmatprep.subr.bf16.mxu0 %v13226_v29  ;;  %v13294_v17 = vpack.c.bf16 %v752_v25, %v751_v27  ;;  %v777_v27 = vld [vmem:[%s19215_s3 + $0xf0] sm:$0xff]  ;;  %v778_v25 = vld [vmem:[%s19215_s3 + $0xf8] sm:$0xff] }
 0x1ac   :  { %9841 = vmatprep.subr.bf16.mxu1 %v13238_v32  ;;  %v9832_v11 = vpack.c.bf16 %v778_v25, %v777_v27  ;;  %v8253_v27 = vld [vmem:[%s19214_s2 + $0x420] sm:$0xff] }
 0x1ae   :  { %9811 = vmatpush3.bf16.msra.mxu0 %v13258_v33 }
 0x1af   :  { %9843 = vmatpush3.bf16.msra.mxu1 %v13262_v34  ;;  %9813 = vmatprep.subr.bf16.mxu0 %v13264_v13 }
 0x1b0   :  { %9845 = vmatprep.subr.bf16.mxu1 %v13276_v0 }
 0x1b2   :  { %9815 = vmatpush3.bf16.msra.mxu0 %v13294_v17 }
 0x1b3   :  { %9847 = vmatpush3.bf16.msra.mxu1 %v13298_v22  ;;  %9817 = vmatprep.subr.bf16.mxu0 %v13300_v39 }
 0x1b4   :  { %9849 = vmatprep.subr.bf16.mxu1 %v13312_v5 }
 0x1b6   :  { %9819 = vmatpush3.bf16.msra.mxu0 %v13330_v38 }
 0x1b7   :  { %9851 = vmatpush3.bf16.msra.mxu1 %v13334_v50  ;;  %9821 = vmatprep.subr.bf16.mxu0 %v13336_v47 }
 0x1b8   :  { %9853 = vmatprep.subr.bf16.mxu1 %v13348_v58 }
 0x1ba   :  { %9823 = vmatpush3.bf16.msra.mxu0 %v13366_v9 }
 0x1bb   :  { %9855 = vmatpush3.bf16.msra.mxu1 %v13370_v10  ;;  %9825 = vmatprep.subr.bf16.mxu0 %v13372_v12 }
 0x1bc   :  { %9857 = vmatprep.subr.bf16.mxu1 %v13384_v43 }
 0x1be   :  { %9827 = vmatpush3.bf16.msra.mxu0 %v13402_v14 }
 0x1bf   :  { %9859 = vmatpush3.bf16.msra.mxu1 %v9858_v54  ;;  %9829 = vmatprep.subr.bf16.mxu0 %v9828_v6 }
 0x1c0   :  { %9861 = vmatprep.subr.bf16.mxu1 %v9860_v31 }
 0x1c2   :  { %9831 = vmatpush3.bf16.msra.mxu0 %v9830_v51 }
 0x1c3   :  { %9863 = vmatpush3.bf16.msra.mxu1 %v9862_v57  ;;  %9833 = vmatprep.subr.bf16.mxu0 %v9832_v11 }
 0x1c4   :  { %9865 = vmatprep.subr.bf16.mxu1 %v9864_v15 }
 0x1c6   :  { %9835 = vmatpush3.bf16.msra.mxu0 %v9834_v53 }
 0x1c7   :  { %9867 = vmatpush3.bf16.msra.mxu1 %v9866_v46  ;;  %9869 = vmatprep.subr.bf16.mxu0 %v13184_v16 }
 0x1c8   :  { %9901 = vmatprep.subr.bf16.mxu1 %v13198_v45 }
 0x244   :  { %v900_v41 = vpop.f32.mrb[56].mxu0 }
 0x245   :  { %v971_v59 = vpop.f32.mrb[56].mxu1  ;;  %v902_v49 = vpop.f32.mrb[57].mxu0 }
 0x246   :  { %v973_v52 = vpop.f32.mrb[57].mxu1  ;;  %1294 = vmatprep.mubr.f32.mxu0 %v902_v49 }
 0x247   :  { %1364 = vmatprep.mubr.f32.mxu1 %v973_v52  ;;  %1295 = vmatmul.mubr.f32.vlgmr.msra.gmra.mrb[60].mxu0 %v900_v41  ;;  %v8261_v41 = vld [vmem:[%s19214_s2 + $0x460] sm:$0xff]  ;;  %v10016_v52 = vpack.c.bf16 %v8264_v61, %v8260_v55  ;;  %v8302_v55 = vld [vmem:[%s19214_s2 + $0x5a8] sm:$0xff]  ;;  %v8300_v61 = vld [vmem:[%s19214_s2 + $0x598] sm:$0xff] }
 0x248   :  { %1365 = vmatmul.mubr.f32.vlgmr.msra.gmra.mrb[60].mxu1 %v971_v59  ;;  %9871 = vmatpush3.bf16.msra.mxu0 %v13218_v28 }
 0x249   :  { %9903 = vmatpush3.bf16.msra.mxu1 %v13224_v26  ;;  %9873 = vmatprep.subr.bf16.mxu0 %v13226_v29  ;;  %v812_v29 = vld [vmem:[%s19216_s4 + $0x8] sm:$0xff] }
 0x24a   :  { %9905 = vmatprep.subr.bf16.mxu1 %v13238_v32  ;;  %v816_v32 = vld [vmem:[%s19216_s4 + $0x28] sm:$0xff] }
 0x24c   :  { %9875 = vmatpush3.bf16.msra.mxu0 %v13258_v33  ;;  %v814_v33 = vld [vmem:[%s19216_s4 + $0x18] sm:$0xff] }
 0x24d   :  { %9907 = vmatpush3.bf16.msra.mxu1 %v13262_v34  ;;  %9877 = vmatprep.subr.bf16.mxu0 %v13264_v13  ;;  %v9932_v34 = vpack.c.bf16 %v816_v32, %v812_v29  ;;  %v818_v13 = vld [vmem:[%s19216_s4 + $0x38] sm:$0xff] }
 0x24e   :  { %9909 = vmatprep.subr.bf16.mxu1 %v13276_v0  ;;  %v811_v0 = vld [vmem:[%s19216_s4] sm:$0xff]  ;;  %v8268_v29 = vld [vmem:[%s19214_s2 + $0x498] sm:$0xff] }
 0x24f   :  { %v8272_v32 = vld [vmem:[%s19214_s2 + $0x4b8] sm:$0xff] }
 0x250   :  { %9879 = vmatpush3.bf16.msra.mxu0 %v13294_v17  ;;  %v815_v17 = vld [vmem:[%s19216_s4 + $0x20] sm:$0xff] }
 0x251   :  { %9911 = vmatpush3.bf16.msra.mxu1 %v13298_v22  ;;  %9881 = vmatprep.subr.bf16.mxu0 %v13300_v39  ;;  %v19406_v22 = vmov 0.0   ;;  %v9936_v39 = vpack.c.bf16 %v818_v13, %v814_v33  ;;  %v8265_v13 = vld [vmem:[%s19214_s2 + $0x480] sm:$0xff] }
 0x252   :  { %9913 = vmatprep.subr.bf16.mxu1 %v13312_v5  ;;  %2262 = vst [vmem:[#allocation2] sm:$0xff] %v19406_v22  ;;  %2263 = vst [vmem:[#allocation2 + $0x8] sm:$0xff] %v19406_v22  ;;  %v9934_v5 = vpack.c.bf16 %v815_v17, %v811_v0  ;;  %v8269_v0 = vld [vmem:[%s19214_s2 + $0x4a0] sm:$0xff] }
 0x253   :  { %2266 = vst [vmem:[#allocation2 + $0x20] sm:$0xff] %v19406_v22  ;;  %2267 = vst [vmem:[#allocation2 + $0x28] sm:$0xff] %v19406_v22 }
 0x254   :  { %9883 = vmatpush3.bf16.msra.mxu0 %v13330_v38  ;;  %2270 = vst [vmem:[#allocation2 + $0x40] sm:$0xff] %v19406_v22  ;;  %2271 = vst [vmem:[#allocation2 + $0x48] sm:$0xff] %v19406_v22  ;;  %v813_v38 = vld [vmem:[%s19216_s4 + $0x10] sm:$0xff] }
 0x255   :  { %9915 = vmatpush3.bf16.msra.mxu1 %v13334_v50  ;;  %9885 = vmatprep.subr.bf16.mxu0 %v13336_v47  ;;  %2274 = vst [vmem:[#allocation2 + $0x60] sm:$0xff] %v19406_v22  ;;  %2275 = vst [vmem:[#allocation2 + $0x68] sm:$0xff] %v19406_v22  ;;  %v817_v50 = vld [vmem:[%s19216_s4 + $0x30] sm:$0xff] }
 0x256   :  { %9917 = vmatprep.subr.bf16.mxu1 %v13348_v58  ;;  %2278 = vst [vmem:[#allocation2 + $0x80] sm:$0xff] %v19406_v22  ;;  %2279 = vst [vmem:[#allocation2 + $0x88] sm:$0xff] %v19406_v22  ;;  %v9938_v47 = vpack.c.bf16 %v817_v50, %v813_v38  ;;  %v8271_v38 = vld [vmem:[%s19214_s2 + $0x4b0] sm:$0xff]  ;;  %v8274_v50 = vld [vmem:[%s19214_s2 + $0x4c8] sm:$0xff] }
 0x257   :  { %2280 = vst [vmem:[#allocation2 + $0x90] sm:$0xff] %v19406_v22  ;;  %2281 = vst [vmem:[#allocation2 + $0x98] sm:$0xff] %v19406_v22 }
 0x258   :  { %9887 = vmatpush3.bf16.msra.mxu0 %v13366_v9  ;;  %2284 = vst [vmem:[#allocation2 + $0xb0] sm:$0xff] %v19406_v22  ;;  %2285 = vst [vmem:[#allocation2 + $0xb8] sm:$0xff] %v19406_v22 }
 0x259   :  { %9919 = vmatpush3.bf16.msra.mxu1 %v13370_v10  ;;  %9889 = vmatprep.subr.bf16.mxu0 %v13372_v12  ;;  %2288 = vst [vmem:[#allocation2 + $0xd0] sm:$0xff] %v19406_v22  ;;  %2289 = vst [vmem:[#allocation2 + $0xd8] sm:$0xff] %v19406_v22 }
 0x25a   :  { %9921 = vmatprep.subr.bf16.mxu1 %v13384_v43  ;;  %2292 = vst [vmem:[#allocation2 + $0xf0] sm:$0xff] %v19406_v22  ;;  %2293 = vst [vmem:[#allocation2 + $0xf8] sm:$0xff] %v19406_v22 }
 0x25b   :  { %2296 = vst [vmem:[#allocation2 + $0x110] sm:$0xff] %v19406_v22  ;;  %2297 = vst [vmem:[#allocation2 + $0x118] sm:$0xff] %v19406_v22 }
 0x25c   :  { %9891 = vmatpush3.bf16.msra.mxu0 %v13402_v14  ;;  %v819_v14 = vld [vmem:[%s19217_s5] sm:$0x1] }
 0x25d   :  { %9923 = vmatpush3.bf16.msra.mxu1 %v9858_v54  ;;  %9893 = vmatprep.subr.bf16.mxu0 %v9828_v6  ;;  %v8250_v54 = vld [vmem:[%s19214_s2 + $0x408] sm:$0xff] }
 0x25e   :  { %9925 = vmatprep.subr.bf16.mxu1 %v9860_v31  ;;  %v8254_v6 = vld [vmem:[%s19214_s2 + $0x428] sm:$0xff]  ;;  %v820_v31 = vld [vmem:[%s19218_s6] sm:$0x1] }
 0x260   :  { %9895 = vmatpush3.bf16.msra.mxu0 %v9830_v51  ;;  %v8258_v51 = vld [vmem:[%s19214_s2 + $0x448] sm:$0xff] }
 0x261   :  { %9927 = vmatpush3.bf16.msra.mxu1 %v9862_v57  ;;  %9897 = vmatprep.subr.bf16.mxu0 %v9832_v11  ;;  %v9948_v57 = vpack.c.bf16 %v8254_v6, %v8250_v54  ;;  %v10012_v11 = vpack.c.bf16 %v8256_v3, %v8252_v8  ;;  %v8283_v54 = vld [vmem:[%s19214_s2 + $0x510] sm:$0xff]  ;;  %v8290_v8 = vld [vmem:[%s19214_s2 + $0x548] sm:$0xff] }
 0x262   :  { %9929 = vmatprep.subr.bf16.mxu1 %v9864_v15  ;;  %v8262_v15 = vld [vmem:[%s19214_s2 + $0x468] sm:$0xff]  ;;  %v8287_v6 = vld [vmem:[%s19214_s2 + $0x530] sm:$0xff] }
 0x263   :  { %v9952_v49 = vpack.c.bf16 %v8262_v15, %v8258_v51  ;;  %v8294_v3 = vld [vmem:[%s19214_s2 + $0x568] sm:$0xff] }
 0x264   :  { %9899 = vmatpush3.bf16.msra.mxu0 %v9834_v53  ;;  %v9950_v53 = vpack.c.bf16 %v8253_v27, %v8249_v2  ;;  %v10030_v27 = vpack.c.bf16 %v8287_v6, %v8283_v54  ;;  %v9968_v37 = vpack.c.bf16 %v8294_v3, %v8290_v8  ;;  %v8298_v15 = vld [vmem:[%s19214_s2 + $0x588] sm:$0xff]  ;;  %v8323_v54 = vld [vmem:[%s19214_s2 + $0x650] sm:$0xff] }
 0x265   :  { %9931 = vmatpush3.bf16.msra.mxu1 %v9866_v46  ;;  %9933 = vmatprep.subr.bf16.mxu0 %v9932_v34  ;;  %v8257_v46 = vld [vmem:[%s19214_s2 + $0x440] sm:$0xff]  ;;  %v8327_v6 = vld [vmem:[%s19214_s2 + $0x670] sm:$0xff]  ;;  %v8330_v3 = vld [vmem:[%s19214_s2 + $0x688] sm:$0xff] }
 0x266   :  { %9937 = vmatprep.subr.bf16.mxu1 %v9936_v39  ;;  %v9954_v33 = vpack.c.bf16 %v8261_v41, %v8257_v46  ;;  %v8297_v46 = vld [vmem:[%s19214_s2 + $0x580] sm:$0xff]  ;;  %v10050_v8 = vpack.c.bf16 %v8327_v6, %v8323_v54  ;;  %v8370_v54 = vld [vmem:[%s19214_s2 + $0x7c8] sm:$0xff] }
 0x267   :  { %v8301_v41 = vld [vmem:[%s19214_s2 + $0x5a0] sm:$0xff]  ;;  %v8374_v6 = vld [vmem:[%s19214_s2 + $0x7e8] sm:$0xff] }
 0x27c   :  { %v1154_v16 = vpop.f32.mrb[58].mxu0 }
 0x27d   :  { %v1225_v45 = vpop.f32.mrb[58].mxu1  ;;  %v1156_v28 = vpop.f32.mrb[59].mxu0 }
 0x27e   :  { %v1227_v26 = vpop.f32.mrb[59].mxu1  ;;  %1435 = vmatprep.mubr.f32.mxu0 %v1156_v28  ;;  %v8266_v28 = vld [vmem:[%s19214_s2 + $0x488] sm:$0xff] }
 0x27f   :  { %1505 = vmatprep.mubr.f32.mxu1 %v1227_v26  ;;  %1436 = vmatmul.mubr.f32.vlgmr.msra.gmra.mrb[62].mxu0 %v1154_v16  ;;  %v8259_v16 = vld [vmem:[%s19214_s2 + $0x450] sm:$0xff]  ;;  %v8270_v26 = vld [vmem:[%s19214_s2 + $0x4a8] sm:$0xff] }
 0x280   :  { %1506 = vmatmul.mubr.f32.vlgmr.msra.gmra.mrb[62].mxu1 %v1225_v45  ;;  %1587 = vmatprep.mubr.f32.mxu0 %v19406_v22  ;;  %v8263_v45 = vld [vmem:[%s19214_s2 + $0x470] sm:$0xff]  ;;  %v9956_v17 = vpack.c.bf16 %v8270_v26, %v8266_v28  ;;  %v8310_v28 = vld [vmem:[%s19214_s2 + $0x5e8] sm:$0xff]  ;;  %v8308_v26 = vld [vmem:[%s19214_s2 + $0x5d8] sm:$0xff] }
 0x281   :  { %1658 = vmatprep.mubr.f32.mxu1 %v19406_v22  ;;  %9935 = vmatpush1.bf16.msra.mxu0 %v9934_v5 }
 0x282   :  { %9939 = vmatpush1.bf16.msra.mxu1 %v9938_v47  ;;  %9941 = vmatprep.subr.bf16.mxu0 %v9932_v34  ;;  %v10018_v34 = vpack.c.bf16 %v8263_v45, %v8259_v16  ;;  %v8303_v16 = vld [vmem:[%s19214_s2 + $0x5b0] sm:$0xff]  ;;  %v8306_v45 = vld [vmem:[%s19214_s2 + $0x5c8] sm:$0xff] }
 0x283   :  { %9945 = vmatprep.subr.bf16.mxu1 %v9936_v39  ;;  %v10020_v39 = vpack.c.bf16 %v8272_v32, %v8268_v29  ;;  %v8312_v29 = vld [vmem:[%s19214_s2 + $0x5f8] sm:$0xff]  ;;  %v9974_v32 = vpack.c.bf16 %v8301_v41, %v8297_v46  ;;  %v8337_v46 = vld [vmem:[%s19214_s2 + $0x6c0] sm:$0xff] }
 0x284   :  { %v8341_v41 = vld [vmem:[%s19214_s2 + $0x6e0] sm:$0xff] }
 0x31a   :  { %v9011_v56 = vpop.f32.mrb[60].mxu0 }
 0x31b   :  { %v9046_v58 = vpop.f32.mrb[60].mxu1  ;;  %v9012_v42 = vpop.f32.mrb[61].mxu0 }
 0x31c   :  { %v9013_v48 = vadd.f32 %v9012_v42, %v9011_v56  ;;  %v9047_v60 = vpop.f32.mrb[61].mxu1  ;;  %v8276_v56 = vld [vmem:[%s19214_s2 + $0x4d8] sm:$0xff]  ;;  %v9958_v42 = vpack.c.bf16 %v8269_v0, %v8265_v13  ;;  %v8309_v13 = vld [vmem:[%s19214_s2 + $0x5e0] sm:$0xff]  ;;  %v9976_v0 = vpack.c.bf16 %v8310_v28, %v8306_v45  ;;  %v8346_v45 = vld [vmem:[%s19214_s2 + $0x708] sm:$0xff] }
 0x31d   :  { %v9048_v63 = vadd.f32 %v9047_v60, %v9046_v58  ;;  %v8280_v58 = vld [vmem:[%s19214_s2 + $0x4f8] sm:$0xff]  ;;  %v8273_v60 = vld [vmem:[%s19214_s2 + $0x4c0] sm:$0xff] }
 0x31f   :  { %v1367_v7 = vadd.f32 %v9048_v63, %v9013_v48  ;;  %v8277_v63 = vld [vmem:[%s19214_s2 + $0x4e0] sm:$0xff] }
 0x321   :  { %v1370_v21 = vmul.f32 0.00015943877, %v1367_v7 }
 0x323   :  { %v1512_v23 = vmul.f32 %v1370_v21, %v1370_v21 }
 0x352   :  { %v9081_v9 = vpop.f32.mrb[62].mxu0 }
 0x353   :  { %v9116_v10 = vpop.f32.mrb[62].mxu1  ;;  %v9082_v12 = vpop.f32.mrb[63].mxu0 }
 0x354   :  { %v9083_v18 = vadd.f32 %v9082_v12, %v9081_v9  ;;  %v9117_v20 = vpop.f32.mrb[63].mxu1  ;;  %v10024_v9 = vpack.c.bf16 %v8280_v58, %v8276_v56  ;;  %v8279_v12 = vld [vmem:[%s19214_s2 + $0x4f0] sm:$0xff]  ;;  %v8320_v56 = vld [vmem:[%s19214_s2 + $0x638] sm:$0xff] }
 0x355   :  { %v9118_v43 = vadd.f32 %v9117_v20, %v9116_v10  ;;  %v8275_v10 = vld [vmem:[%s19214_s2 + $0x4d0] sm:$0xff]  ;;  %v8286_v20 = vld [vmem:[%s19214_s2 + $0x528] sm:$0xff] }
 0x357   :  { %v1508_v35 = vadd.f32 %v9118_v43, %v9083_v18  ;;  %v8282_v18 = vld [vmem:[%s19214_s2 + $0x508] sm:$0xff]  ;;  %v8288_v43 = vld [vmem:[%s19214_s2 + $0x538] sm:$0xff] }
 0x359   :  { %v1511_v24 = vmul.f32 0.00015943877, %v1508_v35  ;;  %v9962_v35 = vpack.c.bf16 %v8277_v63, %v8273_v60  ;;  %v8313_v63 = vld [vmem:[%s19214_s2 + $0x600] sm:$0xff] }
 0x35b   :  { %v1513_v1 = vsub.f32 %v1511_v24, %v1512_v23  ;;  %v10026_v23 = vpack.c.bf16 %v8279_v12, %v8275_v10  ;;  %v8281_v24 = vld [vmem:[%s19214_s2 + $0x500] sm:$0xff]  ;;  %v8319_v12 = vld [vmem:[%s19214_s2 + $0x630] sm:$0xff] }
 0x35d   :  { %v1514_v30 = vadd.f32 1e-05, %v1513_v1  ;;  %v8285_v1 = vld [vmem:[%s19214_s2 + $0x520] sm:$0xff] }
 0x35e   :  { %v9966_v2 = vpack.c.bf16 %v8285_v1, %v8281_v24  ;;  %v8321_v24 = vld [vmem:[%s19214_s2 + $0x640] sm:$0xff] }
 0x35f   :  { %11453 = vrsqrt.f32 %v1514_v30  ;;  %v9964_v30 = vpack.c.bf16 %v8286_v20, %v8282_v18  ;;  %v8322_v20 = vld [vmem:[%s19214_s2 + $0x648] sm:$0xff]  ;;  %v8325_v1 = vld [vmem:[%s19214_s2 + $0x660] sm:$0xff] }
 0x369   :  { %v11454_v19 = vpop.eup %11453 }
 0x36a   :  { %v1516_v25 = vmul.f32 %v11454_v19, %v819_v14  ;;  %v8292_v19 = vld [vmem:[%s19214_s2 + $0x558] sm:$0xff] }
 0x36c   :  { %8245 = vmatmul.mubr.msk.f32.vlgmr.msra.gmra.mrb[64].mxu0 %vm1519_vm5, %v1516_v25  ;;  %8246 = vmatmul.mubr.msk.f32.vlgmr.msra.gmra.mrb[64].mxu1 %vm1519_vm5, %v1516_v25  ;;  %v1517_v40 = vmul.f32 %v1516_v25, %v1370_v21  ;;  %v8284_v21 = vld [vmem:[%s19214_s2 + $0x518] sm:$0xff]  ;;  %v8289_v25 = vld [vmem:[%s19214_s2 + $0x540] sm:$0xff] }
 0x36d   :  { %9943 = vmatpush1.bf16.msra.mxu0 %v9934_v5  ;;  %9947 = vmatpush1.bf16.msra.mxu1 %v9938_v47  ;;  %v8267_v5 = vld [vmem:[%s19214_s2 + $0x490] sm:$0xff]  ;;  %v8278_v47 = vld [vmem:[%s19214_s2 + $0x4e8] sm:$0xff]  ;;  %v10028_v14 = vpack.c.bf16 %v8288_v43, %v8284_v21  ;;  %v8324_v43 = vld [vmem:[%s19214_s2 + $0x658] sm:$0xff] }
 0x36e   :  { %1732 = vmatprep.mubr.f32.mxu0 %v19406_v22  ;;  %1803 = vmatprep.mubr.f32.mxu1 %v19406_v22  ;;  %v1518_v59 = vsub.f32 %v820_v31, %v1517_v40  ;;  %v10022_v48 = vpack.c.bf16 %v8271_v38, %v8267_v5  ;;  %v9960_v7 = vpack.c.bf16 %v8278_v47, %v8274_v50  ;;  %v8296_v31 = vld [vmem:[%s19214_s2 + $0x578] sm:$0xff]  ;;  %v8311_v5 = vld [vmem:[%s19214_s2 + $0x5f0] sm:$0xff]  ;;  %v8314_v38 = vld [vmem:[%s19214_s2 + $0x608] sm:$0xff] }
 0x36f   :  { %9949 = vmatprep.subr.bf16.mxu0 %v9948_v57  ;;  %10013 = vmatprep.subr.bf16.mxu1 %v10012_v11  ;;  %v10032_v51 = vpack.c.bf16 %v8296_v31, %v8292_v19  ;;  %v8291_v57 = vld [vmem:[%s19214_s2 + $0x550] sm:$0xff]  ;;  %v8304_v40 = vld [vmem:[%s19214_s2 + $0x5b8] sm:$0xff]  ;;  %v8318_v50 = vld [vmem:[%s19214_s2 + $0x628] sm:$0xff] }
 0x370   :  { %8247 = vmatmul.mubr.msk.f32.vlgmr.msra.gmra.mrb[66].mxu0 %vm1519_vm5, %v1518_v59  ;;  %8248 = vmatmul.mubr.msk.f32.vlgmr.msra.gmra.mrb[66].mxu1 %vm1519_vm5, %v1518_v59  ;;  %v8295_v11 = vld [vmem:[%s19214_s2 + $0x570] sm:$0xff]  ;;  %v9972_v59 = vpack.c.bf16 %v8302_v55, %v8298_v15  ;;  %v8316_v47 = vld [vmem:[%s19214_s2 + $0x618] sm:$0xff]  ;;  %v8326_v21 = vld [vmem:[%s19214_s2 + $0x668] sm:$0xff] }
 0x371   :  { %9951 = vmatpush1.bf16.msra.mxu0 %v9950_v53  ;;  %10015 = vmatpush1.bf16.msra.mxu1 %v10014_v62  ;;  %v9970_v53 = vpack.c.bf16 %v8293_v36, %v8289_v25  ;;  %v10034_v62 = vpack.c.bf16 %v8295_v11, %v8291_v57  ;;  %v10044_v60 = vpack.c.bf16 %v8320_v56, %v8316_v47  ;;  %v8334_v19 = vld [vmem:[%s19214_s2 + $0x6a8] sm:$0xff]  ;;  %v8332_v31 = vld [vmem:[%s19214_s2 + $0x698] sm:$0xff]  ;;  %v8329_v25 = vld [vmem:[%s19214_s2 + $0x680] sm:$0xff] }
 0x372   :  { %9953 = vmatprep.subr.bf16.mxu0 %v9952_v49  ;;  %10017 = vmatprep.subr.bf16.mxu1 %v10016_v52  ;;  %v10036_v49 = vpack.c.bf16 %v8304_v40, %v8300_v61  ;;  %v8299_v52 = vld [vmem:[%s19214_s2 + $0x590] sm:$0xff]  ;;  %v8333_v36 = vld [vmem:[%s19214_s2 + $0x6a0] sm:$0xff]  ;;  %v8338_v55 = vld [vmem:[%s19214_s2 + $0x6c8] sm:$0xff] }
 0x373   :  { %v8331_v57 = vld [vmem:[%s19214_s2 + $0x690] sm:$0xff]  ;;  %v8342_v61 = vld [vmem:[%s19214_s2 + $0x6e8] sm:$0xff]  ;;  %v8340_v40 = vld [vmem:[%s19214_s2 + $0x6d8] sm:$0xff] }
 0x374   :  { %v8335_v11 = vld [vmem:[%s19214_s2 + $0x6b0] sm:$0xff]  ;;  %v14224_v22 = vld [vmem:[%s19214_s2 + $0x1c0] sm:$0xff] }
 0x375   :  { %9955 = vmatpush1.bf16.msra.mxu0 %v9954_v33  ;;  %10019 = vmatpush1.bf16.msra.mxu1 %v10018_v34  ;;  %v10038_v33 = vpack.c.bf16 %v8303_v16, %v8299_v52  ;;  %v8305_v34 = vld [vmem:[%s19214_s2 + $0x5c0] sm:$0xff]  ;;  %v10054_v15 = vpack.c.bf16 %v8335_v11, %v8331_v57  ;;  %v8339_v52 = vld [vmem:[%s19214_s2 + $0x6d0] sm:$0xff]  ;;  %19888 = vst [vmem:[#allocation125_spill] sm:$0xff] %v14224_v22 }
 0x376   :  { %9957 = vmatprep.subr.bf16.mxu0 %v9956_v17  ;;  %10021 = vmatprep.subr.bf16.mxu1 %v10020_v39  ;;  %v10040_v17 = vpack.c.bf16 %v8312_v29, %v8308_v26  ;;  %v8307_v39 = vld [vmem:[%s19214_s2 + $0x5d0] sm:$0xff]  ;;  %v9978_v58 = vpack.c.bf16 %v8309_v13, %v8305_v34  ;;  %v8350_v26 = vld [vmem:[%s19214_s2 + $0x728] sm:$0xff]  ;;  %v8348_v29 = vld [vmem:[%s19214_s2 + $0x718] sm:$0xff] }
 0x377   :  { %v8343_v16 = vld [vmem:[%s19214_s2 + $0x6f0] sm:$0xff]  ;;  %v8345_v13 = vld [vmem:[%s19214_s2 + $0x700] sm:$0xff] }
 0x378   :  { %v10058_v28 = vpack.c.bf16 %v8343_v16, %v8339_v52  ;;  %v13944_v52 = vld [vmem:[%s19214_s2 + $0x48] sm:$0xff]  ;;  %v19927_v22 = vld [vmem:[#allocation91_spill] sm:$0xff] }
 0x379   :  { %9959 = vmatpush1.bf16.msra.mxu0 %v9958_v42  ;;  %10023 = vmatpush1.bf16.msra.mxu1 %v10022_v48  ;;  %v10042_v42 = vpack.c.bf16 %v8311_v5, %v8307_v39  ;;  %v9980_v48 = vpack.c.bf16 %v8318_v50, %v8314_v38  ;;  %v8351_v5 = vld [vmem:[%s19214_s2 + $0x730] sm:$0xff]  ;;  %v8354_v38 = vld [vmem:[%s19214_s2 + $0x748] sm:$0xff] }
 0x37a   :  { %9961 = vmatprep.subr.bf16.mxu0 %v9960_v7  ;;  %10025 = vmatprep.subr.bf16.mxu1 %v10024_v9  ;;  %v8317_v7 = vld [vmem:[%s19214_s2 + $0x620] sm:$0xff]  ;;  %v8315_v9 = vld [vmem:[%s19214_s2 + $0x610] sm:$0xff]  ;;  %v8358_v50 = vld [vmem:[%s19214_s2 + $0x768] sm:$0xff] }
 0x37b   :  { %v9982_v10 = vpack.c.bf16 %v8317_v7, %v8313_v63  ;;  %v10046_v18 = vpack.c.bf16 %v8319_v12, %v8315_v9  ;;  %v10000_v56 = vpack.c.bf16 %v8358_v50, %v8354_v38  ;;  %v8357_v63 = vld [vmem:[%s19214_s2 + $0x760] sm:$0xff]  ;;  %v8355_v7 = vld [vmem:[%s19214_s2 + $0x750] sm:$0xff]  ;;  %v8366_v12 = vld [vmem:[%s19214_s2 + $0x7a8] sm:$0xff] }
 0x37c   :  { %v8359_v9 = vld [vmem:[%s19214_s2 + $0x770] sm:$0xff]  ;;  %v13949_v16 = vld [vmem:[%s19214_s2 + $0x68] sm:$0xff] }
 0x37d   :  { %9963 = vmatpush1.bf16.msra.mxu0 %v9962_v35  ;;  %10027 = vmatpush1.bf16.msra.mxu1 %v10026_v23  ;;  %v9984_v35 = vpack.c.bf16 %v8326_v21, %v8322_v20  ;;  %v8328_v23 = vld [vmem:[%s19214_s2 + $0x678] sm:$0xff]  ;;  %v14014_v38 = vld [vmem:[%s19214_s2 + $0x90] sm:$0xff] }
 0x37e   :  { %9965 = vmatprep.subr.bf16.mxu0 %v9964_v30  ;;  %10029 = vmatprep.subr.bf16.mxu1 %v10028_v14  ;;  %v10048_v30 = vpack.c.bf16 %v8328_v23, %v8324_v43  ;;  %v9986_v14 = vpack.c.bf16 %v8325_v1, %v8321_v24  ;;  %v8368_v21 = vld [vmem:[%s19214_s2 + $0x7b8] sm:$0xff]  ;;  %v10066_v43 = vpack.c.bf16 %v8359_v9, %v8355_v7  ;;  %v8361_v23 = vld [vmem:[%s19214_s2 + $0x780] sm:$0xff]  ;;  %v8363_v1 = vld [vmem:[%s19214_s2 + $0x790] sm:$0xff] }
 0x37f   :  { %v8365_v24 = vld [vmem:[%s19214_s2 + $0x7a0] sm:$0xff]  ;;  %19857 = vst [vmem:[#allocation60_spill] sm:$0xff] %v14014_v38  ;;  %v14019_v50 = vld [vmem:[%s19214_s2 + $0xb0] sm:$0xff]  ;;  %v14064_v9 = vld [vmem:[%s19214_s2 + $0x108] sm:$0xff] }
 0x380   :  { %19858 = vst [vmem:[#allocation55_spill] sm:$0xff] %v14019_v50  ;;  %v14059_v7 = vld [vmem:[%s19214_s2 + $0xf0] sm:$0xff]  ;;  %v14252_v50 = vld [vmem:[%s19214_s2 + $0x208] sm:$0xff]  ;;  %v14272_v38 = vld [vmem:[%s19214_s2 + $0x200] sm:$0xff] }
 0x381   :  { %9967 = vmatpush1.bf16.msra.mxu0 %v9966_v2  ;;  %10031 = vmatpush1.bf16.msra.mxu1 %v10030_v27  ;;  %v9988_v2 = vpack.c.bf16 %v8334_v19, %v8330_v3  ;;  %v8336_v27 = vld [vmem:[%s19214_s2 + $0x6b8] sm:$0xff]  ;;  %v10006_v19 = vpack.c.bf16 %v8365_v24, %v8361_v23  ;;  %19865 = vst [vmem:[#allocation76_spill] sm:$0xff] %v14059_v7  ;;  %19892 = vst [vmem:[#allocation121_spill] sm:$0xff] %v14252_v50  ;;  %v14277_v24 = vld [vmem:[%s19214_s2 + $0x220] sm:$0xff] }
 0x382   :  { %9969 = vmatprep.subr.bf16.mxu0 %v9968_v37  ;;  %10033 = vmatprep.subr.bf16.mxu1 %v10032_v51  ;;  %v10052_v37 = vpack.c.bf16 %v8336_v27, %v8332_v31  ;;  %v9990_v51 = vpack.c.bf16 %v8333_v36, %v8329_v25  ;;  %v8376_v3 = vld [vmem:[%s19214_s2 + $0x7f8] sm:$0xff]  ;;  %v8369_v27 = vld [vmem:[%s19214_s2 + $0x7c0] sm:$0xff]  ;;  %19896 = vst [vmem:[#allocation141_spill] sm:$0xff] %v14272_v38  ;;  %19897 = vst [vmem:[#allocation140_spill] sm:$0xff] %v14277_v24 }
 0x383   :  { %v8373_v25 = vld [vmem:[%s19214_s2 + $0x7e0] sm:$0xff]  ;;  %v14262_v23 = vld [vmem:[%s19214_s2 + $0x218] sm:$0xff] }
 0x384   :  { %v10010_v57 = vpack.c.bf16 %v8373_v25, %v8369_v27  ;;  %v14204_v25 = vld [vmem:[%s19214_s2 + $0x1c8] sm:$0xff]  ;;  %19894 = vst [vmem:[#allocation138_spill] sm:$0xff] %v14262_v23  ;;  %v14395_v38 = vld [vmem:[%s19214_s2 + $0x2b8] sm:$0xff]  ;;  %v14400_v24 = vld [vmem:[%s19214_s2 + $0x280] sm:$0xff] }
 0x385   :  { %9971 = vmatpush1.bf16.msra.mxu0 %v9970_v53  ;;  %10035 = vmatpush1.bf16.msra.mxu1 %v10034_v62  ;;  %v9992_v53 = vpack.c.bf16 %v8342_v61, %v8338_v55  ;;  %v8344_v62 = vld [vmem:[%s19214_s2 + $0x6f8] sm:$0xff]  ;;  %v2513_v55 = vld [vmem:[%s19214_s2 + $0x28] sm:$0xff]  ;;  %19884 = vst [vmem:[#allocation105_spill] sm:$0xff] %v14204_v25  ;;  %19911 = vst [vmem:[#allocation172_spill] sm:$0xff] %v14395_v38 }
 0x386   :  { %9973 = vmatprep.subr.bf16.mxu0 %v9972_v59  ;;  %10037 = vmatprep.subr.bf16.mxu1 %v10036_v49  ;;  %v10056_v59 = vpack.c.bf16 %v8344_v62, %v8340_v40  ;;  %v9994_v49 = vpack.c.bf16 %v8341_v41, %v8337_v46  ;;  %v2511_v61 = vld [vmem:[%s19214_s2 + $0x18] sm:$0xff]  ;;  %v13924_v46 = vld [vmem:[%s19214_s2] sm:$0xff]  ;;  %v14209_v27 = vld [vmem:[%s19214_s2 + $0x1e8] sm:$0xff]  ;;  %19912 = vst [vmem:[#allocation171_spill] sm:$0xff] %v14400_v24 }
 0x387   :  { %v13929_v41 = vld [vmem:[%s19214_s2 + $0x20] sm:$0xff]  ;;  %19885 = vst [vmem:[#allocation100_spill] sm:$0xff] %v14209_v27  ;;  %v19921_v24 = vld [vmem:[#allocation11_spill] sm:$0xff] }
 0x388   :  { %v14405_v7 = vld [vmem:[%s19214_s2 + $0x2a0] sm:$0xff]  ;;  %v19930_v25 = vld [vmem:[#allocation83_spill] sm:$0xff] }
 0x389   :  { %9975 = vmatpush1.bf16.msra.mxu0 %v9974_v32  ;;  %10039 = vmatpush1.bf16.msra.mxu1 %v10038_v33  ;;  %v8352_v32 = vld [vmem:[%s19214_s2 + $0x738] sm:$0xff]  ;;  %v9996_v33 = vpack.c.bf16 %v8350_v26, %v8346_v45  ;;  %v13964_v26 = vld [vmem:[%s19214_s2 + $0x40] sm:$0xff]  ;;  %19913 = vst [vmem:[#allocation166_spill] sm:$0xff] %v14405_v7 }
 0x38a   :  { %9977 = vmatprep.subr.bf16.mxu0 %v9976_v0  ;;  %10041 = vmatprep.subr.bf16.mxu1 %v10040_v17  ;;  %v10060_v34 = vpack.c.bf16 %v8352_v32, %v8348_v29  ;;  %v8349_v0 = vld [vmem:[%s19214_s2 + $0x720] sm:$0xff]  ;;  %v8347_v17 = vld [vmem:[%s19214_s2 + $0x710] sm:$0xff]  ;;  %v13954_v45 = vld [vmem:[%s19214_s2 + $0x58] sm:$0xff] }
 0x38b   :  { %v9998_v39 = vpack.c.bf16 %v8349_v0, %v8345_v13  ;;  %v10062_v47 = vpack.c.bf16 %v8351_v5, %v8347_v17  ;;  %v13969_v29 = vld [vmem:[%s19214_s2 + $0x60] sm:$0xff]  ;;  %v13974_v32 = vld [vmem:[%s19214_s2 + $0x50] sm:$0xff]  ;;  %v13989_v13 = vld [vmem:[%s19214_s2 + $0xa8] sm:$0xff] }
 0x38c   :  { %v13994_v0 = vld [vmem:[%s19214_s2 + $0x98] sm:$0xff]  ;;  %v14009_v5 = vld [vmem:[%s19214_s2 + $0xa0] sm:$0xff] }
 0x38d   :  { %9979 = vmatpush1.bf16.msra.mxu0 %v9978_v58  ;;  %10043 = vmatpush1.bf16.msra.mxu1 %v10042_v42  ;;  %v8356_v58 = vld [vmem:[%s19214_s2 + $0x758] sm:$0xff] }
 0x38e   :  { %9981 = vmatprep.subr.bf16.mxu0 %v9980_v48  ;;  %10045 = vmatprep.subr.bf16.mxu1 %v10044_v60  ;;  %v8360_v42 = vld [vmem:[%s19214_s2 + $0x778] sm:$0xff]  ;;  %v8353_v48 = vld [vmem:[%s19214_s2 + $0x740] sm:$0xff] }
 0x38f   :  { %v10064_v60 = vpack.c.bf16 %v8360_v42, %v8356_v58  ;;  %v10002_v20 = vpack.c.bf16 %v8357_v63, %v8353_v48  ;;  %v13999_v17 = vld [vmem:[%s19214_s2 + $0xb8] sm:$0xff]  ;;  %v14044_v48 = vld [vmem:[%s19214_s2 + $0xc0] sm:$0xff]  ;;  %v14054_v63 = vld [vmem:[%s19214_s2 + $0xd0] sm:$0xff] }
 0x390   :  { %v14034_v58 = vld [vmem:[%s19214_s2 + $0xd8] sm:$0xff]  ;;  %19862 = vst [vmem:[#allocation74_spill] sm:$0xff] %v14044_v48  ;;  %19864 = vst [vmem:[#allocation77_spill] sm:$0xff] %v14054_v63  ;;  %v14282_v63 = vld [vmem:[%s19214_s2 + $0x210] sm:$0xff] }
 0x391   :  { %9983 = vmatpush1.bf16.msra.mxu0 %v9982_v10  ;;  %10047 = vmatpush1.bf16.msra.mxu1 %v10046_v18  ;;  %v8362_v10 = vld [vmem:[%s19214_s2 + $0x788] sm:$0xff]  ;;  %v8364_v18 = vld [vmem:[%s19214_s2 + $0x798] sm:$0xff]  ;;  %19860 = vst [vmem:[#allocation58_spill] sm:$0xff] %v14034_v58  ;;  %19898 = vst [vmem:[#allocation134_spill] sm:$0xff] %v14282_v63 }
 0x392   :  { %9985 = vmatprep.subr.bf16.mxu0 %v9984_v35  ;;  %10049 = vmatprep.subr.bf16.mxu1 %v10048_v30  ;;  %v10004_v35 = vpack.c.bf16 %v8366_v12, %v8362_v10  ;;  %v10068_v30 = vpack.c.bf16 %v8368_v21, %v8364_v18  ;;  %v14039_v42 = vld [vmem:[%s19214_s2 + $0xf8] sm:$0xff]  ;;  %v14069_v10 = vld [vmem:[%s19214_s2 + $0x128] sm:$0xff]  ;;  %v14089_v21 = vld [vmem:[%s19214_s2 + $0x120] sm:$0xff] }
 0x393   :  { %19861 = vst [vmem:[#allocation54_spill] sm:$0xff] %v14039_v42  ;;  %v14074_v12 = vld [vmem:[%s19214_s2 + $0x118] sm:$0xff]  ;;  %v14295_v42 = vld [vmem:[%s19214_s2 + $0x230] sm:$0xff]  ;;  %v14305_v48 = vld [vmem:[%s19214_s2 + $0x268] sm:$0xff] }
 0x394   :  { %v14079_v18 = vld [vmem:[%s19214_s2 + $0x138] sm:$0xff]  ;;  %19899 = vst [vmem:[#allocation130_spill] sm:$0xff] %v14295_v42  ;;  %19901 = vst [vmem:[#allocation132_spill] sm:$0xff] %v14305_v48  ;;  %v14328_v58 = vld [vmem:[%s19214_s2 + $0x240] sm:$0xff] }
 0x395   :  { %9987 = vmatpush1.bf16.msra.mxu0 %v9986_v14  ;;  %10051 = vmatpush1.bf16.msra.mxu1 %v10050_v8  ;;  %v8367_v14 = vld [vmem:[%s19214_s2 + $0x7b0] sm:$0xff]  ;;  %v8372_v8 = vld [vmem:[%s19214_s2 + $0x7d8] sm:$0xff]  ;;  %19904 = vst [vmem:[#allocation157_spill] sm:$0xff] %v14328_v58 }
 0x396   :  { %9989 = vmatprep.subr.bf16.mxu0 %v9988_v2  ;;  %10053 = vmatprep.subr.bf16.mxu1 %v10052_v37  ;;  %v10070_v31 = vpack.c.bf16 %v8367_v14, %v8363_v1  ;;  %v10008_v2 = vpack.c.bf16 %v8374_v6, %v8370_v54  ;;  %v10072_v36 = vpack.c.bf16 %v8376_v3, %v8372_v8  ;;  %v8371_v37 = vld [vmem:[%s19214_s2 + $0x7d0] sm:$0xff]  ;;  %v14108_v1 = vld [vmem:[%s19214_s2 + $0x148] sm:$0xff]  ;;  %v14118_v14 = vld [vmem:[%s19214_s2 + $0x158] sm:$0xff] }
 0x397   :  { %19869 = vst [vmem:[#allocation68_spill] sm:$0xff] %v14108_v1  ;;  %19870 = vst [vmem:[#allocation90_spill] sm:$0xff] %v14118_v14  ;;  %v14123_v54 = vld [vmem:[%s19214_s2 + $0x178] sm:$0xff]  ;;  %v14128_v6 = vld [vmem:[%s19214_s2 + $0x140] sm:$0xff] }
 0x398   :  { %19871 = vst [vmem:[#allocation85_spill] sm:$0xff] %v14123_v54  ;;  %19872 = vst [vmem:[#allocation93_spill] sm:$0xff] %v14128_v6  ;;  %v14133_v8 = vld [vmem:[%s19214_s2 + $0x160] sm:$0xff]  ;;  %v14138_v3 = vld [vmem:[%s19214_s2 + $0x150] sm:$0xff] }
 0x399   :  { %9991 = vmatpush1.bf16.msra.mxu0 %v9990_v51  ;;  %10055 = vmatpush1.bf16.msra.mxu1 %v10054_v15  ;;  %v8375_v51 = vld [vmem:[%s19214_s2 + $0x7f0] sm:$0xff]  ;;  %v2509_v15 = vld [vmem:[%s19214_s2 + $0x8] sm:$0xff]  ;;  %19873 = vst [vmem:[#allocation92_spill] sm:$0xff] %v14133_v8  ;;  %19874 = vst [vmem:[#allocation86_spill] sm:$0xff] %v14138_v3 }
 0x39a   :  { %9993 = vmatprep.subr.bf16.mxu0 %v9992_v53  ;;  %10057 = vmatprep.subr.bf16.mxu1 %v10056_v59  ;;  %v10074_v11 = vpack.c.bf16 %v8375_v51, %v8371_v37  ;;  %v10076_v40 = vpack.c.bf16 %v2513_v55, %v2509_v15  ;;  %v2515_v53 = vld [vmem:[%s19214_s2 + $0x38] sm:$0xff]  ;;  %v13934_v59 = vld [vmem:[%s19214_s2 + $0x10] sm:$0xff]  ;;  %v14161_v37 = vld [vmem:[%s19214_s2 + $0x1a8] sm:$0xff] }
 0x39b   :  { %v10140_v62 = vpack.c.bf16 %v2515_v53, %v2511_v61  ;;  %19877 = vst [vmem:[#allocation84_spill] sm:$0xff] %v14161_v37  ;;  %v14166_v51 = vld [vmem:[%s19214_s2 + $0x198] sm:$0xff]  ;;  %v14181_v15 = vld [vmem:[%s19214_s2 + $0x1a0] sm:$0xff]  ;;  %v14186_v55 = vld [vmem:[%s19214_s2 + $0x190] sm:$0xff] }
 0x39c   :  { %19878 = vst [vmem:[#allocation106_spill] sm:$0xff] %v14166_v51  ;;  %19881 = vst [vmem:[#allocation108_spill] sm:$0xff] %v14181_v15  ;;  %v14191_v61 = vld [vmem:[%s19214_s2 + $0x1b0] sm:$0xff]  ;;  %v14214_v53 = vld [vmem:[%s19214_s2 + $0x1d8] sm:$0xff] }
 0x39d   :  { %9995 = vmatpush1.bf16.msra.mxu0 %v9994_v49  ;;  %10059 = vmatpush1.bf16.msra.mxu1 %v10058_v28  ;;  %v13939_v49 = vld [vmem:[%s19214_s2 + $0x30] sm:$0xff]  ;;  %v13959_v28 = vld [vmem:[%s19214_s2 + $0x78] sm:$0xff]  ;;  %19882 = vst [vmem:[#allocation102_spill] sm:$0xff] %v14186_v55  ;;  %19883 = vst [vmem:[#allocation98_spill] sm:$0xff] %v14191_v61 }
 0x39e   :  { %9997 = vmatprep.subr.bf16.mxu0 %v9996_v33  ;;  %10061 = vmatprep.subr.bf16.mxu1 %v10060_v34  ;;  %v13979_v33 = vld [vmem:[%s19214_s2 + $0x70] sm:$0xff]  ;;  %v13984_v34 = vld [vmem:[%s19214_s2 + $0x88] sm:$0xff]  ;;  %19886 = vst [vmem:[#allocation122_spill] sm:$0xff] %v14214_v53 }
 0x39f   :  { %v14346_v6 = vld [vmem:[%s19214_s2 + $0x250] sm:$0xff]  ;;  %v14372_v3 = vld [vmem:[%s19214_s2 + $0x288] sm:$0xff] }
 0x3a0   :  { %19906 = vst [vmem:[#allocation150_spill] sm:$0xff] %v14346_v6  ;;  %19908 = vst [vmem:[#allocation153_spill] sm:$0xff] %v14372_v3  ;;  %v14377_v55 = vld [vmem:[%s19214_s2 + $0x2a8] sm:$0xff]  ;;  %v19917_v3 = vld [vmem:[#allocation9_spill] sm:$0xff] }
 0x3a1   :  { %9999 = vmatpush1.bf16.msra.mxu0 %v9998_v39  ;;  %10063 = vmatpush1.bf16.msra.mxu1 %v10062_v47  ;;  %v14004_v39 = vld [vmem:[%s19214_s2 + $0x80] sm:$0xff]  ;;  %v14024_v47 = vld [vmem:[%s19214_s2 + $0xc8] sm:$0xff]  ;;  %19909 = vst [vmem:[#allocation148_spill] sm:$0xff] %v14377_v55 }
 0x3a2   :  { %10001 = vmatprep.subr.bf16.mxu0 %v10000_v56  ;;  %10065 = vmatprep.subr.bf16.mxu1 %v10064_v60  ;;  %19856 = vst [vmem:[#allocation61_spill] sm:$0xff] %v14004_v39  ;;  %19859 = vst [vmem:[#allocation52_spill] sm:$0xff] %v14024_v47  ;;  %v14029_v56 = vld [vmem:[%s19214_s2 + $0xe8] sm:$0xff]  ;;  %v14049_v60 = vld [vmem:[%s19214_s2 + $0xe0] sm:$0xff] }
 0x3a3   :  { %19863 = vst [vmem:[#allocation69_spill] sm:$0xff] %v14049_v60  ;;  %v14257_v39 = vld [vmem:[%s19214_s2 + $0x228] sm:$0xff] }
 0x3a4   :  { %19893 = vst [vmem:[#allocation116_spill] sm:$0xff] %v14257_v39  ;;  %v14300_v47 = vld [vmem:[%s19214_s2 + $0x248] sm:$0xff]  ;;  %v19924_v39 = vld [vmem:[#allocation80_spill] sm:$0xff] }
 0x3a5   :  { %10003 = vmatpush1.bf16.msra.mxu0 %v10002_v20  ;;  %10067 = vmatpush1.bf16.msra.mxu1 %v10066_v43  ;;  %v14084_v20 = vld [vmem:[%s19214_s2 + $0x100] sm:$0xff]  ;;  %v14094_v43 = vld [vmem:[%s19214_s2 + $0x110] sm:$0xff]  ;;  %19900 = vst [vmem:[#allocation137_spill] sm:$0xff] %v14300_v47 }
 0x3a6   :  { %10005 = vmatprep.subr.bf16.mxu0 %v10004_v35  ;;  %10069 = vmatprep.subr.bf16.mxu1 %v10068_v30  ;;  %19866 = vst [vmem:[#allocation70_spill] sm:$0xff] %v14084_v20  ;;  %19867 = vst [vmem:[#allocation66_spill] sm:$0xff] %v14094_v43  ;;  %v14099_v35 = vld [vmem:[%s19214_s2 + $0x130] sm:$0xff]  ;;  %v14113_v30 = vld [vmem:[%s19214_s2 + $0x168] sm:$0xff] }
 0x3a7   :  { %19868 = vst [vmem:[#allocation73_spill] sm:$0xff] %v14099_v35  ;;  %v14318_v35 = vld [vmem:[%s19214_s2 + $0x258] sm:$0xff]  ;;  %v14351_v43 = vld [vmem:[%s19214_s2 + $0x270] sm:$0xff] }
 0x3a8   :  { %19902 = vst [vmem:[#allocation154_spill] sm:$0xff] %v14318_v35  ;;  %v14323_v20 = vld [vmem:[%s19214_s2 + $0x278] sm:$0xff]  ;;  %19907 = vst [vmem:[#allocation146_spill] sm:$0xff] %v14351_v43 }
 0x3a9   :  { %10007 = vmatpush1.bf16.msra.mxu0 %v10006_v19  ;;  %10071 = vmatpush1.bf16.msra.mxu1 %v10070_v31  ;;  %v14143_v19 = vld [vmem:[%s19214_s2 + $0x170] sm:$0xff]  ;;  %19903 = vst [vmem:[#allocation149_spill] sm:$0xff] %v14323_v20  ;;  %v19918_v20 = vld [vmem:[#allocation12_spill] sm:$0xff] }
 0x3aa   :  { %10009 = vmatprep.subr.bf16.mxu0 %v10008_v2  ;;  %10073 = vmatprep.subr.bf16.mxu1 %v10072_v36  ;;  %19875 = vst [vmem:[#allocation82_spill] sm:$0xff] %v14143_v19  ;;  %v14156_v36 = vld [vmem:[%s19214_s2 + $0x188] sm:$0xff]  ;;  %v14234_v2 = vld [vmem:[%s19214_s2 + $0x1d0] sm:$0xff]  ;;  %v14341_v19 = vld [vmem:[%s19214_s2 + $0x260] sm:$0xff] }
 0x3ab   :  { %19876 = vst [vmem:[#allocation89_spill] sm:$0xff] %v14156_v36  ;;  %19890 = vst [vmem:[#allocation118_spill] sm:$0xff] %v14234_v2  ;;  %v14239_v31 = vld [vmem:[%s19214_s2 + $0x1f0] sm:$0xff]  ;;  %v19925_v2 = vld [vmem:[#allocation81_spill] sm:$0xff] }
 0x3ac   :  { %19891 = vst [vmem:[#allocation114_spill] sm:$0xff] %v14239_v31  ;;  %19905 = vst [vmem:[#allocation156_spill] sm:$0xff] %v14341_v19  ;;  %v14420_v19 = vld [vmem:[%s19214_s2 + $0x290] sm:$0xff] }
 0x3ad   :  { %10011 = vmatpush1.bf16.msra.mxu0 %v10010_v57  ;;  %10075 = vmatpush1.bf16.msra.mxu1 %v10074_v11  ;;  %v14171_v57 = vld [vmem:[%s19214_s2 + $0x1b8] sm:$0xff]  ;;  %v14176_v11 = vld [vmem:[%s19214_s2 + $0x180] sm:$0xff]  ;;  %19914 = vst [vmem:[#allocation162_spill] sm:$0xff] %v14420_v19  ;;  %v19922_v19 = vld [vmem:[#allocation14_spill] sm:$0xff] }
 0x3ae   :  { %10077 = vmatprep.subr.bf16.mxu0 %v10076_v40  ;;  %10141 = vmatprep.subr.bf16.mxu1 %v10140_v62  ;;  %19879 = vst [vmem:[#allocation101_spill] sm:$0xff] %v14171_v57  ;;  %19880 = vst [vmem:[#allocation109_spill] sm:$0xff] %v14176_v11  ;;  %v14219_v62 = vld [vmem:[%s19214_s2 + $0x1f8] sm:$0xff]  ;;  %v14229_v40 = vld [vmem:[%s19214_s2 + $0x1e0] sm:$0xff] }
 0x3af   :  { %19887 = vst [vmem:[#allocation117_spill] sm:$0xff] %v14219_v62  ;;  %19889 = vst [vmem:[#allocation124_spill] sm:$0xff] %v14229_v40  ;;  %v14382_v11 = vld [vmem:[%s19214_s2 + $0x298] sm:$0xff]  ;;  %v19928_v40 = vld [vmem:[#allocation78_spill] sm:$0xff] }
 0x3b0   :  { %19910 = vst [vmem:[#allocation165_spill] sm:$0xff] %v14382_v11  ;;  %v19916_v11 = vld [vmem:[#allocation8_spill] sm:$0xff]  ;;  %v19929_v62 = vld [vmem:[#allocation79_spill] sm:$0xff] }
 0x43f   :  { %v1589_v61 = vpop.f32.mrb[64].mxu0  ;;  %v1660_v15 = vpop.f32.mrb[64].mxu1 }
 0x440   :  { %v14408_v63 = vrot.slane %v1589_v61, %v12951_v4  ;;  %v14411_v42 = vrot.slane %v1660_v15, %v12951_v4  ;;  %v1591_v60 = vpop.f32.mrb[65].mxu0  ;;  %v1662_v6 = vpop.f32.mrb[65].mxu1  ;;  %v14425_v61 = vld [vmem:[%s19214_s2 + $0x2b0] sm:$0xff] }
 0x441   :  { %19915 = vst [vmem:[#allocation169_spill] sm:$0xff] %v14425_v61  ;;  %v14428_v15 = vrot.slane %v1591_v60, %v12951_v4  ;;  %v14431_v35 = vrot.slane %v1662_v6, %v12951_v4  ;;  %v19919_v60 = vld [vmem:[#allocation13_spill] sm:$0xff]  ;;  %v19923_v61 = vld [vmem:[#allocation15_spill] sm:$0xff] }
 0x442   :  { %v1826_v38 = vmul.f32 %v14408_v63, %v19916_v11  ;;  %v1828_v55 = vmul.f32 %v14411_v42, %v19917_v3  ;;  %v1830_v47 = vmul.f32 %v14408_v63, %v19918_v20  ;;  %v1832_v48 = vmul.f32 %v14411_v42, %v19919_v60 }
 0x443   :  { %v1734_v6 = vpop.f32.mrb[66].mxu0  ;;  %v1805_v23 = vpop.f32.mrb[66].mxu1  ;;  %v1827_v43 = vmul.f32 %v14428_v15, %v19920_v44  ;;  %v1829_v58 = vmul.f32 %v14431_v35, %v19921_v24  ;;  %v1831_v11 = vmul.f32 %v14428_v15, %v19922_v19  ;;  %v1833_v3 = vmul.f32 %v14431_v35, %v19923_v61  ;;  %v19926_v61 = vld [vmem:[#allocation88_spill] sm:$0xff] }
 0x444   :  { %v14454_v7 = vrot.slane %v1734_v6, %v12951_v4  ;;  %v14457_v20 = vrot.slane %v1805_v23, %v12951_v4  ;;  %v1736_v60 = vpop.f32.mrb[67].mxu0  ;;  %v1807_v50 = vpop.f32.mrb[67].mxu1  ;;  %v1883_v44 = vmul.f32 %v14428_v15, %v19924_v39  ;;  %v1885_v24 = vmul.f32 %v14431_v35, %v19925_v2 }
 0x445   :  { %v14464_v31 = vrot.slane %v1736_v60, %v12951_v4  ;;  %v14467_v19 = vrot.slane %v1807_v50, %v12951_v4  ;;  %v1887_v6 = vmul.f32 %v14428_v15, %v19926_v61  ;;  %v1889_v23 = vmul.f32 %v14431_v35, %v19927_v22  ;;  %v19931_v60 = vld [vmem:[#allocation87_spill] sm:$0xff] }
 0x446   :  { %v1882_v53 = vmul.f32 %v14408_v63, %v19928_v40  ;;  %v1884_v39 = vmul.f32 %v14411_v42, %v19929_v62  ;;  %v1886_v2 = vmul.f32 %v14408_v63, %v19930_v25  ;;  %v1888_v27 = vmul.f32 %v14411_v42, %v19931_v60 }
 0x447   :  { %v1955_v50 = vadd.f32 %v14464_v31, %v1827_v43  ;;  %v1957_v4 = vadd.f32 %v14467_v19, %v1829_v58  ;;  %v1959_v61 = vadd.f32 %v14464_v31, %v1831_v11  ;;  %v1961_v22 = vadd.f32 %v14467_v19, %v1833_v3 }
 0x448   :  { %v2011_v40 = vadd.f32 %v14464_v31, %v1883_v44  ;;  %v2013_v51 = vadd.f32 %v14467_v19, %v1885_v24  ;;  %v2015_v62 = vadd.f32 %v14464_v31, %v1887_v6  ;;  %v2017_v25 = vadd.f32 %v14467_v19, %v1889_v23 }
 0x449   :  { %v2067_v57 = vmax.f32 %v1955_v50, 0.0  ;;  %v2069_v36 = vmax.f32 %v1957_v4, 0.0  ;;  %v2071_v60 = vmax.f32 %v1959_v61, 0.0  ;;  %v2073_v37 = vmax.f32 %v1961_v22, 0.0 }
 0x44a   :  { %v2123_v43 = vmax.f32 %v2011_v40, 0.0  ;;  %v2125_v8 = vmax.f32 %v2013_v51, 0.0  ;;  %v2127_v58 = vmax.f32 %v2015_v62, 0.0  ;;  %v2129_v14 = vmax.f32 %v2017_v25, 0.0 }
 0x44b   :  { %v1954_v11 = vadd.f32 %v14454_v7, %v1826_v38  ;;  %v1956_v3 = vadd.f32 %v14457_v20, %v1828_v55  ;;  %v1958_v44 = vadd.f32 %v14454_v7, %v1830_v47  ;;  %v1960_v24 = vadd.f32 %v14457_v20, %v1832_v48 }
 0x44c   :  { %v2179_v54 = vmax.f32 %v2067_v57, %v2123_v43  ;;  %v2181_v6 = vmax.f32 %v2069_v36, %v2125_v8  ;;  %v2183_v1 = vmax.f32 %v2071_v60, %v2127_v58  ;;  %v2185_v23 = vmax.f32 %v2073_v37, %v2129_v14  ;;  %v19934_v58 = vld [vmem:[#allocation96_spill] sm:$0xff] }
 0x44d   :  { %v2010_v4 = vadd.f32 %v14454_v7, %v1882_v53  ;;  %v2012_v50 = vadd.f32 %v14457_v20, %v1884_v39  ;;  %v2014_v51 = vadd.f32 %v14454_v7, %v1886_v2  ;;  %v2016_v61 = vadd.f32 %v14457_v20, %v1888_v27  ;;  %v19932_v2 = vld [vmem:[#allocation18_spill] sm:$0xff] }
 0x44e   :  { %v2235_v22 = vmax.f32 %v2179_v54, %v2181_v6  ;;  %v14497_v38 = vmax.f32 %v2183_v1, %v2185_v23  ;;  %v2066_v55 = vmax.f32 %v1954_v11, 0.0  ;;  %v2068_v40 = vmax.f32 %v1956_v3, 0.0  ;;  %v19933_v54 = vld [vmem:[#allocation19_spill] sm:$0xff] }
 0x44f   :  { %v2070_v47 = vmax.f32 %v1958_v44, 0.0  ;;  %v2072_v62 = vmax.f32 %v1960_v24, 0.0  ;;  %v2122_v48 = vmax.f32 %v2010_v4, 0.0  ;;  %v2124_v57 = vmax.f32 %v2012_v50, 0.0  ;;  %v19935_v24 = vld [vmem:[#allocation97_spill] sm:$0xff] }
 0x450   :  { %v2304_v8 = vrot.slane %v2235_v22, 6  ;;  %v2307_v14 = vrot.slane %v14497_v38, 6  ;;  %v2126_v36 = vmax.f32 %v2014_v51, 0.0  ;;  %v2128_v37 = vmax.f32 %v2016_v61, 0.0 }
 0x451   :  { %v2178_v53 = vmax.f32 %v2066_v55, %v2122_v48  ;;  %v2180_v39 = vmax.f32 %v2068_v40, %v2124_v57  ;;  %v1835_v27 = vmul.f32 %v14428_v15, %v19932_v2  ;;  %v1837_v1 = vmul.f32 %v14431_v35, %v19933_v54 }
 0x452   :  { %v14505_v25 = vsel %vm2302_vm6, %v2304_v8, %v2307_v14  ;;  %2314 = vst [vmem:[#allocation2 + $0x8] sm:$0xfc] %v2304_v8  ;;  %v2182_v60 = vmax.f32 %v2070_v47, %v2126_v36  ;;  %v2184_v43 = vmax.f32 %v2072_v62, %v2128_v37  ;;  %v1891_v11 = vmul.f32 %v14428_v15, %v19934_v58  ;;  %v19936_v47 = vld [vmem:[#allocation16_spill] sm:$0xff]  ;;  %v19937_v14 = vld [vmem:[#allocation17_spill] sm:$0xff] }
 0x453   :  { %2316 = vst [vmem:[#allocation2 + $0x18] sm:$0xff] %v14505_v25  ;;  %v2810_v3 = vrot.slane %v14505_v25, 1  ;;  %v2234_v44 = vmax.f32 %v2178_v53, %v2180_v39  ;;  %v1893_v6 = vmul.f32 %v14431_v35, %v19935_v24  ;;  %v1963_v23 = vadd.f32 %v14464_v31, %v1835_v27  ;;  %v19938_v53 = vld [vmem:[#allocation94_spill] sm:$0xff] }
 0x454   :  { %v14514_v4 = vmax.f32 %v2182_v60, %v2184_v43  ;;  %v1965_v50 = vadd.f32 %v14467_v19, %v1837_v1  ;;  %v2019_v51 = vadd.f32 %v14464_v31, %v1891_v11  ;;  %v2325_v61 = vrot.slane %v14497_v38, 2  ;;  %v19939_v38 = vld [vmem:[#allocation95_spill] sm:$0xff] }
 0x455   :  { %v2303_v22 = vrot.slane %v2234_v44, 6  ;;  %v2021_v55 = vadd.f32 %v14467_v19, %v1893_v6  ;;  %v2075_v40 = vmax.f32 %v1963_v23, 0.0  ;;  %v1834_v62 = vmul.f32 %v14408_v63, %v19936_v47 }
 0x456   :  { %v2305_v48 = vrot.slane %v14514_v4, 6  ;;  %v2077_v57 = vmax.f32 %v1965_v50, 0.0  ;;  %v2131_v8 = vmax.f32 %v2019_v51, 0.0  ;;  %v1836_v36 = vmul.f32 %v14411_v42, %v19937_v14 }
 0x457   :  { %2313 = vst [vmem:[#allocation2] sm:$0xfc] %v2303_v22  ;;  %v2133_v37 = vmax.f32 %v2021_v55, 0.0  ;;  %v1890_v39 = vmul.f32 %v14408_v63, %v19938_v53  ;;  %v1892_v2 = vmul.f32 %v14411_v42, %v19939_v38  ;;  %v1962_v27 = vadd.f32 %v14454_v7, %v1834_v62 }
 0x458   :  { %v14531_v54 = vsel %vm2302_vm6, %v2303_v22, %v2305_v48  ;;  %v2187_v1 = vmax.f32 %v2075_v40, %v2131_v8  ;;  %v1964_v60 = vadd.f32 %v14457_v20, %v1836_v36  ;;  %v2322_v43 = vrot.slane %v14514_v4, 2  ;;  %v19940_v22 = vld [vmem:[#allocation22_spill] sm:$0xff]  ;;  %v19941_v4 = vld [vmem:[#allocation23_spill] sm:$0xff]  ;;  %v19942_v8 = vld [vmem:[#allocation104_spill] sm:$0xff] }
 0x459   :  { %v2637_v58 = vld [vmem:[#allocation2 + $0x8] sm:$0xfe]  ;;  %2315 = vst [vmem:[#allocation2 + $0x10] sm:$0xff] %v14531_v54  ;;  %v2807_v11 = vrot.slane %v14531_v54, 1  ;;  %v2189_v44 = vmax.f32 %v2077_v57, %v2133_v37  ;;  %v2018_v24 = vadd.f32 %v14454_v7, %v1890_v39  ;;  %v2020_v6 = vadd.f32 %v14457_v20, %v1892_v2  ;;  %v19943_v36 = vld [vmem:[#allocation107_spill] sm:$0xff] }
 0x45a   :  { %v2809_v23 = vrot.slane %v2637_v58, 1  ;;  %v2074_v50 = vmax.f32 %v1962_v27, 0.0  ;;  %v2076_v51 = vmax.f32 %v1964_v60, 0.0  ;;  %v1839_v55 = vmul.f32 %v14428_v15, %v19940_v22 }
 0x45b   :  { %v2239_v40 = vmax.f32 %v2187_v1, %v2189_v44  ;;  %v2130_v47 = vmax.f32 %v2018_v24, 0.0  ;;  %v2132_v62 = vmax.f32 %v2020_v6, 0.0  ;;  %v1841_v48 = vmul.f32 %v14431_v35, %v19941_v4  ;;  %v19944_v24 = vld [vmem:[#allocation20_spill] sm:$0xff] }
 0x45c   :  { %v2811_v57 = vsel %vm2805_vm7, %v2809_v23, %v2810_v3  ;;  %v1895_v14 = vmul.f32 %v14428_v15, %v19942_v8  ;;  %v1897_v37 = vmul.f32 %v14431_v35, %v19943_v36  ;;  %v1967_v53 = vadd.f32 %v14464_v31, %v1839_v55 }
 0x45d   :  { %2976 = vmatprep.mubr.f32.mxu0 %v2811_v57  ;;  %3149 = vmatprep.mubr.f32.mxu1 %v2811_v57  ;;  %v2326_v39 = vrot.slane %v2239_v40, 2  ;;  %v2186_v38 = vmax.f32 %v2074_v50, %v2130_v47  ;;  %v2188_v2 = vmax.f32 %v2076_v51, %v2132_v62  ;;  %v1969_v27 = vadd.f32 %v14467_v19, %v1841_v48  ;;  %v19945_v51 = vld [vmem:[#allocation21_spill] sm:$0xff]  ;;  %v19946_v62 = vld [vmem:[#allocation99_spill] sm:$0xff] }
 0x45e   :  { %v2636_v1 = vld [vmem:[#allocation2] sm:$0xfe]  ;;  %v2023_v60 = vadd.f32 %v14464_v31, %v1895_v14  ;;  %v2025_v58 = vadd.f32 %v14467_v19, %v1897_v37  ;;  %v2079_v44 = vmax.f32 %v1967_v53, 0.0  ;;  %v1838_v6 = vmul.f32 %v14408_v63, %v19944_v24  ;;  %v19947_v14 = vld [vmem:[#allocation103_spill] sm:$0xff] }
 0x45f   :  { %v2806_v23 = vrot.slane %v2636_v1, 1  ;;  %v2327_v22 = vsel %vm2321_vm8, %v2325_v61, %v2326_v39  ;;  %v2238_v55 = vmax.f32 %v2186_v38, %v2188_v2  ;;  %v2081_v4 = vmax.f32 %v1969_v27, 0.0 }
 0x460   :  { %2339 = vst [vmem:[#allocation2 + $0x28] sm:$0xf0] %v2327_v22  ;;  %v2135_v40 = vmax.f32 %v2023_v60, 0.0  ;;  %v2137_v50 = vmax.f32 %v2025_v58, 0.0  ;;  %v1840_v47 = vmul.f32 %v14411_v42, %v19945_v51  ;;  %v1894_v48 = vmul.f32 %v14408_v63, %v19946_v62 }
 0x461   :  { %v2808_v57 = vsel %vm2805_vm7, %v2806_v23, %v2807_v11  ;;  %v14564_v8 = vrot.slane %v2238_v55, 2  ;;  %v1896_v61 = vmul.f32 %v14411_v42, %v19947_v14  ;;  %v1966_v36 = vadd.f32 %v14454_v7, %v1838_v6 }
 0x462   :  { %2977 = vmatmul.mubr.f32.vlgmr.msra.gmra.mrb[68].mxu0 %v2808_v57  ;;  %3150 = vmatmul.mubr.f32.vlgmr.msra.gmra.mrb[68].mxu1 %v2808_v57  ;;  %v2191_v37 = vmax.f32 %v2079_v44, %v2135_v40  ;;  %v2193_v53 = vmax.f32 %v2081_v4, %v2137_v50  ;;  %v1968_v38 = vadd.f32 %v14457_v20, %v1840_v47  ;;  %v19954_v4 = vld [vmem:[#allocation112_spill] sm:$0xff]  ;;  %v19955_v50 = vld [vmem:[#allocation113_spill] sm:$0xff] }
 0x463   :  { %v2324_v2 = vsel %vm2321_vm8, %v2322_v43, %v14564_v8  ;;  %v19948_v27 = vpack.c.bf16 %v13929_v41, %v13924_v46  ;;  %v19949_v1 = vpack.c.bf16 %v13939_v49, %v13934_v59  ;;  %v2022_v60 = vadd.f32 %v14454_v7, %v1894_v48  ;;  %v19952_v41 = vld [vmem:[#allocation26_spill] sm:$0xff]  ;;  %v19953_v49 = vld [vmem:[#allocation27_spill] sm:$0xff] }
 0x464   :  { %v2024_v58 = vadd.f32 %v14457_v20, %v1896_v61  ;;  %v2078_v24 = vmax.f32 %v1966_v36, 0.0  ;;  %2338 = vst [vmem:[#allocation2 + $0x20] sm:$0xf0] %v2324_v2  ;;  %v14580_v44 = vmax.f32 %v2191_v37, %v2193_v53  ;;  %v2080_v6 = vmax.f32 %v1968_v38, 0.0 }
 0x465   :  { %10079 = vmatpush1.bf16.msra.mxu0 %v19948_v27  ;;  %10143 = vmatpush1.bf16.msra.mxu1 %v19949_v1  ;;  %v19950_v43 = vpack.c.bf16 %v13949_v16, %v13944_v52  ;;  %v19951_v46 = vpack.c.bf16 %v13959_v28, %v13954_v45  ;;  %v1843_v59 = vmul.f32 %v14428_v15, %v19952_v41  ;;  %v2134_v22 = vmax.f32 %v2022_v60, 0.0  ;;  %v19960_v27 = vld [vmem:[#allocation24_spill] sm:$0xff] }
 0x466   :  { %v1845_v23 = vmul.f32 %v14431_v35, %v19953_v49  ;;  %v2136_v55 = vmax.f32 %v2024_v58, 0.0  ;;  %v1899_v40 = vmul.f32 %v14428_v15, %v19954_v4  ;;  %v1901_v51 = vmul.f32 %v14431_v35, %v19955_v50  ;;  %v19965_v49 = vld [vmem:[#allocation60_spill] sm:$0xff]  ;;  %v19968_v4 = vld [vmem:[#allocation111_spill] sm:$0xff] }
 0x467   :  { %10081 = vmatprep.subr.bf16.mxu0 %v19950_v43  ;;  %10145 = vmatprep.subr.bf16.mxu1 %v19951_v46  ;;  %v2330_v52 = vrot.slane %v14580_v44, 2  ;;  %v2349_v16 = vrot.slane %v14580_v44, 6  ;;  %v1971_v45 = vadd.f32 %v14464_v31, %v1843_v59  ;;  %v2477_v47 = vld [vmem:[#allocation2 + $0x28] sm:$0xff]  ;;  %v2190_v62 = vmax.f32 %v2078_v24, %v2134_v22  ;;  %v19964_v59 = vld [vmem:[#allocation55_spill] sm:$0xff] }
 0x468   :  { %v1973_v28 = vadd.f32 %v14467_v19, %v1845_v23  ;;  %v2192_v48 = vmax.f32 %v2080_v6, %v2136_v55  ;;  %v19956_v57 = vpack.c.bf16 %v13969_v29, %v13964_v26  ;;  %v19957_v14 = vpack.c.bf16 %v13979_v33, %v13974_v32  ;;  %v19967_v22 = vld [vmem:[#allocation110_spill] sm:$0xff] }
 0x469   :  { %v2027_v61 = vadd.f32 %v14464_v31, %v1899_v40  ;;  %v2814_v36 = vrot.slane %v2477_v47, 1  ;;  %v14608_v37 = vsel %vm2321_vm8, %v2326_v39, %v2330_v52  ;;  %2343 = vst [vmem:[#allocation2 + $0x48] sm:$0x3] %v2330_v52  ;;  %2365 = vst [vmem:[#allocation2 + $0x48] sm:$0xc0] %v2349_v16  ;;  %v19958_v53 = vpack.c.bf16 %v13989_v13, %v13984_v34  ;;  %v19969_v52 = vld [vmem:[#allocation30_spill] sm:$0xff] }
 0x46a   :  { %10083 = vmatpush1.bf16.msra.mxu0 %v19956_v57  ;;  %10147 = vmatpush1.bf16.msra.mxu1 %v19957_v14  ;;  %v19959_v26 = vpack.c.bf16 %v13999_v17, %v13994_v0  ;;  %v2029_v29 = vadd.f32 %v14467_v19, %v1901_v51  ;;  %v2083_v32 = vmax.f32 %v1971_v45, 0.0  ;;  %2341 = vst [vmem:[#allocation2 + $0x38] sm:$0xff] %v14608_v37  ;;  %v2818_v33 = vrot.slane %v14608_v37, 1  ;;  %v19961_v17 = vld [vmem:[#allocation25_spill] sm:$0xff]  ;;  %v19972_v14 = vld [vmem:[#allocation54_spill] sm:$0xff] }
 0x46b   :  { %10085 = vmatprep.subr.bf16.mxu0 %v19958_v53  ;;  %v14621_v39 = vmax.f32 %v2190_v62, %v2192_v48  ;;  %v2085_v38 = vmax.f32 %v1973_v28, 0.0  ;;  %v2139_v2 = vmax.f32 %v2027_v61, 0.0  ;;  %v2815_v34 = vsel %vm2805_vm7, %v2810_v3, %v2814_v36  ;;  %v2476_v60 = vld [vmem:[#allocation2 + $0x20] sm:$0xff]  ;;  %v19970_v28 = vld [vmem:[#allocation52_spill] sm:$0xff]  ;;  %v19973_v61 = vld [vmem:[#allocation58_spill] sm:$0xff] }
 0x46c   :  { %10149 = vmatprep.subr.bf16.mxu1 %v19959_v26  ;;  %v2141_v13 = vmax.f32 %v2029_v29, 0.0  ;;  %v1842_v0 = vmul.f32 %v14408_v63, %v19960_v27  ;;  %v1844_v1 = vmul.f32 %v14411_v42, %v19961_v17  ;;  %2982 = vmatprep.mubr.f32.mxu0 %v2815_v34  ;;  %v2819_v58 = vsel %vm2805_vm7, %v2814_v36, %v2818_v33  ;;  %v19962_v3 = vld [vmem:[#allocation61_spill] sm:$0xff]  ;;  %v19975_v26 = vld [vmem:[#allocation31_spill] sm:$0xff] }
 0x46d   :  { %3155 = vmatprep.mubr.f32.mxu1 %v2815_v34  ;;  %v2328_v24 = vrot.slane %v14621_v39, 2  ;;  %v2348_v6 = vrot.slane %v14621_v39, 6  ;;  %v2195_v43 = vmax.f32 %v2083_v32, %v2139_v2  ;;  %v2812_v25 = vrot.slane %v2476_v60, 1  ;;  %v19978_v60 = vld [vmem:[#allocation69_spill] sm:$0xff] }
 0x46e   :  { %v2197_v46 = vmax.f32 %v2085_v38, %v2141_v13  ;;  %v19963_v41 = vpack.c.bf16 %v14009_v5, %v19962_v3  ;;  %v19966_v23 = vpack.c.bf16 %v19964_v59, %v19965_v49  ;;  %v1898_v55 = vmul.f32 %v14408_v63, %v19967_v22  ;;  %v19976_v13 = vld [vmem:[#allocation120_spill] sm:$0xff]  ;;  %v20003_v39 = vld [vmem:[#allocation93_spill] sm:$0xff] }
 0x46f   :  { %v1900_v40 = vmul.f32 %v14411_v42, %v19968_v4  ;;  %v14645_v50 = vsel %vm2321_vm8, %v14564_v8, %v2328_v24  ;;  %2342 = vst [vmem:[#allocation2 + $0x40] sm:$0x3] %v2328_v24  ;;  %2364 = vst [vmem:[#allocation2 + $0x40] sm:$0xc0] %v2348_v6  ;;  %v1970_v5 = vadd.f32 %v14454_v7, %v1842_v0  ;;  %v19977_v0 = vld [vmem:[#allocation123_spill] sm:$0xff]  ;;  %v19979_v24 = vld [vmem:[#allocation74_spill] sm:$0xff] }
 0x470   :  { %10087 = vmatpush1.bf16.msra.mxu0 %v19963_v41  ;;  %10151 = vmatpush1.bf16.msra.mxu1 %v19966_v23  ;;  %v1972_v51 = vadd.f32 %v14457_v20, %v1844_v1  ;;  %v1847_v45 = vmul.f32 %v14428_v15, %v19969_v52  ;;  %v19971_v47 = vpack.c.bf16 %v14029_v56, %v19970_v28  ;;  %v2816_v62 = vrot.slane %v14645_v50, 1  ;;  %v2481_v37 = vld [vmem:[#allocation2 + $0x48] sm:$0xff] }
 0x471   :  { %v2813_v8 = vsel %vm2805_vm7, %v2807_v11, %v2812_v25  ;;  %2340 = vst [vmem:[#allocation2 + $0x30] sm:$0xff] %v14645_v50  ;;  %v2243_v48 = vmax.f32 %v2195_v43, %v2197_v46  ;;  %v2026_v57 = vadd.f32 %v14454_v7, %v1898_v55  ;;  %v19974_v36 = vpack.c.bf16 %v19972_v14, %v19973_v61  ;;  %v19982_v46 = vld [vmem:[#allocation77_spill] sm:$0xff]  ;;  %v19985_v50 = vld [vmem:[#allocation28_spill] sm:$0xff]  ;;  %v19990_v14 = vld [vmem:[#allocation115_spill] sm:$0xff] }
 0x472   :  { %10089 = vmatprep.subr.bf16.mxu0 %v19971_v47  ;;  %2983 = vmatmul.mubr.f32.gmra.mrb[70].mxu0 %v2813_v8  ;;  %v2028_v56 = vadd.f32 %v14457_v20, %v1900_v40  ;;  %v2082_v53 = vmax.f32 %v1970_v5, 0.0  ;;  %v2084_v54 = vmax.f32 %v1972_v51, 0.0  ;;  %v1849_v11 = vmul.f32 %v14431_v35, %v19975_v26 }
 0x473   :  { %10153 = vmatprep.subr.bf16.mxu1 %v19974_v36  ;;  %3156 = vmatmul.mubr.f32.gmra.mrb[70].mxu1 %v2813_v8  ;;  %v2817_v29 = vsel %vm2805_vm7, %v2812_v25, %v2816_v62  ;;  %v2822_v32 = vrot.slane %v2481_v37, 1  ;;  %v14669_v38 = vrot.slane %v2243_v48, 6  ;;  %v2138_v2 = vmax.f32 %v2026_v57, 0.0  ;;  %v19988_v8 = vld [vmem:[#allocation70_spill] sm:$0xff]  ;;  %v19991_v36 = vld [vmem:[#allocation119_spill] sm:$0xff] }
 0x474   :  { %2988 = vmatprep.mubr.f32.mxu0 %v2819_v58  ;;  %3161 = vmatprep.mubr.f32.mxu1 %v2819_v58  ;;  %v2140_v34 = vmax.f32 %v2028_v56, 0.0  ;;  %v1903_v27 = vmul.f32 %v14428_v15, %v19976_v13  ;;  %v1905_v17 = vmul.f32 %v14431_v35, %v19977_v0  ;;  %v1975_v1 = vadd.f32 %v14464_v31, %v1847_v45  ;;  %v19981_v58 = vld [vmem:[#allocation76_spill] sm:$0xff] }
 0x475   :  { %v19980_v43 = vpack.c.bf16 %v19978_v60, %v19979_v24  ;;  %v19983_v25 = vpack.c.bf16 %v19981_v58, %v19982_v46  ;;  %v2823_v3 = vsel %vm2805_vm7, %v2818_v33, %v2822_v32  ;;  %v14687_v41 = vsel %vm2302_vm6, %v2349_v16, %v14669_v38  ;;  %v20000_v60 = vld [vmem:[#allocation34_spill] sm:$0xff] }
 0x476   :  { %v2194_v59 = vmax.f32 %v2082_v53, %v2138_v2  ;;  %v1977_v49 = vadd.f32 %v14467_v19, %v1849_v11  ;;  %v19984_v23 = vpack.c.bf16 %v14069_v10, %v14064_v9  ;;  %2989 = vmatmul.mubr.f32.gmra.mrb[72].mxu0 %v2817_v29  ;;  %2367 = vst [vmem:[#allocation2 + $0x58] sm:$0xff] %v14687_v41  ;;  %v2826_v22 = vrot.slane %v14687_v41, 1  ;;  %v2480_v16 = vld [vmem:[#allocation2 + $0x40] sm:$0xff] }
 0x477   :  { %10091 = vmatpush1.bf16.msra.mxu0 %v19980_v43  ;;  %10155 = vmatpush1.bf16.msra.mxu1 %v19983_v25  ;;  %v2196_v33 = vmax.f32 %v2084_v54, %v2140_v34  ;;  %v2031_v55 = vadd.f32 %v14464_v31, %v1903_v27  ;;  %v2033_v44 = vadd.f32 %v14467_v19, %v1905_v17  ;;  %v2087_v4 = vmax.f32 %v1975_v1, 0.0  ;;  %v19986_v10 = vld [vmem:[#allocation29_spill] sm:$0xff]  ;;  %v19993_v54 = vld [vmem:[#allocation66_spill] sm:$0xff]  ;;  %v20001_v43 = vld [vmem:[#allocation35_spill] sm:$0xff] }
 0x478   :  { %10093 = vmatprep.subr.bf16.mxu0 %v19984_v23  ;;  %3162 = vmatmul.mubr.f32.gmra.mrb[72].mxu1 %v2817_v29  ;;  %v2089_v40 = vmax.f32 %v1977_v49, 0.0  ;;  %v1846_v9 = vmul.f32 %v14408_v63, %v19985_v50  ;;  %v1848_v5 = vmul.f32 %v14411_v42, %v19986_v10  ;;  %v2820_v51 = vrot.slane %v2480_v16, 1  ;;  %v19992_v53 = vld [vmem:[#allocation73_spill] sm:$0xff]  ;;  %v19998_v34 = vld [vmem:[#allocation90_spill] sm:$0xff]  ;;  %v20002_v49 = vld [vmem:[#allocation92_spill] sm:$0xff] }
 0x479   :  { %2994 = vmatprep.mubr.f32.mxu0 %v2823_v3  ;;  %3167 = vmatprep.mubr.f32.mxu1 %v2823_v3  ;;  %v2827_v52 = vsel %vm2805_vm7, %v2822_v32, %v2826_v22  ;;  %v2242_v45 = vmax.f32 %v2194_v59, %v2196_v33  ;;  %v2143_v28 = vmax.f32 %v2031_v55, 0.0  ;;  %v19987_v47 = vpack.c.bf16 %v14079_v18, %v14074_v12  ;;  %v19995_v12 = vld [vmem:[#allocation68_spill] sm:$0xff]  ;;  %v19997_v2 = vld [vmem:[#allocation85_spill] sm:$0xff]  ;;  %v20006_v33 = vld [vmem:[#allocation86_spill] sm:$0xff] }
 0x47a   :  { %v19989_v48 = vpack.c.bf16 %v14089_v21, %v19988_v8  ;;  %v2145_v57 = vmax.f32 %v2033_v44, 0.0  ;;  %v1902_v61 = vmul.f32 %v14408_v63, %v19990_v14  ;;  %v1904_v37 = vmul.f32 %v14411_v42, %v19991_v36  ;;  %v20008_v44 = vld [vmem:[#allocation128_spill] sm:$0xff] }
 0x47b   :  { %10157 = vmatprep.subr.bf16.mxu1 %v19987_v47  ;;  %v1974_v56 = vadd.f32 %v14454_v7, %v1846_v9  ;;  %v19994_v26 = vpack.c.bf16 %v19992_v53, %v19993_v54  ;;  %v19996_v18 = vpack.c.bf16 %v14113_v30, %v19995_v12  ;;  %v2821_v21 = vsel %vm2805_vm7, %v2816_v62, %v2820_v51  ;;  %v20010_v10 = vld [vmem:[#allocation84_spill] sm:$0xff] }
 0x47c   :  { %10095 = vmatpush1.bf16.msra.mxu0 %v19989_v48  ;;  %v2350_v11 = vrot.slane %v2242_v45, 6  ;;  %v2199_v29 = vmax.f32 %v2087_v4, %v2143_v28  ;;  %v1976_v32 = vadd.f32 %v14457_v20, %v1848_v5  ;;  %v19999_v13 = vpack.c.bf16 %v19997_v2, %v19998_v34  ;;  %3168 = vmatmul.mubr.f32.gmra.mrb[74].mxu1 %v2821_v21  ;;  %v20009_v4 = vld [vmem:[#allocation129_spill] sm:$0xff]  ;;  %v20021_v2 = vld [vmem:[#allocation102_spill] sm:$0xff] }
 0x47d   :  { %10159 = vmatpush1.bf16.msra.mxu1 %v19994_v26  ;;  %10097 = vmatprep.subr.bf16.mxu0 %v19996_v18  ;;  %v2201_v27 = vmax.f32 %v2089_v40, %v2145_v57  ;;  %v2030_v0 = vadd.f32 %v14454_v7, %v1902_v61  ;;  %v2032_v17 = vadd.f32 %v14457_v20, %v1904_v37  ;;  %v2086_v1 = vmax.f32 %v1974_v56, 0.0  ;;  %v20011_v5 = vld [vmem:[#allocation89_spill] sm:$0xff]  ;;  %v20014_v57 = vld [vmem:[#allocation106_spill] sm:$0xff]  ;;  %v20016_v26 = vld [vmem:[#allocation32_spill] sm:$0xff] }
 0x47e   :  { %10161 = vmatprep.subr.bf16.mxu1 %v19999_v13  ;;  %2995 = vmatmul.mubr.f32.gmra.mrb[74].mxu0 %v2821_v21  ;;  %v14731_v30 = vsel %vm2302_vm6, %v2348_v6, %v2350_v11  ;;  %v2088_v62 = vmax.f32 %v1976_v32, 0.0  ;;  %v1851_v24 = vmul.f32 %v14428_v15, %v20000_v60  ;;  %v1853_v58 = vmul.f32 %v14431_v35, %v20001_v43  ;;  %v20005_v6 = vld [vmem:[#allocation82_spill] sm:$0xff]  ;;  %v20013_v48 = vld [vmem:[#allocation101_spill] sm:$0xff]  ;;  %v20017_v18 = vld [vmem:[#allocation108_spill] sm:$0xff] }
 0x47f   :  { %3000 = vmatprep.mubr.f32.mxu0 %v2827_v52  ;;  %3173 = vmatprep.mubr.f32.mxu1 %v2827_v52  ;;  %2366 = vst [vmem:[#allocation2 + $0x50] sm:$0xff] %v14731_v30  ;;  %v2824_v46 = vrot.slane %v14731_v30, 1  ;;  %v14739_v25 = vmax.f32 %v2199_v29, %v2201_v27  ;;  %v2142_v3 = vmax.f32 %v2030_v0, 0.0  ;;  %v2144_v59 = vmax.f32 %v2032_v17, 0.0  ;;  %v20018_v21 = vld [vmem:[#allocation109_spill] sm:$0xff]  ;;  %v20020_v32 = vld [vmem:[#allocation98_spill] sm:$0xff] }
 0x480   :  { %v20004_v23 = vpack.c.bf16 %v20002_v49, %v20003_v39  ;;  %v20007_v55 = vpack.c.bf16 %v20005_v6, %v20006_v33  ;;  %v1907_v16 = vmul.f32 %v14428_v15, %v20008_v44  ;;  %v1909_v40 = vmul.f32 %v14431_v35, %v20009_v4  ;;  %v20023_v0 = vld [vmem:[#allocation33_spill] sm:$0xff]  ;;  %v20024_v17 = vld [vmem:[#allocation126_spill] sm:$0xff] }
 0x481   :  { %v1979_v50 = vadd.f32 %v14464_v31, %v1851_v24  ;;  %v1981_v9 = vadd.f32 %v14467_v19, %v1853_v58  ;;  %v20012_v52 = vpack.c.bf16 %v20010_v10, %v20011_v5  ;;  %v2825_v45 = vsel %vm2805_vm7, %v2820_v51, %v2824_v46  ;;  %v20026_v60 = vld [vmem:[#allocation105_spill] sm:$0xff]  ;;  %v20029_v58 = vld [vmem:[#allocation122_spill] sm:$0xff]  ;;  %v20033_v10 = vld [vmem:[#allocation124_spill] sm:$0xff] }
 0x482   :  { %10099 = vmatpush1.bf16.msra.mxu0 %v20004_v23  ;;  %10163 = vmatpush1.bf16.msra.mxu1 %v20007_v55  ;;  %v2356_v28 = vrot.slane %v14739_v25, 6  ;;  %v2198_v47 = vmax.f32 %v2086_v1, %v2142_v3  ;;  %v2200_v8 = vmax.f32 %v2088_v62, %v2144_v59  ;;  %v20015_v14 = vpack.c.bf16 %v20013_v48, %v20014_v57  ;;  %v20025_v62 = vld [vmem:[#allocation100_spill] sm:$0xff]  ;;  %v20028_v43 = vld [vmem:[#allocation117_spill] sm:$0xff]  ;;  %v20031_v59 = vld [vmem:[#allocation127_spill] sm:$0xff] }
 0x483   :  { %10101 = vmatprep.subr.bf16.mxu0 %v20012_v52  ;;  %3001 = vmatmul.mubr.f32.gmra.mrb[76].mxu0 %v2825_v45  ;;  %v2035_v61 = vadd.f32 %v14464_v31, %v1907_v16  ;;  %v2037_v36 = vadd.f32 %v14467_v19, %v1909_v40  ;;  %v2091_v37 = vmax.f32 %v1979_v50, 0.0  ;;  %v2093_v56 = vmax.f32 %v1981_v9, 0.0  ;;  %v20032_v50 = vld [vmem:[#allocation38_spill] sm:$0xff]  ;;  %v20034_v5 = vld [vmem:[#allocation125_spill] sm:$0xff] }
 0x484   :  { %10165 = vmatprep.subr.bf16.mxu1 %v20015_v14  ;;  %3174 = vmatmul.mubr.f32.gmra.mrb[76].mxu1 %v2825_v45  ;;  %v2357_v53 = vsel %vm2302_vm6, %v14669_v38, %v2356_v28  ;;  %v14767_v51 = vmax.f32 %v2198_v47, %v2200_v8  ;;  %v2375_v54 = vrot.slane %v14739_v25, 2  ;;  %v1850_v12 = vmul.f32 %v14408_v63, %v20016_v26  ;;  %v20036_v45 = vld [vmem:[#allocation114_spill] sm:$0xff]  ;;  %v20039_v14 = vld [vmem:[#allocation39_spill] sm:$0xff] }
 0x485   :  { %v20019_v29 = vpack.c.bf16 %v20017_v18, %v20018_v21  ;;  %v20022_v34 = vpack.c.bf16 %v20020_v32, %v20021_v2  ;;  %2369 = vst [vmem:[#allocation2 + $0x68] sm:$0xf] %v2357_v53  ;;  %v2147_v13 = vmax.f32 %v2035_v61, 0.0  ;;  %v2149_v27 = vmax.f32 %v2037_v36, 0.0  ;;  %v20037_v28 = vld [vmem:[#allocation118_spill] sm:$0xff]  ;;  %v20040_v61 = vld [vmem:[#allocation116_spill] sm:$0xff] }
 0x486   :  { %v1852_v38 = vmul.f32 %v14411_v42, %v20023_v0  ;;  %v1906_v1 = vmul.f32 %v14408_v63, %v20024_v17  ;;  %v20027_v24 = vpack.c.bf16 %v20025_v62, %v20026_v60  ;;  %v20030_v25 = vpack.c.bf16 %v20028_v43, %v20029_v58  ;;  %v20041_v36 = vld [vmem:[#allocation121_spill] sm:$0xff]  ;;  %v20044_v53 = vld [vmem:[#allocation138_spill] sm:$0xff]  ;;  %v20046_v18 = vld [vmem:[#allocation136_spill] sm:$0xff] }
 0x487   :  { %10103 = vmatpush1.bf16.msra.mxu0 %v20019_v29  ;;  %10167 = vmatpush1.bf16.msra.mxu1 %v20022_v34  ;;  %v2354_v3 = vrot.slane %v14767_v51, 6  ;;  %v1908_v49 = vmul.f32 %v14411_v42, %v20031_v59  ;;  %v1978_v39 = vadd.f32 %v14454_v7, %v1850_v12  ;;  %v2372_v23 = vrot.slane %v14767_v51, 2  ;;  %v20047_v29 = vld [vmem:[#allocation139_spill] sm:$0xff]  ;;  %v20048_v0 = vld [vmem:[#allocation36_spill] sm:$0xff]  ;;  %v20050_v58 = vld [vmem:[#allocation141_spill] sm:$0xff] }
 0x488   :  { %10105 = vmatprep.subr.bf16.mxu0 %v20027_v24  ;;  %10169 = vmatprep.subr.bf16.mxu1 %v20030_v25  ;;  %v2203_v6 = vmax.f32 %v2091_v37, %v2147_v13  ;;  %v2205_v33 = vmax.f32 %v2093_v56, %v2149_v27  ;;  %v1980_v55 = vadd.f32 %v14457_v20, %v1852_v38  ;;  %v20043_v56 = vld [vmem:[#allocation133_spill] sm:$0xff]  ;;  %v20049_v43 = vld [vmem:[#allocation140_spill] sm:$0xff]  ;;  %v20053_v59 = vld [vmem:[#allocation134_spill] sm:$0xff] }
 0x489   :  { %v2034_v44 = vadd.f32 %v14454_v7, %v1906_v1  ;;  %v2355_v16 = vsel %vm2302_vm6, %v2350_v11, %v2354_v3  ;;  %v2036_v4 = vadd.f32 %v14457_v20, %v1908_v49  ;;  %v2090_v40 = vmax.f32 %v1978_v39, 0.0  ;;  %v20052_v3 = vld [vmem:[#allocation130_spill] sm:$0xff] }
 0x48a   :  { %v1855_v9 = vmul.f32 %v14428_v15, %v20032_v50  ;;  %v20035_v52 = vpack.c.bf16 %v20033_v10, %v20034_v5  ;;  %v20038_v47 = vpack.c.bf16 %v20036_v45, %v20037_v28  ;;  %2368 = vst [vmem:[#allocation2 + $0x60] sm:$0xf] %v2355_v16  ;;  %v2247_v8 = vmax.f32 %v2203_v6, %v2205_v33  ;;  %v20056_v16 = vld [vmem:[#allocation132_spill] sm:$0xff]  ;;  %v20059_v50 = vld [vmem:[#allocation149_spill] sm:$0xff] }
 0x48b   :  { %v2092_v48 = vmax.f32 %v1980_v55, 0.0  ;;  %v2146_v57 = vmax.f32 %v2034_v44, 0.0  ;;  %v1857_v11 = vmul.f32 %v14431_v35, %v20039_v14  ;;  %v20042_v37 = vpack.c.bf16 %v20040_v61, %v20041_v36  ;;  %v20055_v55 = vld [vmem:[#allocation37_spill] sm:$0xff] }
 0x48c   :  { %10107 = vmatpush1.bf16.msra.mxu0 %v20035_v52  ;;  %10171 = vmatpush1.bf16.msra.mxu1 %v20038_v47  ;;  %v20045_v26 = vpack.c.bf16 %v20043_v56, %v20044_v53  ;;  %v2148_v12 = vmax.f32 %v2036_v4, 0.0  ;;  %v1911_v21 = vmul.f32 %v14428_v15, %v20046_v18  ;;  %v1913_v32 = vmul.f32 %v14431_v35, %v20047_v29  ;;  %v2485_v17 = vld [vmem:[#allocation2 + $0x68] sm:$0xff]  ;;  %v20057_v4 = vld [vmem:[#allocation137_spill] sm:$0xff]  ;;  %v20062_v47 = vld [vmem:[#allocation131_spill] sm:$0xff] }
 0x48d   :  { %10109 = vmatprep.subr.bf16.mxu0 %v20042_v37  ;;  %v1983_v2 = vadd.f32 %v14464_v31, %v1855_v9  ;;  %v2376_v34 = vrot.slane %v2247_v8, 2  ;;  %v2202_v13 = vmax.f32 %v2090_v40, %v2146_v57  ;;  %v1985_v27 = vadd.f32 %v14467_v19, %v1857_v11  ;;  %v20060_v9 = vld [vmem:[#allocation154_spill] sm:$0xff]  ;;  %v20065_v18 = vld [vmem:[#allocation157_spill] sm:$0xff] }
 0x48e   :  { %10173 = vmatprep.subr.bf16.mxu1 %v20045_v26  ;;  %v1854_v38 = vmul.f32 %v14408_v63, %v20048_v0  ;;  %v2204_v1 = vmax.f32 %v2092_v48, %v2148_v12  ;;  %v2039_v62 = vadd.f32 %v14464_v31, %v1911_v21  ;;  %v2041_v60 = vadd.f32 %v14467_v19, %v1913_v32  ;;  %v20063_v48 = vld [vmem:[#allocation135_spill] sm:$0xff]  ;;  %v20064_v12 = vld [vmem:[#allocation156_spill] sm:$0xff]  ;;  %v20067_v29 = vld [vmem:[#allocation146_spill] sm:$0xff] }
 0x48f   :  { %v2095_v24 = vmax.f32 %v1983_v2, 0.0  ;;  %v20051_v25 = vpack.c.bf16 %v20049_v43, %v20050_v58  ;;  %v20054_v49 = vpack.c.bf16 %v20052_v3, %v20053_v59  ;;  %v2830_v39 = vrot.slane %v2485_v17, 1  ;;  %2385 = vst [vmem:[#allocation2 + $0x88] sm:$0x3f] %v2376_v34  ;;  %v20068_v32 = vld [vmem:[#allocation150_spill] sm:$0xff]  ;;  %v20071_v17 = vld [vmem:[#allocation148_spill] sm:$0xff] }
 0x490   :  { %v2377_v6 = vsel %vm2321_vm8, %v2375_v54, %v2376_v34  ;;  %v2097_v33 = vmax.f32 %v1985_v27, 0.0  ;;  %v1856_v44 = vmul.f32 %v14411_v42, %v20055_v55  ;;  %v20058_v40 = vpack.c.bf16 %v20056_v16, %v20057_v4  ;;  %v20070_v0 = vld [vmem:[#allocation42_spill] sm:$0xff]  ;;  %v20079_v16 = vld [vmem:[#allocation145_spill] sm:$0xff] }
 0x491   :  { %10111 = vmatpush1.bf16.msra.mxu0 %v20051_v25  ;;  %10175 = vmatpush1.bf16.msra.mxu1 %v20054_v49  ;;  %v20061_v10 = vpack.c.bf16 %v20059_v50, %v20060_v9  ;;  %2383 = vst [vmem:[#allocation2 + $0x78] sm:$0xff] %v2377_v6  ;;  %v2834_v5 = vrot.slane %v2377_v6, 1  ;;  %v2246_v52 = vmax.f32 %v2202_v13, %v2204_v1  ;;  %v2151_v45 = vmax.f32 %v2039_v62, 0.0  ;;  %v2484_v11 = vld [vmem:[#allocation2 + $0x60] sm:$0xff] }
 0x492   :  { %10113 = vmatprep.subr.bf16.mxu0 %v20058_v40  ;;  %v2153_v28 = vmax.f32 %v2041_v60, 0.0  ;;  %v2831_v54 = vsel %vm2805_vm7, %v2826_v22, %v2830_v39  ;;  %v1910_v8 = vmul.f32 %v14408_v63, %v20062_v47  ;;  %v1912_v57 = vmul.f32 %v14411_v42, %v20063_v48  ;;  %v20072_v1 = vld [vmem:[#allocation153_spill] sm:$0xff]  ;;  %v20074_v60 = vld [vmem:[#allocation172_spill] sm:$0xff] }
 0x493   :  { %10177 = vmatprep.subr.bf16.mxu1 %v20061_v10  ;;  %v1982_v14 = vadd.f32 %v14454_v7, %v1854_v38  ;;  %3006 = vmatprep.mubr.f32.mxu0 %v2831_v54  ;;  %v2835_v61 = vsel %vm2805_vm7, %v2830_v39, %v2834_v5  ;;  %v2373_v36 = vrot.slane %v2246_v52, 2  ;;  %v2207_v37 = vmax.f32 %v2095_v24, %v2151_v45  ;;  %v20075_v24 = vld [vmem:[#allocation165_spill] sm:$0xff]  ;;  %v20077_v39 = vld [vmem:[#allocation43_spill] sm:$0xff]  ;;  %v20080_v52 = vld [vmem:[#allocation166_spill] sm:$0xff] }
 0x494   :  { %3179 = vmatprep.mubr.f32.mxu1 %v2831_v54  ;;  %v2209_v56 = vmax.f32 %v2097_v33, %v2153_v28  ;;  %v2828_v53 = vrot.slane %v2484_v11, 1  ;;  %v1984_v41 = vadd.f32 %v14457_v20, %v1856_v44  ;;  %v2038_v22 = vadd.f32 %v14454_v7, %v1910_v8  ;;  %v20078_v33 = vld [vmem:[#allocation144_spill] sm:$0xff]  ;;  %v20081_v45 = vld [vmem:[#allocation171_spill] sm:$0xff]  ;;  %v20085_v11 = vld [vmem:[#allocation169_spill] sm:$0xff] }
 0x495   :  { %v2040_v26 = vadd.f32 %v14457_v20, %v1912_v57  ;;  %v20066_v21 = vpack.c.bf16 %v20064_v12, %v20065_v18  ;;  %v20069_v2 = vpack.c.bf16 %v20067_v29, %v20068_v32  ;;  %v2374_v34 = vsel %vm2321_vm8, %v2372_v23, %v2373_v36  ;;  %2384 = vst [vmem:[#allocation2 + $0x80] sm:$0x3f] %v2373_v36  ;;  %v20083_v8 = vld [vmem:[#allocation40_spill] sm:$0xff]  ;;  %v20084_v57 = vld [vmem:[#allocation41_spill] sm:$0xff]  ;;  %v20089_v18 = vld [vmem:[#allocation143_spill] sm:$0xff] }
 0x496   :  { %v2249_v13 = vmax.f32 %v2207_v37, %v2209_v56  ;;  %v2094_v27 = vmax.f32 %v1982_v14, 0.0  ;;  %v1859_v38 = vmul.f32 %v14428_v15, %v20070_v0  ;;  %v20073_v62 = vpack.c.bf16 %v20071_v17, %v20072_v1  ;;  %2382 = vst [vmem:[#allocation2 + $0x70] sm:$0xff] %v2374_v34  ;;  %v14870_v3 = vld [vmem:[#allocation2 + $0x88] sm:$0xff] }
 0x497   :  { %10115 = vmatpush1.bf16.msra.mxu0 %v20066_v21  ;;  %10179 = vmatpush1.bf16.msra.mxu1 %v20069_v2  ;;  %v20076_v43 = vpack.c.bf16 %v20074_v60, %v20075_v24  ;;  %v2829_v51 = vsel %vm2805_vm7, %v2824_v46, %v2828_v53  ;;  %v2832_v23 = vrot.slane %v2374_v34, 1  ;;  %v2096_v58 = vmax.f32 %v1984_v41, 0.0  ;;  %v20090_v60 = vld [vmem:[#allocation46_spill] sm:$0xff] }
 0x498   :  { %10117 = vmatprep.subr.bf16.mxu0 %v20073_v62  ;;  %v2150_v25 = vmax.f32 %v2038_v22, 0.0  ;;  %3007 = vmatmul.mubr.f32.gmra.mrb[78].mxu0 %v2829_v51  ;;  %v14872_v59 = vrot.slane %v2249_v13, 6  ;;  %v2152_v49 = vmax.f32 %v2040_v26, 0.0  ;;  %v1861_v6 = vmul.f32 %v14431_v35, %v20077_v39  ;;  %v20088_v26 = vld [vmem:[#allocation142_spill] sm:$0xff]  ;;  %v20092_v39 = vld [vmem:[#allocation152_spill] sm:$0xff] }
 0x499   :  { %10181 = vmatprep.subr.bf16.mxu1 %v20076_v43  ;;  %3180 = vmatmul.mubr.f32.gmra.mrb[78].mxu1 %v2829_v51  ;;  %v1915_v55 = vmul.f32 %v14428_v15, %v20078_v33  ;;  %v2833_v30 = vsel %vm2805_vm7, %v2828_v53, %v2832_v23  ;;  %v2838_v46 = vrot.slane %v14870_v3, 1  ;;  %v1917_v4 = vmul.f32 %v14431_v35, %v20079_v16  ;;  %v20091_v43 = vld [vmem:[#allocation47_spill] sm:$0xff] }
 0x49a   :  { %3012 = vmatprep.mubr.f32.mxu0 %v2835_v61  ;;  %3185 = vmatprep.mubr.f32.mxu1 %v2835_v61  ;;  %v2206_v44 = vmax.f32 %v2094_v27, %v2150_v25  ;;  %2401 = vst [vmem:[#allocation2 + $0x98] sm:$0xfc] %v14872_v59  ;;  %v2208_v40 = vmax.f32 %v2096_v58, %v2152_v49  ;;  %v20086_v61 = vld [vmem:[#allocation162_spill] sm:$0xff] }
 0x49b   :  { %v1987_v50 = vadd.f32 %v14464_v31, %v1859_v38  ;;  %v1989_v9 = vadd.f32 %v14467_v19, %v1861_v6  ;;  %v2043_v10 = vadd.f32 %v14464_v31, %v1915_v55  ;;  %v20082_v28 = vpack.c.bf16 %v20080_v52, %v20081_v45  ;;  %v20093_v55 = vld [vmem:[#allocation155_spill] sm:$0xff] }
 0x49c   :  { %v2839_v54 = vsel %vm2805_vm7, %v2834_v5, %v2838_v46  ;;  %v2045_v47 = vadd.f32 %v14467_v19, %v1917_v4  ;;  %v1858_v48 = vmul.f32 %v14408_v63, %v20083_v8  ;;  %v1860_v14 = vmul.f32 %v14411_v42, %v20084_v57  ;;  %3013 = vmatmul.mubr.f32.gmra.mrb[80].mxu0 %v2833_v30  ;;  %v2488_v5 = vld [vmem:[#allocation2 + $0x80] sm:$0xff]  ;;  %v20094_v57 = vld [vmem:[#allocation44_spill] sm:$0xff] }
 0x49d   :  { %10119 = vmatpush1.bf16.msra.mxu0 %v20082_v28  ;;  %v20087_v36 = vpack.c.bf16 %v20085_v11, %v20086_v61  ;;  %3186 = vmatmul.mubr.f32.gmra.mrb[80].mxu1 %v2833_v30  ;;  %v2248_v37 = vmax.f32 %v2206_v44, %v2208_v40  ;;  %v2099_v56 = vmax.f32 %v1987_v50, 0.0  ;;  %v2101_v53 = vmax.f32 %v1989_v9, 0.0 }
 0x49e   :  { %v2155_v41 = vmax.f32 %v2043_v10, 0.0  ;;  %3018 = vmatprep.mubr.f32.mxu0 %v2839_v54  ;;  %3191 = vmatprep.mubr.f32.mxu1 %v2839_v54  ;;  %v2157_v22 = vmax.f32 %v2045_v47, 0.0  ;;  %v1914_v12 = vmul.f32 %v14408_v63, %v20088_v26  ;;  %v1916_v21 = vmul.f32 %v14411_v42, %v20089_v18 }
 0x49f   :  { %10183 = vmatpush1.bf16.msra.mxu1 %v20087_v36  ;;  %v1986_v29 = vadd.f32 %v14454_v7, %v1858_v48  ;;  %v2836_v32 = vrot.slane %v2488_v5, 1  ;;  %v2390_v2 = vrot.slane %v2248_v37, 6  ;;  %v1988_v13 = vadd.f32 %v14457_v20, %v1860_v14  ;;  %v20095_v14 = vld [vmem:[#allocation45_spill] sm:$0xff] }
 0x4a0   :  { %v2211_v34 = vmax.f32 %v2099_v56, %v2155_v41  ;;  %v2213_v27 = vmax.f32 %v2101_v53, %v2157_v22  ;;  %v2042_v0 = vadd.f32 %v14454_v7, %v1914_v12  ;;  %v2044_v38 = vadd.f32 %v14457_v20, %v1916_v21  ;;  %v20096_v56 = vld [vmem:[#allocation147_spill] sm:$0xff] }
 0x4a1   :  { %v2098_v17 = vmax.f32 %v1986_v29, 0.0  ;;  %v2837_v1 = vsel %vm2805_vm7, %v2832_v23, %v2836_v32  ;;  %2400 = vst [vmem:[#allocation2 + $0x90] sm:$0xfc] %v2390_v2  ;;  %v2100_v62 = vmax.f32 %v1988_v13, 0.0  ;;  %v1863_v24 = vmul.f32 %v14428_v15, %v20090_v60  ;;  %v2491_v58 = vld [vmem:[#allocation2 + $0x98] sm:$0xff]  ;;  %v20097_v53 = vld [vmem:[#allocation151_spill] sm:$0xff] }
 0x4a2   :  { %v1865_v51 = vmul.f32 %v14431_v35, %v20091_v43  ;;  %3019 = vmatmul.mubr.f32.gmra.mrb[82].mxu0 %v2837_v1  ;;  %3192 = vmatmul.mubr.f32.gmra.mrb[82].mxu1 %v2837_v1  ;;  %v2251_v25 = vmax.f32 %v2211_v34, %v2213_v27  ;;  %v2154_v3 = vmax.f32 %v2042_v0, 0.0  ;;  %v2156_v49 = vmax.f32 %v2044_v38, 0.0 }
 0x4a3   :  { %v1919_v6 = vmul.f32 %v14428_v15, %v20092_v39  ;;  %v2842_v33 = vrot.slane %v2491_v58, 1  ;;  %v1921_v23 = vmul.f32 %v14431_v35, %v20093_v55  ;;  %v1991_v30 = vadd.f32 %v14464_v31, %v1863_v24  ;;  %v20098_v24 = vld [vmem:[#allocation50_spill] sm:$0xff] }
 0x4a4   :  { %v1993_v44 = vadd.f32 %v14467_v19, %v1865_v51  ;;  %v2394_v16 = vrot.slane %v2251_v25, 6  ;;  %v2210_v4 = vmax.f32 %v2098_v17, %v2154_v3  ;;  %v2212_v40 = vmax.f32 %v2100_v62, %v2156_v49  ;;  %v20099_v51 = vld [vmem:[#allocation51_spill] sm:$0xff]  ;;  %v20100_v49 = vld [vmem:[#allocation160_spill] sm:$0xff] }
 0x4a5   :  { %v2047_v50 = vadd.f32 %v14464_v31, %v1919_v6  ;;  %v2843_v9 = vsel %vm2805_vm7, %v2838_v46, %v2842_v33  ;;  %v2049_v10 = vadd.f32 %v14467_v19, %v1921_v23  ;;  %v2103_v52 = vmax.f32 %v1991_v30, 0.0  ;;  %v20101_v6 = vld [vmem:[#allocation161_spill] sm:$0xff] }
 0x4a6   :  { %v2105_v45 = vmax.f32 %v1993_v44, 0.0  ;;  %3024 = vmatprep.mubr.f32.mxu0 %v2843_v9  ;;  %3197 = vmatprep.mubr.f32.mxu1 %v2843_v9  ;;  %v14922_v28 = vsel %vm2302_vm6, %v14872_v59, %v2394_v16  ;;  %v14924_v54 = vmax.f32 %v2210_v4, %v2212_v40  ;;  %v2411_v48 = vrot.slane %v2251_v25, 2  ;;  %v20102_v44 = vld [vmem:[#allocation48_spill] sm:$0xff] }
 0x4a7   :  { %v2159_v47 = vmax.f32 %v2047_v50, 0.0  ;;  %2403 = vst [vmem:[#allocation2 + $0xa8] sm:$0xff] %v14922_v28  ;;  %v2161_v8 = vmax.f32 %v2049_v10, 0.0  ;;  %v1862_v46 = vmul.f32 %v14408_v63, %v20094_v57  ;;  %v1864_v11 = vmul.f32 %v14411_v42, %v20095_v14 }
 0x4a8   :  { %v2490_v61 = vld [vmem:[#allocation2 + $0x90] sm:$0xff]  ;;  %v2392_v36 = vrot.slane %v14924_v54, 6  ;;  %v1918_v59 = vmul.f32 %v14408_v63, %v20096_v56  ;;  %v1920_v41 = vmul.f32 %v14411_v42, %v20097_v53  ;;  %v2846_v22 = vrot.slane %v14922_v28, 1  ;;  %v20106_v56 = vld [vmem:[#allocation57_spill] sm:$0xff] }
 0x4a9   :  { %v2215_v37 = vmax.f32 %v2103_v52, %v2159_v47  ;;  %v2840_v5 = vrot.slane %v2490_v61, 1  ;;  %v2217_v26 = vmax.f32 %v2105_v45, %v2161_v8  ;;  %v1990_v12 = vadd.f32 %v14454_v7, %v1862_v46  ;;  %v20103_v45 = vld [vmem:[#allocation49_spill] sm:$0xff]  ;;  %v20104_v8 = vld [vmem:[#allocation158_spill] sm:$0xff] }
 0x4aa   :  { %v14939_v18 = vsel %vm2302_vm6, %v2390_v2, %v2392_v36  ;;  %v1992_v21 = vadd.f32 %v14457_v20, %v1864_v11  ;;  %v2046_v29 = vadd.f32 %v14454_v7, %v1918_v59  ;;  %v2048_v34 = vadd.f32 %v14457_v20, %v1920_v41  ;;  %v20105_v11 = vld [vmem:[#allocation159_spill] sm:$0xff] }
 0x4ab   :  { %v2841_v13 = vsel %vm2805_vm7, %v2836_v32, %v2840_v5  ;;  %2402 = vst [vmem:[#allocation2 + $0xa0] sm:$0xff] %v14939_v18  ;;  %v2844_v27 = vrot.slane %v14939_v18, 1  ;;  %v2253_v0 = vmax.f32 %v2215_v37, %v2217_v26  ;;  %v2102_v38 = vmax.f32 %v1990_v12, 0.0 }
 0x4ac   :  { %3025 = vmatmul.mubr.f32.gmra.mrb[84].mxu0 %v2841_v13  ;;  %3198 = vmatmul.mubr.f32.gmra.mrb[84].mxu1 %v2841_v13  ;;  %v2847_v2 = vsel %vm2805_vm7, %v2842_v33, %v2846_v22  ;;  %v2104_v17 = vmax.f32 %v1992_v21, 0.0  ;;  %v2158_v1 = vmax.f32 %v2046_v29, 0.0  ;;  %v2160_v62 = vmax.f32 %v2048_v34, 0.0  ;;  %v20107_v34 = vld [vmem:[#allocation59_spill] sm:$0xff] }
 0x4ad   :  { %3030 = vmatprep.mubr.f32.mxu0 %v2847_v2  ;;  %3203 = vmatprep.mubr.f32.mxu1 %v2847_v2  ;;  %v2845_v32 = vsel %vm2805_vm7, %v2840_v5, %v2844_v27  ;;  %v2412_v60 = vrot.slane %v2253_v0, 2  ;;  %v1867_v43 = vmul.f32 %v14428_v15, %v20098_v24  ;;  %v1869_v58 = vmul.f32 %v14431_v35, %v20099_v51  ;;  %v20108_v2 = vld [vmem:[#allocation168_spill] sm:$0xff] }
 0x4ae   :  { %v2214_v25 = vmax.f32 %v2102_v38, %v2158_v1  ;;  %v2216_v3 = vmax.f32 %v2104_v17, %v2160_v62  ;;  %v1923_v39 = vmul.f32 %v14428_v15, %v20100_v49  ;;  %v1925_v33 = vmul.f32 %v14431_v35, %v20101_v6  ;;  %v20109_v1 = vld [vmem:[#allocation170_spill] sm:$0xff] }
 0x4af   :  { %v2413_v55 = vsel %vm2321_vm8, %v2411_v48, %v2412_v60  ;;  %v1995_v23 = vadd.f32 %v14464_v31, %v1867_v43  ;;  %v1997_v30 = vadd.f32 %v14467_v19, %v1869_v58  ;;  %v1866_v16 = vmul.f32 %v14408_v63, %v20102_v44  ;;  %v20110_v58 = vld [vmem:[#allocation53_spill] sm:$0xff] }
 0x4b0   :  { %3031 = vmatmul.mubr.f32.gmra.mrb[86].mxu0 %v2845_v32  ;;  %3204 = vmatmul.mubr.f32.gmra.mrb[86].mxu1 %v2845_v32  ;;  %2425 = vst [vmem:[#allocation2 + $0xb8] sm:$0xf0] %v2413_v55  ;;  %v2252_v4 = vmax.f32 %v2214_v25, %v2216_v3  ;;  %v2408_v40 = vrot.slane %v14924_v54, 2  ;;  %v2051_v50 = vadd.f32 %v14464_v31, %v1923_v39 }
 0x4b1   :  { %v2053_v9 = vadd.f32 %v14467_v19, %v1925_v33  ;;  %v2107_v10 = vmax.f32 %v1995_v23, 0.0  ;;  %v2109_v52 = vmax.f32 %v1997_v30, 0.0  ;;  %v1868_v47 = vmul.f32 %v14411_v42, %v20103_v45 }
 0x4b2   :  { %v1922_v48 = vmul.f32 %v14408_v63, %v20104_v8  ;;  %v2409_v57 = vrot.slane %v2252_v4, 2  ;;  %v2163_v46 = vmax.f32 %v2051_v50, 0.0  ;;  %v1924_v61 = vmul.f32 %v14411_v42, %v20105_v11  ;;  %v20113_v8 = vld [vmem:[#allocation167_spill] sm:$0xff] }
 0x4b3   :  { %v2165_v14 = vmax.f32 %v2053_v9, 0.0  ;;  %v1994_v54 = vadd.f32 %v14454_v7, %v1866_v16  ;;  %v1996_v36 = vadd.f32 %v14457_v20, %v1868_v47  ;;  %v1871_v59 = vmul.f32 %v14428_v15, %v20106_v56 }
 0x4b4   :  { %v2050_v37 = vadd.f32 %v14454_v7, %v1922_v48  ;;  %v2410_v53 = vsel %vm2321_vm8, %v2408_v40, %v2409_v57  ;;  %v2219_v41 = vmax.f32 %v2107_v10, %v2163_v46  ;;  %v2052_v26 = vadd.f32 %v14457_v20, %v1924_v61  ;;  %v20111_v40 = vld [vmem:[#allocation56_spill] sm:$0xff]  ;;  %v20112_v10 = vld [vmem:[#allocation163_spill] sm:$0xff] }
 0x4b5   :  { %v2221_v5 = vmax.f32 %v2109_v52, %v2165_v14  ;;  %2424 = vst [vmem:[#allocation2 + $0xb0] sm:$0xf0] %v2410_v53  ;;  %v2106_v12 = vmax.f32 %v1994_v54, 0.0  ;;  %v2108_v21 = vmax.f32 %v1996_v36, 0.0  ;;  %v1873_v13 = vmul.f32 %v14431_v35, %v20107_v34  ;;  %v2597_v36 = vld [vmem:[%s19214_s2 + $0x2c8] sm:$0xff] }
 0x4b6   :  { %v2162_v29 = vmax.f32 %v2050_v37, 0.0  ;;  %v2164_v38 = vmax.f32 %v2052_v26, 0.0  ;;  %v1927_v17 = vmul.f32 %v14428_v15, %v20108_v2  ;;  %v1929_v62 = vmul.f32 %v14431_v35, %v20109_v1  ;;  %v2601_v37 = vld [vmem:[%s19214_s2 + $0x2e8] sm:$0xff]  ;;  %v2603_v26 = vld [vmem:[%s19214_s2 + $0x2f8] sm:$0xff] }
 0x4b7   :  { %v14984_v0 = vmax.f32 %v2219_v41, %v2221_v5  ;;  %v14990_v32 = vld [vmem:[#allocation2 + $0xb8] sm:$0xff]  ;;  %v1999_v43 = vadd.f32 %v14464_v31, %v1871_v59  ;;  %v2001_v51 = vadd.f32 %v14467_v19, %v1873_v13  ;;  %v1870_v25 = vmul.f32 %v14408_v63, %v20110_v58 }
 0x4b8   :  { %v2218_v24 = vmax.f32 %v2106_v12, %v2162_v29  ;;  %v2850_v3 = vrot.slane %v14990_v32, 1  ;;  %v2220_v39 = vmax.f32 %v2108_v21, %v2164_v38  ;;  %v2055_v33 = vadd.f32 %v14464_v31, %v1927_v17  ;;  %v2599_v5 = vld [vmem:[%s19214_s2 + $0x2d8] sm:$0xff] }
 0x4b9   :  { %v2416_v49 = vrot.slane %v14984_v0, 2  ;;  %v2435_v6 = vrot.slane %v14984_v0, 6  ;;  %v2057_v55 = vadd.f32 %v14467_v19, %v1929_v62  ;;  %v2111_v23 = vmax.f32 %v1999_v43, 0.0  ;;  %v20114_v62 = vld [vmem:[#allocation64_spill] sm:$0xff] }
 0x4ba   :  { %v2113_v30 = vmax.f32 %v2001_v51, 0.0  ;;  %v2851_v44 = vsel %vm2805_vm7, %v2846_v22, %v2850_v3  ;;  %v15007_v4 = vmax.f32 %v2218_v24, %v2220_v39  ;;  %v1872_v50 = vmul.f32 %v14411_v42, %v20111_v40  ;;  %v2600_v39 = vld [vmem:[%s19214_s2 + $0x2e0] sm:$0xff] }
 0x4bb   :  { %v15005_v16 = vsel %vm2321_vm8, %v2412_v60, %v2416_v49  ;;  %2429 = vst [vmem:[#allocation2 + $0xd8] sm:$0x3] %v2416_v49  ;;  %2451 = vst [vmem:[#allocation2 + $0xd8] sm:$0xc0] %v2435_v6  ;;  %3036 = vmatprep.mubr.f32.mxu0 %v2851_v44  ;;  %3209 = vmatprep.mubr.f32.mxu1 %v2851_v44  ;;  %v2167_v9 = vmax.f32 %v2055_v33, 0.0  ;;  %v2169_v22 = vmax.f32 %v2057_v55, 0.0 }
 0x4bc   :  { %2427 = vst [vmem:[#allocation2 + $0xc8] sm:$0xff] %v15005_v16  ;;  %v2854_v28 = vrot.slane %v15005_v16, 1  ;;  %v1926_v60 = vmul.f32 %v14408_v63, %v20112_v10  ;;  %v15017_v52 = vld [vmem:[#allocation2 + $0xb0] sm:$0xff]  ;;  %v2414_v45 = vrot.slane %v15007_v4, 2  ;;  %v2434_v47 = vrot.slane %v15007_v4, 6  ;;  %v2596_v49 = vld [vmem:[%s19214_s2 + $0x2c0] sm:$0xff] }
 0x4bd   :  { %v1928_v48 = vmul.f32 %v14411_v42, %v20113_v8  ;;  %v1998_v46 = vadd.f32 %v14454_v7, %v1870_v25  ;;  %v2848_v14 = vrot.slane %v15017_v52, 1  ;;  %v2223_v61 = vmax.f32 %v2111_v23, %v2167_v9  ;;  %v20115_v25 = vld [vmem:[#allocation65_spill] sm:$0xff]  ;;  %v20116_v55 = vld [vmem:[#allocation175_spill] sm:$0xff] }
 0x4be   :  { %v2855_v11 = vsel %vm2805_vm7, %v2850_v3, %v2854_v28  ;;  %v2225_v54 = vmax.f32 %v2113_v30, %v2169_v22  ;;  %v15033_v56 = vsel %vm2321_vm8, %v2409_v57, %v2414_v45  ;;  %2428 = vst [vmem:[#allocation2 + $0xd0] sm:$0x3] %v2414_v45  ;;  %2450 = vst [vmem:[#allocation2 + $0xd0] sm:$0xc0] %v2434_v47  ;;  %v20117_v30 = vld [vmem:[#allocation176_spill] sm:$0xff]  ;;  %v2598_v22 = vld [vmem:[%s19214_s2 + $0x2d0] sm:$0xff] }
 0x4bf   :  { %v2000_v59 = vadd.f32 %v14457_v20, %v1872_v50  ;;  %v2054_v53 = vadd.f32 %v14454_v7, %v1926_v60  ;;  %v2056_v41 = vadd.f32 %v14457_v20, %v1928_v48  ;;  %v2849_v57 = vsel %vm2805_vm7, %v2844_v27, %v2848_v14  ;;  %2426 = vst [vmem:[#allocation2 + $0xc0] sm:$0xff] %v15033_v56  ;;  %v2602_v10 = vld [vmem:[%s19214_s2 + $0x2f0] sm:$0xff] }
 0x4c0   :  { %v2852_v12 = vrot.slane %v15033_v56, 1  ;;  %v2257_v21 = vmax.f32 %v2223_v61, %v2225_v54  ;;  %v2110_v29 = vmax.f32 %v1998_v46, 0.0  ;;  %3037 = vmatmul.mubr.f32.gmra.mrb[88].mxu0 %v2849_v57  ;;  %3210 = vmatmul.mubr.f32.gmra.mrb[88].mxu1 %v2849_v57  ;;  %v10120_v2 = vpack.c.bf16 %v2601_v37, %v2597_v36 }
 0x4c1   :  { %v2112_v34 = vmax.f32 %v2000_v59, 0.0  ;;  %v2166_v13 = vmax.f32 %v2054_v53, 0.0  ;;  %v2168_v38 = vmax.f32 %v2056_v41, 0.0  ;;  %3042 = vmatprep.mubr.f32.mxu0 %v2855_v11  ;;  %3215 = vmatprep.mubr.f32.mxu1 %v2855_v11  ;;  %v10184_v27 = vpack.c.bf16 %v2603_v26, %v2599_v5  ;;  %v20118_v59 = vld [vmem:[#allocation62_spill] sm:$0xff]  ;;  %v20119_v26 = vld [vmem:[#allocation63_spill] sm:$0xff] }
 0x4c2   :  { %v2853_v17 = vsel %vm2805_vm7, %v2848_v14, %v2852_v12  ;;  %v15052_v1 = vld [vmem:[#allocation2 + $0xd8] sm:$0xff]  ;;  %v15054_v18 = vrot.slane %v2257_v21, 6  ;;  %v1875_v24 = vmul.f32 %v14428_v15, %v20114_v62  ;;  %10121 = vmatprep.subr.bf16.mxu0 %v10120_v2  ;;  %v1877_v3 = vmul.f32 %v14431_v35, %v20115_v25  ;;  %v20120_v21 = vld [vmem:[#allocation173_spill] sm:$0xff] }
 0x4c3   :  { %v2858_v43 = vrot.slane %v15052_v1, 1  ;;  %v2222_v51 = vmax.f32 %v2110_v29, %v2166_v13  ;;  %v2224_v58 = vmax.f32 %v2112_v34, %v2168_v38  ;;  %10185 = vmatprep.subr.bf16.mxu1 %v10184_v27  ;;  %v1931_v23 = vmul.f32 %v14428_v15, %v20116_v55  ;;  %v2605_v34 = vld [vmem:[%s19214_s2 + $0x308] sm:$0xff]  ;;  %v2611_v27 = vld [vmem:[%s19214_s2 + $0x338] sm:$0xff] }
 0x4c4   :  { %v15071_v33 = vsel %vm2302_vm6, %v2435_v6, %v15054_v18  ;;  %v1933_v44 = vmul.f32 %v14431_v35, %v20117_v30  ;;  %v2003_v40 = vadd.f32 %v14464_v31, %v1875_v24  ;;  %3043 = vmatmul.mubr.f32.gmra.mrb[90].mxu0 %v2853_v17  ;;  %3216 = vmatmul.mubr.f32.gmra.mrb[90].mxu1 %v2853_v17  ;;  %v20121_v38 = vld [vmem:[#allocation174_spill] sm:$0xff]  ;;  %v2607_v17 = vld [vmem:[%s19214_s2 + $0x318] sm:$0xff]  ;;  %v2604_v30 = vld [vmem:[%s19214_s2 + $0x300] sm:$0xff] }
 0x4c5   :  { %v2859_v50 = vsel %vm2805_vm7, %v2854_v28, %v2858_v43  ;;  %2453 = vst [vmem:[#allocation2 + $0xe8] sm:$0xff] %v15071_v33  ;;  %v2862_v0 = vrot.slane %v15071_v33, 1  ;;  %v2256_v9 = vmax.f32 %v2222_v51, %v2224_v58  ;;  %v2005_v6 = vadd.f32 %v14467_v19, %v1877_v3  ;;  %v15088_v60 = vld [vmem:[#allocation2 + $0xd0] sm:$0xff] }
 0x4c6   :  { %3048 = vmatprep.mubr.f32.mxu0 %v2859_v50  ;;  %3221 = vmatprep.mubr.f32.mxu1 %v2859_v50  ;;  %v2059_v28 = vadd.f32 %v14464_v31, %v1931_v23  ;;  %v2061_v45 = vadd.f32 %v14467_v19, %v1933_v44  ;;  %v2115_v8 = vmax.f32 %v2003_v40, 0.0  ;;  %v10122_v48 = vpack.c.bf16 %v2600_v39, %v2596_v49  ;;  %v20122_v50 = vld [vmem:[#allocation72_spill] sm:$0xff] }
 0x4c7   :  { %v2856_v46 = vrot.slane %v15088_v60, 1  ;;  %v2863_v14 = vsel %vm2805_vm7, %v2858_v43, %v2862_v0  ;;  %v15096_v11 = vrot.slane %v2256_v9, 6  ;;  %v2117_v61 = vmax.f32 %v2005_v6, 0.0  ;;  %v20123_v6 = vld [vmem:[#allocation75_spill] sm:$0xff] }
 0x4c8   :  { %v2171_v54 = vmax.f32 %v2059_v28, 0.0  ;;  %v2173_v36 = vmax.f32 %v2061_v45, 0.0  ;;  %10123 = vmatpush1.bf16.msra.mxu0 %v10122_v48  ;;  %v10186_v37 = vpack.c.bf16 %v2602_v10, %v2598_v22  ;;  %v1874_v53 = vmul.f32 %v14408_v63, %v20118_v59  ;;  %v2608_v10 = vld [vmem:[%s19214_s2 + $0x320] sm:$0xff]  ;;  %v2606_v28 = vld [vmem:[%s19214_s2 + $0x310] sm:$0xff]  ;;  %v20124_v48 = vld [vmem:[#allocation180_spill] sm:$0xff] }
 0x4c9   :  { %v2857_v41 = vsel %vm2805_vm7, %v2852_v12, %v2856_v46  ;;  %v15105_v5 = vsel %vm2302_vm6, %v2434_v47, %v15096_v11  ;;  %v1876_v57 = vmul.f32 %v14411_v42, %v20119_v26  ;;  %v1930_v29 = vmul.f32 %v14408_v63, %v20120_v21  ;;  %v2609_v12 = vld [vmem:[%s19214_s2 + $0x328] sm:$0xff]  ;;  %v2610_v45 = vld [vmem:[%s19214_s2 + $0x330] sm:$0xff] }
 0x4ca   :  { %3049 = vmatmul.mubr.f32.gmra.mrb[92].mxu0 %v2857_v41  ;;  %3222 = vmatmul.mubr.f32.gmra.mrb[92].mxu1 %v2857_v41  ;;  %2452 = vst [vmem:[#allocation2 + $0xe0] sm:$0xff] %v15105_v5  ;;  %v2860_v4 = vrot.slane %v15105_v5, 1  ;;  %v2227_v47 = vmax.f32 %v2115_v8, %v2171_v54  ;;  %v2229_v13 = vmax.f32 %v2117_v61, %v2173_v36 }
 0x4cb   :  { %v1932_v2 = vmul.f32 %v14411_v42, %v20121_v38  ;;  %3054 = vmatprep.mubr.f32.mxu0 %v2863_v14  ;;  %3227 = vmatprep.mubr.f32.mxu1 %v2863_v14  ;;  %v2002_v62 = vadd.f32 %v14454_v7, %v1874_v53  ;;  %v2004_v24 = vadd.f32 %v14457_v20, %v1876_v57  ;;  %v20125_v14 = vld [vmem:[#allocation181_spill] sm:$0xff] }
 0x4cc   :  { %v2058_v43 = vadd.f32 %v14454_v7, %v1930_v29  ;;  %v2861_v51 = vsel %vm2805_vm7, %v2856_v46, %v2860_v4  ;;  %v15133_v58 = vmax.f32 %v2227_v47, %v2229_v13  ;;  %10187 = vmatpush1.bf16.msra.mxu1 %v10186_v37  ;;  %v10124_v3 = vpack.c.bf16 %v2609_v12, %v2605_v34  ;;  %v20128_v13 = vld [vmem:[#allocation177_spill] sm:$0xff] }
 0x4cd   :  { %v2060_v25 = vadd.f32 %v14457_v20, %v1932_v2  ;;  %v2114_v49 = vmax.f32 %v2002_v62, 0.0  ;;  %v2116_v39 = vmax.f32 %v2004_v24, 0.0  ;;  %v10188_v23 = vpack.c.bf16 %v2611_v27, %v2607_v17  ;;  %v2617_v2 = vld [vmem:[%s19214_s2 + $0x368] sm:$0xff]  ;;  %v2615_v17 = vld [vmem:[%s19214_s2 + $0x358] sm:$0xff] }
 0x4ce   :  { %v2170_v55 = vmax.f32 %v2058_v43, 0.0  ;;  %3055 = vmatmul.mubr.f32.gmra.mrb[94].mxu0 %v2861_v51  ;;  %3228 = vmatmul.mubr.f32.gmra.mrb[94].mxu1 %v2861_v51  ;;  %v2442_v44 = vrot.slane %v15133_v58, 6  ;;  %v1879_v9 = vmul.f32 %v14428_v15, %v20122_v50  ;;  %v1881_v22 = vmul.f32 %v14431_v35, %v20123_v6  ;;  %v2619_v27 = vld [vmem:[%s19214_s2 + $0x378] sm:$0xff]  ;;  %v20129_v43 = vld [vmem:[#allocation179_spill] sm:$0xff] }
 0x4cf   :  { %v2172_v40 = vmax.f32 %v2060_v25, 0.0  ;;  %10125 = vmatprep.subr.bf16.mxu0 %v10124_v3  ;;  %10189 = vmatprep.subr.bf16.mxu1 %v10188_v23  ;;  %v1935_v46 = vmul.f32 %v14428_v15, %v20124_v48  ;;  %v1937_v61 = vmul.f32 %v14431_v35, %v20125_v14  ;;  %v10126_v26 = vpack.c.bf16 %v2608_v10, %v2604_v30  ;;  %v20126_v35 = vld [vmem:[#allocation67_spill] sm:$0xff]  ;;  %v2612_v25 = vld [vmem:[%s19214_s2 + $0x340] sm:$0xff]  ;;  %v2621_v30 = vld [vmem:[%s19214_s2 + $0x388] sm:$0xff] }
 0x4d0   :  { %v2226_v8 = vmax.f32 %v2114_v49, %v2170_v55  ;;  %v2443_v54 = vsel %vm2302_vm6, %v15054_v18, %v2442_v44  ;;  %v2007_v37 = vadd.f32 %v14464_v31, %v1879_v9  ;;  %v2009_v59 = vadd.f32 %v14467_v19, %v1881_v22  ;;  %v2613_v18 = vld [vmem:[%s19214_s2 + $0x348] sm:$0xff]  ;;  %v2616_v3 = vld [vmem:[%s19214_s2 + $0x360] sm:$0xff]  ;;  %v2614_v49 = vld [vmem:[%s19214_s2 + $0x350] sm:$0xff] }
 0x4d1   :  { %v2228_v36 = vmax.f32 %v2116_v39, %v2172_v40  ;;  %2455 = vst [vmem:[#allocation2 + $0xf8] sm:$0xf] %v2443_v54  ;;  %v2063_v53 = vadd.f32 %v14464_v31, %v1935_v46  ;;  %v2065_v41 = vadd.f32 %v14467_v19, %v1937_v61  ;;  %v10190_v57 = vpack.c.bf16 %v2610_v45, %v2606_v28  ;;  %v20127_v31 = vld [vmem:[#allocation71_spill] sm:$0xff]  ;;  %v2625_v44 = vld [vmem:[%s19214_s2 + $0x3a8] sm:$0xff]  ;;  %v2627_v22 = vld [vmem:[%s19214_s2 + $0x3b8] sm:$0xff] }
 0x4d2   :  { %v2119_v15 = vmax.f32 %v2007_v37, 0.0  ;;  %v2121_v29 = vmax.f32 %v2009_v59, 0.0  ;;  %v1878_v34 = vmul.f32 %v14408_v63, %v20126_v35  ;;  %10127 = vmatpush1.bf16.msra.mxu0 %v10126_v26  ;;  %v1880_v19 = vmul.f32 %v14411_v42, %v20127_v31  ;;  %v2618_v23 = vld [vmem:[%s19214_s2 + $0x370] sm:$0xff]  ;;  %v2620_v10 = vld [vmem:[%s19214_s2 + $0x380] sm:$0xff]  ;;  %v2629_v59 = vld [vmem:[%s19214_s2 + $0x3c8] sm:$0xff] }
 0x4d3   :  { %v15163_v21 = vmax.f32 %v2226_v8, %v2228_v36  ;;  %v2175_v12 = vmax.f32 %v2063_v53, 0.0  ;;  %v2177_v47 = vmax.f32 %v2065_v41, 0.0  ;;  %10191 = vmatpush1.bf16.msra.mxu1 %v10190_v57  ;;  %v1934_v38 = vmul.f32 %v14408_v63, %v20128_v13  ;;  %v2622_v48 = vld [vmem:[%s19214_s2 + $0x390] sm:$0xff]  ;;  %v2633_v53 = vld [vmem:[%s19214_s2 + $0x3e8] sm:$0xff]  ;;  %v2635_v35 = vld [vmem:[%s19214_s2 + $0x3f8] sm:$0xff] }
 0x4d4   :  { %v2461_v24 = vrot.slane %v15133_v58, 2  ;;  %v1936_v51 = vmul.f32 %v14411_v42, %v20129_v43  ;;  %v2006_v63 = vadd.f32 %v14454_v7, %v1878_v34  ;;  %v2008_v58 = vadd.f32 %v14457_v20, %v1880_v19  ;;  %v2626_v46 = vld [vmem:[%s19214_s2 + $0x3b0] sm:$0xff] }
 0x4d5   :  { %v2440_v62 = vrot.slane %v15163_v21, 6  ;;  %v2231_v39 = vmax.f32 %v2119_v15, %v2175_v12  ;;  %v2233_v55 = vmax.f32 %v2121_v29, %v2177_v47  ;;  %v2062_v42 = vadd.f32 %v14454_v7, %v1934_v38  ;;  %v2623_v7 = vld [vmem:[%s19214_s2 + $0x398] sm:$0xff] }
 0x4d6   :  { %v2064_v50 = vadd.f32 %v14457_v20, %v1936_v51  ;;  %v2118_v9 = vmax.f32 %v2006_v63, 0.0  ;;  %v10128_v6 = vpack.c.bf16 %v2617_v2, %v2613_v18  ;;  %v2120_v45 = vmax.f32 %v2008_v58, 0.0  ;;  %v2624_v20 = vld [vmem:[%s19214_s2 + $0x3a0] sm:$0xff]  ;;  %v2631_v29 = vld [vmem:[%s19214_s2 + $0x3d8] sm:$0xff] }
 0x4d7   :  { %v2441_v40 = vsel %vm2302_vm6, %v15096_v11, %v2440_v62  ;;  %v2261_v28 = vmax.f32 %v2231_v39, %v2233_v55  ;;  %v2174_v11 = vmax.f32 %v2062_v42, 0.0  ;;  %v10192_v8 = vpack.c.bf16 %v2619_v27, %v2615_v17  ;;  %v2628_v17 = vld [vmem:[%s19214_s2 + $0x3c0] sm:$0xff]  ;;  %v2630_v27 = vld [vmem:[%s19214_s2 + $0x3d0] sm:$0xff]  ;;  %v8380_v63 = vld [vmem:[%s19214_s2 + $0x818] sm:$0xff] }
 0x4d8   :  { %2454 = vst [vmem:[#allocation2 + $0xf0] sm:$0xf] %v2441_v40  ;;  %v15229_v14 = vld [vmem:[#allocation2 + $0xf8] sm:$0xff]  ;;  %v2176_v61 = vmax.f32 %v2064_v50, 0.0  ;;  %10129 = vmatprep.subr.bf16.mxu0 %v10128_v6  ;;  %v10130_v54 = vpack.c.bf16 %v2616_v3, %v2612_v25  ;;  %v10194_v36 = vpack.c.bf16 %v2618_v23, %v2614_v49  ;;  %v10132_v37 = vpack.c.bf16 %v2625_v44, %v2621_v30  ;;  %v2634_v62 = vld [vmem:[%s19214_s2 + $0x3f0] sm:$0xff] }
 0x4d9   :  { %v2866_v41 = vrot.slane %v15229_v14, 1  ;;  %v2462_v26 = vrot.slane %v2261_v28, 2  ;;  %v2230_v57 = vmax.f32 %v2118_v9, %v2174_v11  ;;  %10193 = vmatprep.subr.bf16.mxu1 %v10192_v8  ;;  %v10196_v15 = vpack.c.bf16 %v2627_v22, %v2623_v7  ;;  %v8384_v25 = vld [vmem:[%s19214_s2 + $0x838] sm:$0xff]  ;;  %v2473_v28 = vld [vmem:[#allocation2 + $0x8] sm:$0xff]  ;;  %v8381_v11 = vld [vmem:[%s19214_s2 + $0x820] sm:$0xff] }
 0x4da   :  { %v2232_v34 = vmax.f32 %v2120_v45, %v2176_v61  ;;  %10131 = vmatpush1.bf16.msra.mxu0 %v10130_v54  ;;  %10195 = vmatpush1.bf16.msra.mxu1 %v10194_v36  ;;  %v10134_v18 = vpack.c.bf16 %v2624_v20, %v2620_v10  ;;  %v10198_v12 = vpack.c.bf16 %v2626_v46, %v2622_v48  ;;  %v2458_v38 = vrot.slane %v15163_v21, 2  ;;  %v8378_v21 = vld [vmem:[%s19214_s2 + $0x808] sm:$0xff]  ;;  %v8377_v45 = vld [vmem:[%s19214_s2 + $0x800] sm:$0xff]  ;;  %v8379_v8 = vld [vmem:[%s19214_s2 + $0x810] sm:$0xff] }
 0x4db   :  { %v2867_v47 = vsel %vm2805_vm7, %v2862_v0, %v2866_v41  ;;  %v15248_v31 = vsel %vm2321_vm8, %v2461_v24, %v2462_v26  ;;  %2471 = vst [vmem:[#allocation2 + $0x118] sm:$0x3f] %v2462_v26  ;;  %10133 = vmatprep.subr.bf16.mxu0 %v10132_v37  ;;  %10197 = vmatprep.subr.bf16.mxu1 %v10196_v15  ;;  %v2632_v0 = vld [vmem:[%s19214_s2 + $0x3e0] sm:$0xff]  ;;  %v8382_v24 = vld [vmem:[%s19214_s2 + $0x828] sm:$0xff]  ;;  %v8383_v20 = vld [vmem:[%s19214_s2 + $0x830] sm:$0xff] }
 0x4dc   :  { %v10136_v19 = vpack.c.bf16 %v2633_v53, %v2629_v59  ;;  %3060 = vmatprep.mubr.f32.mxu0 %v2867_v47  ;;  %3233 = vmatprep.mubr.f32.mxu1 %v2867_v47  ;;  %2469 = vst [vmem:[#allocation2 + $0x108] sm:$0xff] %v15248_v31  ;;  %v2260_v13 = vmax.f32 %v2230_v57, %v2232_v34  ;;  %v2870_v49 = vrot.slane %v15248_v31, 1  ;;  %v8386_v48 = vld [vmem:[%s19214_s2 + $0x848] sm:$0xff]  ;;  %v8388_v61 = vld [vmem:[%s19214_s2 + $0x858] sm:$0xff]  ;;  %v2472_v36 = vld [vmem:[#allocation2] sm:$0xff] }
 0x4dd   :  { %v10200_v2 = vpack.c.bf16 %v2635_v35, %v2631_v29  ;;  %v10138_v55 = vpack.c.bf16 %v2632_v0, %v2628_v17  ;;  %v10202_v58 = vpack.c.bf16 %v2634_v62, %v2630_v27  ;;  %v10204_v23 = vpack.c.bf16 %v8382_v24, %v8378_v21  ;;  %v8390_v46 = vld [vmem:[%s19214_s2 + $0x868] sm:$0xff]  ;;  %v8392_v54 = vld [vmem:[%s19214_s2 + $0x878] sm:$0xff]  ;;  %v8385_v53 = vld [vmem:[%s19214_s2 + $0x840] sm:$0xff] }
 0x4de   :  { %v2459_v51 = vrot.slane %v2260_v13, 2  ;;  %10135 = vmatpush1.bf16.msra.mxu0 %v10134_v18  ;;  %10199 = vmatpush1.bf16.msra.mxu1 %v10198_v12  ;;  %v10268_v30 = vpack.c.bf16 %v8384_v25, %v8380_v63  ;;  %v2871_v44 = vsel %vm2805_vm7, %v2866_v41, %v2870_v49  ;;  %v10206_v37 = vpack.c.bf16 %v8381_v11, %v8377_v45  ;;  %v8389_v41 = vld [vmem:[%s19214_s2 + $0x860] sm:$0xff]  ;;  %v8387_v15 = vld [vmem:[%s19214_s2 + $0x850] sm:$0xff]  ;;  %v8394_v35 = vld [vmem:[%s19214_s2 + $0x888] sm:$0xff] }
 0x4df   :  { %v15270_v43 = vld [vmem:[#allocation2 + $0xf0] sm:$0xff]  ;;  %10137 = vmatprep.subr.bf16.mxu0 %v10136_v19  ;;  %10201 = vmatprep.subr.bf16.mxu1 %v10200_v2  ;;  %v10270_v59 = vpack.c.bf16 %v8383_v20, %v8379_v8  ;;  %v10208_v26 = vpack.c.bf16 %v8390_v46, %v8386_v48  ;;  %v10272_v57 = vpack.c.bf16 %v8392_v54, %v8388_v61  ;;  %v8398_v34 = vld [vmem:[%s19214_s2 + $0x8a8] sm:$0xff]  ;;  %v8396_v18 = vld [vmem:[%s19214_s2 + $0x898] sm:$0xff] }
 0x4e0   :  { %v2864_v3 = vrot.slane %v15270_v43, 1  ;;  %v15281_v39 = vsel %vm2321_vm8, %v2458_v38, %v2459_v51  ;;  %2470 = vst [vmem:[#allocation2 + $0x110] sm:$0x3f] %v2459_v51  ;;  %v8391_v29 = vld [vmem:[%s19214_s2 + $0x870] sm:$0xff]  ;;  %v8400_v12 = vld [vmem:[%s19214_s2 + $0x8b8] sm:$0xff]  ;;  %v10210_v19 = vpack.c.bf16 %v8389_v41, %v8385_v53  ;;  %v8393_v38 = vld [vmem:[%s19214_s2 + $0x880] sm:$0xff]  ;;  %v10212_v17 = vpack.c.bf16 %v8398_v34, %v8394_v35 }
 0x4e1   :  { %2468 = vst [vmem:[#allocation2 + $0x100] sm:$0xff] %v15281_v39  ;;  %v2868_v50 = vrot.slane %v15281_v39, 1  ;;  %v15340_v47 = vld [vmem:[#allocation2 + $0x18] sm:$0xff]  ;;  %v10274_v13 = vpack.c.bf16 %v8391_v29, %v8387_v15  ;;  %v8397_v2 = vld [vmem:[%s19214_s2 + $0x8a0] sm:$0xff]  ;;  %v10276_v0 = vpack.c.bf16 %v8400_v12, %v8396_v18  ;;  %v8395_v27 = vld [vmem:[%s19214_s2 + $0x890] sm:$0xff] }
 0x4e2   :  { %v2865_v42 = vsel %vm2805_vm7, %v2860_v4, %v2864_v3  ;;  %v2639_v40 = vld [vmem:[#allocation2 + $0x118] sm:$0x1f]  ;;  %10139 = vmatpush1.bf16.msra.mxu0 %v10138_v55  ;;  %10203 = vmatpush1.bf16.msra.mxu1 %v10202_v58  ;;  %v8399_v62 = vld [vmem:[%s19214_s2 + $0x8b0] sm:$0xff]  ;;  %v8402_v21 = vld [vmem:[%s19214_s2 + $0x8c8] sm:$0xff] }
 0x4e3   :  { %3061 = vmatmul.mubr.f32.gmra.mrb[96].mxu0 %v2865_v42  ;;  %3234 = vmatmul.mubr.f32.gmra.mrb[96].mxu1 %v2865_v42  ;;  %v2874_v9 = vrot.slane %v2639_v40, 1  ;;  %v2869_v6 = vsel %vm2805_vm7, %v2864_v3, %v2868_v50  ;;  %v15359_v24 = vld [vmem:[#allocation2 + $0x10] sm:$0xff]  ;;  %v8406_v51 = vld [vmem:[%s19214_s2 + $0x8e8] sm:$0xff]  ;;  %v8404_v63 = vld [vmem:[%s19214_s2 + $0x8d8] sm:$0xff]  ;;  %v10278_v55 = vpack.c.bf16 %v8399_v62, %v8395_v27 }
 0x4e4   :  { %3066 = vmatprep.mubr.f32.mxu0 %v2871_v44  ;;  %3239 = vmatprep.mubr.f32.mxu1 %v2871_v44  ;;  %v8408_v25 = vld [vmem:[%s19214_s2 + $0x8f8] sm:$0xff]  ;;  %v15372_v3 = vld [vmem:[#allocation2 + $0x28] sm:$0xff]  ;;  %v8401_v58 = vld [vmem:[%s19214_s2 + $0x8c0] sm:$0xff] }
 0x4e5   :  { %10205 = vmatprep.subr.bf16.mxu0 %v10204_v23  ;;  %10269 = vmatprep.subr.bf16.mxu1 %v10268_v30  ;;  %v2875_v4 = vsel %vm2805_vm7, %v2870_v49, %v2874_v9  ;;  %v10214_v49 = vpack.c.bf16 %v8397_v2, %v8393_v38  ;;  %v8405_v42 = vld [vmem:[%s19214_s2 + $0x8e0] sm:$0xff]  ;;  %v10216_v23 = vpack.c.bf16 %v8406_v51, %v8402_v21  ;;  %v8403_v44 = vld [vmem:[%s19214_s2 + $0x8d0] sm:$0xff]  ;;  %v8418_v61 = vld [vmem:[%s19214_s2 + $0x948] sm:$0xff] }
 0x4e6   :  { %v10280_v30 = vpack.c.bf16 %v8408_v25, %v8404_v63  ;;  %v8407_v40 = vld [vmem:[%s19214_s2 + $0x8f0] sm:$0xff]  ;;  %v8409_v45 = vld [vmem:[%s19214_s2 + $0x900] sm:$0xff]  ;;  %v15436_v53 = vld [vmem:[#allocation2 + $0x48] sm:$0xff] }
 0x4e7   :  { %3067 = vmatmul.mubr.f32.gmra.mrb[98].mxu0 %v2869_v6  ;;  %3240 = vmatmul.mubr.f32.gmra.mrb[98].mxu1 %v2869_v6  ;;  %v2638_v7 = vld [vmem:[#allocation2 + $0x110] sm:$0x1f]  ;;  %v8414_v6 = vld [vmem:[%s19214_s2 + $0x928] sm:$0xff]  ;;  %v8413_v11 = vld [vmem:[%s19214_s2 + $0x920] sm:$0xff] }
 0x4e8   :  { %3072 = vmatprep.mubr.f32.mxu0 %v2875_v4  ;;  %3245 = vmatprep.mubr.f32.mxu1 %v2875_v4  ;;  %v2872_v22 = vrot.slane %v2638_v7, 1  ;;  %v8412_v4 = vld [vmem:[%s19214_s2 + $0x918] sm:$0xff]  ;;  %v8411_v48 = vld [vmem:[%s19214_s2 + $0x910] sm:$0xff]  ;;  %v10222_v41 = vpack.c.bf16 %v8413_v11, %v8409_v45  ;;  %v8421_v15 = vld [vmem:[%s19214_s2 + $0x960] sm:$0xff] }
 0x4e9   :  { %v8416_v7 = vld [vmem:[%s19214_s2 + $0x938] sm:$0xff]  ;;  %v8415_v46 = vld [vmem:[%s19214_s2 + $0x930] sm:$0xff]  ;;  %v8426_v12 = vld [vmem:[%s19214_s2 + $0x988] sm:$0xff] }
 0x4ea   :  { %v2873_v10 = vsel %vm2805_vm7, %v2868_v50, %v2872_v22  ;;  %v8410_v50 = vld [vmem:[%s19214_s2 + $0x908] sm:$0xff]  ;;  %v10284_v20 = vpack.c.bf16 %v8416_v7, %v8412_v4  ;;  %v15423_v54 = vld [vmem:[#allocation2 + $0x30] sm:$0xff]  ;;  %v8428_v38 = vld [vmem:[%s19214_s2 + $0x998] sm:$0xff] }
 0x4eb   :  { %3073 = vmatmul.mubr.f32.gmra.mrb[100].mxu0 %v2873_v10  ;;  %3246 = vmatmul.mubr.f32.gmra.mrb[100].mxu1 %v2873_v10  ;;  %v10218_v10 = vpack.c.bf16 %v8405_v42, %v8401_v58  ;;  %v10220_v8 = vpack.c.bf16 %v8414_v6, %v8410_v50  ;;  %v8419_v34 = vld [vmem:[%s19214_s2 + $0x950] sm:$0xff]  ;;  %v8432_v2 = vld [vmem:[%s19214_s2 + $0x9b8] sm:$0xff]  ;;  %v8425_v62 = vld [vmem:[%s19214_s2 + $0x980] sm:$0xff] }
 0x4ec   :  { %3078 = vmatprep.mubr.f32.mxu0 %v2874_v9  ;;  %3251 = vmatprep.mubr.f32.mxu1 %v2874_v9  ;;  %v15391_v9 = vld [vmem:[#allocation2 + $0x20] sm:$0xff]  ;;  %v8423_v18 = vld [vmem:[%s19214_s2 + $0x970] sm:$0xff]  ;;  %v10292_v63 = vpack.c.bf16 %v8432_v2, %v8428_v38  ;;  %v8438_v42 = vld [vmem:[%s19214_s2 + $0x9e8] sm:$0xff] }
 0x4ed   :  { %v10290_v27 = vpack.c.bf16 %v8423_v18, %v8419_v34  ;;  %v8429_v21 = vld [vmem:[%s19214_s2 + $0x9a0] sm:$0xff]  ;;  %v8427_v25 = vld [vmem:[%s19214_s2 + $0x990] sm:$0xff]  ;;  %v8442_v11 = vld [vmem:[%s19214_s2 + $0xa08] sm:$0xff] }
 0x4ee   :  { %v15487_v58 = vld [vmem:[#allocation2 + $0x50] sm:$0xff]  ;;  %v8433_v6 = vld [vmem:[%s19214_s2 + $0x9c0] sm:$0xff]  ;;  %v8454_v18 = vld [vmem:[%s19214_s2 + $0xa68] sm:$0xff] }
 0x4ef   :  { %3079 = vmatmul.mubr.f32.gmra.mrb[102].mxu0 %v2872_v22  ;;  %3252 = vmatmul.mubr.f32.gmra.mrb[102].mxu1 %v2872_v22  ;;  %v15404_v22 = vld [vmem:[#allocation2 + $0x38] sm:$0xff]  ;;  %v8437_v4 = vld [vmem:[%s19214_s2 + $0x9e0] sm:$0xff]  ;;  %v8439_v45 = vld [vmem:[%s19214_s2 + $0x9f0] sm:$0xff] }
 0x4f0   :  { %3322 = vmatprep.mubr.f32.mxu0 %v2473_v28  ;;  %3495 = vmatprep.mubr.f32.mxu1 %v2473_v28  ;;  %v10282_v28 = vpack.c.bf16 %v8407_v40, %v8403_v44  ;;  %v15500_v44 = vld [vmem:[#allocation2 + $0x68] sm:$0xff]  ;;  %v10230_v40 = vpack.c.bf16 %v8429_v21, %v8425_v62  ;;  %v15551_v34 = vld [vmem:[#allocation2 + $0x70] sm:$0xff]  ;;  %v8453_v62 = vld [vmem:[%s19214_s2 + $0xa60] sm:$0xff] }
 0x4f1   :  { %v15564_v38 = vld [vmem:[#allocation2 + $0x88] sm:$0xff] }
 0x4f3   :  { %3323 = vmatmul.mubr.f32.vlgmr.msra.gmra.mrb[68].mxu0 %v2472_v36  ;;  %3496 = vmatmul.mubr.f32.vlgmr.msra.gmra.mrb[68].mxu1 %v2472_v36  ;;  %v8422_v36 = vld [vmem:[%s19214_s2 + $0x968] sm:$0xff] }
 0x4f4   :  { %3328 = vmatprep.mubr.f32.mxu0 %v15340_v47  ;;  %3501 = vmatprep.mubr.f32.mxu1 %v15340_v47  ;;  %v10224_v29 = vpack.c.bf16 %v8422_v36, %v8418_v61  ;;  %v15532_v61 = vld [vmem:[#allocation2 + $0x78] sm:$0xff]  ;;  %v10234_v36 = vpack.c.bf16 %v8437_v4, %v8433_v6  ;;  %v8457_v4 = vld [vmem:[%s19214_s2 + $0xa80] sm:$0xff] }
 0x4f5   :  { %10207 = vmatpush1.bf16.msra.mxu0 %v10206_v37  ;;  %10271 = vmatpush1.bf16.msra.mxu1 %v10270_v59  ;;  %v8420_v37 = vld [vmem:[%s19214_s2 + $0x958] sm:$0xff] }
 0x4f6   :  { %10209 = vmatprep.subr.bf16.mxu0 %v10208_v26  ;;  %10273 = vmatprep.subr.bf16.mxu1 %v10272_v57  ;;  %v8424_v59 = vld [vmem:[%s19214_s2 + $0x978] sm:$0xff]  ;;  %v10286_v26 = vpack.c.bf16 %v8415_v46, %v8411_v48  ;;  %v8417_v57 = vld [vmem:[%s19214_s2 + $0x940] sm:$0xff] }
 0x4f7   :  { %3329 = vmatmul.mubr.f32.gmra.mrb[70].mxu0 %v15359_v24  ;;  %3502 = vmatmul.mubr.f32.gmra.mrb[70].mxu1 %v15359_v24  ;;  %v10288_v35 = vpack.c.bf16 %v8424_v59, %v8420_v37  ;;  %v8444_v48 = vld [vmem:[%s19214_s2 + $0xa18] sm:$0xff]  ;;  %v8441_v59 = vld [vmem:[%s19214_s2 + $0xa00] sm:$0xff] }
 0x4f8   :  { %3334 = vmatprep.mubr.f32.mxu0 %v15372_v3  ;;  %3507 = vmatprep.mubr.f32.mxu1 %v15372_v3  ;;  %v8448_v46 = vld [vmem:[%s19214_s2 + $0xa38] sm:$0xff] }
 0x4f9   :  { %10211 = vmatpush1.bf16.msra.mxu0 %v10210_v19  ;;  %10275 = vmatpush1.bf16.msra.mxu1 %v10274_v13  ;;  %v15455_v19 = vld [vmem:[#allocation2 + $0x40] sm:$0xff]  ;;  %v8430_v13 = vld [vmem:[%s19214_s2 + $0x9a8] sm:$0xff] }
 0x4fa   :  { %10213 = vmatprep.subr.bf16.mxu0 %v10212_v17  ;;  %10277 = vmatprep.subr.bf16.mxu1 %v10276_v0  ;;  %v15468_v17 = vld [vmem:[#allocation2 + $0x58] sm:$0xff]  ;;  %v10226_v0 = vpack.c.bf16 %v8421_v15, %v8417_v57  ;;  %v10228_v51 = vpack.c.bf16 %v8430_v13, %v8426_v12  ;;  %v10300_v57 = vpack.c.bf16 %v8448_v46, %v8444_v48  ;;  %v8443_v15 = vld [vmem:[%s19214_s2 + $0xa10] sm:$0xff]  ;;  %v8470_v46 = vld [vmem:[%s19214_s2 + $0xae8] sm:$0xff] }
 0x4fb   :  { %3335 = vmatmul.mubr.f32.gmra.mrb[72].mxu0 %v15391_v9  ;;  %3508 = vmatmul.mubr.f32.gmra.mrb[72].mxu1 %v15391_v9  ;;  %v8452_v12 = vld [vmem:[%s19214_s2 + $0xa58] sm:$0xff]  ;;  %v15615_v48 = vld [vmem:[#allocation2 + $0x90] sm:$0xff] }
 0x4fc   :  { %3340 = vmatprep.mubr.f32.mxu0 %v15404_v22  ;;  %3513 = vmatprep.mubr.f32.mxu1 %v15404_v22  ;;  %v8456_v13 = vld [vmem:[%s19214_s2 + $0xa78] sm:$0xff] }
 0x4fd   :  { %10215 = vmatpush1.bf16.msra.mxu0 %v10214_v49  ;;  %10279 = vmatpush1.bf16.msra.mxu1 %v10278_v55  ;;  %v8431_v49 = vld [vmem:[%s19214_s2 + $0x9b0] sm:$0xff]  ;;  %v8434_v55 = vld [vmem:[%s19214_s2 + $0x9c8] sm:$0xff] }
 0x4fe   :  { %10217 = vmatprep.subr.bf16.mxu0 %v10216_v23  ;;  %10281 = vmatprep.subr.bf16.mxu1 %v10280_v30  ;;  %v8436_v23 = vld [vmem:[%s19214_s2 + $0x9d8] sm:$0xff]  ;;  %v10294_v50 = vpack.c.bf16 %v8431_v49, %v8427_v25  ;;  %v10232_v7 = vpack.c.bf16 %v8438_v42, %v8434_v55  ;;  %v8455_v25 = vld [vmem:[%s19214_s2 + $0xa70] sm:$0xff]  ;;  %v8458_v49 = vld [vmem:[%s19214_s2 + $0xa88] sm:$0xff] }
 0x4ff   :  { %3341 = vmatmul.mubr.f32.gmra.mrb[74].mxu0 %v15423_v54  ;;  %3514 = vmatmul.mubr.f32.gmra.mrb[74].mxu1 %v15423_v54  ;;  %v8440_v30 = vld [vmem:[%s19214_s2 + $0x9f8] sm:$0xff]  ;;  %v15583_v55 = vld [vmem:[#allocation2 + $0x80] sm:$0xff]  ;;  %v8462_v42 = vld [vmem:[%s19214_s2 + $0xaa8] sm:$0xff] }
 0x500   :  { %3346 = vmatprep.mubr.f32.mxu0 %v15436_v53  ;;  %3519 = vmatprep.mubr.f32.mxu1 %v15436_v53 }
 0x501   :  { %10219 = vmatpush1.bf16.msra.mxu0 %v10218_v10  ;;  %10283 = vmatpush1.bf16.msra.mxu1 %v10282_v28  ;;  %v10296_v10 = vpack.c.bf16 %v8440_v30, %v8436_v23  ;;  %v8435_v28 = vld [vmem:[%s19214_s2 + $0x9d0] sm:$0xff]  ;;  %v8460_v23 = vld [vmem:[%s19214_s2 + $0xa98] sm:$0xff] }
 0x502   :  { %10221 = vmatprep.subr.bf16.mxu0 %v10220_v8  ;;  %10285 = vmatprep.subr.bf16.mxu1 %v10284_v20  ;;  %v15519_v8 = vld [vmem:[#allocation2 + $0x60] sm:$0xff]  ;;  %v8446_v20 = vld [vmem:[%s19214_s2 + $0xa28] sm:$0xff]  ;;  %v10298_v37 = vpack.c.bf16 %v8439_v45, %v8435_v28  ;;  %v8464_v30 = vld [vmem:[%s19214_s2 + $0xab8] sm:$0xff] }
 0x503   :  { %3347 = vmatmul.mubr.f32.gmra.mrb[76].mxu0 %v15455_v19  ;;  %3520 = vmatmul.mubr.f32.gmra.mrb[76].mxu1 %v15455_v19  ;;  %v10308_v28 = vpack.c.bf16 %v8464_v30, %v8460_v23  ;;  %v8459_v45 = vld [vmem:[%s19214_s2 + $0xa90] sm:$0xff]  ;;  %v8482_v30 = vld [vmem:[%s19214_s2 + $0xb48] sm:$0xff] }
 0x504   :  { %3352 = vmatprep.mubr.f32.mxu0 %v15468_v17  ;;  %3525 = vmatprep.mubr.f32.mxu1 %v15468_v17  ;;  %v8479_v23 = vld [vmem:[%s19214_s2 + $0xb30] sm:$0xff] }
 0x505   :  { %10223 = vmatpush1.bf16.msra.mxu0 %v10222_v41  ;;  %10287 = vmatpush1.bf16.msra.mxu1 %v10286_v26  ;;  %v8445_v41 = vld [vmem:[%s19214_s2 + $0xa20] sm:$0xff]  ;;  %v10236_v26 = vpack.c.bf16 %v8446_v20, %v8442_v11  ;;  %v8463_v11 = vld [vmem:[%s19214_s2 + $0xab0] sm:$0xff]  ;;  %v8466_v20 = vld [vmem:[%s19214_s2 + $0xac8] sm:$0xff] }
 0x506   :  { %10225 = vmatprep.subr.bf16.mxu0 %v10224_v29  ;;  %10289 = vmatprep.subr.bf16.mxu1 %v10288_v35  ;;  %v8447_v29 = vld [vmem:[%s19214_s2 + $0xa30] sm:$0xff]  ;;  %v8450_v35 = vld [vmem:[%s19214_s2 + $0xa48] sm:$0xff]  ;;  %v10238_v2 = vpack.c.bf16 %v8445_v41, %v8441_v59 }
 0x507   :  { %3353 = vmatmul.mubr.f32.gmra.mrb[78].mxu0 %v15487_v58  ;;  %3526 = vmatmul.mubr.f32.gmra.mrb[78].mxu1 %v15487_v58  ;;  %v10240_v21 = vpack.c.bf16 %v8454_v18, %v8450_v35  ;;  %v15628_v59 = vld [vmem:[#allocation2 + $0xa8] sm:$0xff]  ;;  %v8467_v18 = vld [vmem:[%s19214_s2 + $0xad0] sm:$0xff] }
 0x508   :  { %3358 = vmatprep.mubr.f32.mxu0 %v15500_v44  ;;  %3531 = vmatprep.mubr.f32.mxu1 %v15500_v44 }
 0x509   :  { %10227 = vmatpush1.bf16.msra.mxu0 %v10226_v0  ;;  %10291 = vmatpush1.bf16.msra.mxu1 %v10290_v27  ;;  %v10302_v0 = vpack.c.bf16 %v8447_v29, %v8443_v15  ;;  %v8449_v27 = vld [vmem:[%s19214_s2 + $0xa40] sm:$0xff]  ;;  %v10248_v29 = vpack.c.bf16 %v8470_v46, %v8466_v20  ;;  %v8487_v20 = vld [vmem:[%s19214_s2 + $0xb70] sm:$0xff]  ;;  %v8490_v46 = vld [vmem:[%s19214_s2 + $0xb88] sm:$0xff] }
 0x50a   :  { %10229 = vmatprep.subr.bf16.mxu0 %v10228_v51  ;;  %10293 = vmatprep.subr.bf16.mxu1 %v10292_v63  ;;  %v10304_v51 = vpack.c.bf16 %v8456_v13, %v8452_v12  ;;  %v8451_v63 = vld [vmem:[%s19214_s2 + $0xa50] sm:$0xff]  ;;  %v8469_v15 = vld [vmem:[%s19214_s2 + $0xae0] sm:$0xff]  ;;  %v8474_v13 = vld [vmem:[%s19214_s2 + $0xb08] sm:$0xff] }
 0x50b   :  { %3359 = vmatmul.mubr.f32.gmra.mrb[80].mxu0 %v15519_v8  ;;  %3532 = vmatmul.mubr.f32.gmra.mrb[80].mxu1 %v15519_v8  ;;  %v10306_v6 = vpack.c.bf16 %v8455_v25, %v8451_v63  ;;  %v8471_v12 = vld [vmem:[%s19214_s2 + $0xaf0] sm:$0xff]  ;;  %v8473_v63 = vld [vmem:[%s19214_s2 + $0xb00] sm:$0xff] }
 0x50c   :  { %3364 = vmatprep.mubr.f32.mxu0 %v15532_v61  ;;  %3537 = vmatprep.mubr.f32.mxu1 %v15532_v61  ;;  %v8477_v25 = vld [vmem:[%s19214_s2 + $0xb20] sm:$0xff] }
 0x50d   :  { %10231 = vmatpush1.bf16.msra.mxu0 %v10230_v40  ;;  %10295 = vmatpush1.bf16.msra.mxu1 %v10294_v50  ;;  %v15596_v40 = vld [vmem:[#allocation2 + $0x98] sm:$0xff]  ;;  %v10242_v50 = vpack.c.bf16 %v8453_v62, %v8449_v27 }
 0x50e   :  { %10233 = vmatprep.subr.bf16.mxu0 %v10232_v7  ;;  %10297 = vmatprep.subr.bf16.mxu1 %v10296_v10  ;;  %v8461_v7 = vld [vmem:[%s19214_s2 + $0xaa0] sm:$0xff]  ;;  %v10244_v10 = vpack.c.bf16 %v8462_v42, %v8458_v49  ;;  %v8476_v27 = vld [vmem:[%s19214_s2 + $0xb18] sm:$0xff] }
 0x50f   :  { %3365 = vmatmul.mubr.f32.gmra.mrb[82].mxu0 %v15551_v34  ;;  %3538 = vmatmul.mubr.f32.gmra.mrb[82].mxu1 %v15551_v34  ;;  %v10246_v41 = vpack.c.bf16 %v8461_v7, %v8457_v4  ;;  %v8480_v62 = vld [vmem:[%s19214_s2 + $0xb38] sm:$0xff]  ;;  %v10254_v7 = vpack.c.bf16 %v8477_v25, %v8473_v63 }
 0x510   :  { %3370 = vmatprep.mubr.f32.mxu0 %v15564_v38  ;;  %3543 = vmatprep.mubr.f32.mxu1 %v15564_v38  ;;  %v10316_v42 = vpack.c.bf16 %v8480_v62, %v8476_v27  ;;  %v8488_v4 = vld [vmem:[%s19214_s2 + $0xb78] sm:$0xff] }
 0x511   :  { %10235 = vmatpush1.bf16.msra.mxu0 %v10234_v36  ;;  %10299 = vmatpush1.bf16.msra.mxu1 %v10298_v37  ;;  %v8468_v36 = vld [vmem:[%s19214_s2 + $0xad8] sm:$0xff] }
 0x512   :  { %10237 = vmatprep.subr.bf16.mxu0 %v10236_v26  ;;  %10301 = vmatprep.subr.bf16.mxu1 %v10300_v57  ;;  %v8472_v37 = vld [vmem:[%s19214_s2 + $0xaf8] sm:$0xff]  ;;  %v10310_v26 = vpack.c.bf16 %v8463_v11, %v8459_v45  ;;  %v8465_v57 = vld [vmem:[%s19214_s2 + $0xac0] sm:$0xff] }
 0x513   :  { %3371 = vmatmul.mubr.f32.gmra.mrb[84].mxu0 %v15583_v55  ;;  %3544 = vmatmul.mubr.f32.gmra.mrb[84].mxu1 %v15583_v55  ;;  %v10312_v35 = vpack.c.bf16 %v8472_v37, %v8468_v36  ;;  %v8494_v36 = vld [vmem:[%s19214_s2 + $0xba8] sm:$0xff]  ;;  %v8492_v37 = vld [vmem:[%s19214_s2 + $0xb98] sm:$0xff] }
 0x514   :  { %3376 = vmatprep.mubr.f32.mxu0 %v15596_v40  ;;  %3549 = vmatprep.mubr.f32.mxu1 %v15596_v40  ;;  %v8504_v27 = vld [vmem:[%s19214_s2 + $0xbf8] sm:$0xff] }
 0x515   :  { %10239 = vmatpush1.bf16.msra.mxu0 %v10238_v2  ;;  %10303 = vmatpush1.bf16.msra.mxu1 %v10302_v0  ;;  %v15647_v2 = vld [vmem:[#allocation2 + $0xa0] sm:$0xff]  ;;  %v8478_v0 = vld [vmem:[%s19214_s2 + $0xb28] sm:$0xff] }
 0x516   :  { %10241 = vmatprep.subr.bf16.mxu0 %v10240_v21  ;;  %10305 = vmatprep.subr.bf16.mxu1 %v10304_v51  ;;  %v10250_v21 = vpack.c.bf16 %v8469_v15, %v8465_v57  ;;  %v10314_v51 = vpack.c.bf16 %v8471_v12, %v8467_v18  ;;  %v10252_v49 = vpack.c.bf16 %v8478_v0, %v8474_v13  ;;  %v8489_v57 = vld [vmem:[%s19214_s2 + $0xb80] sm:$0xff]  ;;  %v8495_v18 = vld [vmem:[%s19214_s2 + $0xbb0] sm:$0xff]  ;;  %v8498_v12 = vld [vmem:[%s19214_s2 + $0xbc8] sm:$0xff] }
 0x517   :  { %3377 = vmatmul.mubr.f32.gmra.mrb[86].mxu0 %v15615_v48  ;;  %3550 = vmatmul.mubr.f32.gmra.mrb[86].mxu1 %v15615_v48  ;;  %v8493_v15 = vld [vmem:[%s19214_s2 + $0xba0] sm:$0xff]  ;;  %v8502_v13 = vld [vmem:[%s19214_s2 + $0xbe8] sm:$0xff]  ;;  %v8500_v0 = vld [vmem:[%s19214_s2 + $0xbd8] sm:$0xff] }
 0x518   :  { %3382 = vmatprep.mubr.f32.mxu0 %v15628_v59  ;;  %3555 = vmatprep.mubr.f32.mxu1 %v15628_v59  ;;  %v10262_v62 = vpack.c.bf16 %v8493_v15, %v8489_v57  ;;  %v10264_v63 = vpack.c.bf16 %v8502_v13, %v8498_v12  ;;  %v10328_v25 = vpack.c.bf16 %v8504_v27, %v8500_v0  ;;  %v8517_v15 = vld [vmem:[%s19214_s2 + $0xc60] sm:$0xff]  ;;  %v8519_v12 = vld [vmem:[%s19214_s2 + $0xc70] sm:$0xff]  ;;  %v8522_v13 = vld [vmem:[%s19214_s2 + $0xc88] sm:$0xff] }
 0x519   :  { %10243 = vmatpush1.bf16.msra.mxu0 %v10242_v50  ;;  %10307 = vmatpush1.bf16.msra.mxu1 %v10306_v6  ;;  %v8486_v50 = vld [vmem:[%s19214_s2 + $0xb68] sm:$0xff]  ;;  %v8484_v6 = vld [vmem:[%s19214_s2 + $0xb58] sm:$0xff] }
 0x51a   :  { %10245 = vmatprep.subr.bf16.mxu0 %v10244_v10  ;;  %10309 = vmatprep.subr.bf16.mxu1 %v10308_v28  ;;  %v8481_v10 = vld [vmem:[%s19214_s2 + $0xb40] sm:$0xff]  ;;  %v10256_v45 = vpack.c.bf16 %v8486_v50, %v8482_v30  ;;  %v10320_v11 = vpack.c.bf16 %v8488_v4, %v8484_v6  ;;  %v8512_v30 = vld [vmem:[%s19214_s2 + $0xc38] sm:$0xff] }
 0x51b   :  { %3383 = vmatmul.mubr.f32.gmra.mrb[88].mxu0 %v15647_v2  ;;  %3556 = vmatmul.mubr.f32.gmra.mrb[88].mxu1 %v15647_v2  ;;  %v8485_v28 = vld [vmem:[%s19214_s2 + $0xb60] sm:$0xff]  ;;  %v8524_v27 = vld [vmem:[%s19214_s2 + $0xc98] sm:$0xff] }
 0x51c   :  { %3388 = vmatprep.mubr.f32.mxu0 %v14990_v32  ;;  %3561 = vmatprep.mubr.f32.mxu1 %v14990_v32  ;;  %v8475_v32 = vld [vmem:[%s19214_s2 + $0xb10] sm:$0xff] }
 0x51d   :  { %10247 = vmatpush1.bf16.msra.mxu0 %v10246_v41  ;;  %10311 = vmatpush1.bf16.msra.mxu1 %v10310_v26  ;;  %v8496_v41 = vld [vmem:[%s19214_s2 + $0xbb8] sm:$0xff]  ;;  %v10258_v26 = vpack.c.bf16 %v8485_v28, %v8481_v10  ;;  %v3604_v10 = vld [vmem:[#allocation2] sm:$0xfc] }
 0x51e   :  { %10249 = vmatprep.subr.bf16.mxu0 %v10248_v29  ;;  %10313 = vmatprep.subr.bf16.mxu1 %v10312_v35  ;;  %v10260_v29 = vpack.c.bf16 %v8494_v36, %v8490_v46  ;;  %v10324_v35 = vpack.c.bf16 %v8496_v41, %v8492_v37  ;;  %v8509_v28 = vld [vmem:[%s19214_s2 + $0xc20] sm:$0xff]  ;;  %v3749_v46 = vrot.slane %v15372_v3, 2  ;;  %v8518_v36 = vld [vmem:[%s19214_s2 + $0xc68] sm:$0xff]  ;;  %v8516_v37 = vld [vmem:[%s19214_s2 + $0xc58] sm:$0xff] }
 0x51f   :  { %3389 = vmatmul.mubr.f32.gmra.mrb[90].mxu0 %v15017_v52  ;;  %3562 = vmatmul.mubr.f32.gmra.mrb[90].mxu1 %v15017_v52  ;;  %v10318_v52 = vpack.c.bf16 %v8479_v23, %v8475_v32  ;;  %v8510_v32 = vld [vmem:[%s19214_s2 + $0xc28] sm:$0xff]  ;;  %v8508_v23 = vld [vmem:[%s19214_s2 + $0xc18] sm:$0xff]  ;;  %v8513_v3 = vld [vmem:[%s19214_s2 + $0xc40] sm:$0xff] }
 0x520   :  { %3394 = vmatprep.mubr.f32.mxu0 %v15005_v16  ;;  %3567 = vmatprep.mubr.f32.mxu1 %v15005_v16  ;;  %v8483_v16 = vld [vmem:[%s19214_s2 + $0xb50] sm:$0xff]  ;;  %v10396_v4 = vpack.c.bf16 %v8512_v30, %v8508_v23  ;;  %v8520_v41 = vld [vmem:[%s19214_s2 + $0xc78] sm:$0xff]  ;;  %v8530_v23 = vld [vmem:[%s19214_s2 + $0xcc8] sm:$0xff] }
 0x521   :  { %10251 = vmatpush1.bf16.msra.mxu0 %v10250_v21  ;;  %10315 = vmatpush1.bf16.msra.mxu1 %v10314_v51  ;;  %v8497_v21 = vld [vmem:[%s19214_s2 + $0xbc0] sm:$0xff] }
 0x522   :  { %10253 = vmatprep.subr.bf16.mxu0 %v10252_v49  ;;  %10317 = vmatprep.subr.bf16.mxu1 %v10316_v42  ;;  %v8501_v51 = vld [vmem:[%s19214_s2 + $0xbe0] sm:$0xff]  ;;  %v8503_v49 = vld [vmem:[%s19214_s2 + $0xbf0] sm:$0xff]  ;;  %v8506_v42 = vld [vmem:[%s19214_s2 + $0xc08] sm:$0xff] }
 0x523   :  { %3395 = vmatmul.mubr.f32.gmra.mrb[92].mxu0 %v15033_v56  ;;  %3568 = vmatmul.mubr.f32.gmra.mrb[92].mxu1 %v15033_v56  ;;  %v10322_v56 = vpack.c.bf16 %v8487_v20, %v8483_v16  ;;  %v10266_v50 = vpack.c.bf16 %v8501_v51, %v8497_v21  ;;  %v10332_v6 = vpack.c.bf16 %v8510_v32, %v8506_v42  ;;  %v8511_v16 = vld [vmem:[%s19214_s2 + $0xc30] sm:$0xff] }
 0x524   :  { %3400 = vmatprep.mubr.f32.mxu0 %v15052_v1  ;;  %3573 = vmatprep.mubr.f32.mxu1 %v15052_v1  ;;  %v8491_v1 = vld [vmem:[%s19214_s2 + $0xb90] sm:$0xff]  ;;  %v10338_v21 = vpack.c.bf16 %v8517_v15, %v8513_v3 }
 0x525   :  { %10255 = vmatpush1.bf16.msra.mxu0 %v10254_v7  ;;  %10319 = vmatpush1.bf16.msra.mxu1 %v10318_v52  ;;  %v3605_v7 = vld [vmem:[#allocation2 + $0x8] sm:$0xfc]  ;;  %v8527_v32 = vld [vmem:[%s19214_s2 + $0xcb0] sm:$0xff] }
 0x526   :  { %10257 = vmatprep.subr.bf16.mxu0 %v10256_v45  ;;  %10321 = vmatprep.subr.bf16.mxu1 %v10320_v11  ;;  %v3744_v52 = vrot.slane %v3605_v7, 2  ;;  %v8507_v45 = vld [vmem:[%s19214_s2 + $0xc10] sm:$0xff]  ;;  %v3741_v11 = vrot.slane %v3604_v10, 2  ;;  %v3751_v7 = vrot.slane %v15423_v54, 2  ;;  %v8533_v10 = vld [vmem:[%s19214_s2 + $0xce0] sm:$0xff] }
 0x527   :  { %3401 = vmatmul.mubr.f32.gmra.mrb[94].mxu0 %v15088_v60  ;;  %3574 = vmatmul.mubr.f32.gmra.mrb[94].mxu1 %v15088_v60  ;;  %v10326_v60 = vpack.c.bf16 %v8495_v18, %v8491_v1  ;;  %v10398_v57 = vpack.c.bf16 %v8511_v16, %v8507_v45  ;;  %v10400_v18 = vpack.c.bf16 %v8520_v41, %v8516_v37  ;;  %v8531_v45 = vld [vmem:[%s19214_s2 + $0xcd0] sm:$0xff]  ;;  %v8542_v16 = vld [vmem:[%s19214_s2 + $0xd28] sm:$0xff]  ;;  %v8537_v41 = vld [vmem:[%s19214_s2 + $0xd00] sm:$0xff] }
 0x528   :  { %3406 = vmatprep.mubr.f32.mxu0 %v15071_v33  ;;  %3579 = vmatprep.mubr.f32.mxu1 %v15071_v33  ;;  %v8499_v33 = vld [vmem:[%s19214_s2 + $0xbd0] sm:$0xff] }
 0x529   :  { %10259 = vmatpush1.bf16.msra.mxu0 %v10258_v26  ;;  %10323 = vmatpush1.bf16.msra.mxu1 %v10322_v56  ;;  %v3742_v26 = vrot.slane %v15359_v24, 2  ;;  %v8515_v24 = vld [vmem:[%s19214_s2 + $0xc50] sm:$0xff] }
 0x52a   :  { %10261 = vmatprep.subr.bf16.mxu0 %v10260_v29  ;;  %10325 = vmatprep.subr.bf16.mxu1 %v10324_v35  ;;  %v3747_v35 = vrot.slane %v15391_v9, 2  ;;  %v8526_v9 = vld [vmem:[%s19214_s2 + $0xca8] sm:$0xff]  ;;  %v10402_v51 = vpack.c.bf16 %v8519_v12, %v8515_v24  ;;  %v8543_v15 = vld [vmem:[%s19214_s2 + $0xd30] sm:$0xff]  ;;  %v8548_v24 = vld [vmem:[%s19214_s2 + $0xd58] sm:$0xff] }
 0x52b   :  { %3407 = vmatmul.mubr.f32.gmra.mrb[96].mxu0 %v15105_v5  ;;  %3580 = vmatmul.mubr.f32.gmra.mrb[96].mxu1 %v15105_v5  ;;  %v10330_v5 = vpack.c.bf16 %v8503_v49, %v8499_v33  ;;  %v3743_v29 = vsel %vm2321_vm8, %v3741_v11, %v3742_v26  ;;  %v10340_v49 = vpack.c.bf16 %v8526_v9, %v8522_v13  ;;  %v8538_v11 = vld [vmem:[%s19214_s2 + $0xd08] sm:$0xff]  ;;  %v8552_v12 = vld [vmem:[%s19214_s2 + $0xd78] sm:$0xff]  ;;  %v3759_v13 = vrot.slane %v15487_v58, 2  ;;  %v8545_v9 = vld [vmem:[%s19214_s2 + $0xd40] sm:$0xff] }
 0x52c   :  { %3412 = vmatprep.mubr.f32.mxu0 %v15229_v14  ;;  %3585 = vmatprep.mubr.f32.mxu1 %v15229_v14  ;;  %v2507_v14 = vld [vmem:[#allocation2 + $0x118] sm:$0xf]  ;;  %v3748_v33 = vsel %vm2321_vm8, %v3742_v26, %v3747_v35  ;;  %v8541_v26 = vld [vmem:[%s19214_s2 + $0xd20] sm:$0xff]  ;;  %v10416_v58 = vpack.c.bf16 %v8552_v12, %v8548_v24  ;;  %v8578_v24 = vld [vmem:[%s19214_s2 + $0xe48] sm:$0xff] }
 0x52d   :  { %10263 = vmatpush1.bf16.msra.mxu0 %v10262_v62  ;;  %10327 = vmatpush1.bf16.msra.mxu1 %v10326_v60  ;;  %v8528_v62 = vld [vmem:[%s19214_s2 + $0xcb8] sm:$0xff]  ;;  %v3753_v60 = vrot.slane %v15404_v22, 2  ;;  %v8523_v22 = vld [vmem:[%s19214_s2 + $0xc90] sm:$0xff]  ;;  %v8582_v12 = vld [vmem:[%s19214_s2 + $0xe68] sm:$0xff] }
 0x52e   :  { %10265 = vmatprep.subr.bf16.mxu0 %v10264_v63  ;;  %10329 = vmatprep.subr.bf16.mxu1 %v10328_v25  ;;  %v8521_v63 = vld [vmem:[%s19214_s2 + $0xc80] sm:$0xff]  ;;  %v10404_v42 = vpack.c.bf16 %v8528_v62, %v8524_v27 }
 0x52f   :  { %3413 = vmatmul.mubr.f32.gmra.mrb[98].mxu0 %v15270_v43  ;;  %3586 = vmatmul.mubr.f32.gmra.mrb[98].mxu1 %v15270_v43  ;;  %v3745_v43 = vrot.slane %v15340_v47, 2  ;;  %v8514_v47 = vld [vmem:[%s19214_s2 + $0xc48] sm:$0xff]  ;;  %v8525_v25 = vld [vmem:[%s19214_s2 + $0xca0] sm:$0xff]  ;;  %v3754_v30 = vsel %vm2321_vm8, %v3749_v46, %v3753_v60 }
 0x530   :  { %3418 = vmatprep.mubr.f32.mxu0 %v15248_v31  ;;  %3591 = vmatprep.mubr.f32.mxu1 %v15248_v31  ;;  %v8505_v31 = vld [vmem:[%s19214_s2 + $0xc00] sm:$0xff]  ;;  %v10336_v1 = vpack.c.bf16 %v8518_v36, %v8514_v47  ;;  %v8540_v47 = vld [vmem:[%s19214_s2 + $0xd18] sm:$0xff] }
 0x531   :  { %10267 = vmatpush1.bf16.msra.mxu0 %v10266_v50  ;;  %10331 = vmatpush1.bf16.msra.mxu1 %v10330_v5  ;;  %v3746_v20 = vsel %vm2321_vm8, %v3744_v52, %v3745_v43  ;;  %v10334_v56 = vpack.c.bf16 %v8509_v28, %v8505_v31  ;;  %v3750_v0 = vsel %vm2321_vm8, %v3745_v43, %v3749_v46  ;;  %v3757_v50 = vrot.slane %v15436_v53, 2  ;;  %v8534_v5 = vld [vmem:[%s19214_s2 + $0xce8] sm:$0xff]  ;;  %v8529_v52 = vld [vmem:[%s19214_s2 + $0xcc0] sm:$0xff] }
 0x532   :  { %10333 = vmatprep.subr.bf16.mxu0 %v10332_v6  ;;  %10397 = vmatprep.subr.bf16.mxu1 %v10396_v4  ;;  %v8532_v6 = vld [vmem:[%s19214_s2 + $0xcd8] sm:$0xff]  ;;  %v10406_v53 = vpack.c.bf16 %v8527_v32, %v8523_v22  ;;  %v3752_v43 = vsel %vm2321_vm8, %v3747_v35, %v3751_v7  ;;  %v3755_v31 = vrot.slane %v15455_v19, 2  ;;  %v10344_v28 = vpack.c.bf16 %v8534_v5, %v8530_v23  ;;  %v8549_v27 = vld [vmem:[%s19214_s2 + $0xd60] sm:$0xff] }
 0x533   :  { %3419 = vmatmul.mubr.f32.gmra.mrb[100].mxu0 %v15281_v39  ;;  %3592 = vmatmul.mubr.f32.gmra.mrb[100].mxu1 %v15281_v39  ;;  %v2506_v39 = vld [vmem:[#allocation2 + $0x110] sm:$0xf]  ;;  %v8536_v4 = vld [vmem:[%s19214_s2 + $0xcf8] sm:$0xff]  ;;  %v3758_v19 = vsel %vm2321_vm8, %v3753_v60, %v3757_v50  ;;  %v3761_v46 = vrot.slane %v15468_v17, 2  ;;  %v10346_v36 = vpack.c.bf16 %v8533_v10, %v8529_v52  ;;  %v3763_v60 = vrot.slane %v15519_v8, 2  ;;  %v8566_v10 = vld [vmem:[%s19214_s2 + $0xde8] sm:$0xff] }
 0x534   :  { %3424 = vmatprep.mubr.f32.mxu0 %v2507_v14  ;;  %3597 = vmatprep.mubr.f32.mxu1 %v2507_v14  ;;  %v10342_v14 = vpack.c.bf16 %v8525_v25, %v8521_v63  ;;  %v10408_v54 = vpack.c.bf16 %v8536_v4, %v8532_v6  ;;  %v8539_v17 = vld [vmem:[%s19214_s2 + $0xd10] sm:$0xff]  ;;  %v3760_v62 = vsel %vm2321_vm8, %v3755_v31, %v3759_v13  ;;  %v8554_v25 = vld [vmem:[%s19214_s2 + $0xd88] sm:$0xff]  ;;  %v3769_v22 = vrot.slane %v15532_v61, 2 }
 0x535   :  { %v3762_v35 = vsel %vm2321_vm8, %v3757_v50, %v3761_v46  ;;  %v8551_v63 = vld [vmem:[%s19214_s2 + $0xd70] sm:$0xff]  ;;  %v10354_v32 = vpack.c.bf16 %v8549_v27, %v8545_v9  ;;  %v8557_v50 = vld [vmem:[%s19214_s2 + $0xda0] sm:$0xff]  ;;  %v3764_v5 = vsel %vm2321_vm8, %v3759_v13, %v3763_v60  ;;  %v3773_v52 = vrot.slane %v15564_v38, 2  ;;  %v8580_v13 = vld [vmem:[%s19214_s2 + $0xe58] sm:$0xff] }
 0x536   :  { %v8555_v61 = vld [vmem:[%s19214_s2 + $0xd90] sm:$0xff] }
 0x537   :  { %3425 = vmatmul.mubr.f32.gmra.mrb[102].mxu0 %v2506_v39  ;;  %3598 = vmatmul.mubr.f32.gmra.mrb[102].mxu1 %v2506_v39  ;;  %v8535_v39 = vld [vmem:[%s19214_s2 + $0xcf0] sm:$0xff] }
 0x538   :  { %3911 = vmatprep.mubr.f32.mxu0 %v3746_v20  ;;  %4084 = vmatprep.mubr.f32.mxu1 %v3746_v20  ;;  %v8544_v20 = vld [vmem:[%s19214_s2 + $0xd38] sm:$0xff]  ;;  %v10410_v37 = vpack.c.bf16 %v8535_v39, %v8531_v45  ;;  %v8561_v45 = vld [vmem:[%s19214_s2 + $0xdc0] sm:$0xff] }
 0x539   :  { %v10412_v3 = vpack.c.bf16 %v8544_v20, %v8540_v47  ;;  %v8565_v39 = vld [vmem:[%s19214_s2 + $0xde0] sm:$0xff]  ;;  %v8563_v47 = vld [vmem:[%s19214_s2 + $0xdd0] sm:$0xff] }
 0x53a   :  { %v8567_v20 = vld [vmem:[%s19214_s2 + $0xdf0] sm:$0xff] }
 0x53b   :  { %3912 = vmatmul.mubr.f32.vlgmr.msra.gmra.mrb[68].mxu0 %v3743_v29  ;;  %4085 = vmatmul.mubr.f32.vlgmr.msra.gmra.mrb[68].mxu1 %v3743_v29  ;;  %v8546_v29 = vld [vmem:[%s19214_s2 + $0xd48] sm:$0xff] }
 0x53c   :  { %3917 = vmatprep.mubr.f32.mxu0 %v3750_v0  ;;  %4090 = vmatprep.mubr.f32.mxu1 %v3750_v0  ;;  %v10350_v0 = vpack.c.bf16 %v8541_v26, %v8537_v41  ;;  %v8572_v41 = vld [vmem:[%s19214_s2 + $0xe18] sm:$0xff] }
 0x53d   :  { %10335 = vmatpush1.bf16.msra.mxu0 %v10334_v56  ;;  %10399 = vmatpush1.bf16.msra.mxu1 %v10398_v57  ;;  %v3756_v56 = vsel %vm2321_vm8, %v3751_v7, %v3755_v31  ;;  %v10348_v57 = vpack.c.bf16 %v8542_v16, %v8538_v11  ;;  %v8559_v7 = vld [vmem:[%s19214_s2 + $0xdb0] sm:$0xff]  ;;  %v8568_v31 = vld [vmem:[%s19214_s2 + $0xdf8] sm:$0xff] }
 0x53e   :  { %10337 = vmatprep.subr.bf16.mxu0 %v10336_v1  ;;  %10401 = vmatprep.subr.bf16.mxu1 %v10400_v18  ;;  %v3765_v1 = vrot.slane %v15500_v44, 2  ;;  %v8550_v18 = vld [vmem:[%s19214_s2 + $0xd68] sm:$0xff]  ;;  %v10414_v44 = vpack.c.bf16 %v8543_v15, %v8539_v17  ;;  %v10422_v38 = vpack.c.bf16 %v8559_v7, %v8555_v61  ;;  %v8576_v26 = vld [vmem:[%s19214_s2 + $0xe38] sm:$0xff]  ;;  %v3775_v15 = vrot.slane %v15615_v48, 2  ;;  %v16069_v61 = vld [vmem:[#allocation2 + $0xb0] sm:$0xff] }
 0x53f   :  { %3918 = vmatmul.mubr.f32.gmra.mrb[70].mxu0 %v3748_v33  ;;  %4091 = vmatmul.mubr.f32.gmra.mrb[70].mxu1 %v3748_v33  ;;  %v8558_v33 = vld [vmem:[%s19214_s2 + $0xda8] sm:$0xff]  ;;  %v3783_v7 = vrot.slane %v16069_v61, 2 }
 0x540   :  { %3923 = vmatprep.mubr.f32.mxu0 %v3754_v30  ;;  %4096 = vmatprep.mubr.f32.mxu1 %v3754_v30  ;;  %v3766_v8 = vsel %vm2321_vm8, %v3761_v46, %v3765_v1  ;;  %v8553_v30 = vld [vmem:[%s19214_s2 + $0xd80] sm:$0xff]  ;;  %v10356_v6 = vpack.c.bf16 %v8558_v33, %v8554_v25  ;;  %v8570_v46 = vld [vmem:[%s19214_s2 + $0xe08] sm:$0xff]  ;;  %v16049_v33 = vld [vmem:[#allocation2 + $0xb8] sm:$0xff] }
 0x541   :  { %10339 = vmatpush1.bf16.msra.mxu0 %v10338_v21  ;;  %10403 = vmatpush1.bf16.msra.mxu1 %v10402_v51  ;;  %v10352_v21 = vpack.c.bf16 %v8550_v18, %v8546_v29  ;;  %v8547_v51 = vld [vmem:[%s19214_s2 + $0xd50] sm:$0xff]  ;;  %v8586_v25 = vld [vmem:[%s19214_s2 + $0xe88] sm:$0xff] }
 0x542   :  { %10341 = vmatprep.subr.bf16.mxu0 %v10340_v49  ;;  %10405 = vmatprep.subr.bf16.mxu1 %v10404_v42  ;;  %v8556_v49 = vld [vmem:[%s19214_s2 + $0xd98] sm:$0xff]  ;;  %v10418_v23 = vpack.c.bf16 %v8551_v63, %v8547_v51  ;;  %v8575_v18 = vld [vmem:[%s19214_s2 + $0xe30] sm:$0xff] }
 0x543   :  { %3924 = vmatmul.mubr.f32.gmra.mrb[72].mxu0 %v3752_v43  ;;  %4097 = vmatmul.mubr.f32.gmra.mrb[72].mxu1 %v3752_v43  ;;  %v8560_v42 = vld [vmem:[%s19214_s2 + $0xdb8] sm:$0xff]  ;;  %v8583_v63 = vld [vmem:[%s19214_s2 + $0xe70] sm:$0xff] }
 0x544   :  { %3929 = vmatprep.mubr.f32.mxu0 %v3758_v19  ;;  %4102 = vmatprep.mubr.f32.mxu1 %v3758_v19  ;;  %v10420_v4 = vpack.c.bf16 %v8560_v42, %v8556_v49  ;;  %v8564_v43 = vld [vmem:[%s19214_s2 + $0xdd8] sm:$0xff]  ;;  %v3771_v19 = vrot.slane %v15583_v55, 2  ;;  %v3774_v55 = vsel %vm2321_vm8, %v3769_v22, %v3773_v52  ;;  %v3785_v49 = vrot.slane %v16049_v33, 2  ;;  %v8590_v42 = vld [vmem:[%s19214_s2 + $0xea8] sm:$0xff] }
 0x545   :  { %10343 = vmatpush1.bf16.msra.mxu0 %v10342_v14  ;;  %10407 = vmatpush1.bf16.msra.mxu1 %v10406_v53  ;;  %v8562_v14 = vld [vmem:[%s19214_s2 + $0xdc8] sm:$0xff]  ;;  %v3770_v53 = vsel %vm2321_vm8, %v3765_v1, %v3769_v22  ;;  %v8571_v1 = vld [vmem:[%s19214_s2 + $0xe10] sm:$0xff]  ;;  %v8588_v22 = vld [vmem:[%s19214_s2 + $0xe98] sm:$0xff] }
 0x546   :  { %10345 = vmatprep.subr.bf16.mxu0 %v10344_v28  ;;  %10409 = vmatprep.subr.bf16.mxu1 %v10408_v54  ;;  %v3767_v28 = vrot.slane %v15551_v34, 2  ;;  %v10358_v54 = vpack.c.bf16 %v8557_v50, %v8553_v30  ;;  %v10360_v16 = vpack.c.bf16 %v8566_v10, %v8562_v14  ;;  %v10424_v34 = vpack.c.bf16 %v8568_v31, %v8564_v43  ;;  %v8594_v10 = vld [vmem:[%s19214_s2 + $0xec8] sm:$0xff] }
 0x547   :  { %3930 = vmatmul.mubr.f32.gmra.mrb[74].mxu0 %v3756_v56  ;;  %4103 = vmatmul.mubr.f32.gmra.mrb[74].mxu1 %v3756_v56  ;;  %v10362_v56 = vpack.c.bf16 %v8565_v39, %v8561_v45  ;;  %v10430_v27 = vpack.c.bf16 %v8575_v18, %v8571_v1  ;;  %v8598_v31 = vld [vmem:[%s19214_s2 + $0xee8] sm:$0xff]  ;;  %v8605_v1 = vld [vmem:[%s19214_s2 + $0xf20] sm:$0xff] }
 0x548   :  { %3935 = vmatprep.mubr.f32.mxu0 %v3762_v35  ;;  %4108 = vmatprep.mubr.f32.mxu1 %v3762_v35  ;;  %v3768_v11 = vsel %vm2321_vm8, %v3763_v60, %v3767_v28  ;;  %v3772_v17 = vsel %vm2321_vm8, %v3767_v28, %v3771_v19  ;;  %v10428_v35 = vpack.c.bf16 %v8576_v26, %v8572_v41  ;;  %v8581_v60 = vld [vmem:[%s19214_s2 + $0xe60] sm:$0xff]  ;;  %v8596_v28 = vld [vmem:[%s19214_s2 + $0xed8] sm:$0xff] }
 0x549   :  { %10347 = vmatpush1.bf16.msra.mxu0 %v10346_v36  ;;  %10411 = vmatpush1.bf16.msra.mxu1 %v10410_v37  ;;  %v3777_v36 = vrot.slane %v15596_v40, 2  ;;  %v8574_v37 = vld [vmem:[%s19214_s2 + $0xe28] sm:$0xff]  ;;  %v8569_v40 = vld [vmem:[%s19214_s2 + $0xe00] sm:$0xff]  ;;  %v16111_v41 = vld [vmem:[#allocation2 + $0xd8] sm:$0xff] }
 0x54a   :  { %10349 = vmatprep.subr.bf16.mxu0 %v10348_v57  ;;  %10413 = vmatprep.subr.bf16.mxu1 %v10412_v3  ;;  %v10426_v57 = vpack.c.bf16 %v8567_v20, %v8563_v47  ;;  %v8573_v3 = vld [vmem:[%s19214_s2 + $0xe20] sm:$0xff]  ;;  %v10364_v29 = vpack.c.bf16 %v8574_v37, %v8570_v46  ;;  %v10376_v47 = vpack.c.bf16 %v8598_v31, %v8594_v10  ;;  %v8595_v46 = vld [vmem:[%s19214_s2 + $0xed0] sm:$0xff]  ;;  %v3793_v26 = vrot.slane %v16111_v41, 2 }
 0x54b   :  { %3936 = vmatmul.mubr.f32.gmra.mrb[76].mxu0 %v3760_v62  ;;  %4109 = vmatmul.mubr.f32.gmra.mrb[76].mxu1 %v3760_v62  ;;  %v3778_v48 = vsel %vm2321_vm8, %v3773_v52, %v3777_v36  ;;  %v10366_v9 = vpack.c.bf16 %v8573_v3, %v8569_v40  ;;  %v8577_v62 = vld [vmem:[%s19214_s2 + $0xe40] sm:$0xff]  ;;  %v8591_v52 = vld [vmem:[%s19214_s2 + $0xeb0] sm:$0xff]  ;;  %v8608_v40 = vld [vmem:[%s19214_s2 + $0xf38] sm:$0xff] }
 0x54c   :  { %3941 = vmatprep.mubr.f32.mxu0 %v3766_v8  ;;  %4114 = vmatprep.mubr.f32.mxu1 %v3766_v8  ;;  %v10370_v30 = vpack.c.bf16 %v8581_v60, %v8577_v62  ;;  %v16123_v3 = vld [vmem:[#allocation2 + $0xc0] sm:$0xff]  ;;  %v8614_v62 = vld [vmem:[%s19214_s2 + $0xf68] sm:$0xff]  ;;  %v8612_v60 = vld [vmem:[%s19214_s2 + $0xf58] sm:$0xff] }
 0x54d   :  { %10351 = vmatpush1.bf16.msra.mxu0 %v10350_v0  ;;  %10415 = vmatpush1.bf16.msra.mxu1 %v10414_v44  ;;  %v8584_v0 = vld [vmem:[%s19214_s2 + $0xe78] sm:$0xff]  ;;  %v3781_v44 = vrot.slane %v15628_v59, 2  ;;  %v8579_v59 = vld [vmem:[%s19214_s2 + $0xe50] sm:$0xff]  ;;  %v8621_v31 = vld [vmem:[%s19214_s2 + $0xfa0] sm:$0xff] }
 0x54e   :  { %10353 = vmatprep.subr.bf16.mxu0 %v10352_v21  ;;  %10417 = vmatprep.subr.bf16.mxu1 %v10416_v58  ;;  %v3776_v21 = vsel %vm2321_vm8, %v3771_v19, %v3775_v15  ;;  %v10368_v58 = vpack.c.bf16 %v8582_v12, %v8578_v24  ;;  %v10432_v51 = vpack.c.bf16 %v8584_v0, %v8580_v13  ;;  %v8593_v19 = vld [vmem:[%s19214_s2 + $0xec0] sm:$0xff]  ;;  %v16133_v24 = vld [vmem:[#allocation2 + $0xd0] sm:$0xff] }
 0x54f   :  { %3942 = vmatmul.mubr.f32.gmra.mrb[78].mxu0 %v3764_v5  ;;  %4115 = vmatmul.mubr.f32.gmra.mrb[78].mxu1 %v3764_v5  ;;  %v3782_v8 = vsel %vm2321_vm8, %v3777_v36, %v3781_v44  ;;  %v10434_v50 = vpack.c.bf16 %v8583_v63, %v8579_v59  ;;  %v8585_v5 = vld [vmem:[%s19214_s2 + $0xe80] sm:$0xff]  ;;  %v3786_v43 = vsel %vm2321_vm8, %v3781_v44, %v3785_v49  ;;  %v8602_v36 = vld [vmem:[%s19214_s2 + $0xf08] sm:$0xff]  ;;  %v8603_v0 = vld [vmem:[%s19214_s2 + $0xf10] sm:$0xff] }
 0x550   :  { %3947 = vmatprep.mubr.f32.mxu0 %v3770_v53  ;;  %4120 = vmatprep.mubr.f32.mxu1 %v3770_v53  ;;  %v8587_v53 = vld [vmem:[%s19214_s2 + $0xe90] sm:$0xff] }
 0x551   :  { %10355 = vmatpush1.bf16.msra.mxu0 %v10354_v32  ;;  %10419 = vmatpush1.bf16.msra.mxu1 %v10418_v23  ;;  %v8592_v32 = vld [vmem:[%s19214_s2 + $0xeb8] sm:$0xff]  ;;  %v3779_v23 = vrot.slane %v15647_v2, 2  ;;  %v10372_v2 = vpack.c.bf16 %v8590_v42, %v8586_v25  ;;  %v8607_v44 = vld [vmem:[%s19214_s2 + $0xf30] sm:$0xff]  ;;  %v8609_v25 = vld [vmem:[%s19214_s2 + $0xf40] sm:$0xff] }
 0x552   :  { %10357 = vmatprep.subr.bf16.mxu0 %v10356_v6  ;;  %10421 = vmatprep.subr.bf16.mxu1 %v10420_v4  ;;  %v8589_v6 = vld [vmem:[%s19214_s2 + $0xea0] sm:$0xff]  ;;  %v10436_v14 = vpack.c.bf16 %v8592_v32, %v8588_v22  ;;  %v10446_v63 = vpack.c.bf16 %v8607_v44, %v8603_v0  ;;  %v8611_v32 = vld [vmem:[%s19214_s2 + $0xf50] sm:$0xff]  ;;  %v8638_v44 = vld [vmem:[%s19214_s2 + $0x1028] sm:$0xff] }
 0x553   :  { %3948 = vmatmul.mubr.f32.gmra.mrb[80].mxu0 %v3768_v11  ;;  %4121 = vmatmul.mubr.f32.gmra.mrb[80].mxu1 %v3768_v11  ;;  %v3780_v4 = vsel %vm2321_vm8, %v3775_v15, %v3779_v23  ;;  %v10374_v39 = vpack.c.bf16 %v8589_v6, %v8585_v5  ;;  %v10438_v11 = vpack.c.bf16 %v8591_v52, %v8587_v53  ;;  %v16175_v5 = vld [vmem:[#allocation2 + $0xf8] sm:$0xff] }
 0x554   :  { %3953 = vmatprep.mubr.f32.mxu0 %v3774_v55  ;;  %4126 = vmatprep.mubr.f32.mxu1 %v3774_v55  ;;  %v8599_v55 = vld [vmem:[%s19214_s2 + $0xef0] sm:$0xff]  ;;  %v3801_v6 = vrot.slane %v16175_v5, 2 }
 0x555   :  { %10359 = vmatpush1.bf16.msra.mxu0 %v10358_v54  ;;  %10423 = vmatpush1.bf16.msra.mxu1 %v10422_v38  ;;  %v8600_v54 = vld [vmem:[%s19214_s2 + $0xef8] sm:$0xff]  ;;  %v16091_v38 = vld [vmem:[#allocation2 + $0xc8] sm:$0xff] }
 0x556   :  { %10361 = vmatprep.subr.bf16.mxu0 %v10360_v16  ;;  %10425 = vmatprep.subr.bf16.mxu1 %v10424_v34  ;;  %v3789_v45 = vrot.slane %v16091_v38, 2  ;;  %v8597_v16 = vld [vmem:[%s19214_s2 + $0xee0] sm:$0xff]  ;;  %v3784_v34 = vsel %vm2321_vm8, %v3779_v23, %v3783_v7  ;;  %v10440_v20 = vpack.c.bf16 %v8600_v54, %v8596_v28  ;;  %v8615_v23 = vld [vmem:[%s19214_s2 + $0xf70] sm:$0xff] }
 0x557   :  { %3954 = vmatmul.mubr.f32.gmra.mrb[82].mxu0 %v3772_v17  ;;  %4127 = vmatmul.mubr.f32.gmra.mrb[82].mxu1 %v3772_v17  ;;  %v3787_v17 = vrot.slane %v16123_v3, 2  ;;  %v10378_v15 = vpack.c.bf16 %v8597_v16, %v8593_v19  ;;  %v10450_v10 = vpack.c.bf16 %v8615_v23, %v8611_v32  ;;  %v16197_v54 = vld [vmem:[#allocation2 + $0xf0] sm:$0xff]  ;;  %v4265_v23 = vld [vmem:[#allocation2] sm:$0xf8] }
 0x558   :  { %3959 = vmatprep.mubr.f32.mxu0 %v3778_v48  ;;  %4132 = vmatprep.mubr.f32.mxu1 %v3778_v48  ;;  %v3790_v37 = vsel %vm2321_vm8, %v3785_v49, %v3789_v45  ;;  %v3791_v48 = vrot.slane %v16133_v24, 2  ;;  %v8619_v19 = vld [vmem:[%s19214_s2 + $0xf90] sm:$0xff] }
 0x559   :  { %10363 = vmatpush1.bf16.msra.mxu0 %v10362_v56  ;;  %10427 = vmatpush1.bf16.msra.mxu1 %v10426_v57  ;;  %v8606_v56 = vld [vmem:[%s19214_s2 + $0xf28] sm:$0xff]  ;;  %v8604_v57 = vld [vmem:[%s19214_s2 + $0xf18] sm:$0xff]  ;;  %v3788_v18 = vsel %vm2321_vm8, %v3783_v7, %v3787_v17  ;;  %v8623_v16 = vld [vmem:[%s19214_s2 + $0xfb0] sm:$0xff] }
 0x55a   :  { %10365 = vmatprep.subr.bf16.mxu0 %v10364_v29  ;;  %10429 = vmatprep.subr.bf16.mxu1 %v10428_v35  ;;  %v10442_v29 = vpack.c.bf16 %v8599_v55, %v8595_v46  ;;  %v8601_v35 = vld [vmem:[%s19214_s2 + $0xf00] sm:$0xff]  ;;  %v10380_v12 = vpack.c.bf16 %v8606_v56, %v8602_v36  ;;  %v10444_v13 = vpack.c.bf16 %v8608_v40, %v8604_v57  ;;  %v8620_v7 = vld [vmem:[%s19214_s2 + $0xf98] sm:$0xff]  ;;  %v3606_v56 = vld [vmem:[#allocation2 + $0x110] sm:$0x3f] }
 0x55b   :  { %3960 = vmatmul.mubr.f32.gmra.mrb[84].mxu0 %v3776_v21  ;;  %4133 = vmatmul.mubr.f32.gmra.mrb[84].mxu1 %v3776_v21  ;;  %v8616_v21 = vld [vmem:[%s19214_s2 + $0xf78] sm:$0xff]  ;;  %v10382_v59 = vpack.c.bf16 %v8605_v1, %v8601_v35  ;;  %v3792_v49 = vsel %vm2321_vm8, %v3787_v17, %v3791_v48  ;;  %v10454_v40 = vpack.c.bf16 %v8623_v16, %v8619_v19  ;;  %v8625_v17 = vld [vmem:[%s19214_s2 + $0xfc0] sm:$0xff] }
 0x55c   :  { %3965 = vmatprep.mubr.f32.mxu0 %v3782_v8  ;;  %4138 = vmatprep.mubr.f32.mxu1 %v3782_v8  ;;  %v8613_v8 = vld [vmem:[%s19214_s2 + $0xf60] sm:$0xff]  ;;  %v10448_v22 = vpack.c.bf16 %v8616_v21, %v8612_v60  ;;  %v8628_v46 = vld [vmem:[%s19214_s2 + $0xfd8] sm:$0xff] }
 0x55d   :  { %10367 = vmatpush1.bf16.msra.mxu0 %v10366_v9  ;;  %10431 = vmatpush1.bf16.msra.mxu1 %v10430_v27  ;;  %v8610_v9 = vld [vmem:[%s19214_s2 + $0xf48] sm:$0xff]  ;;  %v3794_v27 = vsel %vm2321_vm8, %v3789_v45, %v3793_v26  ;;  %v10386_v52 = vpack.c.bf16 %v8613_v8, %v8609_v25  ;;  %v3799_v45 = vrot.slane %v16197_v54, 2  ;;  %v8632_v55 = vld [vmem:[%s19214_s2 + $0xff8] sm:$0xff] }
 0x55e   :  { %10369 = vmatprep.subr.bf16.mxu0 %v10368_v58  ;;  %10433 = vmatprep.subr.bf16.mxu1 %v10432_v51  ;;  %v16155_v58 = vld [vmem:[#allocation2 + $0xe8] sm:$0xff]  ;;  %v10384_v42 = vpack.c.bf16 %v8614_v62, %v8610_v9  ;;  %v3607_v36 = vld [vmem:[#allocation2 + $0x118] sm:$0x3f]  ;;  %v10456_v1 = vpack.c.bf16 %v8632_v55, %v8628_v46  ;;  %v16248_v62 = vld [vmem:[#allocation2 + $0x100] sm:$0xff] }
 0x55f   :  { %3966 = vmatmul.mubr.f32.gmra.mrb[86].mxu0 %v3780_v4  ;;  %4139 = vmatmul.mubr.f32.gmra.mrb[86].mxu1 %v3780_v4  ;;  %v3797_v51 = vrot.slane %v16155_v58, 2  ;;  %v8622_v4 = vld [vmem:[%s19214_s2 + $0xfa8] sm:$0xff]  ;;  %v3809_v0 = vrot.slane %v3607_v36, 2  ;;  %v8636_v9 = vld [vmem:[%s19214_s2 + $0x1018] sm:$0xff]  ;;  %v3803_v60 = vrot.slane %v16248_v62, 2  ;;  %v16295_v55 = vld [vmem:[#allocation2 + $0x20] sm:$0xff] }
 0x560   :  { %3971 = vmatprep.mubr.f32.mxu0 %v3786_v43  ;;  %4144 = vmatprep.mubr.f32.mxu1 %v3786_v43  ;;  %v8617_v43 = vld [vmem:[%s19214_s2 + $0xf80] sm:$0xff]  ;;  %v4409_v36 = vrot.slane %v16295_v55, 3 }
 0x561   :  { %10371 = vmatpush1.bf16.msra.mxu0 %v10370_v30  ;;  %10435 = vmatpush1.bf16.msra.mxu1 %v10434_v50  ;;  %v8618_v30 = vld [vmem:[%s19214_s2 + $0xf88] sm:$0xff]  ;;  %v3798_v50 = vsel %vm2321_vm8, %v3793_v26, %v3797_v51  ;;  %v10390_v57 = vpack.c.bf16 %v8621_v31, %v8617_v43 }
 0x562   :  { %10373 = vmatprep.subr.bf16.mxu0 %v10372_v2  ;;  %10437 = vmatprep.subr.bf16.mxu1 %v10436_v14  ;;  %v8624_v2 = vld [vmem:[%s19214_s2 + $0xfb8] sm:$0xff]  ;;  %v16187_v14 = vld [vmem:[#allocation2 + $0xe0] sm:$0xff]  ;;  %v16273_v43 = vld [vmem:[#allocation2 + $0x28] sm:$0xff] }
 0x563   :  { %3972 = vmatmul.mubr.f32.gmra.mrb[88].mxu0 %v3784_v34  ;;  %4145 = vmatmul.mubr.f32.gmra.mrb[88].mxu1 %v3784_v34  ;;  %v3795_v53 = vrot.slane %v16187_v14, 2  ;;  %v8626_v34 = vld [vmem:[%s19214_s2 + $0xfc8] sm:$0xff]  ;;  %v4411_v31 = vrot.slane %v16273_v43, 3 }
 0x564   :  { %3977 = vmatprep.mubr.f32.mxu0 %v3790_v37  ;;  %4150 = vmatprep.mubr.f32.mxu1 %v3790_v37  ;;  %v16219_v37 = vld [vmem:[#allocation2 + $0x108] sm:$0xff] }
 0x565   :  { %10375 = vmatpush1.bf16.msra.mxu0 %v10374_v39  ;;  %10439 = vmatpush1.bf16.msra.mxu1 %v10438_v11  ;;  %v3796_v28 = vsel %vm2321_vm8, %v3791_v48, %v3795_v53  ;;  %v10388_v39 = vpack.c.bf16 %v8622_v4, %v8618_v30  ;;  %v10452_v11 = vpack.c.bf16 %v8624_v2, %v8620_v7  ;;  %v3805_v26 = vrot.slane %v16219_v37, 2  ;;  %v8631_v48 = vld [vmem:[%s19214_s2 + $0xff0] sm:$0xff]  ;;  %v16254_v30 = vld [vmem:[#allocation2 + $0x18] sm:$0xff]  ;;  %v8637_v4 = vld [vmem:[%s19214_s2 + $0x1020] sm:$0xff] }
 0x566   :  { %10377 = vmatprep.subr.bf16.mxu0 %v10376_v47  ;;  %10441 = vmatprep.subr.bf16.mxu1 %v10440_v20  ;;  %v3802_v47 = vsel %vm2321_vm8, %v3797_v51, %v3801_v6  ;;  %v8630_v20 = vld [vmem:[%s19214_s2 + $0xfe8] sm:$0xff]  ;;  %v4403_v7 = vrot.slane %v4265_v23, 3  ;;  %v8635_v2 = vld [vmem:[%s19214_s2 + $0x1010] sm:$0xff] }
 0x567   :  { %3978 = vmatmul.mubr.f32.gmra.mrb[90].mxu0 %v3788_v18  ;;  %4151 = vmatmul.mubr.f32.gmra.mrb[90].mxu1 %v3788_v18  ;;  %v10392_v35 = vpack.c.bf16 %v8630_v20, %v8626_v34  ;;  %v8627_v18 = vld [vmem:[%s19214_s2 + $0xfd0] sm:$0xff]  ;;  %v8645_v20 = vld [vmem:[%s19214_s2 + $0x1060] sm:$0xff] }
 0x568   :  { %3983 = vmatprep.mubr.f32.mxu0 %v3794_v27  ;;  %4156 = vmatprep.mubr.f32.mxu1 %v3794_v27  ;;  %v8640_v27 = vld [vmem:[%s19214_s2 + $0x1038] sm:$0xff]  ;;  %v10458_v51 = vpack.c.bf16 %v8631_v48, %v8627_v18 }
 0x569   :  { %10379 = vmatpush1.bf16.msra.mxu0 %v10378_v15  ;;  %10443 = vmatpush1.bf16.msra.mxu1 %v10442_v29  ;;  %v8629_v15 = vld [vmem:[%s19214_s2 + $0xfe0] sm:$0xff]  ;;  %v3800_v29 = vsel %vm2321_vm8, %v3795_v53, %v3799_v45  ;;  %v10524_v8 = vpack.c.bf16 %v8640_v27, %v8636_v9  ;;  %v8639_v53 = vld [vmem:[%s19214_s2 + $0x1030] sm:$0xff]  ;;  %v16317_v18 = vld [vmem:[#allocation2 + $0x38] sm:$0xff] }
 0x56a   :  { %10381 = vmatprep.subr.bf16.mxu0 %v10380_v12  ;;  %10445 = vmatprep.subr.bf16.mxu1 %v10444_v13  ;;  %v8634_v12 = vld [vmem:[%s19214_s2 + $0x1008] sm:$0xff]  ;;  %v3806_v13 = vsel %vm2321_vm8, %v3801_v6, %v3805_v26  ;;  %v10394_v21 = vpack.c.bf16 %v8629_v15, %v8625_v17  ;;  %v8633_v6 = vld [vmem:[%s19214_s2 + $0x1000] sm:$0xff]  ;;  %v10526_v34 = vpack.c.bf16 %v8639_v53, %v8635_v2  ;;  %v4415_v48 = vrot.slane %v16317_v18, 3 }
 0x56b   :  { %3984 = vmatmul.mubr.f32.gmra.mrb[92].mxu0 %v3792_v49  ;;  %4157 = vmatmul.mubr.f32.gmra.mrb[92].mxu1 %v3792_v49  ;;  %v10460_v25 = vpack.c.bf16 %v8638_v44, %v8634_v12  ;;  %v3810_v49 = vsel %vm2321_vm8, %v3805_v26, %v3809_v0  ;;  %v10462_v16 = vpack.c.bf16 %v8637_v4, %v8633_v6  ;;  %v8650_v17 = vld [vmem:[%s19214_s2 + $0x1088] sm:$0xff]  ;;  %v8653_v44 = vld [vmem:[%s19214_s2 + $0x10a0] sm:$0xff] }
 0x56c   :  { %3989 = vmatprep.mubr.f32.mxu0 %v3798_v50  ;;  %4162 = vmatprep.mubr.f32.mxu1 %v3798_v50  ;;  %v4407_v50 = vrot.slane %v16254_v30, 3  ;;  %v8657_v4 = vld [vmem:[%s19214_s2 + $0x10c0] sm:$0xff] }
 0x56d   :  { %10383 = vmatpush1.bf16.msra.mxu0 %v10382_v59  ;;  %10447 = vmatpush1.bf16.msra.mxu1 %v10446_v63  ;;  %v3804_v59 = vsel %vm2321_vm8, %v3799_v45, %v3803_v60  ;;  %v3807_v63 = vrot.slane %v3606_v56, 2  ;;  %v8644_v45 = vld [vmem:[%s19214_s2 + $0x1058] sm:$0xff]  ;;  %v16359_v53 = vld [vmem:[#allocation2 + $0x40] sm:$0xff] }
 0x56e   :  { %10385 = vmatprep.subr.bf16.mxu0 %v10384_v42  ;;  %10449 = vmatprep.subr.bf16.mxu1 %v10448_v22  ;;  %v4266_v42 = vld [vmem:[#allocation2 + $0x8] sm:$0xf8]  ;;  %v4412_v15 = vsel %vm4402_vm9, %v4407_v50, %v4411_v31 }
 0x56f   :  { %3990 = vmatmul.mubr.f32.gmra.mrb[94].mxu0 %v3796_v28  ;;  %4163 = vmatmul.mubr.f32.gmra.mrb[94].mxu1 %v3796_v28  ;;  %v3808_v22 = vsel %vm2321_vm8, %v3803_v60, %v3807_v63  ;;  %v4406_v32 = vrot.slane %v4266_v42, 3  ;;  %v8646_v28 = vld [vmem:[%s19214_s2 + $0x1068] sm:$0xff]  ;;  %v8660_v42 = vld [vmem:[%s19214_s2 + $0x10d8] sm:$0xff] }
 0x570   :  { %3995 = vmatprep.mubr.f32.mxu0 %v3802_v47  ;;  %4168 = vmatprep.mubr.f32.mxu1 %v3802_v47  ;;  %v8641_v47 = vld [vmem:[%s19214_s2 + $0x1040] sm:$0xff] }
 0x571   :  { %10387 = vmatpush1.bf16.msra.mxu0 %v10386_v52  ;;  %10451 = vmatpush1.bf16.msra.mxu1 %v10450_v10  ;;  %v8642_v52 = vld [vmem:[%s19214_s2 + $0x1048] sm:$0xff]  ;;  %v4408_v10 = vsel %vm4402_vm9, %v4406_v32, %v4407_v50  ;;  %v10466_v12 = vpack.c.bf16 %v8645_v20, %v8641_v47  ;;  %v16349_v32 = vld [vmem:[#allocation2 + $0x30] sm:$0xff]  ;;  %v8672_v47 = vld [vmem:[%s19214_s2 + $0x1138] sm:$0xff] }
 0x572   :  { %10389 = vmatprep.subr.bf16.mxu0 %v10388_v39  ;;  %10453 = vmatprep.subr.bf16.mxu1 %v10452_v11  ;;  %v8648_v39 = vld [vmem:[%s19214_s2 + $0x1078] sm:$0xff]  ;;  %v16285_v11 = vld [vmem:[#allocation2 + $0x10] sm:$0xff]  ;;  %v10464_v26 = vpack.c.bf16 %v8646_v28, %v8642_v52  ;;  %v4413_v23 = vrot.slane %v16349_v32, 3  ;;  %v4417_v52 = vrot.slane %v16359_v53, 3 }
 0x573   :  { %3996 = vmatmul.mubr.f32.gmra.mrb[96].mxu0 %v3800_v29  ;;  %4169 = vmatmul.mubr.f32.gmra.mrb[96].mxu1 %v3800_v29  ;;  %v4404_v19 = vrot.slane %v16285_v11, 3  ;;  %v10528_v56 = vpack.c.bf16 %v8648_v39, %v8644_v45  ;;  %v8654_v29 = vld [vmem:[%s19214_s2 + $0x10a8] sm:$0xff]  ;;  %v8659_v28 = vld [vmem:[%s19214_s2 + $0x10d0] sm:$0xff]  ;;  %v16381_v20 = vld [vmem:[#allocation2 + $0x58] sm:$0xff] }
 0x574   :  { %4001 = vmatprep.mubr.f32.mxu0 %v3806_v13  ;;  %4174 = vmatprep.mubr.f32.mxu1 %v3806_v13  ;;  %v10468_v27 = vpack.c.bf16 %v8654_v29, %v8650_v17  ;;  %v4414_v2 = vsel %vm4402_vm9, %v4409_v36, %v4413_v23  ;;  %v8663_v45 = vld [vmem:[%s19214_s2 + $0x10f0] sm:$0xff]  ;;  %v8666_v39 = vld [vmem:[%s19214_s2 + $0x1108] sm:$0xff] }
 0x575   :  { %10391 = vmatpush1.bf16.msra.mxu0 %v10390_v57  ;;  %10455 = vmatpush1.bf16.msra.mxu1 %v10454_v40  ;;  %v4405_v46 = vsel %vm4402_vm9, %v4403_v7, %v4404_v19  ;;  %v8643_v57 = vld [vmem:[%s19214_s2 + $0x1050] sm:$0xff]  ;;  %v4410_v9 = vsel %vm4402_vm9, %v4404_v19, %v4409_v36  ;;  %v8661_v7 = vld [vmem:[%s19214_s2 + $0x10e0] sm:$0xff] }
 0x576   :  { %10393 = vmatprep.subr.bf16.mxu0 %v10392_v35  ;;  %10457 = vmatprep.subr.bf16.mxu1 %v10456_v1  ;;  %v8647_v40 = vld [vmem:[%s19214_s2 + $0x1070] sm:$0xff]  ;;  %v8652_v35 = vld [vmem:[%s19214_s2 + $0x1098] sm:$0xff]  ;;  %v10474_v36 = vpack.c.bf16 %v8661_v7, %v8657_v4  ;;  %v8682_v4 = vld [vmem:[%s19214_s2 + $0x1188] sm:$0xff] }
 0x577   :  { %4002 = vmatmul.mubr.f32.gmra.mrb[98].mxu0 %v3804_v59  ;;  %4175 = vmatmul.mubr.f32.gmra.mrb[98].mxu1 %v3804_v59  ;;  %v8656_v1 = vld [vmem:[%s19214_s2 + $0x10b8] sm:$0xff]  ;;  %v10530_v13 = vpack.c.bf16 %v8647_v40, %v8643_v57  ;;  %v8658_v59 = vld [vmem:[%s19214_s2 + $0x10c8] sm:$0xff]  ;;  %v8669_v57 = vld [vmem:[%s19214_s2 + $0x1120] sm:$0xff]  ;;  %v4418_v40 = vsel %vm4402_vm9, %v4413_v23, %v4417_v52 }
 0x578   :  { %4007 = vmatprep.mubr.f32.mxu0 %v3810_v49  ;;  %4180 = vmatprep.mubr.f32.mxu1 %v3810_v49  ;;  %v10532_v60 = vpack.c.bf16 %v8656_v1, %v8652_v35  ;;  %v8662_v49 = vld [vmem:[%s19214_s2 + $0x10e8] sm:$0xff]  ;;  %v8667_v29 = vld [vmem:[%s19214_s2 + $0x1110] sm:$0xff] }
 0x579   :  { %10395 = vmatpush1.bf16.msra.mxu0 %v10394_v21  ;;  %10459 = vmatpush1.bf16.msra.mxu1 %v10458_v51  ;;  %v8651_v21 = vld [vmem:[%s19214_s2 + $0x1090] sm:$0xff]  ;;  %v8674_v1 = vld [vmem:[%s19214_s2 + $0x1148] sm:$0xff] }
 0x57a   :  { %10461 = vmatprep.subr.bf16.mxu0 %v10460_v25  ;;  %10525 = vmatprep.subr.bf16.mxu1 %v10524_v8  ;;  %v8655_v51 = vld [vmem:[%s19214_s2 + $0x10b0] sm:$0xff]  ;;  %v16337_v25 = vld [vmem:[#allocation2 + $0x48] sm:$0xff] }
 0x57b   :  { %4008 = vmatmul.mubr.f32.gmra.mrb[100].mxu0 %v3808_v22  ;;  %4181 = vmatmul.mubr.f32.gmra.mrb[100].mxu1 %v3808_v22  ;;  %v4419_v8 = vrot.slane %v16337_v25, 3  ;;  %v8664_v22 = vld [vmem:[%s19214_s2 + $0x10f8] sm:$0xff]  ;;  %v10534_v6 = vpack.c.bf16 %v8655_v51, %v8651_v21  ;;  %v8671_v35 = vld [vmem:[%s19214_s2 + $0x1130] sm:$0xff] }
 0x57c   :  { %4013 = vmatprep.mubr.f32.mxu0 %v3809_v0  ;;  %4186 = vmatprep.mubr.f32.mxu1 %v3809_v0  ;;  %v8649_v0 = vld [vmem:[%s19214_s2 + $0x1080] sm:$0xff]  ;;  %v10542_v51 = vpack.c.bf16 %v8671_v35, %v8667_v29  ;;  %v8692_v29 = vld [vmem:[%s19214_s2 + $0x11d8] sm:$0xff] }
 0x57d   :  { %v10470_v50 = vpack.c.bf16 %v8653_v44, %v8649_v0  ;;  %v4420_v19 = vsel %vm4402_vm9, %v4415_v48, %v4419_v8  ;;  %v8678_v0 = vld [vmem:[%s19214_s2 + $0x1168] sm:$0xff]  ;;  %v8676_v44 = vld [vmem:[%s19214_s2 + $0x1158] sm:$0xff] }
 0x57e   :  { %v8696_v35 = vld [vmem:[%s19214_s2 + $0x11f8] sm:$0xff] }
 0x57f   :  { %4014 = vmatmul.mubr.f32.gmra.mrb[102].mxu0 %v3807_v63  ;;  %4187 = vmatmul.mubr.f32.gmra.mrb[102].mxu1 %v3807_v63  ;;  %v4416_v63 = vsel %vm4402_vm9, %v4411_v31, %v4415_v48  ;;  %v10536_v31 = vpack.c.bf16 %v8664_v22, %v8660_v42  ;;  %v10480_v22 = vpack.c.bf16 %v8678_v0, %v8674_v1  ;;  %v16477_v1 = vld [vmem:[#allocation2 + $0x70] sm:$0xff] }
 0x580   :  { %4573 = vmatprep.mubr.f32.mxu0 %v4408_v10  ;;  %4746 = vmatprep.mubr.f32.mxu1 %v4408_v10  ;;  %v10472_v10 = vpack.c.bf16 %v8662_v49, %v8658_v59  ;;  %v8673_v59 = vld [vmem:[%s19214_s2 + $0x1140] sm:$0xff] }
 0x581   :  { %v16423_v49 = vld [vmem:[#allocation2 + $0x60] sm:$0xff] }
 0x582   :  { %v4425_v42 = vrot.slane %v16423_v49, 3 }
 0x583   :  { %4574 = vmatmul.mubr.f32.vlgmr.msra.gmra.mrb[68].mxu0 %v4405_v46  ;;  %4747 = vmatmul.mubr.f32.vlgmr.msra.gmra.mrb[68].mxu1 %v4405_v46  ;;  %v4423_v46 = vrot.slane %v16381_v20, 3 }
 0x584   :  { %4579 = vmatprep.mubr.f32.mxu0 %v4412_v15  ;;  %4752 = vmatprep.mubr.f32.mxu1 %v4412_v15 }
 0x585   :  { %10463 = vmatpush1.bf16.msra.mxu0 %v10462_v16  ;;  %10527 = vmatpush1.bf16.msra.mxu1 %v10526_v34  ;;  %v8670_v16 = vld [vmem:[%s19214_s2 + $0x1128] sm:$0xff]  ;;  %v8668_v34 = vld [vmem:[%s19214_s2 + $0x1118] sm:$0xff]  ;;  %v4424_v48 = vsel %vm4402_vm9, %v4419_v8, %v4423_v46 }
 0x586   :  { %10465 = vmatprep.subr.bf16.mxu0 %v10464_v26  ;;  %10529 = vmatprep.subr.bf16.mxu1 %v10528_v56  ;;  %v10538_v26 = vpack.c.bf16 %v8663_v45, %v8659_v28  ;;  %v8665_v56 = vld [vmem:[%s19214_s2 + $0x1100] sm:$0xff]  ;;  %v10476_v17 = vpack.c.bf16 %v8670_v16, %v8666_v39  ;;  %v10540_v15 = vpack.c.bf16 %v8672_v47, %v8668_v34 }
 0x587   :  { %4580 = vmatmul.mubr.f32.gmra.mrb[70].mxu0 %v4410_v9  ;;  %4753 = vmatmul.mubr.f32.gmra.mrb[70].mxu1 %v4410_v9  ;;  %v8680_v9 = vld [vmem:[%s19214_s2 + $0x1178] sm:$0xff]  ;;  %v10478_v21 = vpack.c.bf16 %v8669_v57, %v8665_v56  ;;  %v8685_v16 = vld [vmem:[%s19214_s2 + $0x11a0] sm:$0xff]  ;;  %v8690_v56 = vld [vmem:[%s19214_s2 + $0x11c8] sm:$0xff] }
 0x588   :  { %4585 = vmatprep.mubr.f32.mxu0 %v4416_v63  ;;  %4758 = vmatprep.mubr.f32.mxu1 %v4416_v63  ;;  %v8677_v63 = vld [vmem:[%s19214_s2 + $0x1160] sm:$0xff]  ;;  %v10544_v23 = vpack.c.bf16 %v8680_v9, %v8676_v44 }
 0x589   :  { %10467 = vmatpush1.bf16.msra.mxu0 %v10466_v12  ;;  %10531 = vmatpush1.bf16.msra.mxu1 %v10530_v13  ;;  %v16401_v12 = vld [vmem:[#allocation2 + $0x68] sm:$0xff]  ;;  %v10482_v45 = vpack.c.bf16 %v8677_v63, %v8673_v59  ;;  %v8689_v44 = vld [vmem:[%s19214_s2 + $0x11c0] sm:$0xff]  ;;  %v10552_v63 = vpack.c.bf16 %v8696_v35, %v8692_v29  ;;  %v8712_v29 = vld [vmem:[%s19214_s2 + $0x1278] sm:$0xff] }
 0x58a   :  { %10469 = vmatprep.subr.bf16.mxu0 %v10468_v27  ;;  %10533 = vmatprep.subr.bf16.mxu1 %v10532_v60  ;;  %v4427_v13 = vrot.slane %v16401_v12, 3  ;;  %v16413_v27 = vld [vmem:[#allocation2 + $0x50] sm:$0xff]  ;;  %v8693_v9 = vld [vmem:[%s19214_s2 + $0x11e0] sm:$0xff]  ;;  %v16541_v35 = vld [vmem:[#allocation2 + $0xa8] sm:$0xff] }
 0x58b   :  { %4586 = vmatmul.mubr.f32.gmra.mrb[72].mxu0 %v4414_v2  ;;  %4759 = vmatmul.mubr.f32.gmra.mrb[72].mxu1 %v4414_v2  ;;  %v4421_v60 = vrot.slane %v16413_v27, 3  ;;  %v8686_v2 = vld [vmem:[%s19214_s2 + $0x11a8] sm:$0xff] }
 0x58c   :  { %4591 = vmatprep.mubr.f32.mxu0 %v4420_v19  ;;  %4764 = vmatprep.mubr.f32.mxu1 %v4420_v19  ;;  %v4428_v7 = vsel %vm4402_vm9, %v4423_v46, %v4427_v13  ;;  %v8681_v19 = vld [vmem:[%s19214_s2 + $0x1180] sm:$0xff]  ;;  %v10484_v47 = vpack.c.bf16 %v8686_v2, %v8682_v4  ;;  %v8702_v4 = vld [vmem:[%s19214_s2 + $0x1228] sm:$0xff]  ;;  %v8704_v2 = vld [vmem:[%s19214_s2 + $0x1238] sm:$0xff] }
 0x58d   :  { %10471 = vmatpush1.bf16.msra.mxu0 %v10470_v50  ;;  %10535 = vmatpush1.bf16.msra.mxu1 %v10534_v6  ;;  %v4422_v8 = vsel %vm4402_vm9, %v4417_v52, %v4421_v60  ;;  %v8675_v50 = vld [vmem:[%s19214_s2 + $0x1150] sm:$0xff]  ;;  %v8684_v52 = vld [vmem:[%s19214_s2 + $0x1198] sm:$0xff]  ;;  %v4426_v34 = vsel %vm4402_vm9, %v4421_v60, %v4425_v42 }
 0x58e   :  { %10473 = vmatprep.subr.bf16.mxu0 %v10472_v10  ;;  %10537 = vmatprep.subr.bf16.mxu1 %v10536_v31  ;;  %v8679_v6 = vld [vmem:[%s19214_s2 + $0x1170] sm:$0xff]  ;;  %v8688_v10 = vld [vmem:[%s19214_s2 + $0x11b8] sm:$0xff] }
 0x58f   :  { %4592 = vmatmul.mubr.f32.gmra.mrb[74].mxu0 %v4418_v40  ;;  %4765 = vmatmul.mubr.f32.gmra.mrb[74].mxu1 %v4418_v40  ;;  %v16445_v31 = vld [vmem:[#allocation2 + $0x78] sm:$0xff]  ;;  %v10546_v39 = vpack.c.bf16 %v8679_v6, %v8675_v50  ;;  %v10548_v46 = vpack.c.bf16 %v8688_v10, %v8684_v52  ;;  %v16465_v40 = vld [vmem:[#allocation2 + $0x88] sm:$0xff]  ;;  %v10490_v52 = vpack.c.bf16 %v8693_v9, %v8689_v44  ;;  %v8709_v44 = vld [vmem:[%s19214_s2 + $0x1260] sm:$0xff] }
 0x590   :  { %4597 = vmatprep.mubr.f32.mxu0 %v4424_v48  ;;  %4770 = vmatprep.mubr.f32.mxu1 %v4424_v48  ;;  %v4431_v28 = vrot.slane %v16445_v31, 3  ;;  %v4429_v48 = vrot.slane %v16477_v1, 3  ;;  %v16500_v50 = vld [vmem:[#allocation2 + $0x98] sm:$0xff] }
 0x591   :  { %10475 = vmatpush1.bf16.msra.mxu0 %v10474_v36  ;;  %10539 = vmatpush1.bf16.msra.mxu1 %v10538_v26  ;;  %v8683_v36 = vld [vmem:[%s19214_s2 + $0x1190] sm:$0xff]  ;;  %v4439_v6 = vrot.slane %v16500_v50, 3 }
 0x592   :  { %10477 = vmatprep.subr.bf16.mxu0 %v10476_v17  ;;  %10541 = vmatprep.subr.bf16.mxu1 %v10540_v15  ;;  %v8687_v26 = vld [vmem:[%s19214_s2 + $0x11b0] sm:$0xff]  ;;  %v4432_v57 = vsel %vm4402_vm9, %v4427_v13, %v4431_v28  ;;  %v4435_v17 = vrot.slane %v16465_v40, 3  ;;  %v8694_v15 = vld [vmem:[%s19214_s2 + $0x11e8] sm:$0xff]  ;;  %v10486_v13 = vpack.c.bf16 %v8685_v16, %v8681_v19  ;;  %v4430_v60 = vsel %vm4402_vm9, %v4425_v42, %v4429_v48 }
 0x593   :  { %4598 = vmatmul.mubr.f32.gmra.mrb[76].mxu0 %v4422_v8  ;;  %4771 = vmatmul.mubr.f32.gmra.mrb[76].mxu1 %v4422_v8  ;;  %v10550_v0 = vpack.c.bf16 %v8687_v26, %v8683_v36  ;;  %v10488_v59 = vpack.c.bf16 %v8694_v15, %v8690_v56  ;;  %v8691_v8 = vld [vmem:[%s19214_s2 + $0x11d0] sm:$0xff]  ;;  %v8698_v42 = vld [vmem:[%s19214_s2 + $0x1208] sm:$0xff]  ;;  %v8708_v15 = vld [vmem:[%s19214_s2 + $0x1258] sm:$0xff] }
 0x594   :  { %4603 = vmatprep.mubr.f32.mxu0 %v4428_v7  ;;  %4776 = vmatprep.mubr.f32.mxu1 %v4428_v7  ;;  %v8700_v7 = vld [vmem:[%s19214_s2 + $0x1218] sm:$0xff]  ;;  %v16519_v19 = vld [vmem:[#allocation2 + $0x90] sm:$0xff]  ;;  %v8706_v26 = vld [vmem:[%s19214_s2 + $0x1248] sm:$0xff]  ;;  %v4440_v56 = vsel %vm4402_vm9, %v4435_v17, %v4439_v6 }
 0x595   :  { %10479 = vmatpush1.bf16.msra.mxu0 %v10478_v21  ;;  %10543 = vmatpush1.bf16.msra.mxu1 %v10542_v51  ;;  %v16487_v21 = vld [vmem:[#allocation2 + $0x80] sm:$0xff]  ;;  %v4437_v16 = vrot.slane %v16519_v19, 3  ;;  %v8703_v36 = vld [vmem:[%s19214_s2 + $0x1230] sm:$0xff] }
 0x596   :  { %10481 = vmatprep.subr.bf16.mxu0 %v10480_v22  ;;  %10545 = vmatprep.subr.bf16.mxu1 %v10544_v23  ;;  %v4433_v51 = vrot.slane %v16487_v21, 3  ;;  %v8695_v22 = vld [vmem:[%s19214_s2 + $0x11f0] sm:$0xff]  ;;  %v4436_v23 = vsel %vm4402_vm9, %v4431_v28, %v4435_v17  ;;  %v8697_v28 = vld [vmem:[%s19214_s2 + $0x1200] sm:$0xff] }
 0x597   :  { %4604 = vmatmul.mubr.f32.gmra.mrb[78].mxu0 %v4426_v34  ;;  %4777 = vmatmul.mubr.f32.gmra.mrb[78].mxu1 %v4426_v34  ;;  %v10554_v10 = vpack.c.bf16 %v8695_v22, %v8691_v8  ;;  %v10492_v34 = vpack.c.bf16 %v8702_v4, %v8698_v42  ;;  %v8711_v8 = vld [vmem:[%s19214_s2 + $0x1270] sm:$0xff]  ;;  %v8714_v22 = vld [vmem:[%s19214_s2 + $0x1288] sm:$0xff]  ;;  %v4447_v42 = vrot.slane %v16049_v33, 3  ;;  %v8716_v4 = vld [vmem:[%s19214_s2 + $0x1298] sm:$0xff] }
 0x598   :  { %4609 = vmatprep.mubr.f32.mxu0 %v4432_v57  ;;  %4782 = vmatprep.mubr.f32.mxu1 %v4432_v57  ;;  %v8710_v57 = vld [vmem:[%s19214_s2 + $0x1268] sm:$0xff]  ;;  %v4438_v9 = vsel %vm4402_vm9, %v4433_v51, %v4437_v16 }
 0x599   :  { %10483 = vmatpush1.bf16.msra.mxu0 %v10482_v45  ;;  %10547 = vmatpush1.bf16.msra.mxu1 %v10546_v39  ;;  %v8701_v45 = vld [vmem:[%s19214_s2 + $0x1220] sm:$0xff]  ;;  %v4434_v39 = vsel %vm4402_vm9, %v4429_v48, %v4433_v51  ;;  %v4443_v48 = vrot.slane %v16541_v35, 3 }
 0x59a   :  { %10485 = vmatprep.subr.bf16.mxu0 %v10484_v47  ;;  %10549 = vmatprep.subr.bf16.mxu1 %v10548_v46  ;;  %v10556_v47 = vpack.c.bf16 %v8704_v2, %v8700_v7  ;;  %v8699_v46 = vld [vmem:[%s19214_s2 + $0x1210] sm:$0xff]  ;;  %v10494_v17 = vpack.c.bf16 %v8701_v45, %v8697_v28  ;;  %v8720_v7 = vld [vmem:[%s19214_s2 + $0x12b8] sm:$0xff]  ;;  %v16571_v2 = vld [vmem:[#allocation2 + $0xa0] sm:$0xff] }
 0x59b   :  { %4610 = vmatmul.mubr.f32.gmra.mrb[80].mxu0 %v4430_v60  ;;  %4783 = vmatmul.mubr.f32.gmra.mrb[80].mxu1 %v4430_v60  ;;  %v10496_v60 = vpack.c.bf16 %v8710_v57, %v8706_v26  ;;  %v4444_v51 = vsel %vm4402_vm9, %v4439_v6, %v4443_v48  ;;  %v4441_v6 = vrot.slane %v16571_v2, 3  ;;  %v8717_v28 = vld [vmem:[%s19214_s2 + $0x12a0] sm:$0xff]  ;;  %v8722_v26 = vld [vmem:[%s19214_s2 + $0x12c8] sm:$0xff]  ;;  %v8728_v57 = vld [vmem:[%s19214_s2 + $0x12f8] sm:$0xff] }
 0x59c   :  { %4615 = vmatprep.mubr.f32.mxu0 %v4436_v23  ;;  %4788 = vmatprep.mubr.f32.mxu1 %v4436_v23  ;;  %v8718_v23 = vld [vmem:[%s19214_s2 + $0x12a8] sm:$0xff] }
 0x59d   :  { %10487 = vmatpush1.bf16.msra.mxu0 %v10486_v13  ;;  %10551 = vmatpush1.bf16.msra.mxu1 %v10550_v0  ;;  %v10558_v13 = vpack.c.bf16 %v8703_v36, %v8699_v46  ;;  %v8705_v0 = vld [vmem:[%s19214_s2 + $0x1240] sm:$0xff]  ;;  %v4442_v45 = vsel %vm4402_vm9, %v4437_v16, %v4441_v6  ;;  %v8715_v46 = vld [vmem:[%s19214_s2 + $0x1290] sm:$0xff]  ;;  %v8726_v16 = vld [vmem:[%s19214_s2 + $0x12e8] sm:$0xff] }
 0x59e   :  { %10489 = vmatprep.subr.bf16.mxu0 %v10488_v59  ;;  %10553 = vmatprep.subr.bf16.mxu1 %v10552_v63  ;;  %v10560_v59 = vpack.c.bf16 %v8712_v29, %v8708_v15  ;;  %v8707_v63 = vld [vmem:[%s19214_s2 + $0x1250] sm:$0xff]  ;;  %v10498_v33 = vpack.c.bf16 %v8709_v44, %v8705_v0  ;;  %v4451_v15 = vrot.slane %v16091_v38, 3  ;;  %v10504_v44 = vpack.c.bf16 %v8726_v16, %v8722_v26  ;;  %v8737_v16 = vld [vmem:[%s19214_s2 + $0x1340] sm:$0xff] }
 0x59f   :  { %4616 = vmatmul.mubr.f32.gmra.mrb[82].mxu0 %v4434_v39  ;;  %4789 = vmatmul.mubr.f32.gmra.mrb[82].mxu1 %v4434_v39  ;;  %v4445_v39 = vrot.slane %v16069_v61, 3  ;;  %v8719_v36 = vld [vmem:[%s19214_s2 + $0x12b0] sm:$0xff]  ;;  %v4448_v61 = vsel %vm4402_vm9, %v4443_v48, %v4447_v42 }
 0x5a0   :  { %4621 = vmatprep.mubr.f32.mxu0 %v4440_v56  ;;  %4794 = vmatprep.mubr.f32.mxu1 %v4440_v56  ;;  %v8724_v56 = vld [vmem:[%s19214_s2 + $0x12d8] sm:$0xff]  ;;  %v10566_v48 = vpack.c.bf16 %v8719_v36, %v8715_v46  ;;  %v8723_v38 = vld [vmem:[%s19214_s2 + $0x12d0] sm:$0xff]  ;;  %v4459_v36 = vrot.slane %v16155_v58, 3 }
 0x5a1   :  { %10491 = vmatpush1.bf16.msra.mxu0 %v10490_v52  ;;  %10555 = vmatpush1.bf16.msra.mxu1 %v10554_v10  ;;  %v10562_v52 = vpack.c.bf16 %v8711_v8, %v8707_v63  ;;  %v8713_v10 = vld [vmem:[%s19214_s2 + $0x1280] sm:$0xff]  ;;  %v4446_v0 = vsel %vm4402_vm9, %v4441_v6, %v4445_v39  ;;  %v4452_v63 = vsel %vm4402_vm9, %v4447_v42, %v4451_v15  ;;  %v4455_v8 = vrot.slane %v16111_v41, 3  ;;  %v8744_v46 = vld [vmem:[%s19214_s2 + $0x1378] sm:$0xff]  ;;  %v8739_v58 = vld [vmem:[%s19214_s2 + $0x1350] sm:$0xff] }
 0x5a2   :  { %10493 = vmatprep.subr.bf16.mxu0 %v10492_v34  ;;  %10557 = vmatprep.subr.bf16.mxu1 %v10556_v47  ;;  %v10500_v34 = vpack.c.bf16 %v8718_v23, %v8714_v22  ;;  %v10564_v47 = vpack.c.bf16 %v8720_v7, %v8716_v4  ;;  %v10502_v29 = vpack.c.bf16 %v8717_v28, %v8713_v10  ;;  %v8734_v22 = vld [vmem:[%s19214_s2 + $0x1328] sm:$0xff]  ;;  %v8736_v23 = vld [vmem:[%s19214_s2 + $0x1338] sm:$0xff]  ;;  %v4449_v4 = vrot.slane %v16123_v3, 3  ;;  %v8729_v7 = vld [vmem:[%s19214_s2 + $0x1300] sm:$0xff] }
 0x5a3   :  { %4622 = vmatmul.mubr.f32.gmra.mrb[84].mxu0 %v4438_v9  ;;  %4795 = vmatmul.mubr.f32.gmra.mrb[84].mxu1 %v4438_v9  ;;  %v10568_v9 = vpack.c.bf16 %v8728_v57, %v8724_v56  ;;  %v8733_v6 = vld [vmem:[%s19214_s2 + $0x1320] sm:$0xff]  ;;  %v8731_v28 = vld [vmem:[%s19214_s2 + $0x1310] sm:$0xff] }
 0x5a4   :  { %4627 = vmatprep.mubr.f32.mxu0 %v4444_v51  ;;  %4800 = vmatprep.mubr.f32.mxu1 %v4444_v51  ;;  %v8732_v51 = vld [vmem:[%s19214_s2 + $0x1318] sm:$0xff]  ;;  %v10510_v26 = vpack.c.bf16 %v8733_v6, %v8729_v7  ;;  %v8741_v56 = vld [vmem:[%s19214_s2 + $0x1360] sm:$0xff]  ;;  %v8758_v7 = vld [vmem:[%s19214_s2 + $0x13e8] sm:$0xff] }
 0x5a5   :  { %10495 = vmatpush1.bf16.msra.mxu0 %v10494_v17  ;;  %10559 = vmatpush1.bf16.msra.mxu1 %v10558_v13  ;;  %v8721_v17 = vld [vmem:[%s19214_s2 + $0x12c0] sm:$0xff]  ;;  %v10572_v3 = vpack.c.bf16 %v8736_v23, %v8732_v51  ;;  %v4461_v51 = vrot.slane %v16197_v54, 3  ;;  %v8756_v6 = vld [vmem:[%s19214_s2 + $0x13d8] sm:$0xff] }
 0x5a6   :  { %10497 = vmatprep.subr.bf16.mxu0 %v10496_v60  ;;  %10561 = vmatprep.subr.bf16.mxu1 %v10560_v59  ;;  %v8725_v13 = vld [vmem:[%s19214_s2 + $0x12e0] sm:$0xff]  ;;  %v8727_v60 = vld [vmem:[%s19214_s2 + $0x12f0] sm:$0xff]  ;;  %v8730_v59 = vld [vmem:[%s19214_s2 + $0x1308] sm:$0xff] }
 0x5a7   :  { %4628 = vmatmul.mubr.f32.gmra.mrb[86].mxu0 %v4442_v45  ;;  %4801 = vmatmul.mubr.f32.gmra.mrb[86].mxu1 %v4442_v45  ;;  %v10506_v42 = vpack.c.bf16 %v8725_v13, %v8721_v17  ;;  %v10570_v41 = vpack.c.bf16 %v8727_v60, %v8723_v38  ;;  %v10508_v10 = vpack.c.bf16 %v8734_v22, %v8730_v59  ;;  %v8735_v45 = vld [vmem:[%s19214_s2 + $0x1330] sm:$0xff]  ;;  %v8746_v17 = vld [vmem:[%s19214_s2 + $0x1388] sm:$0xff]  ;;  %v8752_v38 = vld [vmem:[%s19214_s2 + $0x13b8] sm:$0xff]  ;;  %v4457_v60 = vrot.slane %v16187_v14, 3 }
 0x5a8   :  { %4633 = vmatprep.mubr.f32.mxu0 %v4448_v61  ;;  %4806 = vmatprep.mubr.f32.mxu1 %v4448_v61  ;;  %v10574_v61 = vpack.c.bf16 %v8735_v45, %v8731_v28  ;;  %v4460_v13 = vsel %vm4402_vm9, %v4455_v8, %v4459_v36  ;;  %v10514_v59 = vpack.c.bf16 %v8741_v56, %v8737_v16  ;;  %v8753_v45 = vld [vmem:[%s19214_s2 + $0x13c0] sm:$0xff]  ;;  %v4465_v16 = vrot.slane %v16248_v62, 3 }
 0x5a9   :  { %10499 = vmatpush1.bf16.msra.mxu0 %v10498_v33  ;;  %10563 = vmatpush1.bf16.msra.mxu1 %v10562_v52  ;;  %v4450_v33 = vsel %vm4402_vm9, %v4445_v39, %v4449_v4  ;;  %v4453_v52 = vrot.slane %v16133_v24, 3  ;;  %v4456_v24 = vsel %vm4402_vm9, %v4451_v15, %v4455_v8  ;;  %v8742_v39 = vld [vmem:[%s19214_s2 + $0x1368] sm:$0xff]  ;;  %v8749_v8 = vld [vmem:[%s19214_s2 + $0x13a0] sm:$0xff] }
 0x5aa   :  { %10501 = vmatprep.subr.bf16.mxu0 %v10500_v34  ;;  %10565 = vmatprep.subr.bf16.mxu1 %v10564_v47  ;;  %v8738_v34 = vld [vmem:[%s19214_s2 + $0x1348] sm:$0xff]  ;;  %v8740_v47 = vld [vmem:[%s19214_s2 + $0x1358] sm:$0xff] }
 0x5ab   :  { %4634 = vmatmul.mubr.f32.gmra.mrb[88].mxu0 %v4446_v0  ;;  %4807 = vmatmul.mubr.f32.gmra.mrb[88].mxu1 %v4446_v0  ;;  %v4454_v57 = vsel %vm4402_vm9, %v4449_v4, %v4453_v52  ;;  %v10512_v15 = vpack.c.bf16 %v8742_v39, %v8738_v34  ;;  %v4463_v0 = vrot.slane %v16175_v5, 3  ;;  %v4458_v22 = vsel %vm4402_vm9, %v4453_v52, %v4457_v60  ;;  %v8747_v4 = vld [vmem:[%s19214_s2 + $0x1390] sm:$0xff]  ;;  %v4268_v52 = vld [vmem:[#allocation2 + $0x118] sm:$0x7f] }
 0x5ac   :  { %4639 = vmatprep.mubr.f32.mxu0 %v4452_v63  ;;  %4812 = vmatprep.mubr.f32.mxu1 %v4452_v63  ;;  %v8745_v63 = vld [vmem:[%s19214_s2 + $0x1380] sm:$0xff]  ;;  %v4462_v34 = vsel %vm4402_vm9, %v4457_v60, %v4461_v51  ;;  %v5065_v60 = vrot.slane %v16285_v11, 4  ;;  %v5080_v11 = vrot.slane %v16337_v25, 4 }
 0x5ad   :  { %10503 = vmatpush1.bf16.msra.mxu0 %v10502_v29  ;;  %10567 = vmatpush1.bf16.msra.mxu1 %v10566_v48  ;;  %v10576_v29 = vpack.c.bf16 %v8744_v46, %v8740_v47  ;;  %v8743_v48 = vld [vmem:[%s19214_s2 + $0x1370] sm:$0xff]  ;;  %v4464_v54 = vsel %vm4402_vm9, %v4459_v36, %v4463_v0  ;;  %v8757_v47 = vld [vmem:[%s19214_s2 + $0x13e0] sm:$0xff] }
 0x5ae   :  { %10505 = vmatprep.subr.bf16.mxu0 %v10504_v44  ;;  %10569 = vmatprep.subr.bf16.mxu1 %v10568_v9  ;;  %v8750_v44 = vld [vmem:[%s19214_s2 + $0x13a8] sm:$0xff]  ;;  %v8748_v9 = vld [vmem:[%s19214_s2 + $0x1398] sm:$0xff]  ;;  %v10578_v5 = vpack.c.bf16 %v8743_v48, %v8739_v58  ;;  %v8759_v46 = vld [vmem:[%s19214_s2 + $0x13f0] sm:$0xff]  ;;  %v10522_v56 = vpack.c.bf16 %v8757_v47, %v8753_v45 }
 0x5af   :  { %4640 = vmatmul.mubr.f32.gmra.mrb[90].mxu0 %v4450_v33  ;;  %4813 = vmatmul.mubr.f32.gmra.mrb[90].mxu1 %v4450_v33  ;;  %v10516_v23 = vpack.c.bf16 %v8750_v44, %v8746_v17  ;;  %v10580_v14 = vpack.c.bf16 %v8752_v38, %v8748_v9  ;;  %v8760_v33 = vld [vmem:[%s19214_s2 + $0x13f8] sm:$0xff]  ;;  %v4928_v48 = vld [vmem:[#allocation2 + $0x8] sm:$0xf0]  ;;  %v5072_v38 = vrot.slane %v16273_v43, 4 }
 0x5b0   :  { %4645 = vmatprep.mubr.f32.mxu0 %v4456_v24  ;;  %4818 = vmatprep.mubr.f32.mxu1 %v4456_v24  ;;  %v10584_v39 = vpack.c.bf16 %v8760_v33, %v8756_v6  ;;  %v5067_v17 = vrot.slane %v4928_v48, 4  ;;  %v5094_v6 = vrot.slane %v16487_v21, 4  ;;  %v5100_v33 = vrot.slane %v16500_v50, 4 }
 0x5b1   :  { %10507 = vmatpush1.bf16.msra.mxu0 %v10506_v42  ;;  %10571 = vmatpush1.bf16.msra.mxu1 %v10570_v41  ;;  %v8751_v42 = vld [vmem:[%s19214_s2 + $0x13b0] sm:$0xff]  ;;  %v8754_v41 = vld [vmem:[%s19214_s2 + $0x13c8] sm:$0xff]  ;;  %v5104_v21 = vrot.slane %v16541_v35, 4 }
 0x5b2   :  { %10509 = vmatprep.subr.bf16.mxu0 %v10508_v10  ;;  %10573 = vmatprep.subr.bf16.mxu1 %v10572_v3  ;;  %v4467_v10 = vrot.slane %v16219_v37, 3  ;;  %v10518_v3 = vpack.c.bf16 %v8749_v8, %v8745_v63  ;;  %v10582_v28 = vpack.c.bf16 %v8751_v42, %v8747_v4  ;;  %v10520_v24 = vpack.c.bf16 %v8758_v7, %v8754_v41  ;;  %v8755_v37 = vld [vmem:[%s19214_s2 + $0x13d0] sm:$0xff] }
 0x5b3   :  { %4646 = vmatmul.mubr.f32.gmra.mrb[92].mxu0 %v4454_v57  ;;  %4819 = vmatmul.mubr.f32.gmra.mrb[92].mxu1 %v4454_v57  ;;  %v10586_v57 = vpack.c.bf16 %v8759_v46, %v8755_v37  ;;  %v5086_v42 = vrot.slane %v16423_v49, 4  ;;  %v5092_v41 = vrot.slane %v16445_v31, 4  ;;  %v5090_v49 = vrot.slane %v16477_v1, 4 }
 0x5b4   :  { %4651 = vmatprep.mubr.f32.mxu0 %v4460_v13  ;;  %4824 = vmatprep.mubr.f32.mxu1 %v4460_v13  ;;  %v4468_v36 = vsel %vm4402_vm9, %v4463_v0, %v4467_v10  ;;  %v4927_v13 = vld [vmem:[#allocation2] sm:$0xf0]  ;;  %v5068_v0 = vrot.slane %v16254_v30, 4  ;;  %v5076_v30 = vrot.slane %v16317_v18, 4  ;;  %v5105_v50 = vsel %vm267_vm1, %v5100_v33, %v5104_v21 }
 0x5b5   :  { %10511 = vmatpush1.bf16.msra.mxu0 %v10510_v26  ;;  %10575 = vmatpush1.bf16.msra.mxu1 %v10574_v61  ;;  %v4471_v26 = vrot.slane %v4268_v52, 3  ;;  %v4267_v61 = vld [vmem:[#allocation2 + $0x110] sm:$0x7f]  ;;  %v5064_v44 = vrot.slane %v4927_v13, 4  ;;  %v5091_v7 = vsel %vm267_vm1, %v5086_v42, %v5090_v49  ;;  %v5095_v52 = vsel %vm267_vm1, %v5090_v49, %v5094_v6 }
 0x5b6   :  { %10513 = vmatprep.subr.bf16.mxu0 %v10512_v15  ;;  %10577 = vmatprep.subr.bf16.mxu1 %v10576_v29  ;;  %v4466_v15 = vsel %vm4402_vm9, %v4461_v51, %v4465_v16  ;;  %v4469_v29 = vrot.slane %v4267_v61, 3  ;;  %v5069_v9 = vsel %vm267_vm1, %v5067_v17, %v5068_v0  ;;  %v5073_v63 = vsel %vm267_vm1, %v5068_v0, %v5072_v38  ;;  %v11516_v17 = vld [vmem:[#allocation2 + $0xf8] sm:$0xff]  ;;  %v11517_v0 = vld [vmem:[#allocation2 + $0xe0] sm:$0xff] }
 0x5b7   :  { %4652 = vmatmul.mubr.f32.gmra.mrb[94].mxu0 %v4458_v22  ;;  %4825 = vmatmul.mubr.f32.gmra.mrb[94].mxu1 %v4458_v22  ;;  %v4472_v58 = vsel %vm4402_vm9, %v4467_v10, %v4471_v26  ;;  %v5077_v43 = vsel %vm267_vm1, %v5072_v38, %v5076_v30  ;;  %v5078_v51 = vrot.slane %v16359_v53, 4  ;;  %v5081_v18 = vsel %vm267_vm1, %v5076_v30, %v5080_v11  ;;  %v11518_v38 = vld [vmem:[#allocation2 + $0xf0] sm:$0xff] }
 0x5b8   :  { %4657 = vmatprep.mubr.f32.mxu0 %v4464_v54  ;;  %4830 = vmatprep.mubr.f32.mxu1 %v4464_v54  ;;  %v4470_v62 = vsel %vm4402_vm9, %v4465_v16, %v4469_v29  ;;  %v5082_v53 = vrot.slane %v16413_v27, 4  ;;  %v5096_v27 = vrot.slane %v16465_v40, 4  ;;  %v5098_v40 = vrot.slane %v16519_v19, 4 }
 0x5b9   :  { %10515 = vmatpush1.bf16.msra.mxu0 %v10514_v59  ;;  %10579 = vmatpush1.bf16.msra.mxu1 %v10578_v5  ;;  %v5066_v59 = vsel %vm267_vm1, %v5064_v44, %v5065_v60  ;;  %v5070_v5 = vrot.slane %v16295_v55, 4  ;;  %v5074_v55 = vrot.slane %v16349_v32, 4  ;;  %v5088_v32 = vrot.slane %v16401_v12, 4 }
 0x5ba   :  { %10517 = vmatprep.subr.bf16.mxu0 %v10516_v23  ;;  %10581 = vmatprep.subr.bf16.mxu1 %v10580_v14  ;;  %v5084_v23 = vrot.slane %v16381_v20, 4  ;;  %v5083_v4 = vsel %vm267_vm1, %v5078_v51, %v5082_v53  ;;  %v5087_v54 = vsel %vm267_vm1, %v5082_v53, %v5086_v42  ;;  %v5097_v31 = vsel %vm267_vm1, %v5092_v41, %v5096_v27  ;;  %v20130_v53 = vld [vmem:[#allocation7_spill] sm:$0xff] }
 0x5bb   :  { %4658 = vmatmul.mubr.f32.gmra.mrb[96].mxu0 %v4462_v34  ;;  %4831 = vmatmul.mubr.f32.gmra.mrb[96].mxu1 %v4462_v34  ;;  %v5071_v8 = vsel %vm267_vm1, %v5065_v60, %v5070_v5  ;;  %v5075_v22 = vsel %vm267_vm1, %v5070_v5, %v5074_v55  ;;  %v5079_v14 = vsel %vm267_vm1, %v5074_v55, %v5078_v51  ;;  %v5102_v19 = vrot.slane %v16571_v2, 4  ;;  %v11510_v34 = vld [vmem:[#allocation2 + $0xb0] sm:$0xff]  ;;  %v4930_v5 = vld [vmem:[#allocation2 + $0x118] sm:$0xff] }
 0x5bc   :  { %4663 = vmatprep.mubr.f32.mxu0 %v4468_v36  ;;  %4836 = vmatprep.mubr.f32.mxu1 %v4468_v36  ;;  %v5085_v25 = vsel %vm267_vm1, %v5080_v11, %v5084_v23  ;;  %v5089_v20 = vsel %vm267_vm1, %v5084_v23, %v5088_v32  ;;  %v5093_v12 = vsel %vm267_vm1, %v5088_v32, %v5092_v41  ;;  %v11512_v36 = vld [vmem:[#allocation2 + $0xd8] sm:$0xff]  ;;  %v5124_v13 = vrot.slane %v11516_v17, 4  ;;  %v4929_v55 = vld [vmem:[#allocation2 + $0x110] sm:$0xff]  ;;  %v16789_v32 = vld [vmem:[%s19224_s12] sm:$0x3] }
 0x5bd   :  { %10519 = vmatpush1.bf16.msra.mxu0 %v10518_v3  ;;  %10583 = vmatpush1.bf16.msra.mxu1 %v10582_v28  ;;  %v5101_v1 = vsel %vm267_vm1, %v5096_v27, %v5100_v33  ;;  %v5099_v10 = vsel %vm267_vm1, %v5094_v6, %v5098_v40  ;;  %v11509_v3 = vld [vmem:[#allocation2 + $0xb8] sm:$0xff]  ;;  %v5103_v45 = vsel %vm267_vm1, %v5098_v40, %v5102_v19  ;;  %v5116_v2 = vrot.slane %v11512_v36, 4 }
 0x5be   :  { %10521 = vmatprep.subr.bf16.mxu0 %v10520_v24  ;;  %10585 = vmatprep.subr.bf16.mxu1 %v10584_v39  ;;  %v5108_v28 = vrot.slane %v11509_v3, 4  ;;  %v5106_v24 = vrot.slane %v11510_v34, 4  ;;  %v11511_v39 = vld [vmem:[#allocation2 + $0xc8] sm:$0xff]  ;;  %v5118_v44 = vrot.slane %v11517_v0, 4  ;;  %v5122_v60 = vrot.slane %v11518_v38, 4 }
 0x5bf   :  { %4664 = vmatmul.mubr.f32.gmra.mrb[98].mxu0 %v4466_v15  ;;  %4837 = vmatmul.mubr.f32.gmra.mrb[98].mxu1 %v4466_v15  ;;  %v5112_v47 = vrot.slane %v11511_v39, 4  ;;  %v5132_v11 = vrot.slane %v4930_v5, 4  ;;  %v5130_v23 = vrot.slane %v4929_v55, 4 }
 0x5c0   :  { %4669 = vmatprep.mubr.f32.mxu0 %v4472_v58  ;;  %4842 = vmatprep.mubr.f32.mxu1 %v4472_v58  ;;  %v5109_v35 = vsel %vm267_vm1, %v5104_v21, %v5108_v28  ;;  %v5107_v37 = vsel %vm267_vm1, %v5102_v19, %v5106_v24 }
 0x5c1   :  { %10523 = vmatpush1.bf16.msra.mxu0 %v10522_v56  ;;  %10587 = vmatpush1.bf16.msra.mxu1 %v10586_v57  ;;  %v5113_v46 = vsel %vm267_vm1, %v5108_v28, %v5112_v47  ;;  %v11514_v56 = vld [vmem:[#allocation2 + $0xd0] sm:$0xff]  ;;  %v5117_v15 = vsel %vm267_vm1, %v5112_v47, %v5116_v2 }
 0x5c2   :  { %v5114_v57 = vrot.slane %v11514_v56, 4 }
 0x5c3   :  { %4670 = vmatmul.mubr.f32.gmra.mrb[100].mxu0 %v4470_v62  ;;  %4843 = vmatmul.mubr.f32.gmra.mrb[100].mxu1 %v4470_v62 }
 0x5c4   :  { %4675 = vmatprep.mubr.f32.mxu0 %v4471_v26  ;;  %4848 = vmatprep.mubr.f32.mxu1 %v4471_v26  ;;  %v11513_v26 = vld [vmem:[#allocation2 + $0xc0] sm:$0xff] }
 0x5c5   :  { %v5110_v61 = vrot.slane %v11513_v26, 4 }
 0x5c7   :  { %4676 = vmatmul.mubr.f32.gmra.mrb[102].mxu0 %v4469_v29  ;;  %4849 = vmatmul.mubr.f32.gmra.mrb[102].mxu1 %v4469_v29  ;;  %v5111_v16 = vsel %vm267_vm1, %v5106_v24, %v5110_v61  ;;  %v11515_v29 = vld [vmem:[#allocation2 + $0xe8] sm:$0xff]  ;;  %v5115_v48 = vsel %vm267_vm1, %v5110_v61, %v5114_v57 }
 0x5c8   :  { %5234 = vmatprep.mubr.f32.mxu0 %v5069_v9  ;;  %5407 = vmatprep.mubr.f32.mxu1 %v5069_v9  ;;  %v5120_v58 = vrot.slane %v11515_v29, 4  ;;  %v5119_v9 = vsel %vm267_vm1, %v5114_v57, %v5118_v44 }
 0x5ca   :  { %v5121_v62 = vsel %vm267_vm1, %v5116_v2, %v5120_v58 }
 0x5cb   :  { %5235 = vmatmul.mubr.f32.vlgmr.msra.gmra.mrb[68].mxu0 %v5066_v59  ;;  %5408 = vmatmul.mubr.f32.vlgmr.msra.gmra.mrb[68].mxu1 %v5066_v59  ;;  %v5125_v59 = vsel %vm267_vm1, %v5120_v58, %v5124_v13 }
 0x5cc   :  { %5240 = vmatprep.mubr.f32.mxu0 %v5073_v63  ;;  %5413 = vmatprep.mubr.f32.mxu1 %v5073_v63  ;;  %v11519_v63 = vld [vmem:[#allocation2 + $0x108] sm:$0xff] }
 0x5cd   :  { %v5128_v30 = vrot.slane %v11519_v63, 4 }
 0x5cf   :  { %5241 = vmatmul.mubr.f32.gmra.mrb[70].mxu0 %v5071_v8  ;;  %5414 = vmatmul.mubr.f32.gmra.mrb[70].mxu1 %v5071_v8  ;;  %v5123_v8 = vsel %vm267_vm1, %v5118_v44, %v5122_v60 }
 0x5d0   :  { %5246 = vmatprep.mubr.f32.mxu0 %v5077_v43  ;;  %5419 = vmatprep.mubr.f32.mxu1 %v5077_v43  ;;  %v5129_v43 = vsel %vm267_vm1, %v5124_v13, %v5128_v30 }
 0x5d3   :  { %5247 = vmatmul.mubr.f32.gmra.mrb[72].mxu0 %v5075_v22  ;;  %5420 = vmatmul.mubr.f32.gmra.mrb[72].mxu1 %v5075_v22  ;;  %v11520_v22 = vld [vmem:[#allocation2 + $0x100] sm:$0xff] }
 0x5d4   :  { %5252 = vmatprep.mubr.f32.mxu0 %v5081_v18  ;;  %5425 = vmatprep.mubr.f32.mxu1 %v5081_v18  ;;  %v5126_v51 = vrot.slane %v11520_v22, 4 }
 0x5d6   :  { %v5127_v18 = vsel %vm267_vm1, %v5122_v60, %v5126_v51 }
 0x5d7   :  { %5253 = vmatmul.mubr.f32.gmra.mrb[74].mxu0 %v5079_v14  ;;  %5426 = vmatmul.mubr.f32.gmra.mrb[74].mxu1 %v5079_v14  ;;  %v5133_v14 = vsel %vm267_vm1, %v5128_v30, %v5132_v11 }
 0x5d8   :  { %5258 = vmatprep.mubr.f32.mxu0 %v5085_v25  ;;  %5431 = vmatprep.mubr.f32.mxu1 %v5085_v25  ;;  %v5131_v25 = vsel %vm267_vm1, %v5126_v51, %v5130_v23 }
 0x5db   :  { %5259 = vmatmul.mubr.f32.gmra.mrb[76].mxu0 %v5083_v4  ;;  %5432 = vmatmul.mubr.f32.gmra.mrb[76].mxu1 %v5083_v4  ;;  %v20131_v4 = vsub.s32 1, %v20130_v53 }
 0x5dc   :  { %5264 = vmatprep.mubr.f32.mxu0 %v5089_v20  ;;  %5437 = vmatprep.mubr.f32.mxu1 %v5089_v20 }
 0x5dd   :  { %v16794_v42 = vrot.slane %v16789_v32, %v20131_v4 }
 0x5df   :  { %5265 = vmatmul.mubr.f32.gmra.mrb[78].mxu0 %v5087_v54  ;;  %5438 = vmatmul.mubr.f32.gmra.mrb[78].mxu1 %v5087_v54 }
 0x5e0   :  { %5270 = vmatprep.mubr.f32.mxu0 %v5093_v12  ;;  %5443 = vmatprep.mubr.f32.mxu1 %v5093_v12 }
 0x5e3   :  { %5271 = vmatmul.mubr.f32.gmra.mrb[80].mxu0 %v5091_v7  ;;  %5444 = vmatmul.mubr.f32.gmra.mrb[80].mxu1 %v5091_v7 }
 0x5e4   :  { %5276 = vmatprep.mubr.f32.mxu0 %v5097_v31  ;;  %5449 = vmatprep.mubr.f32.mxu1 %v5097_v31 }
 0x5e7   :  { %5277 = vmatmul.mubr.f32.gmra.mrb[82].mxu0 %v5095_v52  ;;  %5450 = vmatmul.mubr.f32.gmra.mrb[82].mxu1 %v5095_v52 }
 0x5e8   :  { %5282 = vmatprep.mubr.f32.mxu0 %v5101_v1  ;;  %5455 = vmatprep.mubr.f32.mxu1 %v5101_v1 }
 0x5eb   :  { %5283 = vmatmul.mubr.f32.gmra.mrb[84].mxu0 %v5099_v10  ;;  %5456 = vmatmul.mubr.f32.gmra.mrb[84].mxu1 %v5099_v10 }
 0x5ec   :  { %5288 = vmatprep.mubr.f32.mxu0 %v5105_v50  ;;  %5461 = vmatprep.mubr.f32.mxu1 %v5105_v50 }
 0x5ef   :  { %5289 = vmatmul.mubr.f32.gmra.mrb[86].mxu0 %v5103_v45  ;;  %5462 = vmatmul.mubr.f32.gmra.mrb[86].mxu1 %v5103_v45 }
 0x5f0   :  { %5294 = vmatprep.mubr.f32.mxu0 %v5109_v35  ;;  %5467 = vmatprep.mubr.f32.mxu1 %v5109_v35 }
 0x5f3   :  { %5295 = vmatmul.mubr.f32.gmra.mrb[88].mxu0 %v5107_v37  ;;  %5468 = vmatmul.mubr.f32.gmra.mrb[88].mxu1 %v5107_v37 }
 0x5f4   :  { %5300 = vmatprep.mubr.f32.mxu0 %v5113_v46  ;;  %5473 = vmatprep.mubr.f32.mxu1 %v5113_v46 }
 0x5f7   :  { %5301 = vmatmul.mubr.f32.gmra.mrb[90].mxu0 %v5111_v16  ;;  %5474 = vmatmul.mubr.f32.gmra.mrb[90].mxu1 %v5111_v16 }
 0x5f8   :  { %5306 = vmatprep.mubr.f32.mxu0 %v5117_v15  ;;  %5479 = vmatprep.mubr.f32.mxu1 %v5117_v15 }
 0x5fb   :  { %5307 = vmatmul.mubr.f32.gmra.mrb[92].mxu0 %v5115_v48  ;;  %5480 = vmatmul.mubr.f32.gmra.mrb[92].mxu1 %v5115_v48 }
 0x5fc   :  { %5312 = vmatprep.mubr.f32.mxu0 %v5121_v62  ;;  %5485 = vmatprep.mubr.f32.mxu1 %v5121_v62 }
 0x5ff   :  { %5313 = vmatmul.mubr.f32.gmra.mrb[94].mxu0 %v5119_v9  ;;  %5486 = vmatmul.mubr.f32.gmra.mrb[94].mxu1 %v5119_v9 }
 0x600   :  { %5318 = vmatprep.mubr.f32.mxu0 %v5125_v59  ;;  %5491 = vmatprep.mubr.f32.mxu1 %v5125_v59 }
 0x603   :  { %5319 = vmatmul.mubr.f32.gmra.mrb[96].mxu0 %v5123_v8  ;;  %5492 = vmatmul.mubr.f32.gmra.mrb[96].mxu1 %v5123_v8 }
 0x604   :  { %5324 = vmatprep.mubr.f32.mxu0 %v5129_v43  ;;  %5497 = vmatprep.mubr.f32.mxu1 %v5129_v43 }
 0x607   :  { %5325 = vmatmul.mubr.f32.gmra.mrb[98].mxu0 %v5127_v18  ;;  %5498 = vmatmul.mubr.f32.gmra.mrb[98].mxu1 %v5127_v18 }
 0x608   :  { %5330 = vmatprep.mubr.f32.mxu0 %v5133_v14  ;;  %5503 = vmatprep.mubr.f32.mxu1 %v5133_v14 }
 0x60b   :  { %5331 = vmatmul.mubr.f32.gmra.mrb[100].mxu0 %v5131_v25  ;;  %5504 = vmatmul.mubr.f32.gmra.mrb[100].mxu1 %v5131_v25 }
 0x60c   :  { %5336 = vmatprep.mubr.f32.mxu0 %v5132_v11  ;;  %5509 = vmatprep.mubr.f32.mxu1 %v5132_v11 }
 0x60f   :  { %5337 = vmatmul.mubr.f32.gmra.mrb[102].mxu0 %v5130_v23  ;;  %5510 = vmatmul.mubr.f32.gmra.mrb[102].mxu1 %v5130_v23 }
 0x610   :  { %8763 = vmatprep.mubr.msk.f32.mxu0 %vm182_vm0, %v16794_v42  ;;  %8766 = vmatprep.mubr.msk.f32.mxu1 %vm182_vm0, %v16794_v42 }
 0x69e   :  { %v16800_v20 = vpop.f32.mrb[68].mxu0  ;;  %v16802_v41 = vpop.f32.mrb[68].mxu1 }
 0x69f   :  { %20132 = vst [vmem:[#allocation164_spill] sm:$0xff] %v16800_v20  ;;  %20133 = vst [vmem:[#allocation8_spill] sm:$0xff] %v16802_v41  ;;  %v16804_v54 = vpop.f32.mrb[69].mxu0  ;;  %v16806_v12 = vpop.f32.mrb[69].mxu1  ;;  %v16810_v27 = vmul.f32 %v16800_v20, %v16800_v20  ;;  %v16814_v49 = vmul.f32 %v16802_v41, %v16802_v41 }
 0x6a0   :  { %20134 = vst [vmem:[#allocation9_spill] sm:$0xff] %v16804_v54  ;;  %20135 = vst [vmem:[#allocation12_spill] sm:$0xff] %v16806_v12  ;;  %v16818_v7 = vmul.f32 %v16804_v54, %v16804_v54  ;;  %v16822_v6 = vmul.f32 %v16806_v12, %v16806_v12 }
 0x6a2   :  { %v16824_v31 = vpop.f32.mrb[70].mxu0  ;;  %v16826_v33 = vpop.f32.mrb[70].mxu1 }
 0x6a3   :  { %20136 = vst [vmem:[#allocation13_spill] sm:$0xff] %v16824_v31  ;;  %20137 = vst [vmem:[#allocation10_spill] sm:$0xff] %v16826_v33  ;;  %v10590_v52 = vpack.c.bf16 %v16824_v31, %v16800_v20  ;;  %v16832_v40 = vmul.f32 %v16824_v31, %v16824_v31  ;;  %v10628_v1 = vpack.c.bf16 %v16826_v33, %v16802_v41  ;;  %v16840_v10 = vpop.f32.mrb[71].mxu0  ;;  %v16842_v50 = vpop.f32.mrb[71].mxu1 }
 0x6a4   :  { %v16838_v21 = vmul.f32 %v16826_v33, %v16826_v33  ;;  %20138 = vst [vmem:[#allocation11_spill] sm:$0xff] %v16840_v10  ;;  %20139 = vst [vmem:[#allocation14_spill] sm:$0xff] %v16842_v50  ;;  %v10588_v3 = vpack.c.bf16 %v16840_v10, %v16804_v54  ;;  %v16848_v28 = vmul.f32 %v16840_v10, %v16840_v10 }
 0x6a5   :  { %v10626_v19 = vpack.c.bf16 %v16842_v50, %v16806_v12  ;;  %v16854_v45 = vmul.f32 %v16842_v50, %v16842_v50 }
 0x6a6   :  { %v16860_v35 = vpop.f32.mrb[72].mxu0  ;;  %v16862_v39 = vpop.f32.mrb[72].mxu1  ;;  %10589 = vmatprep.subr.bf16.mxu0 %v10588_v3 }
 0x6a7   :  { %20140 = vst [vmem:[#allocation15_spill] sm:$0xff] %v16860_v35  ;;  %20141 = vst [vmem:[#allocation80_spill] sm:$0xff] %v16862_v39  ;;  %10627 = vmatprep.subr.bf16.mxu1 %v10626_v19  ;;  %v16868_v46 = vpop.f32.mrb[73].mxu0  ;;  %v16870_v36 = vpop.f32.mrb[73].mxu1  ;;  %10591 = vmatpush1.bf16.msra.mxu0 %v10590_v52  ;;  %v16874_v2 = vmul.f32 %v16860_v35, %v16860_v35  ;;  %v16878_v26 = vmul.f32 %v16862_v39, %v16862_v39 }
 0x6a8   :  { %20142 = vst [vmem:[#allocation81_spill] sm:$0xff] %v16868_v46  ;;  %20143 = vst [vmem:[#allocation88_spill] sm:$0xff] %v16870_v36  ;;  %10629 = vmatpush1.bf16.msra.mxu1 %v10628_v1  ;;  %v16882_v61 = vmul.f32 %v16868_v46, %v16868_v46  ;;  %v16886_v16 = vmul.f32 %v16870_v36, %v16870_v36 }
 0x6aa   :  { %v16888_v56 = vpop.f32.mrb[74].mxu0  ;;  %v16890_v57 = vpop.f32.mrb[74].mxu1 }
 0x6ab   :  { %20144 = vst [vmem:[#allocation91_spill] sm:$0xff] %v16888_v56  ;;  %20145 = vst [vmem:[#allocation78_spill] sm:$0xff] %v16890_v57  ;;  %v10594_v15 = vpack.c.bf16 %v16888_v56, %v16860_v35  ;;  %v16896_v29 = vmul.f32 %v16888_v56, %v16888_v56  ;;  %v10632_v58 = vpack.c.bf16 %v16890_v57, %v16862_v39  ;;  %v16904_v62 = vpop.f32.mrb[75].mxu0  ;;  %v16906_v17 = vpop.f32.mrb[75].mxu1 }
 0x6ac   :  { %v16902_v48 = vmul.f32 %v16890_v57, %v16890_v57  ;;  %20146 = vst [vmem:[#allocation79_spill] sm:$0xff] %v16904_v62  ;;  %20147 = vst [vmem:[#allocation83_spill] sm:$0xff] %v16906_v17  ;;  %v10592_v13 = vpack.c.bf16 %v16904_v62, %v16868_v46  ;;  %v16912_v0 = vmul.f32 %v16904_v62, %v16904_v62 }
 0x6ad   :  { %v10630_v44 = vpack.c.bf16 %v16906_v17, %v16870_v36  ;;  %v16918_v9 = vmul.f32 %v16906_v17, %v16906_v17 }
 0x6ae   :  { %v16924_v59 = vpop.f32.mrb[76].mxu0  ;;  %v16926_v5 = vpop.f32.mrb[76].mxu1  ;;  %10593 = vmatprep.subr.bf16.mxu0 %v10592_v13 }
 0x6af   :  { %20148 = vst [vmem:[#allocation87_spill] sm:$0xff] %v16924_v59  ;;  %20149 = vst [vmem:[#allocation18_spill] sm:$0xff] %v16926_v5  ;;  %10631 = vmatprep.subr.bf16.mxu1 %v10630_v44  ;;  %v16932_v8 = vpop.f32.mrb[77].mxu0  ;;  %v16934_v43 = vpop.f32.mrb[77].mxu1  ;;  %10595 = vmatpush1.bf16.msra.mxu0 %v10594_v15  ;;  %v16938_v11 = vmul.f32 %v16924_v59, %v16924_v59  ;;  %v16942_v55 = vmul.f32 %v16926_v5, %v16926_v5 }
 0x6b0   :  { %20150 = vst [vmem:[#allocation19_spill] sm:$0xff] %v16932_v8  ;;  %20151 = vst [vmem:[#allocation96_spill] sm:$0xff] %v16934_v43  ;;  %10633 = vmatpush1.bf16.msra.mxu1 %v10632_v58  ;;  %v16946_v22 = vmul.f32 %v16932_v8, %v16932_v8  ;;  %v16950_v51 = vmul.f32 %v16934_v43, %v16934_v43 }
 0x6b2   :  { %v16952_v18 = vpop.f32.mrb[78].mxu0  ;;  %v16954_v23 = vpop.f32.mrb[78].mxu1 }
 0x6b3   :  { %20152 = vst [vmem:[#allocation97_spill] sm:$0xff] %v16952_v18  ;;  %20153 = vst [vmem:[#allocation16_spill] sm:$0xff] %v16954_v23  ;;  %v10598_v14 = vpack.c.bf16 %v16952_v18, %v16924_v59  ;;  %v16960_v25 = vmul.f32 %v16952_v18, %v16952_v18  ;;  %v10636_v53 = vpack.c.bf16 %v16954_v23, %v16926_v5  ;;  %v16968_v52 = vpop.f32.mrb[79].mxu0  ;;  %v16970_v1 = vpop.f32.mrb[79].mxu1 }
 0x6b4   :  { %v16966_v4 = vmul.f32 %v16954_v23, %v16954_v23  ;;  %20154 = vst [vmem:[#allocation17_spill] sm:$0xff] %v16968_v52  ;;  %20155 = vst [vmem:[#allocation94_spill] sm:$0xff] %v16970_v1  ;;  %v10596_v3 = vpack.c.bf16 %v16968_v52, %v16932_v8  ;;  %v16976_v19 = vmul.f32 %v16968_v52, %v16968_v52 }
 0x6b5   :  { %v10634_v15 = vpack.c.bf16 %v16970_v1, %v16934_v43  ;;  %v16982_v58 = vmul.f32 %v16970_v1, %v16970_v1 }
 0x6b6   :  { %v16988_v60 = vpop.f32.mrb[80].mxu0  ;;  %v16990_v38 = vpop.f32.mrb[80].mxu1  ;;  %10597 = vmatprep.subr.bf16.mxu0 %v10596_v3 }
 0x6b7   :  { %20156 = vst [vmem:[#allocation95_spill] sm:$0xff] %v16988_v60  ;;  %20157 = vst [vmem:[#allocation22_spill] sm:$0xff] %v16990_v38  ;;  %10635 = vmatprep.subr.bf16.mxu1 %v10634_v15  ;;  %v16996_v24 = vpop.f32.mrb[81].mxu0  ;;  %v16998_v34 = vpop.f32.mrb[81].mxu1  ;;  %10599 = vmatpush1.bf16.msra.mxu0 %v10598_v14  ;;  %v17002_v44 = vmul.f32 %v16988_v60, %v16988_v60  ;;  %v17006_v3 = vmul.f32 %v16990_v38, %v16990_v38 }
 0x6b8   :  { %20158 = vst [vmem:[#allocation23_spill] sm:$0xff] %v16996_v24  ;;  %20159 = vst [vmem:[#allocation104_spill] sm:$0xff] %v16998_v34  ;;  %10637 = vmatpush1.bf16.msra.mxu1 %v10636_v53  ;;  %v17010_v15 = vmul.f32 %v16996_v24, %v16996_v24  ;;  %v17014_v13 = vmul.f32 %v16998_v34, %v16998_v34 }
 0x6ba   :  { %v17016_v63 = vpop.f32.mrb[82].mxu0  ;;  %v17018_v14 = vpop.f32.mrb[82].mxu1 }
 0x6bb   :  { %20160 = vst [vmem:[#allocation107_spill] sm:$0xff] %v17016_v63  ;;  %20161 = vst [vmem:[#allocation20_spill] sm:$0xff] %v17018_v14  ;;  %v10602_v53 = vpack.c.bf16 %v17016_v63, %v16988_v60  ;;  %v17024_v30 = vmul.f32 %v17016_v63, %v17016_v63  ;;  %v10640_v37 = vpack.c.bf16 %v17018_v14, %v16990_v38  ;;  %v17032_v23 = vpop.f32.mrb[83].mxu0  ;;  %v17034_v18 = vpop.f32.mrb[83].mxu1 }
 0x6bc   :  { %v17030_v47 = vmul.f32 %v17018_v14, %v17018_v14  ;;  %20162 = vst [vmem:[#allocation21_spill] sm:$0xff] %v17032_v23  ;;  %20163 = vst [vmem:[#allocation99_spill] sm:$0xff] %v17034_v18  ;;  %v10600_v1 = vpack.c.bf16 %v17032_v23, %v16996_v24  ;;  %v17040_v60 = vmul.f32 %v17032_v23, %v17032_v23 }
 0x6bd   :  { %v10638_v63 = vpack.c.bf16 %v17034_v18, %v16998_v34  ;;  %v17046_v38 = vmul.f32 %v17034_v18, %v17034_v18 }
 0x6be   :  { %v17052_v5 = vpop.f32.mrb[84].mxu0  ;;  %v17054_v24 = vpop.f32.mrb[84].mxu1  ;;  %10601 = vmatprep.subr.bf16.mxu0 %v10600_v1 }
 0x6bf   :  { %20164 = vst [vmem:[#allocation103_spill] sm:$0xff] %v17052_v5  ;;  %20165 = vst [vmem:[#allocation26_spill] sm:$0xff] %v17054_v24  ;;  %10639 = vmatprep.subr.bf16.mxu1 %v10638_v63  ;;  %v17060_v18 = vpop.f32.mrb[85].mxu0  ;;  %v17062_v59 = vpop.f32.mrb[85].mxu1  ;;  %10603 = vmatpush1.bf16.msra.mxu0 %v10602_v53  ;;  %v17066_v52 = vmul.f32 %v17052_v5, %v17052_v5  ;;  %v17070_v1 = vmul.f32 %v17054_v24, %v17054_v24 }
 0x6c0   :  { %20166 = vst [vmem:[#allocation27_spill] sm:$0xff] %v17060_v18  ;;  %20167 = vst [vmem:[#allocation112_spill] sm:$0xff] %v17062_v59  ;;  %10641 = vmatpush1.bf16.msra.mxu1 %v10640_v37  ;;  %v17074_v63 = vmul.f32 %v17060_v18, %v17060_v18  ;;  %v17078_v14 = vmul.f32 %v17062_v59, %v17062_v59 }
 0x6c2   :  { %v17080_v34 = vpop.f32.mrb[86].mxu0  ;;  %v17082_v53 = vpop.f32.mrb[86].mxu1 }
 0x6c3   :  { %20168 = vst [vmem:[#allocation113_spill] sm:$0xff] %v17080_v34  ;;  %20169 = vst [vmem:[#allocation24_spill] sm:$0xff] %v17082_v53  ;;  %v10606_v37 = vpack.c.bf16 %v17080_v34, %v17052_v5  ;;  %v17088_v23 = vmul.f32 %v17080_v34, %v17080_v34  ;;  %v10644_v57 = vpack.c.bf16 %v17082_v53, %v17054_v24  ;;  %v17096_v43 = vpop.f32.mrb[87].mxu0  ;;  %v17098_v8 = vpop.f32.mrb[87].mxu1 }
 0x6c4   :  { %v17094_v56 = vmul.f32 %v17082_v53, %v17082_v53  ;;  %20170 = vst [vmem:[#allocation25_spill] sm:$0xff] %v17096_v43  ;;  %20171 = vst [vmem:[#allocation61_spill] sm:$0xff] %v17098_v8  ;;  %v10604_v17 = vpack.c.bf16 %v17096_v43, %v17060_v18  ;;  %v17104_v5 = vmul.f32 %v17096_v43, %v17096_v43 }
 0x6c5   :  { %v10642_v34 = vpack.c.bf16 %v17098_v8, %v17062_v59  ;;  %v17110_v24 = vmul.f32 %v17098_v8, %v17098_v8 }
 0x6c6   :  { %v17116_v39 = vpop.f32.mrb[88].mxu0  ;;  %v17118_v18 = vpop.f32.mrb[88].mxu1  ;;  %10605 = vmatprep.subr.bf16.mxu0 %v10604_v17 }
 0x6c7   :  { %20172 = vst [vmem:[#allocation55_spill] sm:$0xff] %v17116_v39  ;;  %20173 = vst [vmem:[#allocation60_spill] sm:$0xff] %v17118_v18  ;;  %10643 = vmatprep.subr.bf16.mxu1 %v10642_v34  ;;  %v17124_v8 = vpop.f32.mrb[89].mxu0  ;;  %v17126_v35 = vpop.f32.mrb[89].mxu1  ;;  %10607 = vmatpush1.bf16.msra.mxu0 %v10606_v37  ;;  %v17130_v62 = vmul.f32 %v17116_v39, %v17116_v39  ;;  %v17134_v17 = vmul.f32 %v17118_v18, %v17118_v18 }
 0x6c8   :  { %20174 = vst [vmem:[#allocation110_spill] sm:$0xff] %v17124_v8  ;;  %20175 = vst [vmem:[#allocation111_spill] sm:$0xff] %v17126_v35  ;;  %10645 = vmatpush1.bf16.msra.mxu1 %v10644_v57  ;;  %v17138_v34 = vmul.f32 %v17124_v8, %v17124_v8  ;;  %v17142_v53 = vmul.f32 %v17126_v35, %v17126_v35 }
 0x6c9   :  { %20176 = vst [vmem:[#allocation30_spill] sm:$0xff] %v17130_v62  ;;  %20177 = vst [vmem:[#allocation52_spill] sm:$0xff] %v17134_v17 }
 0x6ca   :  { %20178 = vst [vmem:[#allocation54_spill] sm:$0xff] %v17138_v34  ;;  %20179 = vst [vmem:[#allocation58_spill] sm:$0xff] %v17142_v53  ;;  %v17144_v59 = vpop.f32.mrb[90].mxu0  ;;  %v17146_v37 = vpop.f32.mrb[90].mxu1 }
 0x6cb   :  { %20180 = vst [vmem:[#allocation31_spill] sm:$0xff] %v17144_v59  ;;  %20181 = vst [vmem:[#allocation120_spill] sm:$0xff] %v17146_v37  ;;  %v10610_v57 = vpack.c.bf16 %v17144_v59, %v17116_v39  ;;  %v17152_v43 = vmul.f32 %v17144_v59, %v17144_v59  ;;  %v10648_v36 = vpack.c.bf16 %v17146_v37, %v17118_v18  ;;  %v17160_v50 = vpop.f32.mrb[91].mxu0  ;;  %v17162_v10 = vpop.f32.mrb[91].mxu1 }
 0x6cc   :  { %v17158_v46 = vmul.f32 %v17146_v37, %v17146_v37  ;;  %20184 = vst [vmem:[#allocation74_spill] sm:$0xff] %v17160_v50  ;;  %20185 = vst [vmem:[#allocation76_spill] sm:$0xff] %v17162_v10  ;;  %v10608_v12 = vpack.c.bf16 %v17160_v50, %v17124_v8  ;;  %v17168_v39 = vmul.f32 %v17160_v50, %v17160_v50 }
 0x6cd   :  { %20182 = vst [vmem:[#allocation123_spill] sm:$0xff] %v17152_v43  ;;  %v10646_v59 = vpack.c.bf16 %v17162_v10, %v17126_v35  ;;  %v17174_v18 = vmul.f32 %v17162_v10, %v17162_v10 }
 0x6ce   :  { %20183 = vst [vmem:[#allocation69_spill] sm:$0xff] %v17158_v46  ;;  %20186 = vst [vmem:[#allocation77_spill] sm:$0xff] %v17168_v39  ;;  %v17180_v33 = vpop.f32.mrb[92].mxu0  ;;  %v17182_v8 = vpop.f32.mrb[92].mxu1  ;;  %10609 = vmatprep.subr.bf16.mxu0 %v10608_v12 }
 0x6cf   :  { %20187 = vst [vmem:[#allocation28_spill] sm:$0xff] %v17174_v18  ;;  %20188 = vst [vmem:[#allocation29_spill] sm:$0xff] %v17180_v33  ;;  %10647 = vmatprep.subr.bf16.mxu1 %v10646_v59  ;;  %v17188_v10 = vpop.f32.mrb[93].mxu0  ;;  %v17190_v31 = vpop.f32.mrb[93].mxu1  ;;  %10611 = vmatpush1.bf16.msra.mxu0 %v10610_v57  ;;  %v17194_v54 = vmul.f32 %v17180_v33, %v17180_v33  ;;  %v17198_v12 = vmul.f32 %v17182_v8, %v17182_v8 }
 0x6d0   :  { %20189 = vst [vmem:[#allocation70_spill] sm:$0xff] %v17182_v8  ;;  %20190 = vst [vmem:[#allocation115_spill] sm:$0xff] %v17188_v10  ;;  %10649 = vmatpush1.bf16.msra.mxu1 %v10648_v36  ;;  %v17202_v59 = vmul.f32 %v17188_v10, %v17188_v10  ;;  %v17206_v37 = vmul.f32 %v17190_v31, %v17190_v31 }
 0x6d1   :  { %20191 = vst [vmem:[#allocation119_spill] sm:$0xff] %v17190_v31  ;;  %20192 = vst [vmem:[#allocation73_spill] sm:$0xff] %v17194_v54 }
 0x6d2   :  { %20193 = vst [vmem:[#allocation66_spill] sm:$0xff] %v17198_v12  ;;  %20194 = vst [vmem:[#allocation68_spill] sm:$0xff] %v17202_v59  ;;  %v17208_v35 = vpop.f32.mrb[94].mxu0  ;;  %v17210_v57 = vpop.f32.mrb[94].mxu1 }
 0x6d3   :  { %20195 = vst [vmem:[#allocation85_spill] sm:$0xff] %v17206_v37  ;;  %20196 = vst [vmem:[#allocation90_spill] sm:$0xff] %v17208_v35  ;;  %v10614_v36 = vpack.c.bf16 %v17208_v35, %v17180_v33  ;;  %v17216_v50 = vmul.f32 %v17208_v35, %v17208_v35  ;;  %v10652_v41 = vpack.c.bf16 %v17210_v57, %v17182_v8  ;;  %v17224_v17 = vpop.f32.mrb[95].mxu0  ;;  %v17226_v46 = vpop.f32.mrb[95].mxu1 }
 0x6d4   :  { %20197 = vst [vmem:[#allocation34_spill] sm:$0xff] %v17210_v57  ;;  %v17222_v20 = vmul.f32 %v17210_v57, %v17210_v57  ;;  %20200 = vst [vmem:[#allocation93_spill] sm:$0xff] %v17224_v17  ;;  %v10612_v62 = vpack.c.bf16 %v17224_v17, %v17188_v10  ;;  %v17232_v33 = vmul.f32 %v17224_v17, %v17224_v17 }
 0x6d5   :  { %20198 = vst [vmem:[#allocation35_spill] sm:$0xff] %v17216_v50  ;;  %20201 = vst [vmem:[#allocation82_spill] sm:$0xff] %v17226_v46  ;;  %v10650_v35 = vpack.c.bf16 %v17226_v46, %v17190_v31  ;;  %v17238_v8 = vmul.f32 %v17226_v46, %v17226_v46 }
 0x6d6   :  { %20199 = vst [vmem:[#allocation92_spill] sm:$0xff] %v17222_v20  ;;  %20202 = vst [vmem:[#allocation86_spill] sm:$0xff] %v17232_v33  ;;  %v17244_v53 = vpop.f32.mrb[96].mxu0  ;;  %v17246_v10 = vpop.f32.mrb[96].mxu1  ;;  %10613 = vmatprep.subr.bf16.mxu0 %v10612_v62 }
 0x6d7   :  { %20203 = vst [vmem:[#allocation128_spill] sm:$0xff] %v17238_v8  ;;  %20204 = vst [vmem:[#allocation129_spill] sm:$0xff] %v17244_v53  ;;  %10651 = vmatprep.subr.bf16.mxu1 %v10650_v35  ;;  %v17252_v46 = vpop.f32.mrb[97].mxu0  ;;  %v17254_v18 = vpop.f32.mrb[97].mxu1  ;;  %10615 = vmatpush1.bf16.msra.mxu0 %v10614_v36  ;;  %v17258_v43 = vmul.f32 %v17244_v53, %v17244_v53  ;;  %v17262_v62 = vmul.f32 %v17246_v10, %v17246_v10 }
 0x6d8   :  { %20205 = vst [vmem:[#allocation84_spill] sm:$0xff] %v17246_v10  ;;  %20206 = vst [vmem:[#allocation89_spill] sm:$0xff] %v17252_v46  ;;  %10653 = vmatpush1.bf16.msra.mxu1 %v10652_v41  ;;  %v17266_v35 = vmul.f32 %v17252_v46, %v17252_v46  ;;  %v17270_v57 = vmul.f32 %v17254_v18, %v17254_v18 }
 0x6d9   :  { %20207 = vst [vmem:[#allocation101_spill] sm:$0xff] %v17254_v18  ;;  %20208 = vst [vmem:[#allocation106_spill] sm:$0xff] %v17258_v43 }
 0x6da   :  { %20209 = vst [vmem:[#allocation32_spill] sm:$0xff] %v17262_v62  ;;  %v17272_v31 = vpop.f32.mrb[98].mxu0  ;;  %v17274_v36 = vpop.f32.mrb[98].mxu1 }
 0x6db   :  { %20210 = vst [vmem:[#allocation108_spill] sm:$0xff] %v17272_v31  ;;  %20211 = vst [vmem:[#allocation109_spill] sm:$0xff] %v17274_v36  ;;  %v10618_v41 = vpack.c.bf16 %v17272_v31, %v17244_v53  ;;  %v17280_v17 = vmul.f32 %v17272_v31, %v17272_v31  ;;  %v10656_v12 = vpack.c.bf16 %v17274_v36, %v17246_v10  ;;  %v17288_v54 = vpop.f32.mrb[99].mxu0  ;;  %v17290_v50 = vpop.f32.mrb[99].mxu1 }
 0x6dc   :  { %v17286_v20 = vmul.f32 %v17274_v36, %v17274_v36  ;;  %20214 = vst [vmem:[#allocation33_spill] sm:$0xff] %v17288_v54  ;;  %20215 = vst [vmem:[#allocation126_spill] sm:$0xff] %v17290_v50  ;;  %v10616_v37 = vpack.c.bf16 %v17288_v54, %v17252_v46  ;;  %v17296_v53 = vmul.f32 %v17288_v54, %v17288_v54 }
 0x6dd   :  { %20212 = vst [vmem:[#allocation98_spill] sm:$0xff] %v17280_v17  ;;  %v10654_v31 = vpack.c.bf16 %v17290_v50, %v17254_v18  ;;  %v17302_v10 = vmul.f32 %v17290_v50, %v17290_v50 }
 0x6de   :  { %20213 = vst [vmem:[#allocation102_spill] sm:$0xff] %v17286_v20  ;;  %v17308_v59 = vpop.f32.mrb[100].mxu0  ;;  %v17310_v46 = vpop.f32.mrb[100].mxu1  ;;  %10617 = vmatprep.subr.bf16.mxu0 %v10616_v37  ;;  %v10692_v54 = vpack.c.bf16 %v17296_v53, %v17266_v35 }
 0x6df   :  { %20216 = vst [vmem:[#allocation100_spill] sm:$0xff] %v17308_v59  ;;  %20217 = vst [vmem:[#allocation105_spill] sm:$0xff] %v17310_v46  ;;  %10655 = vmatprep.subr.bf16.mxu1 %v10654_v31  ;;  %v10730_v18 = vpack.c.bf16 %v17302_v10, %v17270_v57  ;;  %v17316_v50 = vpop.f32.mrb[101].mxu0  ;;  %v17318_v33 = vpop.f32.mrb[101].mxu1  ;;  %10619 = vmatpush1.bf16.msra.mxu0 %v10618_v41  ;;  %v17322_v8 = vmul.f32 %v17308_v59, %v17308_v59 }
 0x6e0   :  { %20218 = vst [vmem:[#allocation117_spill] sm:$0xff] %v17316_v50  ;;  %20219 = vst [vmem:[#allocation122_spill] sm:$0xff] %v17318_v33  ;;  %10657 = vmatpush1.bf16.msra.mxu1 %v10656_v12  ;;  %v17326_v37 = vmul.f32 %v17310_v46, %v17310_v46  ;;  %v17330_v31 = vmul.f32 %v17316_v50, %v17316_v50  ;;  %v17334_v10 = vmul.f32 %v17318_v33, %v17318_v33 }
 0x6e2   :  { %v17336_v53 = vpop.f32.mrb[102].mxu0  ;;  %v17338_v57 = vpop.f32.mrb[102].mxu1 }
 0x6e3   :  { %20220 = vst [vmem:[#allocation127_spill] sm:$0xff] %v17336_v53  ;;  %20221 = vst [vmem:[#allocation38_spill] sm:$0xff] %v17338_v57  ;;  %v10623_v12 = vpack.c.bf16 %v17336_v53, %v17308_v59  ;;  %v17344_v35 = vmul.f32 %v17336_v53, %v17336_v53  ;;  %v10661_v41 = vpack.c.bf16 %v17338_v57, %v17310_v46  ;;  %v17352_v62 = vpop.f32.mrb[103].mxu0  ;;  %v17354_v20 = vpop.f32.mrb[103].mxu1 }
 0x6e4   :  { %v17350_v36 = vmul.f32 %v17338_v57, %v17338_v57  ;;  %20222 = vst [vmem:[#allocation124_spill] sm:$0xff] %v17352_v62  ;;  %v10620_v43 = vpack.c.bf16 %v17352_v62, %v17316_v50  ;;  %v5906_v59 = vmul.f32 %v17352_v62, %v17352_v62  ;;  %v10658_v53 = vpack.c.bf16 %v17354_v20, %v17318_v33  ;;  %v20224_v62 = vld [vmem:[#allocation178_spill] sm:$0xff] }
 0x6e5   :  { %v5908_v46 = vmul.f32 %v17354_v20, %v17354_v20  ;;  %v10699_v57 = vpack.c.bf16 %v17344_v35, %v17322_v8  ;;  %v17376_v33 = vrot.slane %v16789_v32, %v20224_v62  ;;  %v20225_v8 = vpack.c.bf16 %v16848_v28, %v16818_v7  ;;  %v5589_v35 = vld [vmem:[%s19220_s8] sm:$0xff] }
 0x6e6   :  { %v10737_v17 = vpack.c.bf16 %v17350_v36, %v17326_v37  ;;  %v10696_v34 = vpack.c.bf16 %v5906_v59, %v17330_v31  ;;  %10622 = vmatprep.subr.msk.bf16.mxu0 %vm11850_vm3, %v10620_v43  ;;  %10660 = vmatprep.subr.msk.bf16.mxu1 %vm11850_vm3, %v10658_v53  ;;  %v20227_v32 = vpack.c.bf16 %v16832_v40, %v16810_v27  ;;  %v5606_v59 = vld [vmem:[%s19220_s8 + $0x88] sm:$0xff]  ;;  %v5637_v36 = vld [vmem:[%s19220_s8 + $0x180] sm:$0xff]  ;;  %v20273_v53 = vld [vmem:[#allocation32_spill] sm:$0xff] }
 0x6e7   :  { %v10734_v39 = vpack.c.bf16 %v5908_v46, %v17334_v10  ;;  %10625 = vmatpush1.bf16.msk.msra.mxu0 %vm11850_vm3, %v10623_v12  ;;  %10663 = vmatpush1.bf16.msk.msra.mxu1 %vm11850_vm3, %v10661_v41  ;;  %v20226_v46 = vpack.c.bf16 %v16854_v45, %v16822_v6  ;;  %v20228_v43 = vpack.c.bf16 %v16838_v21, %v16814_v49  ;;  %v5638_v37 = vld [vmem:[%s19220_s8 + $0x188] sm:$0xff] }
 0x6e8   :  { %10665 = vmatprep.subr.bf16.mxu0 %v20225_v8  ;;  %v20229_v7 = vpack.c.bf16 %v16912_v0, %v16882_v61  ;;  %v20230_v6 = vpack.c.bf16 %v16918_v9, %v16886_v16  ;;  %v20231_v27 = vpack.c.bf16 %v16896_v29, %v16874_v2  ;;  %v20232_v49 = vpack.c.bf16 %v16902_v48, %v16878_v26  ;;  %v20245_v9 = vld [vmem:[#allocation77_spill] sm:$0xff]  ;;  %v20269_v31 = vld [vmem:[#allocation98_spill] sm:$0xff] }
 0x6e9   :  { %10703 = vmatprep.subr.bf16.mxu1 %v20226_v46  ;;  %v20233_v40 = vpack.c.bf16 %v16976_v19, %v16946_v22  ;;  %v20234_v21 = vpack.c.bf16 %v16982_v58, %v16950_v51  ;;  %v20235_v28 = vpack.c.bf16 %v16960_v25, %v16938_v11  ;;  %v20237_v45 = vpack.c.bf16 %v17040_v60, %v17010_v15  ;;  %v20248_v60 = vld [vmem:[#allocation28_spill] sm:$0xff]  ;;  %v20251_v11 = vld [vmem:[#allocation123_spill] sm:$0xff]  ;;  %v20254_v22 = vld [vmem:[#allocation69_spill] sm:$0xff] }
 0x6ea   :  { %5760 = vmatmul.mubr.f32.vlgmr.msra.gmra.mrb[104].mxu0 %v17376_v33  ;;  %5831 = vmatmul.mubr.f32.vlgmr.msra.gmra.mrb[104].mxu1 %v17376_v33  ;;  %v20238_v2 = vpack.c.bf16 %v17046_v38, %v17014_v13  ;;  %v20239_v26 = vpack.c.bf16 %v17024_v30, %v17002_v44  ;;  %v20240_v61 = vpack.c.bf16 %v17030_v47, %v17006_v3  ;;  %v20246_v38 = vld [vmem:[#allocation54_spill] sm:$0xff]  ;;  %v20255_v51 = vld [vmem:[#allocation52_spill] sm:$0xff]  ;;  %v20261_v19 = vld [vmem:[#allocation85_spill] sm:$0xff] }
 0x6eb   :  { %10667 = vmatpush1.bf16.msra.mxu0 %v20227_v32  ;;  %10705 = vmatpush1.bf16.msra.mxu1 %v20228_v43  ;;  %v20241_v16 = vpack.c.bf16 %v17104_v5, %v17074_v63  ;;  %v20242_v29 = vpack.c.bf16 %v17110_v24, %v17078_v14  ;;  %v20243_v48 = vpack.c.bf16 %v17088_v23, %v17066_v52  ;;  %v20249_v30 = vld [vmem:[#allocation58_spill] sm:$0xff]  ;;  %v20260_v52 = vld [vmem:[#allocation128_spill] sm:$0xff]  ;;  %v20263_v13 = vld [vmem:[#allocation35_spill] sm:$0xff] }
 0x6ec   :  { %10669 = vmatprep.subr.bf16.mxu0 %v20229_v7  ;;  %10707 = vmatprep.subr.bf16.mxu1 %v20230_v6  ;;  %v20244_v0 = vpack.c.bf16 %v17094_v56, %v17070_v1  ;;  %v20247_v47 = vpack.c.bf16 %v20245_v9, %v20246_v38  ;;  %v20250_v5 = vpack.c.bf16 %v20248_v60, %v20249_v30  ;;  %v20257_v25 = vld [vmem:[#allocation86_spill] sm:$0xff]  ;;  %v20264_v44 = vld [vmem:[#allocation73_spill] sm:$0xff]  ;;  %v20266_v15 = vld [vmem:[#allocation92_spill] sm:$0xff] }
 0x6ed   :  { %8769 = vmatprep.mubr.msk.f32.mxu0 %vm182_vm0, %v16794_v42  ;;  %8772 = vmatprep.mubr.msk.f32.mxu1 %vm182_vm0, %v16794_v42  ;;  %v20236_v42 = vpack.c.bf16 %v16966_v4, %v16942_v55  ;;  %v20252_v55 = vld [vmem:[#allocation30_spill] sm:$0xff]  ;;  %v20256_v23 = vpack.c.bf16 %v20254_v22, %v20255_v51  ;;  %v20258_v4 = vld [vmem:[#allocation68_spill] sm:$0xff]  ;;  %v20262_v58 = vpack.c.bf16 %v20260_v52, %v20261_v19  ;;  %v5605_v63 = vld [vmem:[%s19220_s8 + $0x80] sm:$0xff] }
 0x6ee   :  { %v20253_v24 = vpack.c.bf16 %v20251_v11, %v20252_v55  ;;  %v20259_v56 = vpack.c.bf16 %v20257_v25, %v20258_v4  ;;  %v20265_v3 = vpack.c.bf16 %v20263_v13, %v20264_v44  ;;  %v20267_v14 = vld [vmem:[#allocation66_spill] sm:$0xff]  ;;  %v17500_v8 = vpack.c.bf16 %v5606_v59, %v5605_v63  ;;  %v5621_v32 = vld [vmem:[%s19220_s8 + $0x100] sm:$0xff]  ;;  %v5607_v7 = vld [vmem:[%s19220_s8 + $0x90] sm:$0xff] }
 0x6ef   :  { %10671 = vmatpush1.bf16.msra.mxu0 %v20231_v27  ;;  %10709 = vmatpush1.bf16.msra.mxu1 %v20232_v49  ;;  %v20268_v1 = vpack.c.bf16 %v20266_v15, %v20267_v14  ;;  %v20270_v10 = vld [vmem:[#allocation106_spill] sm:$0xff]  ;;  %v17502_v46 = vpack.c.bf16 %v5638_v37, %v5637_v36  ;;  %v5640_v6 = vld [vmem:[%s19220_s8 + $0x198] sm:$0xff]  ;;  %v5625_v9 = vld [vmem:[%s19220_s8 + $0x120] sm:$0xff] }
 0x6f0   :  { %10673 = vmatprep.subr.bf16.mxu0 %v20233_v40  ;;  %10711 = vmatprep.subr.bf16.mxu1 %v20234_v21  ;;  %v5590_v41 = vld [vmem:[%s19220_s8 + $0x8] sm:$0xff]  ;;  %v5591_v40 = vld [vmem:[%s19220_s8 + $0x10] sm:$0xff]  ;;  %v5592_v21 = vld [vmem:[%s19220_s8 + $0x18] sm:$0xff] }
 0x6f1   :  { %v5622_v43 = vld [vmem:[%s19220_s8 + $0x108] sm:$0xff]  ;;  %v17526_v27 = vpack.c.bf16 %v5590_v41, %v5589_v35  ;;  %v5612_v60 = vld [vmem:[%s19220_s8 + $0xb8] sm:$0xff]  ;;  %v5643_v30 = vld [vmem:[%s19220_s8 + $0x1b0] sm:$0xff] }
 0x6f2   :  { %v17528_v49 = vpack.c.bf16 %v5622_v43, %v5621_v32  ;;  %v5626_v38 = vld [vmem:[%s19220_s8 + $0x128] sm:$0xff]  ;;  %v5596_v22 = vld [vmem:[%s19220_s8 + $0x38] sm:$0xff]  ;;  %v5627_v25 = vld [vmem:[%s19220_s8 + $0x130] sm:$0xff] }
 0x6f3   :  { %10675 = vmatpush1.bf16.msra.mxu0 %v20235_v28  ;;  %10713 = vmatpush1.bf16.msra.mxu1 %v20236_v42  ;;  %v5624_v28 = vld [vmem:[%s19220_s8 + $0x118] sm:$0xff]  ;;  %v5609_v42 = vld [vmem:[%s19220_s8 + $0xa0] sm:$0xff]  ;;  %v17602_v55 = vpack.c.bf16 %v5626_v38, %v5625_v9  ;;  %v5614_v52 = vld [vmem:[%s19220_s8 + $0xc8] sm:$0xff] }
 0x6f4   :  { %10677 = vmatprep.subr.bf16.mxu0 %v20237_v45  ;;  %10715 = vmatprep.subr.bf16.mxu1 %v20238_v2  ;;  %v5610_v45 = vld [vmem:[%s19220_s8 + $0xa8] sm:$0xff]  ;;  %v5641_v2 = vld [vmem:[%s19220_s8 + $0x1a0] sm:$0xff]  ;;  %v5628_v4 = vld [vmem:[%s19220_s8 + $0x138] sm:$0xff] }
 0x6f5   :  { %v5645_v19 = vld [vmem:[%s19220_s8 + $0x1c0] sm:$0xff]  ;;  %v17638_v44 = vpack.c.bf16 %v5628_v4, %v5627_v25  ;;  %v5598_v15 = vld [vmem:[%s19220_s8 + $0x48] sm:$0xff]  ;;  %v5615_v36 = vld [vmem:[%s19220_s8 + $0xd0] sm:$0xff] }
 0x6f6   :  { %v5629_v63 = vld [vmem:[%s19220_s8 + $0x140] sm:$0xff]  ;;  %v5630_v59 = vld [vmem:[%s19220_s8 + $0x148] sm:$0xff]  ;;  %v5616_v37 = vld [vmem:[%s19220_s8 + $0xd8] sm:$0xff] }
 0x6f7   :  { %10679 = vmatpush1.bf16.msra.mxu0 %v20239_v26  ;;  %10717 = vmatpush1.bf16.msra.mxu1 %v20240_v61  ;;  %v5642_v26 = vld [vmem:[%s19220_s8 + $0x1a8] sm:$0xff]  ;;  %v17564_v61 = vpack.c.bf16 %v5592_v21, %v5591_v40  ;;  %v17684_v35 = vpack.c.bf16 %v5616_v37, %v5615_v36  ;;  %v5631_v32 = vld [vmem:[%s19220_s8 + $0x150] sm:$0xff]  ;;  %v5632_v43 = vld [vmem:[%s19220_s8 + $0x158] sm:$0xff] }
 0x6f8   :  { %10681 = vmatprep.subr.bf16.mxu0 %v20241_v16  ;;  %10719 = vmatprep.subr.bf16.mxu1 %v20242_v29  ;;  %v5593_v29 = vld [vmem:[%s19220_s8 + $0x20] sm:$0xff]  ;;  %v17710_v21 = vpack.c.bf16 %v5632_v43, %v5631_v32  ;;  %v5651_v9 = vld [vmem:[%s19220_s8 + $0x1f0] sm:$0xff]  ;;  %v5652_v38 = vld [vmem:[%s19220_s8 + $0x1f8] sm:$0xff] }
 0x6f9   :  { %v5635_v25 = vld [vmem:[%s19220_s8 + $0x170] sm:$0xff]  ;;  %v5668_v36 = vld [vmem:[%s19221_s9 + $0x78] sm:$0xff] }
 0x6fb   :  { %10683 = vmatpush1.bf16.msra.mxu0 %v20243_v48  ;;  %10721 = vmatpush1.bf16.msra.mxu1 %v20244_v0  ;;  %v5594_v48 = vld [vmem:[%s19220_s8 + $0x28] sm:$0xff]  ;;  %v17578_v0 = vpack.c.bf16 %v5642_v26, %v5641_v2  ;;  %v5633_v2 = vld [vmem:[%s19220_s8 + $0x160] sm:$0xff] }
 0x6fc   :  { %10685 = vmatprep.subr.bf16.mxu0 %v20247_v47  ;;  %10723 = vmatprep.subr.bf16.mxu1 %v20250_v5  ;;  %v5611_v47 = vld [vmem:[%s19220_s8 + $0xb0] sm:$0xff]  ;;  %v5644_v5 = vld [vmem:[%s19220_s8 + $0x1b8] sm:$0xff]  ;;  %v17600_v11 = vpack.c.bf16 %v5594_v48, %v5593_v29  ;;  %v5634_v26 = vld [vmem:[%s19220_s8 + $0x168] sm:$0xff] }
 0x6fd   :  { %v17612_v51 = vpack.c.bf16 %v5612_v60, %v5611_v47  ;;  %v5619_v29 = vld [vmem:[%s19220_s8 + $0xf0] sm:$0xff]  ;;  %v5620_v48 = vld [vmem:[%s19220_s8 + $0xf8] sm:$0xff]  ;;  %v10798_v60 = vpack.c.bf16 %v5634_v26, %v5633_v2 }
 0x6ff   :  { %10687 = vmatpush1.bf16.msra.mxu0 %v20253_v24  ;;  %10725 = vmatpush1.bf16.msra.mxu1 %v20256_v23  ;;  %v5595_v24 = vld [vmem:[%s19220_s8 + $0x30] sm:$0xff]  ;;  %v17614_v23 = vpack.c.bf16 %v5644_v5, %v5643_v30  ;;  %v10768_v30 = vpack.c.bf16 %v5620_v48, %v5619_v29  ;;  %v10800_v5 = vpack.c.bf16 %v5652_v38, %v5651_v9 }
 0x700   :  { %10689 = vmatprep.subr.bf16.mxu0 %v20259_v56  ;;  %10727 = vmatprep.subr.bf16.mxu1 %v20262_v58  ;;  %v5613_v56 = vld [vmem:[%s19220_s8 + $0xc0] sm:$0xff]  ;;  %v5646_v58 = vld [vmem:[%s19220_s8 + $0x1c8] sm:$0xff]  ;;  %v17636_v13 = vpack.c.bf16 %v5596_v22, %v5595_v24  ;;  %v5603_v24 = vld [vmem:[%s19220_s8 + $0x70] sm:$0xff] }
 0x701   :  { %v17648_v14 = vpack.c.bf16 %v5614_v52, %v5613_v56  ;;  %v5604_v22 = vld [vmem:[%s19220_s8 + $0x78] sm:$0xff] }
 0x702   :  { %v10770_v4 = vpack.c.bf16 %v5604_v22, %v5603_v24  ;;  %v5636_v56 = vld [vmem:[%s19220_s8 + $0x178] sm:$0xff]  ;;  %v5670_v24 = vld [vmem:[%s19223_s11] sm:$0x1] }
 0x703   :  { %10691 = vmatpush1.bf16.msra.mxu0 %v20265_v3  ;;  %10729 = vmatpush1.bf16.msra.mxu1 %v20268_v1  ;;  %v5597_v3 = vld [vmem:[%s19220_s8 + $0x40] sm:$0xff]  ;;  %v17650_v1 = vpack.c.bf16 %v5646_v58, %v5645_v19  ;;  %v10802_v52 = vpack.c.bf16 %v5636_v56, %v5635_v25 }
 0x704   :  { %10693 = vmatprep.subr.bf16.mxu0 %v10692_v54  ;;  %10731 = vmatprep.subr.bf16.mxu1 %v10730_v18  ;;  %v20271_v54 = vpack.c.bf16 %v20269_v31, %v20270_v10  ;;  %v20272_v18 = vld [vmem:[#allocation102_spill] sm:$0xff]  ;;  %v5647_v31 = vld [vmem:[%s19220_s8 + $0x1d0] sm:$0xff]  ;;  %v5648_v10 = vld [vmem:[%s19220_s8 + $0x1d8] sm:$0xff] }
 0x705   :  { %v20274_v12 = vpack.c.bf16 %v20272_v18, %v20273_v53  ;;  %v17674_v18 = vpack.c.bf16 %v5630_v59, %v5629_v63  ;;  %v5599_v53 = vld [vmem:[%s19220_s8 + $0x50] sm:$0xff]  ;;  %v17686_v41 = vpack.c.bf16 %v5648_v10, %v5647_v31  ;;  %v5666_v63 = vld [vmem:[%s19221_s9 + $0x68] sm:$0xff]  ;;  %v5664_v59 = vld [vmem:[%s19221_s9 + $0x58] sm:$0xff] }
 0x706   :  { %v10880_v31 = vpack.c.bf16 %v5668_v36, %v5664_v59  ;;  %v5661_v10 = vld [vmem:[%s19221_s9 + $0x40] sm:$0xff]  ;;  %v20286_v36 = vld [vmem:[#allocation15_spill] sm:$0xff] }
 0x707   :  { %10695 = vmatpush1.bf16.msra.mxu0 %v20271_v54  ;;  %10733 = vmatpush1.bf16.msra.mxu1 %v20274_v12  ;;  %v17672_v54 = vpack.c.bf16 %v5598_v15, %v5597_v3  ;;  %v5600_v12 = vld [vmem:[%s19220_s8 + $0x58] sm:$0xff] }
 0x708   :  { %10698 = vmatprep.subr.msk.bf16.mxu0 %vm11850_vm3, %v10696_v34  ;;  %10736 = vmatprep.subr.msk.bf16.mxu1 %vm11850_vm3, %v10734_v39  ;;  %v5608_v39 = vld [vmem:[%s19220_s8 + $0x98] sm:$0xff]  ;;  %v5639_v34 = vld [vmem:[%s19220_s8 + $0x190] sm:$0xff]  ;;  %v17708_v40 = vpack.c.bf16 %v5600_v12, %v5599_v53 }
 0x709   :  { %v17540_v50 = vpack.c.bf16 %v5640_v6, %v5639_v34  ;;  %v5649_v34 = vld [vmem:[%s19220_s8 + $0x1e0] sm:$0xff]  ;;  %v5650_v6 = vld [vmem:[%s19220_s8 + $0x1e8] sm:$0xff]  ;;  %v5667_v12 = vld [vmem:[%s19221_s9 + $0x70] sm:$0xff] }
 0x70b   :  { %10701 = vmatpush1.bf16.msk.msra.mxu0 %vm11850_vm3, %v10699_v57  ;;  %10739 = vmatpush1.bf16.msk.msra.mxu1 %vm11850_vm3, %v10737_v17  ;;  %v17538_v57 = vpack.c.bf16 %v5608_v39, %v5607_v7  ;;  %v5623_v17 = vld [vmem:[%s19220_s8 + $0x110] sm:$0xff]  ;;  %v5617_v7 = vld [vmem:[%s19220_s8 + $0xe0] sm:$0xff]  ;;  %v5618_v39 = vld [vmem:[%s19220_s8 + $0xe8] sm:$0xff] }
 0x70c   :  { %10741 = vmatprep.subr.bf16.mxu0 %v17500_v8  ;;  %10773 = vmatprep.subr.bf16.mxu1 %v17502_v46  ;;  %v17566_v16 = vpack.c.bf16 %v5624_v28, %v5623_v17  ;;  %v5601_v17 = vld [vmem:[%s19220_s8 + $0x60] sm:$0xff]  ;;  %v5602_v28 = vld [vmem:[%s19220_s8 + $0x68] sm:$0xff] }
 0x70d   :  { %v10766_v47 = vpack.c.bf16 %v5602_v28, %v5601_v17 }
 0x70e   :  { %5986 = vmatmul.mubr.f32.vlgmr.msra.gmra.mrb[106].mxu0 %v17376_v33  ;;  %6057 = vmatmul.mubr.f32.vlgmr.msra.gmra.mrb[106].mxu1 %v17376_v33  ;;  %v17576_v33 = vpack.c.bf16 %v5610_v45, %v5609_v42  ;;  %v10764_v42 = vpack.c.bf16 %v5618_v39, %v5617_v7  ;;  %v10796_v45 = vpack.c.bf16 %v5650_v6, %v5649_v34 }
 0x70f   :  { %10743 = vmatpush3.bf16.msra.mxu0 %v17526_v27  ;;  %10775 = vmatpush3.bf16.msra.mxu1 %v17528_v49 }
 0x710   :  { %10745 = vmatprep.subr.bf16.mxu0 %v17538_v57  ;;  %10777 = vmatprep.subr.bf16.mxu1 %v17540_v50 }
 0x713   :  { %10747 = vmatpush3.bf16.msra.mxu0 %v17564_v61  ;;  %10779 = vmatpush3.bf16.msra.mxu1 %v17566_v16 }
 0x714   :  { %10749 = vmatprep.subr.bf16.mxu0 %v17576_v33  ;;  %10781 = vmatprep.subr.bf16.mxu1 %v17578_v0 }
 0x717   :  { %10751 = vmatpush3.bf16.msra.mxu0 %v17600_v11  ;;  %10783 = vmatpush3.bf16.msra.mxu1 %v17602_v55 }
 0x718   :  { %10753 = vmatprep.subr.bf16.mxu0 %v17612_v51  ;;  %10785 = vmatprep.subr.bf16.mxu1 %v17614_v23 }
 0x71b   :  { %10755 = vmatpush3.bf16.msra.mxu0 %v17636_v13  ;;  %10787 = vmatpush3.bf16.msra.mxu1 %v17638_v44 }
 0x71c   :  { %10757 = vmatprep.subr.bf16.mxu0 %v17648_v14  ;;  %10789 = vmatprep.subr.bf16.mxu1 %v17650_v1 }
 0x71f   :  { %10759 = vmatpush3.bf16.msra.mxu0 %v17672_v54  ;;  %10791 = vmatpush3.bf16.msra.mxu1 %v17674_v18 }
 0x720   :  { %10761 = vmatprep.subr.bf16.mxu0 %v17684_v35  ;;  %10793 = vmatprep.subr.bf16.mxu1 %v17686_v41 }
 0x723   :  { %10763 = vmatpush3.bf16.msra.mxu0 %v17708_v40  ;;  %10795 = vmatpush3.bf16.msra.mxu1 %v17710_v21 }
 0x724   :  { %10765 = vmatprep.subr.bf16.mxu0 %v10764_v42  ;;  %10797 = vmatprep.subr.bf16.mxu1 %v10796_v45 }
 0x727   :  { %10767 = vmatpush3.bf16.msra.mxu0 %v10766_v47  ;;  %10799 = vmatpush3.bf16.msra.mxu1 %v10798_v60 }
 0x728   :  { %10769 = vmatprep.subr.bf16.mxu0 %v10768_v30  ;;  %10801 = vmatprep.subr.bf16.mxu1 %v10800_v5 }
 0x72b   :  { %10771 = vmatpush3.bf16.msra.mxu0 %v10770_v4  ;;  %10803 = vmatpush3.bf16.msra.mxu1 %v10802_v52 }
 0x72c   :  { %10805 = vmatprep.subr.bf16.mxu0 %v17500_v8  ;;  %10837 = vmatprep.subr.bf16.mxu1 %v17502_v46 }
 0x7bd   :  { %v5761_v19 = vpop.f32.mrb[104].mxu0  ;;  %v5832_v58 = vpop.f32.mrb[104].mxu1 }
 0x7be   :  { %v5763_v3 = vpop.f32.mrb[105].mxu0  ;;  %v5834_v15 = vpop.f32.mrb[105].mxu1 }
 0x7bf   :  { %6127 = vmatprep.mubr.f32.mxu0 %v5763_v3  ;;  %6197 = vmatprep.mubr.f32.mxu1 %v5834_v15 }
 0x7c0   :  { %6128 = vmatmul.mubr.f32.vlgmr.msra.gmra.mrb[108].mxu0 %v5761_v19  ;;  %6198 = vmatmul.mubr.f32.vlgmr.msra.gmra.mrb[108].mxu1 %v5832_v58 }
 0x7c1   :  { %10807 = vmatpush3.bf16.msra.mxu0 %v17526_v27  ;;  %10839 = vmatpush3.bf16.msra.mxu1 %v17528_v49 }
 0x7c2   :  { %10809 = vmatprep.subr.bf16.mxu0 %v17538_v57  ;;  %10841 = vmatprep.subr.bf16.mxu1 %v17540_v50  ;;  %v20275_v57 = vmov 0.0   ;;  %v5654_v50 = vld [vmem:[%s19221_s9 + $0x8] sm:$0xff] }
 0x7c5   :  { %10811 = vmatpush3.bf16.msra.mxu0 %v17564_v61  ;;  %10843 = vmatpush3.bf16.msra.mxu1 %v17566_v16  ;;  %v5658_v61 = vld [vmem:[%s19221_s9 + $0x28] sm:$0xff]  ;;  %v5656_v16 = vld [vmem:[%s19221_s9 + $0x18] sm:$0xff] }
 0x7c6   :  { %10813 = vmatprep.subr.bf16.mxu0 %v17576_v33  ;;  %10845 = vmatprep.subr.bf16.mxu1 %v17578_v0  ;;  %v10868_v33 = vpack.c.bf16 %v5658_v61, %v5654_v50  ;;  %v5660_v0 = vld [vmem:[%s19221_s9 + $0x38] sm:$0xff]  ;;  %v20279_v61 = vld [vmem:[#allocation10_spill] sm:$0xff] }
 0x7c9   :  { %10815 = vmatpush3.bf16.msra.mxu0 %v17600_v11  ;;  %10847 = vmatpush3.bf16.msra.mxu1 %v17602_v55  ;;  %v5653_v11 = vld [vmem:[%s19221_s9] sm:$0xff] }
 0x7ca   :  { %10817 = vmatprep.subr.bf16.mxu0 %v17612_v51  ;;  %10849 = vmatprep.subr.bf16.mxu1 %v17614_v23  ;;  %v5657_v55 = vld [vmem:[%s19221_s9 + $0x20] sm:$0xff]  ;;  %v10876_v51 = vpack.c.bf16 %v5660_v0, %v5656_v16 }
 0x7cb   :  { %v10870_v23 = vpack.c.bf16 %v5657_v55, %v5653_v11  ;;  %v20281_v11 = vld [vmem:[#allocation12_spill] sm:$0xff] }
 0x7cd   :  { %10819 = vmatpush3.bf16.msra.mxu0 %v17636_v13  ;;  %10851 = vmatpush3.bf16.msra.mxu1 %v17638_v44  ;;  %v5655_v13 = vld [vmem:[%s19221_s9 + $0x10] sm:$0xff] }
 0x7ce   :  { %10821 = vmatprep.subr.bf16.mxu0 %v17648_v14  ;;  %10853 = vmatprep.subr.bf16.mxu1 %v17650_v1  ;;  %v5659_v44 = vld [vmem:[%s19221_s9 + $0x30] sm:$0xff]  ;;  %v5662_v14 = vld [vmem:[%s19221_s9 + $0x48] sm:$0xff] }
 0x7cf   :  { %v10878_v1 = vpack.c.bf16 %v5659_v44, %v5655_v13  ;;  %v10872_v37 = vpack.c.bf16 %v5666_v63, %v5662_v14  ;;  %v20283_v13 = vld [vmem:[#allocation14_spill] sm:$0xff]  ;;  %v20284_v14 = vld [vmem:[#allocation81_spill] sm:$0xff]  ;;  %v20285_v63 = vld [vmem:[#allocation88_spill] sm:$0xff] }
 0x7d1   :  { %10823 = vmatpush3.bf16.msra.mxu0 %v17672_v54  ;;  %10855 = vmatpush3.bf16.msra.mxu1 %v17674_v18  ;;  %v5665_v54 = vld [vmem:[%s19221_s9 + $0x60] sm:$0xff]  ;;  %v5663_v18 = vld [vmem:[%s19221_s9 + $0x50] sm:$0xff] }
 0x7d2   :  { %10825 = vmatprep.subr.bf16.mxu0 %v17684_v35  ;;  %10857 = vmatprep.subr.bf16.mxu1 %v17686_v41  ;;  %v10874_v53 = vpack.c.bf16 %v5665_v54, %v5661_v10  ;;  %v10882_v35 = vpack.c.bf16 %v5667_v12, %v5663_v18  ;;  %v20288_v54 = vld [vmem:[#allocation79_spill] sm:$0xff] }
 0x7d5   :  { %10827 = vmatpush3.bf16.msra.mxu0 %v17708_v40  ;;  %10859 = vmatpush3.bf16.msra.mxu1 %v17710_v21 }
 0x7d6   :  { %10829 = vmatprep.subr.bf16.mxu0 %v10764_v42  ;;  %10861 = vmatprep.subr.bf16.mxu1 %v10796_v45 }
 0x7d9   :  { %10831 = vmatpush3.bf16.msra.mxu0 %v10766_v47  ;;  %10863 = vmatpush3.bf16.msra.mxu1 %v10798_v60  ;;  %v5669_v47 = vld [vmem:[%s19222_s10] sm:$0x1] }
 0x7da   :  { %10833 = vmatprep.subr.bf16.mxu0 %v10768_v30  ;;  %10865 = vmatprep.subr.bf16.mxu1 %v10800_v5 }
 0x7dd   :  { %10835 = vmatpush3.bf16.msra.mxu0 %v10770_v4  ;;  %10867 = vmatpush3.bf16.msra.mxu1 %v10802_v52 }
 0x7de   :  { %10869 = vmatprep.subr.bf16.mxu0 %v10868_v33  ;;  %10877 = vmatprep.subr.bf16.mxu1 %v10876_v51 }
 0x7e1   :  { %v5987_v8 = vpop.f32.mrb[106].mxu0  ;;  %v6058_v46 = vpop.f32.mrb[106].mxu1 }
 0x7e2   :  { %v5989_v27 = vpop.f32.mrb[107].mxu0  ;;  %v6060_v49 = vpop.f32.mrb[107].mxu1 }
 0x7e3   :  { %6268 = vmatprep.mubr.f32.mxu0 %v5989_v27  ;;  %6338 = vmatprep.mubr.f32.mxu1 %v6060_v49  ;;  %v20277_v27 = vld [vmem:[#allocation8_spill] sm:$0xff] }
 0x7e4   :  { %6269 = vmatmul.mubr.f32.vlgmr.msra.gmra.mrb[110].mxu0 %v5987_v8  ;;  %6339 = vmatmul.mubr.f32.vlgmr.msra.gmra.mrb[110].mxu1 %v6058_v46  ;;  %v20276_v8 = vld [vmem:[#allocation164_spill] sm:$0xff] }
 0x7e5   :  { %6420 = vmatprep.mubr.f32.mxu0 %v20275_v57  ;;  %6491 = vmatprep.mubr.f32.mxu1 %v20275_v57 }
 0x7e6   :  { %10871 = vmatpush1.bf16.msra.mxu0 %v10870_v23  ;;  %10879 = vmatpush1.bf16.msra.mxu1 %v10878_v1 }
 0x7e7   :  { %10873 = vmatprep.subr.bf16.mxu0 %v10872_v37  ;;  %10881 = vmatprep.subr.bf16.mxu1 %v10880_v31 }
 0x7ea   :  { %10875 = vmatpush1.bf16.msra.mxu0 %v10874_v53  ;;  %10883 = vmatpush1.bf16.msra.mxu1 %v10882_v35 }
 0x7eb   :  { %10885 = vmatprep.subr.bf16.mxu0 %v10868_v33  ;;  %10893 = vmatprep.subr.bf16.mxu1 %v10876_v51  ;;  %v20280_v33 = vld [vmem:[#allocation9_spill] sm:$0xff]  ;;  %v20282_v51 = vld [vmem:[#allocation11_spill] sm:$0xff] }
 0x893   :  { %v9151_v41 = vpop.f32.mrb[108].mxu0  ;;  %v9186_v32 = vpop.f32.mrb[108].mxu1 }
 0x894   :  { %v9152_v43 = vpop.f32.mrb[109].mxu0  ;;  %v9187_v7 = vpop.f32.mrb[109].mxu1 }
 0x895   :  { %v9153_v39 = vadd.f32 %v9152_v43, %v9151_v41  ;;  %v9188_v34 = vadd.f32 %v9187_v7, %v9186_v32  ;;  %v20291_v32 = vld [vmem:[#allocation96_spill] sm:$0xff]  ;;  %v20292_v7 = vld [vmem:[#allocation91_spill] sm:$0xff] }
 0x897   :  { %v6200_v6 = vadd.f32 %v9188_v34, %v9153_v39  ;;  %v20293_v34 = vld [vmem:[#allocation78_spill] sm:$0xff] }
 0x899   :  { %v6203_v42 = vmul.f32 0.0006377551, %v6200_v6 }
 0x89b   :  { %v6345_v29 = vmul.f32 %v6203_v42, %v6203_v42 }
 0x8b7   :  { %v9221_v40 = vpop.f32.mrb[110].mxu0  ;;  %v9256_v21 = vpop.f32.mrb[110].mxu1 }
 0x8b8   :  { %v9222_v17 = vpop.f32.mrb[111].mxu0  ;;  %v9257_v28 = vpop.f32.mrb[111].mxu1 }
 0x8b9   :  { %v9223_v45 = vadd.f32 %v9222_v17, %v9221_v40  ;;  %v9258_v2 = vadd.f32 %v9257_v28, %v9256_v21  ;;  %v20294_v40 = vld [vmem:[#allocation87_spill] sm:$0xff]  ;;  %v20295_v17 = vld [vmem:[#allocation18_spill] sm:$0xff] }
 0x8bb   :  { %v6341_v26 = vadd.f32 %v9258_v2, %v9223_v45  ;;  %v20296_v2 = vld [vmem:[#allocation17_spill] sm:$0xff] }
 0x8bd   :  { %v6344_v48 = vmul.f32 0.0006377551, %v6341_v26 }
 0x8bf   :  { %v6346_v9 = vsub.f32 %v6344_v48, %v6345_v29  ;;  %v20297_v29 = vld [vmem:[#allocation94_spill] sm:$0xff] }
 0x8c1   :  { %v6347_v38 = vadd.f32 1e-05, %v6346_v9  ;;  %v20298_v9 = vld [vmem:[#allocation23_spill] sm:$0xff] }
 0x8c3   :  { %11455 = vrsqrt.f32 %v6347_v38 }
 0x8cd   :  { %v11456_v60 = vpop.eup %11455 }
 0x8ce   :  { %v6349_v30 = vmul.f32 %v11456_v60, %v5669_v47  ;;  %v20299_v47 = vld [vmem:[#allocation104_spill] sm:$0xff] }
 0x8d0   :  { %8773 = vmatmul.mubr.msk.f32.vlgmr.msra.gmra.mrb[112].mxu0 %vm6352_vm10, %v6349_v30  ;;  %8774 = vmatmul.mubr.msk.f32.vlgmr.msra.gmra.mrb[112].mxu1 %vm6352_vm10, %v6349_v30  ;;  %v6350_v5 = vmul.f32 %v6349_v30, %v6203_v42 }
 0x8d1   :  { %10887 = vmatpush1.bf16.msra.mxu0 %v10870_v23  ;;  %10895 = vmatpush1.bf16.msra.mxu1 %v10878_v1 }
 0x8d2   :  { %10889 = vmatprep.subr.bf16.mxu0 %v10872_v37  ;;  %10897 = vmatprep.subr.bf16.mxu1 %v10880_v31  ;;  %v6351_v22 = vsub.f32 %v5670_v24, %v6350_v5  ;;  %v20287_v31 = vld [vmem:[#allocation80_spill] sm:$0xff] }
 0x8d3   :  { %6565 = vmatprep.mubr.f32.mxu0 %v20275_v57  ;;  %6636 = vmatprep.mubr.f32.mxu1 %v20275_v57  ;;  %v20278_v57 = vld [vmem:[#allocation13_spill] sm:$0xff] }
 0x8d5   :  { %10891 = vmatpush1.bf16.msra.mxu0 %v10874_v53  ;;  %10899 = vmatpush1.bf16.msra.mxu1 %v10882_v35  ;;  %v20289_v53 = vld [vmem:[#allocation83_spill] sm:$0xff] }
 0x8d6   :  { %v20290_v35 = vld [vmem:[#allocation19_spill] sm:$0xff] }
 0x8d8   :  { %8775 = vmatmul.mubr.msk.f32.vlgmr.msra.gmra.mrb[114].mxu0 %vm6352_vm10, %v6351_v22  ;;  %8776 = vmatmul.mubr.msk.f32.vlgmr.msra.gmra.mrb[114].mxu1 %vm6352_vm10, %v6351_v22 }
 0x9a3   :  { %v6422_v25 = vpop.f32.mrb[112].mxu0  ;;  %v6493_v4 = vpop.f32.mrb[112].mxu1 }
 0x9a4   :  { %v17839_v56 = vrot.slane %v6422_v25, %v20224_v62  ;;  %v17842_v52 = vrot.slane %v6493_v4, %v20224_v62  ;;  %v6424_v19 = vpop.f32.mrb[113].mxu0  ;;  %v6495_v58 = vpop.f32.mrb[113].mxu1  ;;  %v20300_v25 = vld [vmem:[#allocation97_spill] sm:$0xff] }
 0x9a5   :  { %v17845_v3 = vrot.slane %v6424_v19, %v20224_v62  ;;  %v17848_v15 = vrot.slane %v6495_v58, %v20224_v62  ;;  %v20301_v19 = vld [vmem:[#allocation16_spill] sm:$0xff] }
 0x9a6   :  { %v6659_v46 = vmul.f32 %v17839_v56, %v20276_v8  ;;  %v6661_v49 = vmul.f32 %v17842_v52, %v20277_v27  ;;  %v6663_v50 = vmul.f32 %v17839_v56, %v20278_v57  ;;  %v6665_v16 = vmul.f32 %v17842_v52, %v20279_v61  ;;  %v20302_v57 = vld [vmem:[#allocation95_spill] sm:$0xff] }
 0x9a7   :  { %v6660_v0 = vmul.f32 %v17845_v3, %v20280_v33  ;;  %v6662_v55 = vmul.f32 %v17848_v15, %v20281_v11  ;;  %v6664_v23 = vmul.f32 %v17845_v3, %v20282_v51  ;;  %v6666_v44 = vmul.f32 %v17848_v15, %v20283_v13  ;;  %v20303_v33 = vld [vmem:[#allocation22_spill] sm:$0xff] }
 0x9a8   :  { %v6668_v1 = vmul.f32 %v17845_v3, %v20284_v14  ;;  %v6670_v59 = vmul.f32 %v17848_v15, %v20285_v63  ;;  %v6667_v37 = vmul.f32 %v17839_v56, %v20286_v36  ;;  %v6669_v10 = vmul.f32 %v17842_v52, %v20287_v31 }
 0x9a9   :  { %v17876_v18 = vmul.f32 %v17845_v3, %v20288_v54  ;;  %v17880_v12 = vmul.f32 %v17848_v15, %v20289_v53  ;;  %v17884_v41 = vmul.f32 %v17845_v3, %v20290_v35  ;;  %v17888_v43 = vmul.f32 %v17848_v15, %v20291_v32 }
 0x9aa   :  { %v17892_v39 = vmul.f32 %v17839_v56, %v20292_v7  ;;  %v17896_v6 = vmul.f32 %v17842_v52, %v20293_v34  ;;  %v17900_v21 = vmul.f32 %v17839_v56, %v20294_v40  ;;  %v17904_v28 = vmul.f32 %v17842_v52, %v20295_v17 }
 0x9ab   :  { %v6567_v42 = vpop.f32.mrb[114].mxu0  ;;  %v6638_v45 = vpop.f32.mrb[114].mxu1  ;;  %v17908_v26 = vmul.f32 %v17845_v3, %v20296_v2  ;;  %v17912_v48 = vmul.f32 %v17848_v15, %v20297_v29  ;;  %v17916_v38 = vmul.f32 %v17845_v3, %v20298_v9  ;;  %v17920_v60 = vmul.f32 %v17848_v15, %v20299_v47 }
 0x9ac   :  { %v17923_v30 = vrot.slane %v6567_v42, %v20224_v62  ;;  %v17926_v5 = vrot.slane %v6638_v45, %v20224_v62  ;;  %v6569_v24 = vpop.f32.mrb[115].mxu0  ;;  %v6640_v22 = vpop.f32.mrb[115].mxu1  ;;  %v17930_v4 = vmul.f32 %v17839_v56, %v20300_v25  ;;  %v17934_v58 = vmul.f32 %v17842_v52, %v20301_v19 }
 0x9ad   :  { %v17937_v8 = vrot.slane %v6569_v24, %v20224_v62  ;;  %v17940_v27 = vrot.slane %v6640_v22, %v20224_v62  ;;  %v17944_v61 = vmul.f32 %v17839_v56, %v20302_v57  ;;  %v17948_v11 = vmul.f32 %v17842_v52, %v20303_v33 }
 0x9ae   :  { %v6747_v51 = vadd.f32 %v17923_v30, %v6659_v46  ;;  %v6749_v13 = vadd.f32 %v17926_v5, %v6661_v49  ;;  %v6751_v14 = vadd.f32 %v17923_v30, %v6663_v50  ;;  %v6753_v63 = vadd.f32 %v17926_v5, %v6665_v16 }
 0x9af   :  { %v6748_v36 = vadd.f32 %v17937_v8, %v6660_v0  ;;  %v6750_v62 = vadd.f32 %v17940_v27, %v6662_v55  ;;  %v6752_v31 = vadd.f32 %v17937_v8, %v6664_v23  ;;  %v6754_v54 = vadd.f32 %v17940_v27, %v6666_v44 }
 0x9b0   :  { %v17959_v53 = vadd.f32 %v17937_v8, %v6668_v1  ;;  %v17962_v35 = vadd.f32 %v17940_v27, %v6670_v59  ;;  %v17965_v46 = vadd.f32 %v17923_v30, %v6667_v37  ;;  %v17968_v49 = vadd.f32 %v17926_v5, %v6669_v10 }
 0x9b1   :  { %v6820_v50 = vmax.f32 %v6748_v36, 0.0  ;;  %v6822_v16 = vmax.f32 %v6750_v62, 0.0  ;;  %v6824_v0 = vmax.f32 %v6752_v31, 0.0  ;;  %v6826_v55 = vmax.f32 %v6754_v54, 0.0 }
 0x9b2   :  { %v6828_v23 = vmax.f32 %v17959_v53, 0.0  ;;  %v6830_v44 = vmax.f32 %v17962_v35, 0.0  ;;  %v6819_v32 = vmax.f32 %v6747_v51, 0.0  ;;  %v6821_v1 = vmax.f32 %v6749_v13, 0.0 }
 0x9b3   :  { %v6966_v7 = vrot.slane %v6820_v50, 1  ;;  %v6967_v34 = vrot.slane %v6824_v0, 1  ;;  %v6972_v59 = vrot.slane %v6822_v16, 1  ;;  %v6973_v40 = vrot.slane %v6826_v55, 1 }
 0x9b4   :  { %v6977_v37 = vrot.slane %v6828_v23, 1  ;;  %v6981_v10 = vrot.slane %v6830_v44, 1  ;;  %v6823_v17 = vmax.f32 %v6751_v14, 0.0  ;;  %v6825_v42 = vmax.f32 %v6753_v63, 0.0 }
 0x9b5   :  { %v6968_v45 = vsel %vm2805_vm7, %v6966_v7, %v6967_v34  ;;  %v6974_v2 = vsel %vm2805_vm7, %v6972_v59, %v6973_v40  ;;  %v6827_v29 = vmax.f32 %v17965_v46, 0.0  ;;  %v6829_v9 = vmax.f32 %v17968_v49, 0.0 }
 0x9b6   :  { %v6978_v47 = vsel %vm2805_vm7, %v6967_v34, %v6977_v37  ;;  %v6982_v24 = vsel %vm2805_vm7, %v6973_v40, %v6981_v10  ;;  %v7176_v22 = vmax.f32 %v6820_v50, %v6968_v45  ;;  %v7178_v25 = vmax.f32 %v6822_v16, %v6974_v2 }
 0x9b7   :  { %v7180_v19 = vmax.f32 %v6824_v0, %v6978_v47  ;;  %v7182_v57 = vmax.f32 %v6826_v55, %v6982_v24  ;;  %v6963_v33 = vrot.slane %v6819_v32, 1  ;;  %v6964_v51 = vrot.slane %v6823_v17, 1 }
 0x9b8   :  { %v7248_v13 = vmax.f32 %v7176_v22, %v7178_v25  ;;  %v6969_v14 = vrot.slane %v6821_v1, 1  ;;  %v6970_v63 = vrot.slane %v6825_v42, 1  ;;  %v6975_v36 = vrot.slane %v6827_v29, 1 }
 0x9b9   :  { %v7250_v62 = vmax.f32 %v7180_v19, %v7182_v57  ;;  %v6965_v31 = vsel %vm2805_vm7, %v6963_v33, %v6964_v51  ;;  %v6979_v54 = vrot.slane %v6829_v9, 1  ;;  %v6760_v50 = vadd.f32 %v17937_v8, %v17876_v18 }
 0x9ba   :  { %v6971_v16 = vsel %vm2805_vm7, %v6969_v14, %v6970_v63  ;;  %v6976_v0 = vsel %vm2805_vm7, %v6964_v51, %v6975_v36  ;;  %v7175_v55 = vmax.f32 %v6819_v32, %v6965_v31  ;;  %v6762_v7 = vadd.f32 %v17940_v27, %v17880_v12 }
 0x9bb   :  { %v10900_v34 = vpack.c.bf16 %v7250_v62, %v7248_v13  ;;  %v6980_v59 = vsel %vm2805_vm7, %v6970_v63, %v6979_v54  ;;  %v7177_v40 = vmax.f32 %v6821_v1, %v6971_v16  ;;  %v7179_v45 = vmax.f32 %v6823_v17, %v6976_v0 }
 0x9bc   :  { %v7181_v2 = vmax.f32 %v6825_v42, %v6980_v59  ;;  %v17996_v47 = vadd.f32 %v17937_v8, %v17884_v41  ;;  %v18000_v18 = vadd.f32 %v17940_v27, %v17888_v43  ;;  %v6832_v24 = vmax.f32 %v6760_v50, 0.0 }
 0x9bd   :  { %10901 = vmatprep.subr.bf16.mxu0 %v10900_v34  ;;  %v7247_v32 = vmax.f32 %v7175_v55, %v7177_v40  ;;  %v6834_v22 = vmax.f32 %v6762_v7, 0.0  ;;  %v6759_v12 = vadd.f32 %v17923_v30, %v17892_v39  ;;  %v6761_v1 = vadd.f32 %v17926_v5, %v17896_v6 }
 0x9be   :  { %v7249_v17 = vmax.f32 %v7179_v45, %v7181_v2  ;;  %v6836_v42 = vmax.f32 %v17996_v47, 0.0  ;;  %v6838_v41 = vmax.f32 %v18000_v18, 0.0  ;;  %v6985_v25 = vrot.slane %v6832_v24, 1 }
 0x9bf   :  { %v6989_v19 = vrot.slane %v6834_v22, 1  ;;  %v18010_v43 = vadd.f32 %v17923_v30, %v17900_v21  ;;  %v18014_v57 = vadd.f32 %v17926_v5, %v17904_v28  ;;  %v6831_v33 = vmax.f32 %v6759_v12, 0.0 }
 0x9c0   :  { %v10902_v39 = vpack.c.bf16 %v7249_v17, %v7247_v32  ;;  %v6986_v51 = vsel %vm2805_vm7, %v6977_v37, %v6985_v25  ;;  %v6993_v6 = vrot.slane %v6836_v42, 1  ;;  %v6997_v13 = vrot.slane %v6838_v41, 1 }
 0x9c1   :  { %v6990_v14 = vsel %vm2805_vm7, %v6981_v10, %v6989_v19  ;;  %v7184_v21 = vmax.f32 %v6828_v23, %v6986_v51  ;;  %v6833_v63 = vmax.f32 %v6761_v1, 0.0  ;;  %v6835_v62 = vmax.f32 %v18010_v43, 0.0 }
 0x9c2   :  { %10903 = vmatpush1.bf16.msra.mxu0 %v10902_v39  ;;  %v6994_v28 = vsel %vm2805_vm7, %v6985_v25, %v6993_v6  ;;  %v6998_v31 = vsel %vm2805_vm7, %v6989_v19, %v6997_v13  ;;  %v7186_v37 = vmax.f32 %v6830_v44, %v6990_v14  ;;  %v6837_v50 = vmax.f32 %v18014_v57, 0.0 }
 0x9c3   :  { %v7188_v16 = vmax.f32 %v6832_v24, %v6994_v28  ;;  %v7190_v0 = vmax.f32 %v6834_v22, %v6998_v31  ;;  %v6983_v55 = vrot.slane %v6831_v33, 1  ;;  %v6987_v10 = vrot.slane %v6833_v63, 1 }
 0x9c4   :  { %v7252_v7 = vmax.f32 %v7184_v21, %v7186_v37  ;;  %v6991_v53 = vrot.slane %v6835_v62, 1  ;;  %v6995_v23 = vrot.slane %v6837_v50, 1  ;;  %v6768_v34 = vadd.f32 %v17937_v8, %v17908_v26 }
 0x9c5   :  { %v7254_v59 = vmax.f32 %v7188_v16, %v7190_v0  ;;  %v6984_v35 = vsel %vm2805_vm7, %v6975_v36, %v6983_v55  ;;  %v6988_v44 = vsel %vm2805_vm7, %v6979_v54, %v6987_v10  ;;  %v6770_v40 = vadd.f32 %v17940_v27, %v17912_v48 }
 0x9c6   :  { %v6992_v45 = vsel %vm2805_vm7, %v6983_v55, %v6991_v53  ;;  %v6996_v2 = vsel %vm2805_vm7, %v6987_v10, %v6995_v23  ;;  %v7183_v24 = vmax.f32 %v6827_v29, %v6984_v35  ;;  %v7185_v32 = vmax.f32 %v6829_v9, %v6988_v44 }
 0x9c7   :  { %v10904_v22 = vpack.c.bf16 %v7254_v59, %v7252_v7  ;;  %v7187_v26 = vmax.f32 %v6831_v33, %v6992_v45  ;;  %v7189_v12 = vmax.f32 %v6833_v63, %v6996_v2  ;;  %v18048_v36 = vadd.f32 %v17937_v8, %v17916_v38 }
 0x9c8   :  { %v7251_v54 = vmax.f32 %v7183_v24, %v7185_v32  ;;  %v18052_v48 = vadd.f32 %v17940_v27, %v17920_v60  ;;  %v6840_v1 = vmax.f32 %v6768_v34, 0.0  ;;  %v6842_v17 = vmax.f32 %v6770_v40, 0.0  ;;  %v20305_v34 = vld [vmem:[#allocation99_spill] sm:$0xff] }
 0x9c9   :  { %10905 = vmatprep.subr.bf16.mxu0 %v10904_v22  ;;  %v7253_v46 = vmax.f32 %v7187_v26, %v7189_v12  ;;  %v6844_v29 = vmax.f32 %v18048_v36, 0.0  ;;  %v6767_v49 = vadd.f32 %v17923_v30, %v17930_v4  ;;  %v6769_v9 = vadd.f32 %v17926_v5, %v17934_v58  ;;  %v20306_v32 = vld [vmem:[#allocation27_spill] sm:$0xff]  ;;  %v20312_v36 = vld [vmem:[#allocation25_spill] sm:$0xff] }
 0x9ca   :  { %v6846_v38 = vmax.f32 %v18052_v48, 0.0  ;;  %v7001_v25 = vrot.slane %v6840_v1, 1  ;;  %v7005_v19 = vrot.slane %v6842_v17, 1  ;;  %v18062_v60 = vadd.f32 %v17923_v30, %v17944_v61 }
 0x9cb   :  { %v10906_v33 = vpack.c.bf16 %v7253_v46, %v7251_v54  ;;  %v7009_v39 = vrot.slane %v6844_v29, 1  ;;  %v18068_v51 = vadd.f32 %v17926_v5, %v17948_v11  ;;  %v6839_v4 = vmax.f32 %v6767_v49, 0.0  ;;  %v20307_v54 = vld [vmem:[#allocation112_spill] sm:$0xff]  ;;  %v20308_v46 = vld [vmem:[#allocation107_spill] sm:$0xff] }
 0x9cc   :  { %v7002_v14 = vsel %vm2805_vm7, %v6993_v6, %v7001_v25  ;;  %v7006_v58 = vsel %vm2805_vm7, %v6997_v13, %v7005_v19  ;;  %v7013_v21 = vrot.slane %v6846_v38, 1  ;;  %v6841_v63 = vmax.f32 %v6769_v9, 0.0 }
 0x9cd   :  { %10907 = vmatpush1.bf16.msra.mxu0 %v10906_v33  ;;  %v7010_v61 = vsel %vm2805_vm7, %v7001_v25, %v7009_v39  ;;  %v7192_v28 = vmax.f32 %v6836_v42, %v7002_v14  ;;  %v7194_v31 = vmax.f32 %v6838_v41, %v7006_v58  ;;  %v6843_v11 = vmax.f32 %v18062_v60, 0.0  ;;  %v20304_v42 = vld [vmem:[#allocation21_spill] sm:$0xff]  ;;  %v20309_v25 = vld [vmem:[#allocation20_spill] sm:$0xff]  ;;  %v20310_v14 = vld [vmem:[#allocation103_spill] sm:$0xff] }
 0x9ce   :  { %v7014_v37 = vsel %vm2805_vm7, %v7005_v19, %v7013_v21  ;;  %v7196_v6 = vmax.f32 %v6840_v1, %v7010_v61  ;;  %v6845_v13 = vmax.f32 %v18068_v51, 0.0  ;;  %v6999_v16 = vrot.slane %v6839_v4, 1 }
 0x9cf   :  { %v7198_v0 = vmax.f32 %v6842_v17, %v7014_v37  ;;  %v7256_v55 = vmax.f32 %v7192_v28, %v7194_v31  ;;  %v7003_v10 = vrot.slane %v6841_v63, 1  ;;  %v7007_v7 = vrot.slane %v6843_v11, 1 }
 0x9d0   :  { %v7000_v47 = vsel %vm2805_vm7, %v6991_v53, %v6999_v16  ;;  %v7011_v18 = vrot.slane %v6845_v13, 1  ;;  %v6688_v41 = vmul.f32 %v17845_v3, %v20304_v42  ;;  %v6690_v59 = vmul.f32 %v17848_v15, %v20305_v34 }
 0x9d1   :  { %v7258_v35 = vmax.f32 %v7196_v6, %v7198_v0  ;;  %v7004_v44 = vsel %vm2805_vm7, %v6995_v23, %v7003_v10  ;;  %v7008_v40 = vsel %vm2805_vm7, %v6999_v16, %v7007_v7  ;;  %v7191_v45 = vmax.f32 %v6835_v62, %v7000_v47 }
 0x9d2   :  { %v7012_v2 = vsel %vm2805_vm7, %v7003_v10, %v7011_v18  ;;  %v7193_v53 = vmax.f32 %v6837_v50, %v7004_v44  ;;  %v7195_v24 = vmax.f32 %v6839_v4, %v7008_v40  ;;  %v6692_v22 = vmul.f32 %v17845_v3, %v20306_v32 }
 0x9d3   :  { %v10908_v26 = vpack.c.bf16 %v7258_v35, %v7256_v55  ;;  %v7197_v12 = vmax.f32 %v6841_v63, %v7012_v2  ;;  %v6694_v1 = vmul.f32 %v17848_v15, %v20307_v54  ;;  %v6776_v23 = vadd.f32 %v17937_v8, %v6688_v41  ;;  %v20311_v63 = vld [vmem:[#allocation26_spill] sm:$0xff]  ;;  %v20313_v54 = vld [vmem:[#allocation61_spill] sm:$0xff] }
 0x9d4   :  { %v7255_v17 = vmax.f32 %v7191_v45, %v7193_v53  ;;  %v6778_v43 = vadd.f32 %v17940_v27, %v6690_v59  ;;  %v18105_v62 = vadd.f32 %v17937_v8, %v6692_v22  ;;  %v6687_v57 = vmul.f32 %v17839_v56, %v20308_v46 }
 0x9d5   :  { %10909 = vmatprep.subr.bf16.mxu0 %v10908_v26  ;;  %v7257_v50 = vmax.f32 %v7195_v24, %v7197_v12  ;;  %v18110_v49 = vadd.f32 %v17940_v27, %v6694_v1  ;;  %v6848_v9 = vmax.f32 %v6776_v23, 0.0  ;;  %v6689_v19 = vmul.f32 %v17842_v52, %v20309_v25 }
 0x9d6   :  { %v6850_v33 = vmax.f32 %v6778_v43, 0.0  ;;  %v6852_v4 = vmax.f32 %v18105_v62, 0.0  ;;  %v6691_v58 = vmul.f32 %v17839_v56, %v20310_v14  ;;  %v6693_v61 = vmul.f32 %v17842_v52, %v20311_v63 }
 0x9d7   :  { %v10910_v28 = vpack.c.bf16 %v7257_v50, %v7255_v17  ;;  %v6854_v31 = vmax.f32 %v18110_v49, 0.0  ;;  %v7017_v37 = vrot.slane %v6848_v9, 1  ;;  %v6775_v6 = vadd.f32 %v17923_v30, %v6687_v57  ;;  %v20314_v50 = vld [vmem:[#allocation110_spill] sm:$0xff] }
 0x9d8   :  { %v7021_v16 = vrot.slane %v6850_v33, 1  ;;  %v18123_v0 = vrot.slane %v6852_v4, 1  ;;  %v6777_v55 = vadd.f32 %v17926_v5, %v6689_v19  ;;  %v18127_v10 = vadd.f32 %v17923_v30, %v6691_v58 }
 0x9d9   :  { %10911 = vmatpush1.bf16.msra.mxu0 %v10910_v28  ;;  %v7018_v47 = vsel %vm2805_vm7, %v7009_v39, %v7017_v37  ;;  %v7029_v42 = vrot.slane %v6854_v31, 1  ;;  %v18133_v41 = vadd.f32 %v17926_v5, %v6693_v61  ;;  %v6847_v34 = vmax.f32 %v6775_v6, 0.0  ;;  %v20317_v28 = vld [vmem:[#allocation24_spill] sm:$0xff] }
 0x9da   :  { %v7022_v59 = vsel %vm2805_vm7, %v7013_v21, %v7021_v16  ;;  %v7026_v35 = vsel %vm2805_vm7, %v7017_v37, %v18123_v0  ;;  %v7200_v44 = vmax.f32 %v6844_v29, %v7018_v47  ;;  %v6849_v40 = vmax.f32 %v6777_v55, 0.0  ;;  %v20318_v47 = vld [vmem:[#allocation55_spill] sm:$0xff] }
 0x9db   :  { %v7030_v45 = vsel %vm2805_vm7, %v7021_v16, %v7029_v42  ;;  %v7202_v39 = vmax.f32 %v6846_v38, %v7022_v59  ;;  %v7204_v2 = vmax.f32 %v6848_v9, %v7026_v35  ;;  %v6851_v53 = vmax.f32 %v18127_v10, 0.0 }
 0x9dc   :  { %v7206_v24 = vmax.f32 %v6850_v33, %v7030_v45  ;;  %v6853_v32 = vmax.f32 %v18133_v41, 0.0  ;;  %v7015_v22 = vrot.slane %v6847_v34, 1  ;;  %v7019_v21 = vrot.slane %v6849_v40, 1  ;;  %v20315_v33 = vld [vmem:[#allocation111_spill] sm:$0xff] }
 0x9dd   :  { %v7260_v26 = vmax.f32 %v7200_v44, %v7202_v39  ;;  %v7023_v12 = vrot.slane %v6851_v53, 1  ;;  %v6696_v29 = vmul.f32 %v17845_v3, %v20312_v36  ;;  %v6698_v1 = vmul.f32 %v17848_v15, %v20313_v54  ;;  %v20319_v44 = vld [vmem:[#allocation60_spill] sm:$0xff] }
 0x9de   :  { %v7262_v48 = vmax.f32 %v7204_v2, %v7206_v24  ;;  %v7016_v38 = vsel %vm2805_vm7, %v7007_v7, %v7015_v22  ;;  %v7020_v23 = vsel %vm2805_vm7, %v7011_v18, %v7019_v21  ;;  %v7027_v17 = vrot.slane %v6853_v32, 1 }
 0x9df   :  { %v7024_v43 = vsel %vm2805_vm7, %v7015_v22, %v7023_v12  ;;  %v7199_v46 = vmax.f32 %v6843_v11, %v7016_v38  ;;  %v7201_v57 = vmax.f32 %v6845_v13, %v7020_v23  ;;  %v6700_v9 = vmul.f32 %v17845_v3, %v20314_v50  ;;  %v20316_v13 = vld [vmem:[#allocation113_spill] sm:$0xff] }
 0x9e0   :  { %v10912_v25 = vpack.c.bf16 %v7262_v48, %v7260_v26  ;;  %v7028_v19 = vsel %vm2805_vm7, %v7019_v21, %v7027_v17  ;;  %v7203_v7 = vmax.f32 %v6847_v34, %v7024_v43  ;;  %v6702_v18 = vmul.f32 %v17848_v15, %v20315_v33  ;;  %v20320_v33 = vld [vmem:[#allocation74_spill] sm:$0xff] }
 0x9e1   :  { %v7205_v14 = vmax.f32 %v6849_v40, %v7028_v19  ;;  %v7259_v58 = vmax.f32 %v7199_v46, %v7201_v57  ;;  %v6784_v63 = vadd.f32 %v17937_v8, %v6696_v29  ;;  %v6786_v60 = vadd.f32 %v17940_v27, %v6698_v1 }
 0x9e2   :  { %10913 = vmatprep.subr.bf16.mxu0 %v10912_v25  ;;  %v18168_v51 = vadd.f32 %v17937_v8, %v6700_v9  ;;  %v18171_v11 = vadd.f32 %v17940_v27, %v6702_v18  ;;  %v6695_v61 = vmul.f32 %v17839_v56, %v20316_v13  ;;  %v6697_v37 = vmul.f32 %v17842_v52, %v20317_v28 }
 0x9e3   :  { %v7261_v6 = vmax.f32 %v7203_v7, %v7205_v14  ;;  %v6856_v16 = vmax.f32 %v6784_v63, 0.0  ;;  %v6858_v55 = vmax.f32 %v6786_v60, 0.0  ;;  %v6699_v34 = vmul.f32 %v17839_v56, %v20318_v47  ;;  %v20322_v60 = vld [vmem:[#allocation115_spill] sm:$0xff] }
 0x9e4   :  { %v6860_v59 = vmax.f32 %v18168_v51, 0.0  ;;  %v6862_v35 = vmax.f32 %v18171_v11, 0.0  ;;  %v6701_v40 = vmul.f32 %v17842_v52, %v20319_v44  ;;  %v6783_v45 = vadd.f32 %v17923_v30, %v6695_v61  ;;  %v20323_v61 = vld [vmem:[#allocation119_spill] sm:$0xff] }
 0x9e5   :  { %v10914_v39 = vpack.c.bf16 %v7261_v6, %v7259_v58  ;;  %v7033_v2 = vrot.slane %v6856_v16, 1  ;;  %v7037_v24 = vrot.slane %v6858_v55, 1  ;;  %v6785_v22 = vadd.f32 %v17926_v5, %v6697_v37 }
 0x9e6   :  { %v7041_v21 = vrot.slane %v6860_v59, 1  ;;  %v18189_v26 = vrot.slane %v6862_v35, 1  ;;  %v18192_v36 = vadd.f32 %v17923_v30, %v6699_v34  ;;  %v18195_v29 = vadd.f32 %v17926_v5, %v6701_v40 }
 0x9e7   :  { %10915 = vmatpush1.bf16.msra.mxu0 %v10914_v39  ;;  %v7034_v54 = vsel %vm2805_vm7, %v18123_v0, %v7033_v2  ;;  %v7038_v1 = vsel %vm2805_vm7, %v7029_v42, %v7037_v24  ;;  %v6855_v48 = vmax.f32 %v6783_v45, 0.0  ;;  %v6857_v38 = vmax.f32 %v6785_v22, 0.0  ;;  %v20324_v39 = vld [vmem:[#allocation31_spill] sm:$0xff] }
 0x9e8   :  { %v7042_v23 = vsel %vm2805_vm7, %v7033_v2, %v7041_v21  ;;  %v7046_v43 = vsel %vm2805_vm7, %v7037_v24, %v18189_v26  ;;  %v7208_v46 = vmax.f32 %v6852_v4, %v7034_v54  ;;  %v7210_v57 = vmax.f32 %v6854_v31, %v7038_v1  ;;  %v20321_v4 = vld [vmem:[#allocation76_spill] sm:$0xff] }
 0x9e9   :  { %v7212_v50 = vmax.f32 %v6856_v16, %v7042_v23  ;;  %v7214_v9 = vmax.f32 %v6858_v55, %v7046_v43  ;;  %v6859_v25 = vmax.f32 %v18192_v36, 0.0  ;;  %v6861_v0 = vmax.f32 %v18195_v29, 0.0 }
 0x9ea   :  { %v7264_v42 = vmax.f32 %v7208_v46, %v7210_v57  ;;  %v7031_v19 = vrot.slane %v6855_v48, 1  ;;  %v7035_v7 = vrot.slane %v6857_v38, 1  ;;  %v6704_v18 = vmul.f32 %v17845_v3, %v20320_v33  ;;  %v20327_v46 = vld [vmem:[#allocation70_spill] sm:$0xff] }
 0x9eb   :  { %v7266_v14 = vmax.f32 %v7212_v50, %v7214_v9  ;;  %v7039_v62 = vrot.slane %v6859_v25, 1  ;;  %v7043_v49 = vrot.slane %v6861_v0, 1  ;;  %v6706_v31 = vmul.f32 %v17848_v15, %v20321_v4 }
 0x9ec   :  { %v7032_v58 = vsel %vm2805_vm7, %v7023_v12, %v7031_v19  ;;  %v7036_v63 = vsel %vm2805_vm7, %v7027_v17, %v7035_v7  ;;  %v6708_v13 = vmul.f32 %v17845_v3, %v20322_v60  ;;  %v6710_v28 = vmul.f32 %v17848_v15, %v20323_v61 }
 0x9ed   :  { %v10916_v37 = vpack.c.bf16 %v7266_v14, %v7264_v42  ;;  %v7040_v6 = vsel %vm2805_vm7, %v7031_v19, %v7039_v62  ;;  %v7044_v16 = vsel %vm2805_vm7, %v7035_v7, %v7043_v49  ;;  %v7207_v55 = vmax.f32 %v6851_v53, %v7032_v58 }
 0x9ee   :  { %v7209_v47 = vmax.f32 %v6853_v32, %v7036_v63  ;;  %v7211_v12 = vmax.f32 %v6855_v48, %v7040_v6  ;;  %v7213_v34 = vmax.f32 %v6857_v38, %v7044_v16  ;;  %v6792_v17 = vadd.f32 %v17937_v8, %v6704_v18  ;;  %v20325_v32 = vld [vmem:[#allocation120_spill] sm:$0xff]  ;;  %v20326_v48 = vld [vmem:[#allocation29_spill] sm:$0xff] }
 0x9ef   :  { %10917 = vmatprep.subr.bf16.mxu0 %v10916_v37  ;;  %v6794_v44 = vadd.f32 %v17940_v27, %v6706_v31  ;;  %v18232_v40 = vadd.f32 %v17937_v8, %v6708_v13  ;;  %v18235_v45 = vadd.f32 %v17940_v27, %v6710_v28  ;;  %v6703_v10 = vmul.f32 %v17839_v56, %v20324_v39 }
 0x9f0   :  { %v7263_v53 = vmax.f32 %v7207_v55, %v7209_v47  ;;  %v7265_v2 = vmax.f32 %v7211_v12, %v7213_v34  ;;  %v6864_v41 = vmax.f32 %v6792_v17, 0.0  ;;  %v6705_v24 = vmul.f32 %v17842_v52, %v20325_v32  ;;  %v20328_v55 = vld [vmem:[#allocation93_spill] sm:$0xff]  ;;  %v20329_v17 = vld [vmem:[#allocation82_spill] sm:$0xff] }
 0x9f1   :  { %v6866_v22 = vmax.f32 %v6794_v44, 0.0  ;;  %v6868_v54 = vmax.f32 %v18232_v40, 0.0  ;;  %v6870_v1 = vmax.f32 %v18235_v45, 0.0  ;;  %v6707_v38 = vmul.f32 %v17839_v56, %v20326_v48  ;;  %v20330_v44 = vld [vmem:[#allocation89_spill] sm:$0xff] }
 0x9f2   :  { %v10918_v23 = vpack.c.bf16 %v7265_v2, %v7263_v53  ;;  %v7049_v43 = vrot.slane %v6864_v41, 1  ;;  %v6709_v57 = vmul.f32 %v17842_v52, %v20327_v46  ;;  %v6791_v50 = vadd.f32 %v17923_v30, %v6703_v10 }
 0x9f3   :  { %v7053_v9 = vrot.slane %v6866_v22, 1  ;;  %v7057_v42 = vrot.slane %v6868_v54, 1  ;;  %v7061_v19 = vrot.slane %v6870_v1, 1  ;;  %v6793_v7 = vadd.f32 %v17926_v5, %v6705_v24 }
 0x9f4   :  { %10919 = vmatpush1.bf16.msra.mxu0 %v10918_v23  ;;  %v7050_v33 = vsel %vm2805_vm7, %v7041_v21, %v7049_v43  ;;  %v18255_v18 = vadd.f32 %v17923_v30, %v6707_v38  ;;  %v18258_v14 = vadd.f32 %v17926_v5, %v6709_v57  ;;  %v6863_v4 = vmax.f32 %v6791_v50, 0.0  ;;  %v20332_v57 = vld [vmem:[#allocation90_spill] sm:$0xff] }
 0x9f5   :  { %v7054_v31 = vsel %vm2805_vm7, %v18189_v26, %v7053_v9  ;;  %v7058_v58 = vsel %vm2805_vm7, %v7049_v43, %v7057_v42  ;;  %v7062_v63 = vsel %vm2805_vm7, %v7053_v9, %v7061_v19  ;;  %v7216_v60 = vmax.f32 %v6860_v59, %v7050_v33 }
 0x9f6   :  { %v7218_v21 = vmax.f32 %v6862_v35, %v7054_v31  ;;  %v7220_v13 = vmax.f32 %v6864_v41, %v7058_v58  ;;  %v7222_v61 = vmax.f32 %v6866_v22, %v7062_v63  ;;  %v6865_v28 = vmax.f32 %v6793_v7, 0.0  ;;  %v20331_v41 = vld [vmem:[#allocation101_spill] sm:$0xff]  ;;  %v20333_v7 = vld [vmem:[#allocation34_spill] sm:$0xff] }
 0x9f7   :  { %v6867_v37 = vmax.f32 %v18255_v18, 0.0  ;;  %v6869_v6 = vmax.f32 %v18258_v14, 0.0  ;;  %v7047_v16 = vrot.slane %v6863_v4, 1  ;;  %v6712_v26 = vmul.f32 %v17845_v3, %v20328_v55  ;;  %v20334_v58 = vld [vmem:[#allocation129_spill] sm:$0xff] }
 0x9f8   :  { %v7268_v47 = vmax.f32 %v7216_v60, %v7218_v21  ;;  %v7270_v12 = vmax.f32 %v7220_v13, %v7222_v61  ;;  %v7051_v34 = vrot.slane %v6865_v28, 1  ;;  %v6714_v51 = vmul.f32 %v17848_v15, %v20329_v17  ;;  %v20335_v60 = vld [vmem:[#allocation84_spill] sm:$0xff] }
 0x9f9   :  { %v7048_v11 = vsel %vm2805_vm7, %v7039_v62, %v7047_v16  ;;  %v7055_v59 = vrot.slane %v6867_v37, 1  ;;  %v7059_v35 = vrot.slane %v6869_v6, 1  ;;  %v6716_v39 = vmul.f32 %v17845_v3, %v20330_v44 }
 0x9fa   :  { %v10920_v10 = vpack.c.bf16 %v7270_v12, %v7268_v47  ;;  %v7052_v53 = vsel %vm2805_vm7, %v7043_v49, %v7051_v34  ;;  %v7215_v2 = vmax.f32 %v6859_v25, %v7048_v11  ;;  %v6718_v32 = vmul.f32 %v17848_v15, %v20331_v41 }
 0x9fb   :  { %v7056_v62 = vsel %vm2805_vm7, %v7047_v16, %v7055_v59  ;;  %v7060_v24 = vsel %vm2805_vm7, %v7051_v34, %v7059_v35  ;;  %v7217_v22 = vmax.f32 %v6861_v0, %v7052_v53  ;;  %v6800_v48 = vadd.f32 %v17937_v8, %v6712_v26 }
 0x9fc   :  { %10921 = vmatprep.subr.bf16.mxu0 %v10920_v10  ;;  %v7219_v38 = vmax.f32 %v6863_v4, %v7056_v62  ;;  %v7221_v23 = vmax.f32 %v6865_v28, %v7060_v24  ;;  %v6802_v49 = vadd.f32 %v17940_v27, %v6714_v51  ;;  %v18293_v36 = vadd.f32 %v17937_v8, %v6716_v39  ;;  %v20337_v24 = vld [vmem:[#allocation126_spill] sm:$0xff] }
 0x9fd   :  { %v7267_v25 = vmax.f32 %v7215_v2, %v7217_v22  ;;  %v18296_v43 = vadd.f32 %v17940_v27, %v6718_v32  ;;  %v6872_v46 = vmax.f32 %v6800_v48, 0.0  ;;  %v6711_v50 = vmul.f32 %v17839_v56, %v20332_v57 }
 0x9fe   :  { %v7269_v29 = vmax.f32 %v7219_v38, %v7221_v23  ;;  %v6874_v0 = vmax.f32 %v6802_v49, 0.0  ;;  %v6876_v9 = vmax.f32 %v18293_v36, 0.0  ;;  %v6713_v33 = vmul.f32 %v17842_v52, %v20333_v7  ;;  %v20338_v49 = vld [vmem:[#allocation117_spill] sm:$0xff] }
 0x9ff   :  { %v6878_v4 = vmax.f32 %v18296_v43, 0.0  ;;  %v7065_v31 = vrot.slane %v6872_v46, 1  ;;  %v6715_v63 = vmul.f32 %v17839_v56, %v20334_v58  ;;  %v6717_v21 = vmul.f32 %v17842_v52, %v20335_v60 }
 0xa00   :  { %v10922_v13 = vpack.c.bf16 %v7269_v29, %v7267_v25  ;;  %v7069_v61 = vrot.slane %v6874_v0, 1  ;;  %v7073_v28 = vrot.slane %v6876_v9, 1  ;;  %v6799_v16 = vadd.f32 %v17923_v30, %v6711_v50 }
 0xa01   :  { %v7066_v55 = vsel %vm2805_vm7, %v7057_v42, %v7065_v31  ;;  %v18314_v26 = vrot.slane %v6878_v4, 1  ;;  %v6801_v47 = vadd.f32 %v17926_v5, %v6713_v33  ;;  %v18318_v12 = vadd.f32 %v17923_v30, %v6715_v63 }
 0xa02   :  { %10923 = vmatpush1.bf16.msra.mxu0 %v10922_v13  ;;  %v7070_v34 = vsel %vm2805_vm7, %v7061_v19, %v7069_v61  ;;  %v7074_v17 = vsel %vm2805_vm7, %v7065_v31, %v7073_v28  ;;  %v7224_v51 = vmax.f32 %v6868_v54, %v7066_v55  ;;  %v18325_v11 = vadd.f32 %v17926_v5, %v6717_v21  ;;  %v20336_v54 = vld [vmem:[#allocation33_spill] sm:$0xff]  ;;  %v20340_v55 = vld [vmem:[#allocation108_spill] sm:$0xff] }
 0xa03   :  { %v7078_v42 = vsel %vm2805_vm7, %v7069_v61, %v18314_v26  ;;  %v7226_v44 = vmax.f32 %v6870_v1, %v7070_v34  ;;  %v7228_v39 = vmax.f32 %v6872_v46, %v7074_v17  ;;  %v6871_v10 = vmax.f32 %v6799_v16, 0.0  ;;  %v20339_v46 = vld [vmem:[#allocation122_spill] sm:$0xff] }
 0xa04   :  { %v7230_v53 = vmax.f32 %v6874_v0, %v7078_v42  ;;  %v6873_v2 = vmax.f32 %v6801_v47, 0.0  ;;  %v6875_v19 = vmax.f32 %v18318_v12, 0.0  ;;  %v6877_v41 = vmax.f32 %v18325_v11, 0.0  ;;  %v20342_v42 = vld [vmem:[#allocation100_spill] sm:$0xff]  ;;  %v8802_v12 = vld [vmem:[%s19226_s14 + $0x180] sm:$0xff] }
 0xa05   :  { %v7272_v32 = vmax.f32 %v7224_v51, %v7226_v44  ;;  %v7063_v40 = vrot.slane %v6871_v10, 1  ;;  %v6720_v62 = vmul.f32 %v17845_v3, %v20336_v54  ;;  %v6722_v22 = vmul.f32 %v17848_v15, %v20337_v24 }
 0xa06   :  { %v7274_v48 = vmax.f32 %v7228_v39, %v7230_v53  ;;  %v7067_v38 = vrot.slane %v6873_v2, 1  ;;  %v7071_v45 = vrot.slane %v6875_v19, 1  ;;  %v7075_v1 = vrot.slane %v6877_v41, 1  ;;  %v20343_v39 = vld [vmem:[#allocation105_spill] sm:$0xff] }
 0xa07   :  { %v7064_v23 = vsel %vm2805_vm7, %v7055_v59, %v7063_v40  ;;  %v6724_v25 = vmul.f32 %v17845_v3, %v20338_v49  ;;  %v6726_v57 = vmul.f32 %v17848_v15, %v20339_v46  ;;  %v6808_v50 = vadd.f32 %v17937_v8, %v6720_v62 }
 0xa08   :  { %v10924_v29 = vpack.c.bf16 %v7274_v48, %v7272_v32  ;;  %v7068_v0 = vsel %vm2805_vm7, %v7059_v35, %v7067_v38  ;;  %v7072_v7 = vsel %vm2805_vm7, %v7063_v40, %v7071_v45  ;;  %v7076_v33 = vsel %vm2805_vm7, %v7067_v38, %v7075_v1 }
 0xa09   :  { %v7223_v31 = vmax.f32 %v6867_v37, %v7064_v23  ;;  %v7225_v59 = vmax.f32 %v6869_v6, %v7068_v0  ;;  %v7227_v58 = vmax.f32 %v6871_v10, %v7072_v7  ;;  %v7229_v63 = vmax.f32 %v6873_v2, %v7076_v33  ;;  %v20341_v37 = vld [vmem:[#allocation109_spill] sm:$0xff]  ;;  %v20344_v0 = vld [vmem:[#allocation124_spill] sm:$0xff] }
 0xa0a   :  { %10925 = vmatprep.subr.bf16.mxu0 %v10924_v29  ;;  %v6810_v60 = vadd.f32 %v17940_v27, %v6722_v22  ;;  %v18356_v21 = vadd.f32 %v17937_v8, %v6724_v25  ;;  %v18359_v35 = vadd.f32 %v17940_v27, %v6726_v57  ;;  %v6880_v13 = vmax.f32 %v6808_v50, 0.0 }
 0xa0b   :  { %v7271_v61 = vmax.f32 %v7223_v31, %v7225_v59  ;;  %v7273_v16 = vmax.f32 %v7227_v58, %v7229_v63  ;;  %v6719_v18 = vmul.f32 %v17839_v56, %v20340_v55  ;;  %v6721_v14 = vmul.f32 %v17842_v52, %v20341_v37  ;;  %v8787_v37 = vld [vmem:[%s19226_s14 + $0x108] sm:$0xff] }
 0xa0c   :  { %v6882_v6 = vmax.f32 %v6810_v60, 0.0  ;;  %v6884_v47 = vmax.f32 %v18356_v21, 0.0  ;;  %v6886_v34 = vmax.f32 %v18359_v35, 0.0  ;;  %v7081_v17 = vrot.slane %v6880_v13, 1 }
 0xa0d   :  { %v10926_v51 = vpack.c.bf16 %v7273_v16, %v7271_v61  ;;  %v6723_v44 = vmul.f32 %v17839_v56, %v20342_v42  ;;  %v6725_v10 = vmul.f32 %v17842_v52, %v20343_v39  ;;  %v6807_v53 = vadd.f32 %v17923_v30, %v6719_v18  ;;  %v20345_v18 = vld [vmem:[#allocation127_spill] sm:$0xff] }
 0xa0e   :  { %v7082_v2 = vsel %vm2805_vm7, %v7073_v28, %v7081_v17  ;;  %v7085_v32 = vrot.slane %v6882_v6, 1  ;;  %v7089_v40 = vrot.slane %v6884_v47, 1  ;;  %v18377_v54 = vrot.slane %v6886_v34, 1 }
 0xa0f   :  { %10927 = vmatpush1.bf16.msra.mxu0 %v10926_v51  ;;  %v7232_v62 = vmax.f32 %v6876_v9, %v7082_v2  ;;  %v6809_v24 = vadd.f32 %v17926_v5, %v6721_v14  ;;  %v18383_v22 = vadd.f32 %v17923_v30, %v6723_v44  ;;  %v18386_v48 = vadd.f32 %v17926_v5, %v6725_v10  ;;  %v8804_v10 = vld [vmem:[%s19226_s14 + $0x190] sm:$0xff] }
 0xa10   :  { %v7086_v28 = vsel %vm2805_vm7, %v18314_v26, %v7085_v32  ;;  %v7090_v38 = vsel %vm2805_vm7, %v7081_v17, %v7089_v40  ;;  %v7094_v23 = vsel %vm2805_vm7, %v7085_v32, %v18377_v54  ;;  %v6879_v49 = vmax.f32 %v6807_v53, 0.0  ;;  %v20346_v17 = vld [vmem:[#allocation38_spill] sm:$0xff]  ;;  %v8805_v53 = vld [vmem:[%s19226_s14 + $0x198] sm:$0xff] }
 0xa11   :  { %v7234_v36 = vmax.f32 %v6878_v4, %v7086_v28  ;;  %v7236_v9 = vmax.f32 %v6880_v13, %v7090_v38  ;;  %v7238_v25 = vmax.f32 %v6882_v6, %v7094_v23  ;;  %v6881_v46 = vmax.f32 %v6809_v24, 0.0  ;;  %v8789_v24 = vld [vmem:[%s19226_s14 + $0x118] sm:$0xff]  ;;  %v8806_v28 = vld [vmem:[%s19226_s14 + $0x1a0] sm:$0xff]  ;;  %v8807_v38 = vld [vmem:[%s19226_s14 + $0x1a8] sm:$0xff] }
 0xa12   :  { %v6883_v57 = vmax.f32 %v18383_v22, 0.0  ;;  %v6885_v50 = vmax.f32 %v18386_v48, 0.0  ;;  %v7079_v29 = vrot.slane %v6879_v49, 1  ;;  %v6728_v26 = vmul.f32 %v17845_v3, %v20344_v0  ;;  %v8810_v22 = vld [vmem:[%s19226_s14 + $0x1c0] sm:$0xff]  ;;  %v8811_v48 = vld [vmem:[%s19226_s14 + $0x1c8] sm:$0xff] }
 0xa13   :  { %v7276_v7 = vmax.f32 %v7232_v62, %v7234_v36  ;;  %v7278_v33 = vmax.f32 %v7236_v9, %v7238_v25  ;;  %v7083_v31 = vrot.slane %v6881_v46, 1  ;;  %v6730_v59 = vmul.f32 %v17848_v15, %v17354_v20 }
 0xa14   :  { %v7080_v43 = vsel %vm2805_vm7, %v7071_v45, %v7079_v29  ;;  %v18404_v4 = vrot.slane %v6883_v57, 1  ;;  %v18408_v58 = vrot.slane %v6885_v50, 1  ;;  %v6816_v63 = vadd.f32 %v17937_v8, %v6728_v26  ;;  %v7284_v8 = vld [vmem:[%s19225_s13 + $0x8] sm:$0xff] }
 0xa15   :  { %v10928_v3 = vpack.c.bf16 %v7278_v33, %v7276_v7  ;;  %v7084_v60 = vsel %vm2805_vm7, %v7075_v1, %v7083_v31  ;;  %v7231_v13 = vmax.f32 %v6875_v19, %v7080_v43  ;;  %v6818_v20 = vadd.f32 %v17940_v27, %v6730_v59  ;;  %v8803_v27 = vld [vmem:[%s19226_s14 + $0x188] sm:$0xff]  ;;  %8779 = vmatprep.mubr.msk.f32.mxu0 %vm7297_vm12, %v7284_v8  ;;  %v8809_v33 = vld [vmem:[%s19226_s14 + $0x1b8] sm:$0xff] }
 0xa16   :  { %v7088_v15 = vsel %vm2805_vm7, %v7079_v29, %v18404_v4  ;;  %v7092_v45 = vsel %vm2805_vm7, %v7083_v31, %v18408_v58  ;;  %v7233_v61 = vmax.f32 %v6877_v41, %v7084_v60  ;;  %v6888_v16 = vmax.f32 %v6816_v63, 0.0  ;;  %v8786_v41 = vld [vmem:[%s19226_s14 + $0x100] sm:$0xff]  ;;  %v8820_v31 = vld [vmem:[%s19226_s14 + $0x210] sm:$0xff] }
 0xa17   :  { %10929 = vmatprep.subr.bf16.mxu0 %v10928_v3  ;;  %v7235_v19 = vmax.f32 %v6879_v49, %v7088_v15  ;;  %v7237_v1 = vmax.f32 %v6881_v46, %v7092_v45  ;;  %v6890_v55 = vmax.f32 %v6818_v20, 0.0  ;;  %v6727_v11 = vmul.f32 %v17839_v56, %v20345_v18  ;;  %v8790_v29 = vld [vmem:[%s19226_s14 + $0x120] sm:$0xff]  ;;  %v7286_v18 = vld [vmem:[%s19225_s13 + $0x18] sm:$0xff] }
 0xa18   :  { %v7275_v14 = vmax.f32 %v7231_v13, %v7233_v61  ;;  %v7097_v6 = vrot.slane %v6888_v16, 1  ;;  %v6729_v51 = vmul.f32 %v17842_v52, %v20346_v17  ;;  %v10938_v56 = vpack.c.bf16 %v8803_v27, %v8802_v12  ;;  %v8788_v52 = vld [vmem:[%s19226_s14 + $0x110] sm:$0xff]  ;;  %v8794_v12 = vld [vmem:[%s19226_s14 + $0x140] sm:$0xff]  ;;  %v8795_v27 = vld [vmem:[%s19226_s14 + $0x148] sm:$0xff] }
 0xa19   :  { %v7277_v42 = vmax.f32 %v7235_v19, %v7237_v1  ;;  %v7101_v44 = vrot.slane %v6890_v55, 1  ;;  %v6815_v39 = vadd.f32 %v17923_v30, %v6727_v11  ;;  %v10940_v62 = vpack.c.bf16 %v8787_v37, %v8786_v41  ;;  %v8792_v61 = vld [vmem:[%s19226_s14 + $0x130] sm:$0xff]  ;;  %v8813_v1 = vld [vmem:[%s19226_s14 + $0x1d8] sm:$0xff]  ;;  %v8815_v17 = vld [vmem:[%s19226_s14 + $0x1e8] sm:$0xff] }
 0xa1a   :  { %v7098_v2 = vsel %vm2805_vm7, %v7089_v40, %v7097_v6  ;;  %v7244_v32 = vmax.f32 %v6888_v16, %v7097_v6  ;;  %v6817_v30 = vadd.f32 %v17926_v5, %v6729_v51  ;;  %10939 = vmatprep.subr.bf16.mxu1 %v10938_v56  ;;  %v10942_v46 = vpack.c.bf16 %v8805_v53, %v8804_v10  ;;  %v8812_v19 = vld [vmem:[%s19226_s14 + $0x1d0] sm:$0xff]  ;;  %v8814_v6 = vld [vmem:[%s19226_s14 + $0x1e0] sm:$0xff]  ;;  %v8799_v10 = vld [vmem:[%s19226_s14 + $0x168] sm:$0xff] }
 0xa1b   :  { %v10930_v23 = vpack.c.bf16 %v7277_v42, %v7275_v14  ;;  %v7102_v40 = vsel %vm2805_vm7, %v18377_v54, %v7101_v44  ;;  %v7240_v5 = vmax.f32 %v6884_v47, %v7098_v2  ;;  %v7246_v49 = vmax.f32 %v6890_v55, %v7101_v44  ;;  %10941 = vmatpush3.bf16.msra.mxu1 %v10940_v62  ;;  %v8791_v54 = vld [vmem:[%s19226_s14 + $0x128] sm:$0xff]  ;;  %v7283_v55 = vld [vmem:[%s19225_s13] sm:$0xff]  ;;  %v8796_v37 = vld [vmem:[%s19226_s14 + $0x150] sm:$0xff] }
 0xa1c   :  { %v7242_v36 = vmax.f32 %v6886_v34, %v7102_v40  ;;  %v6887_v9 = vmax.f32 %v6815_v39, 0.0  ;;  %v6889_v25 = vmax.f32 %v6817_v30, 0.0  ;;  %v10944_v47 = vpack.c.bf16 %v8789_v24, %v8788_v52  ;;  %10943 = vmatprep.subr.bf16.mxu1 %v10942_v46  ;;  %v8808_v34 = vld [vmem:[%s19226_s14 + $0x1b0] sm:$0xff]  ;;  %v8797_v14 = vld [vmem:[%s19226_s14 + $0x158] sm:$0xff]  ;;  %v7288_v42 = vld [vmem:[%s19225_s13 + $0x28] sm:$0xff] }
 0xa1d   :  { %10931 = vmatpush1.bf16.msra.mxu0 %v10930_v23  ;;  %v7282_v21 = vmax.f32 %v7244_v32, %v7246_v49  ;;  %v10946_v0 = vpack.c.bf16 %v8807_v38, %v8806_v28  ;;  %v10948_v59 = vpack.c.bf16 %v8791_v54, %v8790_v29  ;;  %v10950_v45 = vpack.c.bf16 %v8809_v33, %v8808_v34  ;;  %v7285_v51 = vld [vmem:[%s19225_s13 + $0x10] sm:$0xff]  ;;  %v8798_v56 = vld [vmem:[%s19226_s14 + $0x160] sm:$0xff]  ;;  %v7290_v52 = vld [vmem:[%s19225_s13 + $0x38] sm:$0xff] }
 0xa1e   :  { %v7280_v26 = vmax.f32 %v7240_v5, %v7242_v36  ;;  %v7095_v7 = vrot.slane %v6887_v9, 1  ;;  %v7099_v35 = vrot.slane %v6889_v25, 1  ;;  %v10954_v8 = vpack.c.bf16 %v8811_v48, %v8810_v22  ;;  %v7287_v53 = vld [vmem:[%s19225_s13 + $0x20] sm:$0xff]  ;;  %v7289_v32 = vld [vmem:[%s19225_s13 + $0x30] sm:$0xff]  ;;  %v7292_v30 = vld [vmem:[%s19225_s13 + $0x48] sm:$0xff] }
 0xa1f   :  { %10945 = vmatpush3.bf16.msra.mxu1 %v10944_v47  ;;  %v10956_v11 = vpack.c.bf16 %v8795_v27, %v8794_v12  ;;  %v10958_v41 = vpack.c.bf16 %v8813_v1, %v8812_v19  ;;  %v10960_v44 = vpack.c.bf16 %v8797_v14, %v8796_v37  ;;  %v10962_v39 = vpack.c.bf16 %v8815_v17, %v8814_v6  ;;  %v7291_v62 = vld [vmem:[%s19225_s13 + $0x40] sm:$0xff]  ;;  %v7294_v24 = vld [vmem:[%s19225_s13 + $0x58] sm:$0xff]  ;;  %v7293_v28 = vld [vmem:[%s19225_s13 + $0x50] sm:$0xff] }
 0xa20   :  { %v10932_v43 = vpack.c.bf16 %v7282_v21, %v7280_v26  ;;  %v7096_v63 = vsel %vm2805_vm7, %v18404_v4, %v7095_v7  ;;  %v7100_v3 = vsel %vm2805_vm7, %v18408_v58, %v7099_v35  ;;  %v7243_v60 = vmax.f32 %v6887_v9, %v7095_v7  ;;  %10947 = vmatprep.subr.bf16.mxu1 %v10946_v0  ;;  %v8793_v4 = vld [vmem:[%s19226_s14 + $0x138] sm:$0xff]  ;;  %v7296_v38 = vld [vmem:[%s19225_s13 + $0x68] sm:$0xff]  ;;  %v7295_v23 = vld [vmem:[%s19225_s13 + $0x60] sm:$0xff] }
 0xa21   :  { %v7239_v13 = vmax.f32 %v6883_v57, %v7096_v63  ;;  %v7241_v20 = vmax.f32 %v6885_v50, %v7100_v3  ;;  %v7245_v15 = vmax.f32 %v6889_v25, %v7099_v35  ;;  %v10952_v58 = vpack.c.bf16 %v8793_v4, %v8792_v61  ;;  %v8816_v40 = vld [vmem:[%s19226_s14 + $0x1f0] sm:$0xff]  ;;  %v8817_v5 = vld [vmem:[%s19226_s14 + $0x1f8] sm:$0xff]  ;;  %v7449_v46 = vld [vmem:[%s19226_s14 + $0x80] sm:$0xff] }
 0xa22   :  { %10934 = vmatprep.subr.msk.bf16.mxu0 %vm18482_vm13, %v10932_v43  ;;  %v10964_v2 = vpack.c.bf16 %v8799_v10, %v8798_v56  ;;  %v10966_v49 = vpack.c.bf16 %v8817_v5, %v8816_v40  ;;  %v8800_v36 = vld [vmem:[%s19226_s14 + $0x170] sm:$0xff]  ;;  %v8801_v9 = vld [vmem:[%s19226_s14 + $0x178] sm:$0xff]  ;;  %v7450_v29 = vld [vmem:[%s19226_s14 + $0x88] sm:$0xff] }
 0xa23   :  { %v7279_v57 = vmax.f32 %v7239_v13, %v7241_v20  ;;  %v7281_v50 = vmax.f32 %v7243_v60, %v7245_v15  ;;  %10949 = vmatpush3.bf16.msra.mxu1 %v10948_v59  ;;  %v10968_v25 = vpack.c.bf16 %v8801_v9, %v8800_v36  ;;  %v10970_v54 = vpack.c.bf16 %v7450_v29, %v7449_v46  ;;  %v8834_v21 = vld [vmem:[%s19226_s14 + $0x280] sm:$0xff]  ;;  %v8835_v47 = vld [vmem:[%s19226_s14 + $0x288] sm:$0xff]  ;;  %v8836_v34 = vld [vmem:[%s19226_s14 + $0x290] sm:$0xff] }
 0xa24   :  { %10951 = vmatprep.subr.bf16.mxu1 %v10950_v45  ;;  %v8818_v0 = vld [vmem:[%s19226_s14 + $0x200] sm:$0xff]  ;;  %v11002_v26 = vpack.c.bf16 %v8835_v47, %v8834_v21  ;;  %v8819_v7 = vld [vmem:[%s19226_s14 + $0x208] sm:$0xff]  ;;  %v8837_v33 = vld [vmem:[%s19226_s14 + $0x298] sm:$0xff] }
 0xa25   :  { %v10935_v16 = vpack.c.bf16 %v7281_v50, %v7279_v57  ;;  %v11004_v35 = vpack.c.bf16 %v8819_v7, %v8818_v0  ;;  %v11006_v59 = vpack.c.bf16 %v8837_v33, %v8836_v34  ;;  %v8821_v43 = vld [vmem:[%s19226_s14 + $0x218] sm:$0xff]  ;;  %v8838_v3 = vld [vmem:[%s19226_s14 + $0x2a0] sm:$0xff]  ;;  %v8839_v60 = vld [vmem:[%s19226_s14 + $0x2a8] sm:$0xff] }
 0xa26   :  { %v11008_v63 = vpack.c.bf16 %v8821_v43, %v8820_v31  ;;  %v8822_v13 = vld [vmem:[%s19226_s14 + $0x220] sm:$0xff]  ;;  %v11010_v20 = vpack.c.bf16 %v8839_v60, %v8838_v3  ;;  %v8823_v15 = vld [vmem:[%s19226_s14 + $0x228] sm:$0xff]  ;;  %v8840_v61 = vld [vmem:[%s19226_s14 + $0x2b0] sm:$0xff] }
 0xa27   :  { %10937 = vmatpush1.bf16.msk.msra.mxu0 %vm18482_vm13, %v10935_v16  ;;  %10953 = vmatpush3.bf16.msra.mxu1 %v10952_v58  ;;  %v11012_v45 = vpack.c.bf16 %v8823_v15, %v8822_v13  ;;  %v8841_v4 = vld [vmem:[%s19226_s14 + $0x2b8] sm:$0xff]  ;;  %v8824_v22 = vld [vmem:[%s19226_s14 + $0x230] sm:$0xff]  ;;  %v8842_v58 = vld [vmem:[%s19226_s14 + $0x2c0] sm:$0xff] }
 0xa28   :  { %10955 = vmatprep.subr.bf16.mxu1 %v10954_v8  ;;  %11003 = vmatprep.subr.bf16.mxu0 %v11002_v26  ;;  %v11014_v48 = vpack.c.bf16 %v8841_v4, %v8840_v61  ;;  %v8825_v57 = vld [vmem:[%s19226_s14 + $0x238] sm:$0xff]  ;;  %v8843_v16 = vld [vmem:[%s19226_s14 + $0x2c8] sm:$0xff]  ;;  %v8826_v8 = vld [vmem:[%s19226_s14 + $0x240] sm:$0xff] }
 0xa29   :  { %v11016_v50 = vpack.c.bf16 %v8825_v57, %v8824_v22  ;;  %v11018_v12 = vpack.c.bf16 %v8843_v16, %v8842_v58  ;;  %v8827_v27 = vld [vmem:[%s19226_s14 + $0x248] sm:$0xff]  ;;  %v8844_v1 = vld [vmem:[%s19226_s14 + $0x2d0] sm:$0xff]  ;;  %v8846_v14 = vld [vmem:[%s19226_s14 + $0x2e0] sm:$0xff] }
 0xa2a   :  { %7391 = vmatmul.mubr.f32.vlgmr.msra.gmra.mrb[116].mxu0 %v7283_v55  ;;  %v11020_v19 = vpack.c.bf16 %v8827_v27, %v8826_v8  ;;  %v8845_v55 = vld [vmem:[%s19226_s14 + $0x2d8] sm:$0xff]  ;;  %v8847_v6 = vld [vmem:[%s19226_s14 + $0x2e8] sm:$0xff]  ;;  %v8830_v17 = vld [vmem:[%s19226_s14 + $0x260] sm:$0xff] }
 0xa2b   :  { %8780 = vmatprep.mubr.msk.f32.mxu0 %vm7297_vm12, %v7286_v18  ;;  %10957 = vmatpush3.bf16.msra.mxu1 %v10956_v11  ;;  %v8828_v18 = vld [vmem:[%s19226_s14 + $0x250] sm:$0xff]  ;;  %v11022_v11 = vpack.c.bf16 %v8845_v55, %v8844_v1  ;;  %v8849_v56 = vld [vmem:[%s19226_s14 + $0x2f8] sm:$0xff]  ;;  %v8882_v21 = vld [vmem:[%s19226_s14 + $0x400] sm:$0xff] }
 0xa2c   :  { %10959 = vmatprep.subr.bf16.mxu1 %v10958_v41  ;;  %11005 = vmatpush3.bf16.msra.mxu0 %v11004_v35  ;;  %v8829_v41 = vld [vmem:[%s19226_s14 + $0x258] sm:$0xff]  ;;  %v8832_v10 = vld [vmem:[%s19226_s14 + $0x270] sm:$0xff]  ;;  %v8883_v47 = vld [vmem:[%s19226_s14 + $0x408] sm:$0xff] }
 0xa2d   :  { %11007 = vmatprep.subr.bf16.mxu0 %v11006_v59  ;;  %v11024_v37 = vpack.c.bf16 %v8829_v41, %v8828_v18  ;;  %v7451_v40 = vld [vmem:[%s19226_s14 + $0x90] sm:$0xff]  ;;  %v7452_v5 = vld [vmem:[%s19226_s14 + $0x98] sm:$0xff]  ;;  %v7454_v0 = vld [vmem:[%s19226_s14 + $0xa8] sm:$0xff]  ;;  %v11068_v59 = vpack.c.bf16 %v8883_v47, %v8882_v21 }
 0xa2e   :  { %7397 = vmatmul.mubr.f32.gmra.mrb[118].mxu0 %v7285_v51  ;;  %v11026_v51 = vpack.c.bf16 %v8847_v6, %v8846_v14  ;;  %v7435_v9 = vld [vmem:[%s19226_s14 + $0x10] sm:$0xff]  ;;  %v10974_v29 = vpack.c.bf16 %v7452_v5, %v7451_v40  ;;  %v8901_v7 = vld [vmem:[%s19226_s14 + $0x498] sm:$0xff]  ;;  %v7437_v34 = vld [vmem:[%s19226_s14 + $0x20] sm:$0xff] }
 0xa2f   :  { %8781 = vmatprep.mubr.msk.f32.mxu0 %vm7297_vm12, %v7288_v42  ;;  %10961 = vmatpush3.bf16.msra.mxu1 %v10960_v44  ;;  %v8831_v42 = vld [vmem:[%s19226_s14 + $0x268] sm:$0xff]  ;;  %v8900_v26 = vld [vmem:[%s19226_s14 + $0x490] sm:$0xff]  ;;  %v7456_v15 = vld [vmem:[%s19226_s14 + $0xb8] sm:$0xff] }
 0xa30   :  { %10963 = vmatprep.subr.bf16.mxu1 %v10962_v39  ;;  %11009 = vmatpush3.bf16.msra.mxu0 %v11008_v63  ;;  %v11028_v44 = vpack.c.bf16 %v8831_v42, %v8830_v17  ;;  %v8848_v39 = vld [vmem:[%s19226_s14 + $0x2f0] sm:$0xff]  ;;  %v7438_v33 = vld [vmem:[%s19226_s14 + $0x28] sm:$0xff]  ;;  %v11070_v60 = vpack.c.bf16 %v8901_v7, %v8900_v26  ;;  %v7457_v16 = vld [vmem:[%s19226_s14 + $0xc0] sm:$0xff] }
 0xa31   :  { %11011 = vmatprep.subr.bf16.mxu0 %v11010_v20  ;;  %v7455_v63 = vld [vmem:[%s19226_s14 + $0xb0] sm:$0xff]  ;;  %v8885_v20 = vld [vmem:[%s19226_s14 + $0x418] sm:$0xff]  ;;  %v8903_v61 = vld [vmem:[%s19226_s14 + $0x4a8] sm:$0xff]  ;;  %v10980_v4 = vpack.c.bf16 %v7438_v33, %v7437_v34 }
 0xa32   :  { %7403 = vmatmul.mubr.f32.gmra.mrb[120].mxu0 %v7287_v53  ;;  %v11030_v53 = vpack.c.bf16 %v8849_v56, %v8848_v39  ;;  %v8884_v13 = vld [vmem:[%s19226_s14 + $0x410] sm:$0xff]  ;;  %v10982_v58 = vpack.c.bf16 %v7456_v15, %v7455_v63  ;;  %v8887_v27 = vld [vmem:[%s19226_s14 + $0x428] sm:$0xff]  ;;  %v8905_v18 = vld [vmem:[%s19226_s14 + $0x4b8] sm:$0xff] }
 0xa33   :  { %8782 = vmatprep.mubr.msk.f32.mxu0 %vm7297_vm12, %v7290_v52  ;;  %10965 = vmatpush3.bf16.msra.mxu1 %v10964_v2  ;;  %v8833_v52 = vld [vmem:[%s19226_s14 + $0x278] sm:$0xff]  ;;  %v7439_v22 = vld [vmem:[%s19226_s14 + $0x30] sm:$0xff]  ;;  %v11072_v57 = vpack.c.bf16 %v8885_v20, %v8884_v13  ;;  %v7458_v1 = vld [vmem:[%s19226_s14 + $0xc8] sm:$0xff] }
 0xa34   :  { %10967 = vmatprep.subr.bf16.mxu1 %v10966_v49  ;;  %11013 = vmatpush3.bf16.msra.mxu0 %v11012_v45  ;;  %v11032_v2 = vpack.c.bf16 %v8833_v52, %v8832_v10  ;;  %v8902_v45 = vld [vmem:[%s19226_s14 + $0x4a0] sm:$0xff]  ;;  %v8904_v55 = vld [vmem:[%s19226_s14 + $0x4b0] sm:$0xff]  ;;  %v10986_v17 = vpack.c.bf16 %v7458_v1, %v7457_v16  ;;  %v8889_v39 = vld [vmem:[%s19226_s14 + $0x438] sm:$0xff] }
 0xa35   :  { %11015 = vmatprep.subr.bf16.mxu0 %v11014_v48  ;;  %v7440_v48 = vld [vmem:[%s19226_s14 + $0x38] sm:$0xff]  ;;  %v11074_v8 = vpack.c.bf16 %v8903_v61, %v8902_v45  ;;  %v7441_v41 = vld [vmem:[%s19226_s14 + $0x40] sm:$0xff]  ;;  %v11078_v42 = vpack.c.bf16 %v8905_v18, %v8904_v55  ;;  %v8907_v52 = vld [vmem:[%s19226_s14 + $0x4c8] sm:$0xff] }
 0xa36   :  { %7409 = vmatmul.mubr.f32.gmra.mrb[122].mxu0 %v7289_v32  ;;  %v8898_v32 = vld [vmem:[%s19226_s14 + $0x480] sm:$0xff]  ;;  %v7460_v10 = vld [vmem:[%s19226_s14 + $0xd8] sm:$0xff]  ;;  %v7446_v21 = vld [vmem:[%s19226_s14 + $0x68] sm:$0xff] }
 0xa37   :  { %8783 = vmatprep.mubr.msk.f32.mxu0 %vm7297_vm12, %v7292_v30  ;;  %10969 = vmatpush3.bf16.msra.mxu1 %v10968_v25  ;;  %v8899_v30 = vld [vmem:[%s19226_s14 + $0x488] sm:$0xff]  ;;  %v7436_v25 = vld [vmem:[%s19226_s14 + $0x18] sm:$0xff]  ;;  %v8890_v5 = vld [vmem:[%s19226_s14 + $0x440] sm:$0xff] }
 0xa38   :  { %10971 = vmatprep.subr.bf16.mxu1 %v10970_v54  ;;  %11017 = vmatpush3.bf16.msra.mxu0 %v11016_v50  ;;  %v7453_v54 = vld [vmem:[%s19226_s14 + $0xa0] sm:$0xff]  ;;  %v10976_v35 = vpack.c.bf16 %v7436_v25, %v7435_v9  ;;  %v7462_v9 = vld [vmem:[%s19226_s14 + $0xe8] sm:$0xff]  ;;  %v8908_v25 = vld [vmem:[%s19226_s14 + $0x4d0] sm:$0xff] }
 0xa39   :  { %11019 = vmatprep.subr.bf16.mxu0 %v11018_v12  ;;  %v10978_v43 = vpack.c.bf16 %v7454_v0, %v7453_v54  ;;  %v8886_v12 = vld [vmem:[%s19226_s14 + $0x420] sm:$0xff]  ;;  %v7463_v7 = vld [vmem:[%s19226_s14 + $0xf0] sm:$0xff]  ;;  %v8893_v33 = vld [vmem:[%s19226_s14 + $0x458] sm:$0xff] }
 0xa3a   :  { %7415 = vmatmul.mubr.f32.gmra.mrb[124].mxu0 %v7291_v62  ;;  %v11066_v62 = vpack.c.bf16 %v8899_v30, %v8898_v32  ;;  %v11076_v14 = vpack.c.bf16 %v8887_v27, %v8886_v12  ;;  %v7443_v32 = vld [vmem:[%s19226_s14 + $0x50] sm:$0xff]  ;;  %v7444_v30 = vld [vmem:[%s19226_s14 + $0x58] sm:$0xff]  ;;  %v7445_v54 = vld [vmem:[%s19226_s14 + $0x60] sm:$0xff] }
 0xa3b   :  { %8784 = vmatprep.mubr.msk.f32.mxu0 %vm7297_vm12, %v7294_v24  ;;  %v8892_v34 = vld [vmem:[%s19226_s14 + $0x450] sm:$0xff]  ;;  %v8911_v63 = vld [vmem:[%s19226_s14 + $0x4e8] sm:$0xff]  ;;  %v7448_v13 = vld [vmem:[%s19226_s14 + $0x78] sm:$0xff] }
 0xa3c   :  { %11021 = vmatpush3.bf16.msra.mxu0 %v11020_v19  ;;  %v11088_v20 = vpack.c.bf16 %v8893_v33, %v8892_v34  ;;  %v8866_v45 = vld [vmem:[%s19226_s14 + $0x380] sm:$0xff]  ;;  %v8851_v1 = vld [vmem:[%s19226_s14 + $0x308] sm:$0xff]  ;;  %v8868_v55 = vld [vmem:[%s19226_s14 + $0x390] sm:$0xff] }
 0xa3d   :  { %11023 = vmatprep.subr.bf16.mxu0 %v11022_v11  ;;  %v10984_v11 = vpack.c.bf16 %v7440_v48, %v7439_v22  ;;  %v8895_v22 = vld [vmem:[%s19226_s14 + $0x468] sm:$0xff]  ;;  %v8850_v27 = vld [vmem:[%s19226_s14 + $0x300] sm:$0xff] }
 0xa3e   :  { %7421 = vmatmul.mubr.f32.gmra.mrb[126].mxu0 %v7293_v28  ;;  %v8867_v48 = vld [vmem:[%s19226_s14 + $0x388] sm:$0xff] }
 0xa3f   :  { %8785 = vmatprep.mubr.msk.f32.mxu0 %vm7297_vm12, %v7296_v38  ;;  %v7433_v38 = vld [vmem:[%s19226_s14] sm:$0xff]  ;;  %v11034_v12 = vpack.c.bf16 %v8867_v48, %v8866_v45  ;;  %v8953_v48 = vld [vmem:[%s19226_s14 + $0x638] sm:$0xff] }
 0xa40   :  { %11025 = vmatpush3.bf16.msra.mxu0 %v11024_v37  ;;  %v7442_v37 = vld [vmem:[%s19226_s14 + $0x48] sm:$0xff] }
 0xa41   :  { %11027 = vmatprep.subr.bf16.mxu0 %v11026_v51  ;;  %v7459_v51 = vld [vmem:[%s19226_s14 + $0xd0] sm:$0xff] }
 0xa42   :  { %7427 = vmatmul.mubr.f32.gmra.mrb[128].mxu0 %v7295_v23  ;;  %v7434_v23 = vld [vmem:[%s19226_s14 + $0x8] sm:$0xff] }
 0xa43   :  { %v10972_v36 = vpack.c.bf16 %v7434_v23, %v7433_v38  ;;  %v10990_v38 = vpack.c.bf16 %v7460_v10, %v7459_v51  ;;  %v7461_v23 = vld [vmem:[%s19226_s14 + $0xe0] sm:$0xff]  ;;  %v11036_v51 = vpack.c.bf16 %v8851_v1, %v8850_v27  ;;  %v8861_v27 = vld [vmem:[%s19226_s14 + $0x358] sm:$0xff] }
 0xa44   :  { %11029 = vmatpush3.bf16.msra.mxu0 %v11028_v44  ;;  %v8888_v44 = vld [vmem:[%s19226_s14 + $0x430] sm:$0xff]  ;;  %v10994_v26 = vpack.c.bf16 %v7462_v9, %v7461_v23  ;;  %v8878_v1 = vld [vmem:[%s19226_s14 + $0x3e0] sm:$0xff] }
 0xa45   :  { %11031 = vmatprep.subr.bf16.mxu0 %v11030_v53  ;;  %v8906_v53 = vld [vmem:[%s19226_s14 + $0x4c0] sm:$0xff] }
 0xa46   :  { %v11082_v40 = vpack.c.bf16 %v8907_v52, %v8906_v53  ;;  %v8871_v53 = vld [vmem:[%s19226_s14 + $0x3a8] sm:$0xff] }
 0xa48   :  { %11033 = vmatpush3.bf16.msra.mxu0 %v11032_v2  ;;  %v10988_v2 = vpack.c.bf16 %v7442_v37, %v7441_v41  ;;  %v8896_v41 = vld [vmem:[%s19226_s14 + $0x470] sm:$0xff]  ;;  %v8897_v37 = vld [vmem:[%s19226_s14 + $0x478] sm:$0xff] }
 0xa49   :  { %11067 = vmatprep.subr.bf16.mxu0 %v11066_v62  ;;  %v11080_v62 = vpack.c.bf16 %v8889_v39, %v8888_v44  ;;  %v8852_v44 = vld [vmem:[%s19226_s14 + $0x310] sm:$0xff]  ;;  %v8853_v39 = vld [vmem:[%s19226_s14 + $0x318] sm:$0xff]  ;;  %v11096_v10 = vpack.c.bf16 %v8897_v37, %v8896_v41  ;;  %v8954_v41 = vld [vmem:[%s19226_s14 + $0x640] sm:$0xff] }
 0xa4a   :  { %v8955_v37 = vld [vmem:[%s19226_s14 + $0x648] sm:$0xff] }
 0xafd   :  { %v18705_v24 = vpop.f32.mrb[116].mxu0 }
 0xafe   :  { %v7394_v28 = vpop.f32.mrb[117].mxu0 }
 0xb01   :  { %v7398_v49 = vpop.f32.mrb[118].mxu0 }
 0xb02   :  { %v7400_v46 = vpop.f32.mrb[119].mxu0 }
 0xb03   :  { %7562 = vmatprep.mubr.f32.mxu1 %v7400_v46  ;;  %v8909_v46 = vld [vmem:[%s19226_s14 + $0x4d8] sm:$0xff] }
 0xb04   :  { %7563 = vmatmul.mubr.f32.vlgmr.msra.gmra.mrb[116].mxu1 %v7398_v49  ;;  %v8891_v49 = vld [vmem:[%s19226_s14 + $0x448] sm:$0xff] }
 0xb05   :  { %10973 = vmatpush3.bf16.msra.mxu1 %v10972_v36  ;;  %7632 = vmatprep.mubr.f32.mxu1 %v7394_v28  ;;  %v7404_v31 = vpop.f32.mrb[120].mxu0  ;;  %v11084_v47 = vpack.c.bf16 %v8891_v49, %v8890_v5  ;;  %v8872_v5 = vld [vmem:[%s19226_s14 + $0x3b0] sm:$0xff] }
 0xb06   :  { %10975 = vmatprep.subr.bf16.mxu1 %v10974_v29  ;;  %v7406_v3 = vpop.f32.mrb[121].mxu0  ;;  %v10992_v29 = vpack.c.bf16 %v7444_v30, %v7443_v32  ;;  %v8947_v32 = vld [vmem:[%s19226_s14 + $0x608] sm:$0xff]  ;;  %v8964_v30 = vld [vmem:[%s19226_s14 + $0x690] sm:$0xff] }
 0xb07   :  { %7735 = vmatprep.mubr.f32.mxu0 %v7406_v3  ;;  %v10996_v3 = vpack.c.bf16 %v7446_v21, %v7445_v54  ;;  %v8967_v54 = vld [vmem:[%s19226_s14 + $0x6a8] sm:$0xff] }
 0xb08   :  { %7736 = vmatmul.mubr.f32.vlgmr.msra.gmra.mrb[130].mxu0 %v7404_v31 }
 0xb09   :  { %10977 = vmatpush3.bf16.msra.mxu1 %v10976_v35  ;;  %11069 = vmatpush3.bf16.msra.mxu0 %v11068_v59  ;;  %v18773_v50 = vpop.f32.mrb[122].mxu0  ;;  %v11086_v35 = vpack.c.bf16 %v8909_v46, %v8908_v25  ;;  %v7464_v59 = vld [vmem:[%s19226_s14 + $0xf8] sm:$0xff]  ;;  %v8948_v25 = vld [vmem:[%s19226_s14 + $0x610] sm:$0xff] }
 0xb0a   :  { %10979 = vmatprep.subr.bf16.mxu1 %v10978_v43  ;;  %11071 = vmatprep.subr.bf16.mxu0 %v11070_v60  ;;  %v18784_v19 = vpop.f32.mrb[123].mxu0  ;;  %v8910_v43 = vld [vmem:[%s19226_s14 + $0x4e0] sm:$0xff]  ;;  %v7447_v60 = vld [vmem:[%s19226_s14 + $0x70] sm:$0xff]  ;;  %v10998_v15 = vpack.c.bf16 %v7464_v59, %v7463_v7  ;;  %v8949_v46 = vld [vmem:[%s19226_s14 + $0x618] sm:$0xff] }
 0xb0b   :  { %v11090_v61 = vpack.c.bf16 %v8911_v63, %v8910_v43  ;;  %v11000_v16 = vpack.c.bf16 %v7448_v13, %v7447_v60  ;;  %v8857_v7 = vld [vmem:[%s19226_s14 + $0x338] sm:$0xff]  ;;  %v11136_v34 = vpack.c.bf16 %v8949_v46, %v8948_v25  ;;  %v8950_v59 = vld [vmem:[%s19226_s14 + $0x620] sm:$0xff]  ;;  %v8951_v43 = vld [vmem:[%s19226_s14 + $0x628] sm:$0xff] }
 0xb0c   :  { %v8968_v63 = vld [vmem:[%s19226_s14 + $0x6b0] sm:$0xff]  ;;  %v11140_v45 = vpack.c.bf16 %v8951_v43, %v8950_v59  ;;  %v8958_v25 = vld [vmem:[%s19226_s14 + $0x660] sm:$0xff]  ;;  %v8959_v46 = vld [vmem:[%s19226_s14 + $0x668] sm:$0xff] }
 0xb0d   :  { %10981 = vmatpush3.bf16.msra.mxu1 %v10980_v4  ;;  %11073 = vmatpush3.bf16.msra.mxu0 %v11072_v57  ;;  %v18801_v6 = vpop.f32.mrb[124].mxu0  ;;  %v8894_v4 = vld [vmem:[%s19226_s14 + $0x460] sm:$0xff]  ;;  %v8912_v57 = vld [vmem:[%s19226_s14 + $0x4f0] sm:$0xff]  ;;  %v8961_v43 = vld [vmem:[%s19226_s14 + $0x678] sm:$0xff] }
 0xb0e   :  { %10983 = vmatprep.subr.bf16.mxu1 %v10982_v58  ;;  %11075 = vmatprep.subr.bf16.mxu0 %v11074_v8  ;;  %v7418_v56 = vpop.f32.mrb[125].mxu0  ;;  %v8913_v58 = vld [vmem:[%s19226_s14 + $0x4f8] sm:$0xff]  ;;  %v11092_v8 = vpack.c.bf16 %v8895_v22, %v8894_v4  ;;  %v8952_v22 = vld [vmem:[%s19226_s14 + $0x630] sm:$0xff] }
 0xb0f   :  { %7943 = vmatprep.mubr.f32.mxu0 %v7418_v56  ;;  %v11094_v18 = vpack.c.bf16 %v8913_v58, %v8912_v57  ;;  %v8870_v56 = vld [vmem:[%s19226_s14 + $0x3a0] sm:$0xff]  ;;  %v8971_v58 = vld [vmem:[%s19226_s14 + $0x6c8] sm:$0xff]  ;;  %v8960_v59 = vld [vmem:[%s19226_s14 + $0x670] sm:$0xff] }
 0xb10   :  { %v11042_v23 = vpack.c.bf16 %v8871_v53, %v8870_v56  ;;  %v8970_v57 = vld [vmem:[%s19226_s14 + $0x6c0] sm:$0xff]  ;;  %v8880_v56 = vld [vmem:[%s19226_s14 + $0x3f0] sm:$0xff]  ;;  %v8881_v53 = vld [vmem:[%s19226_s14 + $0x3f8] sm:$0xff] }
 0xb11   :  { %10985 = vmatpush3.bf16.msra.mxu1 %v10984_v11  ;;  %11077 = vmatpush3.bf16.msra.mxu0 %v11076_v14  ;;  %v18827_v28 = vpop.f32.mrb[126].mxu0  ;;  %v8869_v11 = vld [vmem:[%s19226_s14 + $0x398] sm:$0xff]  ;;  %v8962_v14 = vld [vmem:[%s19226_s14 + $0x680] sm:$0xff] }
 0xb12   :  { %10987 = vmatprep.subr.bf16.mxu1 %v10986_v17  ;;  %11079 = vmatprep.subr.bf16.mxu0 %v11078_v42  ;;  %v18838_v36 = vpop.f32.mrb[127].mxu0  ;;  %v8963_v17 = vld [vmem:[%s19226_s14 + $0x688] sm:$0xff]  ;;  %v11038_v42 = vpack.c.bf16 %v8869_v11, %v8868_v55  ;;  %v11144_v55 = vpack.c.bf16 %v8953_v48, %v8952_v22  ;;  %v11146_v11 = vpack.c.bf16 %v8971_v58, %v8970_v57  ;;  %v8936_v48 = vld [vmem:[%s19226_s14 + $0x5b0] sm:$0xff] }
 0xb13   :  { %v11130_v52 = vpack.c.bf16 %v8963_v17, %v8962_v14  ;;  %v8972_v14 = vld [vmem:[%s19226_s14 + $0x6d0] sm:$0xff]  ;;  %v8973_v17 = vld [vmem:[%s19226_s14 + $0x6d8] sm:$0xff]  ;;  %v8919_v22 = vld [vmem:[%s19226_s14 + $0x528] sm:$0xff] }
 0xb14   :  { %v8920_v58 = vld [vmem:[%s19226_s14 + $0x530] sm:$0xff] }
 0xb15   :  { %10989 = vmatpush3.bf16.msra.mxu1 %v10988_v2  ;;  %11081 = vmatpush3.bf16.msra.mxu0 %v11080_v62  ;;  %v18855_v0 = vpop.f32.mrb[128].mxu0  ;;  %v8946_v2 = vld [vmem:[%s19226_s14 + $0x600] sm:$0xff]  ;;  %v8965_v62 = vld [vmem:[%s19226_s14 + $0x698] sm:$0xff] }
 0xb16   :  { %10991 = vmatprep.subr.bf16.mxu1 %v10990_v38  ;;  %11083 = vmatprep.subr.bf16.mxu0 %v11082_v40  ;;  %v18866_v31 = vpop.f32.mrb[129].mxu0  ;;  %v11040_v38 = vpack.c.bf16 %v8853_v39, %v8852_v44  ;;  %v8854_v40 = vld [vmem:[%s19226_s14 + $0x320] sm:$0xff]  ;;  %v11132_v49 = vpack.c.bf16 %v8947_v32, %v8946_v2  ;;  %v11134_v9 = vpack.c.bf16 %v8965_v62, %v8964_v30  ;;  %v8863_v39 = vld [vmem:[%s19226_s14 + $0x368] sm:$0xff]  ;;  %v8956_v2 = vld [vmem:[%s19226_s14 + $0x650] sm:$0xff] }
 0xb17   :  { %v8862_v44 = vld [vmem:[%s19226_s14 + $0x360] sm:$0xff]  ;;  %v8957_v32 = vld [vmem:[%s19226_s14 + $0x658] sm:$0xff]  ;;  %v8975_v62 = vld [vmem:[%s19226_s14 + $0x6e8] sm:$0xff] }
 0xb18   :  { %v8974_v30 = vld [vmem:[%s19226_s14 + $0x6e0] sm:$0xff] }
 0xb19   :  { %10993 = vmatpush3.bf16.msra.mxu1 %v10992_v29  ;;  %11085 = vmatpush3.bf16.msra.mxu0 %v11084_v47  ;;  %v8966_v29 = vld [vmem:[%s19226_s14 + $0x6a0] sm:$0xff] }
 0xb1a   :  { %10995 = vmatprep.subr.bf16.mxu1 %v10994_v26  ;;  %11087 = vmatprep.subr.bf16.mxu0 %v11086_v35  ;;  %v8856_v26 = vld [vmem:[%s19226_s14 + $0x330] sm:$0xff]  ;;  %v8874_v35 = vld [vmem:[%s19226_s14 + $0x3c0] sm:$0xff]  ;;  %v11138_v33 = vpack.c.bf16 %v8967_v54, %v8966_v29  ;;  %v8977_v54 = vld [vmem:[%s19226_s14 + $0x6f8] sm:$0xff] }
 0xb1b   :  { %v11048_v60 = vpack.c.bf16 %v8857_v7, %v8856_v26  ;;  %v8976_v29 = vld [vmem:[%s19226_s14 + $0x6f0] sm:$0xff]  ;;  %v8914_v26 = vld [vmem:[%s19226_s14 + $0x500] sm:$0xff]  ;;  %v8915_v7 = vld [vmem:[%s19226_s14 + $0x508] sm:$0xff] }
 0xb1d   :  { %10997 = vmatpush3.bf16.msra.mxu1 %v10996_v3  ;;  %11089 = vmatpush3.bf16.msra.mxu0 %v11088_v20  ;;  %v8969_v3 = vld [vmem:[%s19226_s14 + $0x6b8] sm:$0xff]  ;;  %v8858_v20 = vld [vmem:[%s19226_s14 + $0x340] sm:$0xff] }
 0xb1e   :  { %10999 = vmatprep.subr.bf16.mxu1 %v10998_v15  ;;  %11091 = vmatprep.subr.bf16.mxu0 %v11090_v61  ;;  %v8876_v15 = vld [vmem:[%s19226_s14 + $0x3d0] sm:$0xff]  ;;  %v8877_v61 = vld [vmem:[%s19226_s14 + $0x3d8] sm:$0xff]  ;;  %v11142_v4 = vpack.c.bf16 %v8969_v3, %v8968_v63  ;;  %v11100_v63 = vpack.c.bf16 %v8915_v7, %v8914_v26 }
 0xb21   :  { %11001 = vmatpush3.bf16.msra.mxu1 %v11000_v16  ;;  %11093 = vmatpush3.bf16.msra.mxu0 %v11092_v8  ;;  %v11054_v8 = vpack.c.bf16 %v8877_v61, %v8876_v15  ;;  %v8935_v15 = vld [vmem:[%s19226_s14 + $0x5a8] sm:$0xff] }
 0xb22   :  { %11035 = vmatprep.subr.bf16.mxu1 %v11034_v12  ;;  %11095 = vmatprep.subr.bf16.mxu0 %v11094_v18  ;;  %v8860_v12 = vld [vmem:[%s19226_s14 + $0x350] sm:$0xff]  ;;  %v8879_v18 = vld [vmem:[%s19226_s14 + $0x3e8] sm:$0xff] }
 0xb24   :  { %7633 = vmatmul.mubr.f32.vlgmr.msra.gmra.mrb[118].mxu1 %v18705_v24  ;;  %v8855_v24 = vld [vmem:[%s19226_s14 + $0x328] sm:$0xff] }
 0xb25   :  { %11037 = vmatpush3.bf16.msra.mxu1 %v11036_v51  ;;  %7839 = vmatprep.mubr.f32.mxu1 %v18784_v19  ;;  %v8873_v19 = vld [vmem:[%s19226_s14 + $0x3b8] sm:$0xff]  ;;  %v11044_v21 = vpack.c.bf16 %v8855_v24, %v8854_v40  ;;  %v11056_v51 = vpack.c.bf16 %v8861_v27, %v8860_v12  ;;  %v8864_v40 = vld [vmem:[%s19226_s14 + $0x370] sm:$0xff]  ;;  %v8939_v12 = vld [vmem:[%s19226_s14 + $0x5c8] sm:$0xff] }
 0xb26   :  { %11039 = vmatprep.subr.bf16.mxu1 %v11038_v42  ;;  %11097 = vmatpush3.bf16.msra.mxu0 %v11096_v10  ;;  %v11046_v47 = vpack.c.bf16 %v8873_v19, %v8872_v5  ;;  %v11058_v42 = vpack.c.bf16 %v8879_v18, %v8878_v1  ;;  %v11148_v10 = vpack.c.bf16 %v8955_v37, %v8954_v41  ;;  %v8865_v24 = vld [vmem:[%s19226_s14 + $0x378] sm:$0xff]  ;;  %v8930_v5 = vld [vmem:[%s19226_s14 + $0x580] sm:$0xff]  ;;  %v8931_v19 = vld [vmem:[%s19226_s14 + $0x588] sm:$0xff] }
 0xb27   :  { %11131 = vmatprep.subr.bf16.mxu0 %v11130_v52  ;;  %v11150_v52 = vpack.c.bf16 %v8973_v17, %v8972_v14  ;;  %v8922_v1 = vld [vmem:[%s19226_s14 + $0x540] sm:$0xff]  ;;  %v8940_v18 = vld [vmem:[%s19226_s14 + $0x5d0] sm:$0xff]  ;;  %v8925_v17 = vld [vmem:[%s19226_s14 + $0x558] sm:$0xff] }
 0xb28   :  { %v8924_v14 = vld [vmem:[%s19226_s14 + $0x550] sm:$0xff] }
 0xb29   :  { %11041 = vmatpush3.bf16.msra.mxu1 %v11040_v38  ;;  %7944 = vmatmul.mubr.f32.vlgmr.msra.gmra.mrb[132].mxu0 %v18801_v6  ;;  %v8875_v6 = vld [vmem:[%s19226_s14 + $0x3c8] sm:$0xff]  ;;  %v11060_v38 = vpack.c.bf16 %v8863_v39, %v8862_v44  ;;  %v11120_v44 = vpack.c.bf16 %v8925_v17, %v8924_v14 }
 0xb2a   :  { %11043 = vmatprep.subr.bf16.mxu1 %v11042_v23  ;;  %11133 = vmatpush3.bf16.msra.mxu0 %v11132_v49  ;;  %v11050_v13 = vpack.c.bf16 %v8875_v6, %v8874_v35  ;;  %v11062_v23 = vpack.c.bf16 %v8881_v53, %v8880_v56  ;;  %v11152_v49 = vpack.c.bf16 %v8957_v32, %v8956_v2  ;;  %v8932_v35 = vld [vmem:[%s19226_s14 + $0x590] sm:$0xff]  ;;  %v8933_v6 = vld [vmem:[%s19226_s14 + $0x598] sm:$0xff]  ;;  %v8926_v56 = vld [vmem:[%s19226_s14 + $0x560] sm:$0xff] }
 0xb2b   :  { %11135 = vmatprep.subr.bf16.mxu0 %v11134_v9  ;;  %8151 = vmatprep.mubr.f32.mxu0 %v18866_v31  ;;  %v8859_v31 = vld [vmem:[%s19226_s14 + $0x348] sm:$0xff]  ;;  %v11154_v9 = vpack.c.bf16 %v8975_v62, %v8974_v30  ;;  %v11102_v3 = vpack.c.bf16 %v8933_v6, %v8932_v35  ;;  %v8944_v53 = vld [vmem:[%s19226_s14 + $0x5f0] sm:$0xff]  ;;  %v8929_v62 = vld [vmem:[%s19226_s14 + $0x578] sm:$0xff] }
 0xb2c   :  { %v11052_v16 = vpack.c.bf16 %v8859_v31, %v8858_v20  ;;  %v11160_v20 = vpack.c.bf16 %v8961_v43, %v8960_v59  ;;  %v8934_v31 = vld [vmem:[%s19226_s14 + $0x5a0] sm:$0xff]  ;;  %v8928_v30 = vld [vmem:[%s19226_s14 + $0x570] sm:$0xff] }
 0xb2d   :  { %11045 = vmatpush3.bf16.msra.mxu1 %v11044_v21  ;;  %v11064_v21 = vpack.c.bf16 %v8865_v24, %v8864_v40  ;;  %v11106_v61 = vpack.c.bf16 %v8935_v15, %v8934_v31 }
 0xb2e   :  { %11047 = vmatprep.subr.bf16.mxu1 %v11046_v47  ;;  %11137 = vmatpush3.bf16.msra.mxu0 %v11136_v34  ;;  %v11098_v47 = vpack.c.bf16 %v8931_v19, %v8930_v5  ;;  %v11156_v34 = vpack.c.bf16 %v8959_v46, %v8958_v25 }
 0xb2f   :  { %11139 = vmatprep.subr.bf16.mxu0 %v11138_v33  ;;  %v11158_v33 = vpack.c.bf16 %v8977_v54, %v8976_v29 }
 0xb31   :  { %11049 = vmatpush3.bf16.msra.mxu1 %v11048_v60  ;;  %v8916_v60 = vld [vmem:[%s19226_s14 + $0x510] sm:$0xff] }
 0xb32   :  { %11051 = vmatprep.subr.bf16.mxu1 %v11050_v13  ;;  %11141 = vmatpush3.bf16.msra.mxu0 %v11140_v45  ;;  %v8917_v13 = vld [vmem:[%s19226_s14 + $0x518] sm:$0xff] }
 0xb33   :  { %11143 = vmatprep.subr.bf16.mxu0 %v11142_v4  ;;  %v11104_v45 = vpack.c.bf16 %v8917_v13, %v8916_v60  ;;  %v8918_v4 = vld [vmem:[%s19226_s14 + $0x520] sm:$0xff] }
 0xb35   :  { %11053 = vmatpush3.bf16.msra.mxu1 %v11052_v16  ;;  %v8921_v16 = vld [vmem:[%s19226_s14 + $0x538] sm:$0xff] }
 0xb36   :  { %11055 = vmatprep.subr.bf16.mxu1 %v11054_v8  ;;  %11145 = vmatpush3.bf16.msra.mxu0 %v11144_v55  ;;  %v8938_v8 = vld [vmem:[%s19226_s14 + $0x5c0] sm:$0xff]  ;;  %v8923_v55 = vld [vmem:[%s19226_s14 + $0x548] sm:$0xff] }
 0xb37   :  { %11147 = vmatprep.subr.bf16.mxu0 %v11146_v11  ;;  %v11114_v27 = vpack.c.bf16 %v8939_v12, %v8938_v8  ;;  %v8941_v11 = vld [vmem:[%s19226_s14 + $0x5d8] sm:$0xff]  ;;  %v11116_v41 = vpack.c.bf16 %v8923_v55, %v8922_v1 }
 0xb38   :  { %v11118_v37 = vpack.c.bf16 %v8941_v11, %v8940_v18 }
 0xb39   :  { %11057 = vmatpush3.bf16.msra.mxu1 %v11056_v51  ;;  %v8942_v51 = vld [vmem:[%s19226_s14 + $0x5e0] sm:$0xff] }
 0xb3a   :  { %11059 = vmatprep.subr.bf16.mxu1 %v11058_v42  ;;  %11149 = vmatpush3.bf16.msra.mxu0 %v11148_v10  ;;  %v8943_v42 = vld [vmem:[%s19226_s14 + $0x5e8] sm:$0xff] }
 0xb3b   :  { %11151 = vmatprep.subr.bf16.mxu0 %v11150_v52  ;;  %v11122_v39 = vpack.c.bf16 %v8943_v42, %v8942_v51  ;;  %v8927_v10 = vld [vmem:[%s19226_s14 + $0x568] sm:$0xff]  ;;  %v8945_v52 = vld [vmem:[%s19226_s14 + $0x5f8] sm:$0xff] }
 0xb3c   :  { %v11124_v2 = vpack.c.bf16 %v8927_v10, %v8926_v56  ;;  %v11126_v32 = vpack.c.bf16 %v8945_v52, %v8944_v53 }
 0xb3d   :  { %11061 = vmatpush3.bf16.msra.mxu1 %v11060_v38  ;;  %v11128_v38 = vpack.c.bf16 %v8929_v62, %v8928_v30 }
 0xb3e   :  { %11063 = vmatprep.subr.bf16.mxu1 %v11062_v23  ;;  %11153 = vmatpush3.bf16.msra.mxu0 %v11152_v49 }
 0xb3f   :  { %11155 = vmatprep.subr.bf16.mxu0 %v11154_v9 }
 0xb41   :  { %11065 = vmatpush3.bf16.msra.mxu1 %v11064_v21 }
 0xb42   :  { %11099 = vmatprep.subr.bf16.mxu1 %v11098_v47  ;;  %11157 = vmatpush3.bf16.msra.mxu0 %v11156_v34 }
 0xb43   :  { %11159 = vmatprep.subr.bf16.mxu0 %v11158_v33 }
 0xb44   :  { %7840 = vmatmul.mubr.f32.vlgmr.msra.gmra.mrb[120].mxu1 %v18773_v50  ;;  %v8937_v50 = vld [vmem:[%s19226_s14 + $0x5b8] sm:$0xff] }
 0xb45   :  { %11101 = vmatpush3.bf16.msra.mxu1 %v11100_v63  ;;  %8047 = vmatprep.mubr.f32.mxu1 %v18838_v36  ;;  %v11108_v36 = vpack.c.bf16 %v8919_v22, %v8918_v4  ;;  %v11110_v57 = vpack.c.bf16 %v8937_v50, %v8936_v48 }
 0xb46   :  { %11103 = vmatprep.subr.bf16.mxu1 %v11102_v3  ;;  %11161 = vmatpush3.bf16.msra.mxu0 %v11160_v20  ;;  %v8978_v20 = vld [vmem:[%s19227_s15] ss:$0 sm:$0xff] }
 0xb49   :  { %11105 = vmatpush3.bf16.msra.mxu1 %v11104_v45  ;;  %8152 = vmatmul.mubr.f32.vlgmr.msra.gmra.mrb[134].mxu0 %v18855_v0  ;;  %v11112_v0 = vpack.c.bf16 %v8921_v16, %v8920_v58 }
 0xb4a   :  { %11107 = vmatprep.subr.bf16.mxu1 %v11106_v61 }
 0xb4d   :  { %11109 = vmatpush3.bf16.msra.mxu1 %v11108_v36 }
 0xb4e   :  { %11111 = vmatprep.subr.bf16.mxu1 %v11110_v57 }
 0xb51   :  { %11113 = vmatpush3.bf16.msra.mxu1 %v11112_v0 }
 0xb52   :  { %11115 = vmatprep.subr.bf16.mxu1 %v11114_v27 }
 0xb55   :  { %11117 = vmatpush3.bf16.msra.mxu1 %v11116_v41 }
 0xb56   :  { %11119 = vmatprep.subr.bf16.mxu1 %v11118_v37 }
 0xb59   :  { %11121 = vmatpush3.bf16.msra.mxu1 %v11120_v44 }
 0xb5a   :  { %11123 = vmatprep.subr.bf16.mxu1 %v11122_v39 }
 0xb5d   :  { %11125 = vmatpush3.bf16.msra.mxu1 %v11124_v2 }
 0xb5e   :  { %11127 = vmatprep.subr.bf16.mxu1 %v11126_v32 }
 0xb61   :  { %11129 = vmatpush3.bf16.msra.mxu1 %v11128_v38 }
 0xb64   :  { %8048 = vmatmul.mubr.f32.vlgmr.msra.gmra.mrb[122].mxu1 %v18827_v28 }
 0xbd7   :  { %v9291_v23 = vpop.f32.mrb[116].mxu1 }
 0xbd8   :  { %v9292_v40 = vpop.f32.mrb[117].mxu1 }
 0xbd9   :  { %v9293_v24 = vadd.f32 %v9292_v40, %v9291_v23 }
 0xbdb   :  { %v9361_v5 = vpop.f32.mrb[130].mxu0 }
 0xbdc   :  { %v9362_v49 = vpop.f32.mrb[131].mxu0 }
 0xbdd   :  { %v9363_v19 = vadd.f32 %v9362_v49, %v9361_v5 }
 0xbf7   :  { %v9326_v9 = vpop.f32.mrb[118].mxu1 }
 0xbf8   :  { %v9327_v25 = vpop.f32.mrb[119].mxu1 }
 0xbf9   :  { %v9328_v46 = vadd.f32 %v9327_v25, %v9326_v9 }
 0xbfb   :  { %v7635_v29 = vadd.f32 %v9328_v46, %v9293_v24 }
 0xbfc   :  { %v9431_v54 = vpop.f32.mrb[132].mxu0 }
 0xbfd   :  { %v7741_v21 = vadd.f32 %v9363_v19, %v7635_v29  ;;  %v9432_v47 = vpop.f32.mrb[133].mxu0 }
 0xbfe   :  { %v9433_v26 = vadd.f32 %v9432_v47, %v9431_v54 }
 0xc17   :  { %v9396_v7 = vpop.f32.mrb[120].mxu1 }
 0xc18   :  { %v9397_v35 = vpop.f32.mrb[121].mxu1 }
 0xc19   :  { %v9398_v34 = vadd.f32 %v9397_v35, %v9396_v7 }
 0xc1b   :  { %v7845_v6 = vadd.f32 %v9398_v34, %v7741_v21 }
 0xc1c   :  { %v9501_v33 = vpop.f32.mrb[134].mxu0 }
 0xc1d   :  { %v7949_v28 = vadd.f32 %v9433_v26, %v7845_v6  ;;  %v9502_v59 = vpop.f32.mrb[135].mxu0 }
 0xc1e   :  { %v9503_v43 = vadd.f32 %v9502_v59, %v9501_v33 }
 0xc37   :  { %v9466_v63 = vpop.f32.mrb[122].mxu1 }
 0xc38   :  { %v9467_v3 = vpop.f32.mrb[123].mxu1 }
 0xc39   :  { %v9468_v60 = vadd.f32 %v9467_v3, %v9466_v63 }
 0xc3b   :  { %v8053_v13 = vadd.f32 %v9468_v60, %v7949_v28 }
 0xc3d   :  { %v8157_v31 = vadd.f32 %v9503_v43, %v8053_v13 }
 0xc3f   :  { %v8165_v15 = vadd.f32 %v8978_v20, %v8157_v31 }
 0xc41   :  { %8166 = vst [vmem:[#allocation3] sm:$0xff] %v8165_v15 }
 0xc42   :  { %11532 = shalt.err (!%p11529_p4)
}
 0xc43   :  { %s11533_s24 = scalar_lea.hbm %s19228_s16, 128 }
 0xc44   :  { %p11534_p5 = scmp.ne.s32.totalorder %s19228_s16, %s11533_s24  ;;  %p11537_p6 = scmp.lt.u32.totalorder %s11533_s24, %s19228_s16 }
 0xc46   :  { %p11539_p7 = pnand %p11537_p6, %p11534_p5 }
 0xc48   :  { %11542 = shalt.err (!%p11539_p7)
}
 0xc49   :  { %8176 = dma.vmem_to_hbm [thread:$0]  %s8174_s20, 128, %s19228_s16, [#allocation4]  }
 0xc4a   :  { %11543 = dma.done.wait [#allocation4], 128  }
 0xc4b   :  { %11544 = vsyncadd [#allocation4], 4294967168 }
 0xc4c   :  { %8180 = vsyncpa [#allocation4], 1 }

</bundles_post_ra>
